<compile_context>
chip_gen: v7x
topology: tpu7x:2x2x1
jax: 0.10.0
libtpu: 0.0.40
codegen_flags: <defaults>
</compile_context>

<pallas_src>
import math

import jax
import jax.numpy as jnp
from jax import lax
from jax.experimental import pallas as pl
from jax.experimental.pallas import tpu as pltpu

LOG_STD_MIN, LOG_STD_MAX = -2.0, 2.0
LN_EPS = 1e-5


# ----------------------------- math helpers --------------------------------------
def _silu_k(x):
    # kernel-only: 1/(1+exp(-x)) via the EUP (exp + approx reciprocal), off the VALU.
    return x * pl.reciprocal(1.0 + jnp.exp(-x), approx=True)


def _silu_ref(x):
    return x * (1.0 / (1.0 + jnp.exp(-x)))


def _softplus(x):
    # numerically stable softplus: max(x, 0) + log(1 + exp(-|x|))
    return jnp.maximum(x, 0.0) + jnp.log(1.0 + jnp.exp(-jnp.abs(x)))


def _layernorm(x, g, b):
    mu = jnp.mean(x, axis=-1, keepdims=True)
    var = jnp.mean((x - mu) ** 2, axis=-1, keepdims=True)
    return (x - mu) * lax.rsqrt(var + LN_EPS) * g + b


def _full_spec(a):
    nd = a.ndim
    return pl.BlockSpec(a.shape, lambda g, nd=nd: (0,) * nd)


BLK_ORDER = ("w_in", "b_in", "conv_w", "conv_b", "w_xdt", "b_xdt",
             "a_log", "d_param", "w_out", "b_out", "ln_g", "ln_b")
HEAD_ORDER = ("wp", "bp", "w1m", "w1p", "b1", "ln1g", "ln1b",
              "w2", "b2", "ln2g", "ln2b", "w_head", "b_head")


# ----------------------------- the fused kernel -----------------------------------
def fused_actor_kernel(
    x_ref, port_ref,
    w_emb_ref, b_emb_ref,
    w_in_ref, b_in_ref, conv_w_ref, conv_b_ref,
    w_xdt_ref, b_xdt_ref, a_log_ref, d_ref, w_out_ref, b_out_ref,
    ln_g_ref, ln_b_ref,
    wp_ref, bp_ref, w1m_ref, w1p_ref, b1_ref, ln1g_ref, ln1b_ref,
    w2_ref, b2_ref, ln2g_ref, ln2b_ref, wh_ref, bh_ref,
    o_ref,
):
    Bt, L, _ = x_ref.shape
    n_layers = w_in_ref.shape[0]
    di = d_ref.shape[2]           # d_inner
    ds = a_log_ref.shape[1]       # d_state
    dc = conv_w_ref.shape[1]      # d_conv

    pad_zero = jnp.zeros((dc - 1, di), jnp.float32)   # hoisted out of all loops

    # ---- input embedding (batch folded into the matmul M dimension) ----
    if Bt == 1:
        x_in = x_ref[0]
    else:
        x_in = jnp.concatenate([x_ref[b] for b in range(Bt)], axis=0)   # (Bt*L, F)
    x = jnp.dot(x_in, w_emb_ref[...], preferred_element_type=jnp.float32) + b_emb_ref[...]

    # ---- mamba blocks (statically unrolled over layers) ----
    for l in range(n_layers):
        residual = x

        # fused in_proj: columns [:di] = x-branch, [di:] = gate/res branch
        xr = jnp.dot(x, w_in_ref[l], preferred_element_type=jnp.float32) + b_in_ref[l]
        xs = _silu_k(xr[:, :di])        # (Bt*L, di)
        res = xr[:, di:]                # (Bt*L, di)

        # causal depthwise conv1d: dc shifted full-tile FMAs per batch element.
        conv_w = conv_w_ref[l]          # (dc, di)
        conv_b = conv_b_ref[l]          # (1, di)
        cw_rows = [conv_w[k:k + 1, :] for k in range(dc)]   # hoisted row slices
        xc_parts = []
        for b in range(Bt):
            xb = xs[b * L:(b + 1) * L, :]                    # (L, di)
            xpad = jnp.concatenate([pad_zero, xb], axis=0)   # (L+dc-1, di), zero top rows
            acc = xpad[0:L, :] * cw_rows[0]
            for k in range(1, dc):
                acc = acc + xpad[k:k + L, :] * cw_rows[k]
            xc_parts.append(acc + conv_b)
        xc = xc_parts[0] if Bt == 1 else jnp.concatenate(xc_parts, axis=0)
        xc = _silu_k(xc)                # (Bt*L, di)

        # fused x_proj (B, C) + dt_proj
        proj = jnp.dot(xc, w_xdt_ref[l], preferred_element_type=jnp.float32) + b_xdt_ref[l]
        dt = _softplus(proj[:, 2 * ds:])    # (Bt*L, di)
        dtx = dt * xc                        # (Bt*L, di)
        A_T = -jnp.exp(a_log_ref[l])         # (ds, di), state on sublanes / channel on lanes

        # selective scan, fully unrolled; Adisc_t / Bx_t computed lazily per step
        # (nothing of shape (L, ds, di) is ever materialized).
        y_rows = []
        for b in range(Bt):
            Bcol = proj[b * L:(b + 1) * L, :ds][:, :, None]          # (L, ds, 1)
            Ccol = proj[b * L:(b + 1) * L, ds:2 * ds][:, :, None]    # (L, ds, 1)
            h = jnp.zeros((ds, di), jnp.float32)
            for t in range(L):
                r = b * L + t
                Adisc_t = jnp.exp(A_T * dt[r:r + 1, :])              # (ds, di)
                h = Adisc_t * h + Bcol[t] * dtx[r:r + 1, :]          # (ds, di)
                y_rows.append(jnp.sum(h * Ccol[t], axis=0, keepdims=True))   # (1, di)
        ys = jnp.concatenate(y_rows, axis=0)                         # (Bt*L, di)

        y = (ys + xc * d_ref[l]) * _silu_k(res)
        out = jnp.dot(y, w_out_ref[l], preferred_element_type=jnp.float32) + b_out_ref[l]
        x = _layernorm(out + residual, ln_g_ref[l], ln_b_ref[l])

    # ---- head ----
    mf_parts = [jnp.mean(x[b * L:(b + 1) * L, :], axis=0, keepdims=True) for b in range(Bt)]
    mf = mf_parts[0] if Bt == 1 else jnp.concatenate(mf_parts, axis=0)   # (Bt, H)
    pvec = port_ref[...][:, 0, :]                                        # (Bt, 2)
    # K=2 portfolio projection done on the VPU (no MXU matmul)
    pf = jnp.maximum(
        pvec[:, 0:1] * wp_ref[0:1, :] + pvec[:, 1:2] * wp_ref[1:2, :] + bp_ref[...], 0.0)
    # fusion Linear over concat([mf, pf]) expressed as two dots (no lane concat needed)
    h1 = (jnp.dot(mf, w1m_ref[...], preferred_element_type=jnp.float32)
          + jnp.dot(pf, w1p_ref[...], preferred_element_type=jnp.float32)
          + b1_ref[...])
    h1 = jnp.maximum(_layernorm(h1, ln1g_ref[...], ln1b_ref[...]), 0.0)
    h2 = jnp.dot(h1, w2_ref[...], preferred_element_type=jnp.float32) + b2_ref[...]
    h2 = jnp.maximum(_layernorm(h2, ln2g_ref[...], ln2b_ref[...]), 0.0)
    heads = jnp.dot(h2, wh_ref[...], preferred_element_type=jnp.float32) + bh_ref[...]  # (Bt, 2A)
    a_dim = heads.shape[1] // 2
    col = lax.broadcasted_iota(jnp.int32, heads.shape, 1)
    # clamp only the log_std half; mean half passes through
    o_ref[:, 0, :] = jnp.where(col < a_dim, heads, jnp.clip(heads, LOG_STD_MIN, LOG_STD_MAX))


# ----------------------------- pallas_call wrapper ---------------------------------
def mamba_actor_forward_pallas(market, portfolio, params, batch_tile=None):
    B, L, F = market.shape
    blk = params["blk"]
    head = params["head"]
    a2 = head["w_head"].shape[1]                       # 2 * action_dim

    # One grid step covering the whole batch is best on single-TC v5e/v6e (matmuls at
    # M=B*L, no per-step overhead).  On v7x pass batch_tile=B//2 to use both TCs.
    if batch_tile is None:
        batch_tile = B
    assert B % batch_tile == 0
    port3 = portfolio.reshape(B, 1, -1)

    weights = ([params["w_emb"], params["b_emb"]]
               + [blk[n] for n in BLK_ORDER]
               + [head[n] for n in HEAD_ORDER])

    out = pl.pallas_call(
        fused_actor_kernel,
        out_shape=jax.ShapeDtypeStruct((B, 1, a2), jnp.float32),
        grid_spec=pltpu.PrefetchScalarGridSpec(
            num_scalar_prefetch=0,
            grid=(B // batch_tile,),
            in_specs=[pl.BlockSpec((batch_tile, L, F), lambda g: (g, 0, 0)),
                      pl.BlockSpec((batch_tile, 1, port3.shape[2]), lambda g: (g, 0, 0))]
                     + [_full_spec(w) for w in weights],
            out_specs=pl.BlockSpec((batch_tile, 1, a2), lambda g: (g, 0, 0)),
        ),
        compiler_params=pltpu.CompilerParams(dimension_semantics=("parallel",)),
    )(market, port3, *weights)

    out = out.reshape(B, a2)
    a_dim = a2 // 2
    return out[:, :a_dim], out[:, a_dim:]


# ----------------------------- parameter construction -------------------------------
def _xavier(key, fan_in, fan_out):
    limit = math.sqrt(6.0 / (fan_in + fan_out))
    return jax.random.uniform(key, (fan_in, fan_out), jnp.float32, -limit, limit)


def init_params(key, feature_dim, hidden_dim, action_dim, n_layers, d_state, d_conv):
    di = 2 * hidden_dim
    h4 = hidden_dim // 4
    keys = iter(jax.random.split(key, 8 + 6 * n_layers))

    w_emb = _xavier(next(keys), feature_dim, hidden_dim)
    b_emb = jnp.zeros((1, hidden_dim), jnp.float32)

    cb = 1.0 / math.sqrt(d_conv)  # PyTorch Conv1d default bound (fan_in = 1 * d_conv)
    w_in_l, cw_l, cbias_l, w_xdt_l, w_out_l = [], [], [], [], []
    for _ in range(n_layers):
        w_in_l.append(_xavier(next(keys), hidden_dim, 2 * di))
        cw_l.append(jax.random.uniform(next(keys), (d_conv, di), jnp.float32, -cb, cb))
        cbias_l.append(jax.random.uniform(next(keys), (1, di), jnp.float32, -cb, cb))
        w_xp = _xavier(next(keys), di, 2 * d_state)          # x_proj (B | C)
        w_dt = _xavier(next(keys), di, di)                   # dt_proj
        w_xdt_l.append(jnp.concatenate([w_xp, w_dt], axis=1))
        w_out_l.append(_xavier(next(keys), di, hidden_dim))

    blk = {
        "w_in": jnp.stack(w_in_l),                                        # (NL, H, 2di)
        "b_in": jnp.zeros((n_layers, 1, 2 * di), jnp.float32),
        "conv_w": jnp.stack(cw_l),                                        # (NL, dc, di)
        "conv_b": jnp.stack(cbias_l),                                     # (NL, 1, di)
        "w_xdt": jnp.stack(w_xdt_l),                                      # (NL, di, 2ds+di)
        "b_xdt": jnp.zeros((n_layers, 1, 2 * d_state + di), jnp.float32),
        # stored transposed (d_state, d_inner): a_log[l, s, c] = log(s+1)
        "a_log": jnp.tile(
            jnp.log(jnp.arange(1, d_state + 1, dtype=jnp.float32))[None, :, None],
            (n_layers, 1, di)),
        "d_param": jnp.ones((n_layers, 1, di), jnp.float32),
        "w_out": jnp.stack(w_out_l),                                      # (NL, di, H)
        "b_out": jnp.zeros((n_layers, 1, hidden_dim), jnp.float32),
        "ln_g": jnp.ones((n_layers, 1, hidden_dim), jnp.float32),
        "ln_b": jnp.zeros((n_layers, 1, hidden_dim), jnp.float32),
    }

    w1 = _xavier(next(keys), hidden_dim + h4, hidden_dim)
    head = {
        "wp": _xavier(next(keys), 2, h4),
        "bp": jnp.zeros((1, h4), jnp.float32),
        "w1m": w1[:hidden_dim, :],
        "w1p": w1[hidden_dim:, :],
        "b1": jnp.zeros((1, hidden_dim), jnp.float32),
        "ln1g": jnp.ones((1, hidden_dim), jnp.float32),
        "ln1b": jnp.zeros((1, hidden_dim), jnp.float32),
        "w2": _xavier(next(keys), hidden_dim, hidden_dim),
        "b2": jnp.zeros((1, hidden_dim), jnp.float32),
        "ln2g": jnp.ones((1, hidden_dim), jnp.float32),
        "ln2b": jnp.zeros((1, hidden_dim), jnp.float32),
        # mean | log_std heads fused into one (H, 2A) matrix
        "w_head": jnp.concatenate(
            [_xavier(next(keys), hidden_dim, action_dim),
             _xavier(next(keys), hidden_dim, action_dim)], axis=1),
        "b_head": jnp.zeros((1, 2 * action_dim), jnp.float32),
    }
    return {"w_emb": w_emb, "b_emb": b_emb, "blk": blk, "head": head}


# ----------------------------- pure-JAX reference (for validation) ------------------
def mamba_actor_forward_ref(market, portfolio, params):
    x = market @ params["w_emb"] + params["b_emb"]
    blk = params["blk"]
    n_layers = blk["w_in"].shape[0]
    di = blk["d_param"].shape[2]
    ds = blk["a_log"].shape[1]
    dc = blk["conv_w"].shape[1]
    B, L, _ = x.shape

    for l in range(n_layers):
        residual = x
        xr = x @ blk["w_in"][l] + blk["b_in"][l]
        xs = _silu_ref(xr[..., :di])
        res = xr[..., di:]
        xpad = jnp.pad(xs, ((0, 0), (dc - 1, 0), (0, 0)))
        xc = blk["conv_b"][l][None]
        for k in range(dc):
            xc = xc + xpad[:, k:k + L, :] * blk["conv_w"][l, k][None, None, :]
        xc = _silu_ref(xc)
        proj = xc @ blk["w_xdt"][l] + blk["b_xdt"][l]
        Bm = proj[..., :ds]
        Cm = proj[..., ds:2 * ds]
        dt = _softplus(proj[..., 2 * ds:])
        A = -jnp.exp(blk["a_log"][l]).T                       # (di, ds)
        A_disc = jnp.exp(A[None, None] * dt[..., None])       # (B, L, di, ds)
        Bx = (dt * xc)[..., None] * Bm[:, :, None, :]         # (B, L, di, ds)
        h = jnp.zeros((B, di, ds), jnp.float32)
        ys = []
        for t in range(L):
            h = A_disc[:, t] * h + Bx[:, t]
            ys.append(jnp.sum(h * Cm[:, t][:, None, :], axis=-1))
        y = jnp.stack(ys, axis=1) + xc * blk["d_param"][l]
        y = y * _silu_ref(res)
        out = y @ blk["w_out"][l] + blk["b_out"][l]
        x = _layernorm(out + residual, blk["ln_g"][l], blk["ln_b"][l])

    hp = params["head"]
    mf = jnp.mean(x, axis=1)
    pf = jnp.maximum(portfolio @ hp["wp"] + hp["bp"], 0.0)
    h1 = mf @ hp["w1m"] + pf @ hp["w1p"] + hp["b1"]
    h1 = jnp.maximum(_layernorm(h1, hp["ln1g"], hp["ln1b"]), 0.0)
    h2 = jnp.maximum(_layernorm(h1 @ hp["w2"] + hp["b2"], hp["ln2g"], hp["ln2b"]), 0.0)
    heads = h2 @ hp["w_head"] + hp["b_head"]
    a_dim = heads.shape[1] // 2
    mean = heads[:, :a_dim]
    log_std = jnp.clip(heads[:, a_dim:], LOG_STD_MIN, LOG_STD_MAX)
    return mean, log_std


# ----------------------------- main --------------------------------------------------
if __name__ == "__main__":
    B, L, F = 2, 8, 8          # batch, window_size, feature_dim
    H, ACTION_DIM = 32, 1      # hidden_dim, action_dim
    N_LAYERS, D_STATE, D_CONV = 4, 16, 4

    key = jax.random.PRNGKey(0)
    kp, kx, kport = jax.random.split(key, 3)
    params = init_params(kp, F, H, ACTION_DIM, N_LAYERS, D_STATE, D_CONV)

    market = jax.random.normal(kx, (B, L, F), jnp.float32)
    portfolio = jax.random.normal(kport, (B, 2), jnp.float32)

    mean, log_std = mamba_actor_forward_pallas(market, portfolio, params)
    jax.block_until_ready((mean, log_std))

    mean_ref, log_std_ref = mamba_actor_forward_ref(market, portfolio, params)
    # tolerance relaxed slightly because silu uses the EUP approximate reciprocal
    assert bool(jnp.allclose(mean, mean_ref, atol=3e-3, rtol=3e-3)), (mean, mean_ref)
    assert bool(jnp.allclose(log_std, log_std_ref, atol=3e-3, rtol=3e-3)), (log_std, log_std_ref)

    print("KERNEL_OK")
</pallas_src>

<mosaic_0001>
module attributes {stable_mosaic.version = 11 : i64} {
  func.func @fused_actor_kernel(%arg0: i32, %arg1: memref<2x8x8xf32, #tpu.memory_space<vmem>>, %arg2: memref<2x1x2xf32, #tpu.memory_space<vmem>>, %arg3: memref<8x32xf32, #tpu.memory_space<vmem>>, %arg4: memref<1x32xf32, #tpu.memory_space<vmem>>, %arg5: memref<4x32x128xf32, #tpu.memory_space<vmem>>, %arg6: memref<4x1x128xf32, #tpu.memory_space<vmem>>, %arg7: memref<4x4x64xf32, #tpu.memory_space<vmem>>, %arg8: memref<4x1x64xf32, #tpu.memory_space<vmem>>, %arg9: memref<4x64x96xf32, #tpu.memory_space<vmem>>, %arg10: memref<4x1x96xf32, #tpu.memory_space<vmem>>, %arg11: memref<4x16x64xf32, #tpu.memory_space<vmem>>, %arg12: memref<4x1x64xf32, #tpu.memory_space<vmem>>, %arg13: memref<4x64x32xf32, #tpu.memory_space<vmem>>, %arg14: memref<4x1x32xf32, #tpu.memory_space<vmem>>, %arg15: memref<4x1x32xf32, #tpu.memory_space<vmem>>, %arg16: memref<4x1x32xf32, #tpu.memory_space<vmem>>, %arg17: memref<2x8xf32, #tpu.memory_space<vmem>>, %arg18: memref<1x8xf32, #tpu.memory_space<vmem>>, %arg19: memref<32x32xf32, #tpu.memory_space<vmem>>, %arg20: memref<8x32xf32, #tpu.memory_space<vmem>>, %arg21: memref<1x32xf32, #tpu.memory_space<vmem>>, %arg22: memref<1x32xf32, #tpu.memory_space<vmem>>, %arg23: memref<1x32xf32, #tpu.memory_space<vmem>>, %arg24: memref<32x32xf32, #tpu.memory_space<vmem>>, %arg25: memref<1x32xf32, #tpu.memory_space<vmem>>, %arg26: memref<1x32xf32, #tpu.memory_space<vmem>>, %arg27: memref<1x32xf32, #tpu.memory_space<vmem>>, %arg28: memref<32x2xf32, #tpu.memory_space<vmem>>, %arg29: memref<1x2xf32, #tpu.memory_space<vmem>>, %arg30: memref<2x1x2xf32, #tpu.memory_space<vmem>>) attributes {dimension_semantics = [#tpu.dimension_semantics<parallel>], iteration_bounds = array<i64: 1>, scalar_prefetch = 0 : i64, scratch_operands = 0 : i64, tpu.core_type = #tpu.core_type<tc>, window_params = [{transform_indices = @transform_0, window_bounds = array<i64: 2, 8, 8>}, {transform_indices = @transform_1, window_bounds = array<i64: 2, 1, 2>}, {pipeline_mode = #tpu.pipeline_mode<synchronous>, transform_indices = @transform_2, window_bounds = array<i64: 8, 32>}, {pipeline_mode = #tpu.pipeline_mode<synchronous>, transform_indices = @transform_3, window_bounds = array<i64: 1, 32>}, {pipeline_mode = #tpu.pipeline_mode<synchronous>, transform_indices = @transform_4, window_bounds = array<i64: 4, 32, 128>}, {pipeline_mode = #tpu.pipeline_mode<synchronous>, transform_indices = @transform_5, window_bounds = array<i64: 4, 1, 128>}, {pipeline_mode = #tpu.pipeline_mode<synchronous>, transform_indices = @transform_6, window_bounds = array<i64: 4, 4, 64>}, {pipeline_mode = #tpu.pipeline_mode<synchronous>, transform_indices = @transform_7, window_bounds = array<i64: 4, 1, 64>}, {pipeline_mode = #tpu.pipeline_mode<synchronous>, transform_indices = @transform_8, window_bounds = array<i64: 4, 64, 96>}, {pipeline_mode = #tpu.pipeline_mode<synchronous>, transform_indices = @transform_9, window_bounds = array<i64: 4, 1, 96>}, {pipeline_mode = #tpu.pipeline_mode<synchronous>, transform_indices = @transform_10, window_bounds = array<i64: 4, 16, 64>}, {pipeline_mode = #tpu.pipeline_mode<synchronous>, transform_indices = @transform_11, window_bounds = array<i64: 4, 1, 64>}, {pipeline_mode = #tpu.pipeline_mode<synchronous>, transform_indices = @transform_12, window_bounds = array<i64: 4, 64, 32>}, {pipeline_mode = #tpu.pipeline_mode<synchronous>, transform_indices = @transform_13, window_bounds = array<i64: 4, 1, 32>}, {pipeline_mode = #tpu.pipeline_mode<synchronous>, transform_indices = @transform_14, window_bounds = array<i64: 4, 1, 32>}, {pipeline_mode = #tpu.pipeline_mode<synchronous>, transform_indices = @transform_15, window_bounds = array<i64: 4, 1, 32>}, {pipeline_mode = #tpu.pipeline_mode<synchronous>, transform_indices = @transform_16, window_bounds = array<i64: 2, 8>}, {pipeline_mode = #tpu.pipeline_mode<synchronous>, transform_indices = @transform_17, window_bounds = array<i64: 1, 8>}, {pipeline_mode = #tpu.pipeline_mode<synchronous>, transform_indices = @transform_18, window_bounds = array<i64: 32, 32>}, {pipeline_mode = #tpu.pipeline_mode<synchronous>, transform_indices = @transform_19, window_bounds = array<i64: 8, 32>}, {pipeline_mode = #tpu.pipeline_mode<synchronous>, transform_indices = @transform_20, window_bounds = array<i64: 1, 32>}, {pipeline_mode = #tpu.pipeline_mode<synchronous>, transform_indices = @transform_21, window_bounds = array<i64: 1, 32>}, {pipeline_mode = #tpu.pipeline_mode<synchronous>, transform_indices = @transform_22, window_bounds = array<i64: 1, 32>}, {pipeline_mode = #tpu.pipeline_mode<synchronous>, transform_indices = @transform_23, window_bounds = array<i64: 32, 32>}, {pipeline_mode = #tpu.pipeline_mode<synchronous>, transform_indices = @transform_24, window_bounds = array<i64: 1, 32>}, {pipeline_mode = #tpu.pipeline_mode<synchronous>, transform_indices = @transform_25, window_bounds = array<i64: 1, 32>}, {pipeline_mode = #tpu.pipeline_mode<synchronous>, transform_indices = @transform_26, window_bounds = array<i64: 1, 32>}, {pipeline_mode = #tpu.pipeline_mode<synchronous>, transform_indices = @transform_27, window_bounds = array<i64: 32, 2>}, {pipeline_mode = #tpu.pipeline_mode<synchronous>, transform_indices = @transform_28, window_bounds = array<i64: 1, 2>}, {transform_indices = @transform_29, window_bounds = array<i64: 2, 1, 2>}]} {
    %cst = arith.constant 0.000000e+00 : f32
    %0 = vector.broadcast %cst : f32 to vector<3x64xf32>
    %c0 = arith.constant 0 : index
    %c0_0 = arith.constant 0 : index
    %c0_1 = arith.constant 0 : index
    %1 = vector.load %arg1[%c0, %c0_0, %c0_1] : memref<2x8x8xf32, #tpu.memory_space<vmem>>, vector<1x8x8xf32>
    %2 = vector.shape_cast %1 : vector<1x8x8xf32> to vector<8x8xf32>
    %c1 = arith.constant 1 : index
    %c0_2 = arith.constant 0 : index
    %c0_3 = arith.constant 0 : index
    %3 = vector.load %arg1[%c1, %c0_2, %c0_3] : memref<2x8x8xf32, #tpu.memory_space<vmem>>, vector<1x8x8xf32>
    %4 = vector.shape_cast %3 : vector<1x8x8xf32> to vector<8x8xf32>
    %5 = tpu.concatenate %2, %4 in 0 : vector<8x8xf32>, vector<8x8xf32> -> vector<16x8xf32>
    %c0_4 = arith.constant 0 : index
    %c0_5 = arith.constant 0 : index
    %6 = vector.load %arg3[%c0_4, %c0_5] : memref<8x32xf32, #tpu.memory_space<vmem>>, vector<8x32xf32>
    %cst_6 = arith.constant dense<0.000000e+00> : vector<16x32xf32>
    %7 = tpu.matmul %5, %6, %cst_6 {dimension_numbers = #tpu.dot_dimension_numbers<[1], [0], [0], [1], [0, 0, 1, 1], [], []>} : vector<16x8xf32>, vector<8x32xf32>, vector<16x32xf32> -> vector<16x32xf32>
    %c0_7 = arith.constant 0 : index
    %c0_8 = arith.constant 0 : index
    %8 = vector.load %arg4[%c0_7, %c0_8] : memref<1x32xf32, #tpu.memory_space<vmem>>, vector<1x32xf32>
    %9 = vector.broadcast %8 : vector<1x32xf32> to vector<16x32xf32>
    %10 = arith.addf %7, %9 : vector<16x32xf32>
    %c0_9 = arith.constant 0 : index
    %c0_10 = arith.constant 0 : index
    %c0_11 = arith.constant 0 : index
    %11 = vector.load %arg5[%c0_9, %c0_10, %c0_11] : memref<4x32x128xf32, #tpu.memory_space<vmem>>, vector<1x32x128xf32>
    %12 = vector.shape_cast %11 : vector<1x32x128xf32> to vector<32x128xf32>
    %cst_12 = arith.constant dense<0.000000e+00> : vector<16x128xf32>
    %13 = tpu.matmul %10, %12, %cst_12 {dimension_numbers = #tpu.dot_dimension_numbers<[1], [0], [0], [1], [0, 0, 1, 1], [], []>} : vector<16x32xf32>, vector<32x128xf32>, vector<16x128xf32> -> vector<16x128xf32>
    %c0_13 = arith.constant 0 : index
    %c0_14 = arith.constant 0 : index
    %c0_15 = arith.constant 0 : index
    %14 = vector.load %arg6[%c0_13, %c0_14, %c0_15] : memref<4x1x128xf32, #tpu.memory_space<vmem>>, vector<1x1x128xf32>
    %15 = vector.shape_cast %14 : vector<1x1x128xf32> to vector<1x128xf32>
    %16 = vector.broadcast %15 : vector<1x128xf32> to vector<16x128xf32>
    %17 = arith.addf %13, %16 : vector<16x128xf32>
    %18 = vector.extract_strided_slice %17 {offsets = [0, 0], sizes = [16, 64], strides = [1, 1]} : vector<16x128xf32> to vector<16x64xf32>
    %cst_16 = arith.constant 0.000000e+00 : f32
    %19 = vector.broadcast %cst_16 : f32 to vector<16x64xf32>
    %20 = arith.subf %19, %18 : vector<16x64xf32>
    %21 = math.exp %20 : vector<16x64xf32>
    %cst_17 = arith.constant 1.000000e+00 : f32
    %22 = vector.broadcast %cst_17 : f32 to vector<16x64xf32>
    %23 = arith.addf %22, %21 : vector<16x64xf32>
    %24 = tpu.reciprocal %23 {approx = true} : vector<16x64xf32> -> vector<16x64xf32>
    %25 = arith.mulf %18, %24 : vector<16x64xf32>
    %26 = vector.extract_strided_slice %17 {offsets = [0, 64], sizes = [16, 64], strides = [1, 1]} : vector<16x128xf32> to vector<16x64xf32>
    %c0_18 = arith.constant 0 : index
    %c0_19 = arith.constant 0 : index
    %c0_20 = arith.constant 0 : index
    %27 = vector.load %arg7[%c0_18, %c0_19, %c0_20] : memref<4x4x64xf32, #tpu.memory_space<vmem>>, vector<1x4x64xf32>
    %28 = vector.shape_cast %27 : vector<1x4x64xf32> to vector<4x64xf32>
    %c0_21 = arith.constant 0 : index
    %c0_22 = arith.constant 0 : index
    %c0_23 = arith.constant 0 : index
    %29 = vector.load %arg8[%c0_21, %c0_22, %c0_23] : memref<4x1x64xf32, #tpu.memory_space<vmem>>, vector<1x1x64xf32>
    %30 = vector.shape_cast %29 : vector<1x1x64xf32> to vector<1x64xf32>
    %31 = vector.extract_strided_slice %28 {offsets = [0, 0], sizes = [1, 64], strides = [1, 1]} : vector<4x64xf32> to vector<1x64xf32>
    %32 = vector.extract_strided_slice %28 {offsets = [1, 0], sizes = [1, 64], strides = [1, 1]} : vector<4x64xf32> to vector<1x64xf32>
    %33 = vector.extract_strided_slice %28 {offsets = [2, 0], sizes = [1, 64], strides = [1, 1]} : vector<4x64xf32> to vector<1x64xf32>
    %34 = vector.extract_strided_slice %28 {offsets = [3, 0], sizes = [1, 64], strides = [1, 1]} : vector<4x64xf32> to vector<1x64xf32>
    %35 = vector.extract_strided_slice %25 {offsets = [0, 0], sizes = [8, 64], strides = [1, 1]} : vector<16x64xf32> to vector<8x64xf32>
    %36 = tpu.concatenate %0, %35 in 0 : vector<3x64xf32>, vector<8x64xf32> -> vector<11x64xf32>
    %37 = vector.extract_strided_slice %36 {offsets = [0, 0], sizes = [8, 64], strides = [1, 1]} : vector<11x64xf32> to vector<8x64xf32>
    %38 = vector.broadcast %31 : vector<1x64xf32> to vector<8x64xf32>
    %39 = arith.mulf %37, %38 : vector<8x64xf32>
    %40 = vector.extract_strided_slice %36 {offsets = [1, 0], sizes = [8, 64], strides = [1, 1]} : vector<11x64xf32> to vector<8x64xf32>
    %41 = vector.broadcast %32 : vector<1x64xf32> to vector<8x64xf32>
    %42 = arith.mulf %40, %41 : vector<8x64xf32>
    %43 = arith.addf %39, %42 : vector<8x64xf32>
    %44 = vector.extract_strided_slice %36 {offsets = [2, 0], sizes = [8, 64], strides = [1, 1]} : vector<11x64xf32> to vector<8x64xf32>
    %45 = vector.broadcast %33 : vector<1x64xf32> to vector<8x64xf32>
    %46 = arith.mulf %44, %45 : vector<8x64xf32>
    %47 = arith.addf %43, %46 : vector<8x64xf32>
    %48 = vector.extract_strided_slice %36 {offsets = [3, 0], sizes = [8, 64], strides = [1, 1]} : vector<11x64xf32> to vector<8x64xf32>
    %49 = vector.broadcast %34 : vector<1x64xf32> to vector<8x64xf32>
    %50 = arith.mulf %48, %49 : vector<8x64xf32>
    %51 = arith.addf %47, %50 : vector<8x64xf32>
    %52 = vector.broadcast %30 : vector<1x64xf32> to vector<8x64xf32>
    %53 = arith.addf %51, %52 : vector<8x64xf32>
    %54 = vector.extract_strided_slice %25 {offsets = [8, 0], sizes = [8, 64], strides = [1, 1]} : vector<16x64xf32> to vector<8x64xf32>
    %55 = tpu.concatenate %0, %54 in 0 : vector<3x64xf32>, vector<8x64xf32> -> vector<11x64xf32>
    %56 = vector.extract_strided_slice %55 {offsets = [0, 0], sizes = [8, 64], strides = [1, 1]} : vector<11x64xf32> to vector<8x64xf32>
    %57 = vector.broadcast %31 : vector<1x64xf32> to vector<8x64xf32>
    %58 = arith.mulf %56, %57 : vector<8x64xf32>
    %59 = vector.extract_strided_slice %55 {offsets = [1, 0], sizes = [8, 64], strides = [1, 1]} : vector<11x64xf32> to vector<8x64xf32>
    %60 = vector.broadcast %32 : vector<1x64xf32> to vector<8x64xf32>
    %61 = arith.mulf %59, %60 : vector<8x64xf32>
    %62 = arith.addf %58, %61 : vector<8x64xf32>
    %63 = vector.extract_strided_slice %55 {offsets = [2, 0], sizes = [8, 64], strides = [1, 1]} : vector<11x64xf32> to vector<8x64xf32>
    %64 = vector.broadcast %33 : vector<1x64xf32> to vector<8x64xf32>
    %65 = arith.mulf %63, %64 : vector<8x64xf32>
    %66 = arith.addf %62, %65 : vector<8x64xf32>
    %67 = vector.extract_strided_slice %55 {offsets = [3, 0], sizes = [8, 64], strides = [1, 1]} : vector<11x64xf32> to vector<8x64xf32>
    %68 = vector.broadcast %34 : vector<1x64xf32> to vector<8x64xf32>
    %69 = arith.mulf %67, %68 : vector<8x64xf32>
    %70 = arith.addf %66, %69 : vector<8x64xf32>
    %71 = vector.broadcast %30 : vector<1x64xf32> to vector<8x64xf32>
    %72 = arith.addf %70, %71 : vector<8x64xf32>
    %73 = tpu.concatenate %53, %72 in 0 : vector<8x64xf32>, vector<8x64xf32> -> vector<16x64xf32>
    %cst_24 = arith.constant 0.000000e+00 : f32
    %74 = vector.broadcast %cst_24 : f32 to vector<16x64xf32>
    %75 = arith.subf %74, %73 : vector<16x64xf32>
    %76 = math.exp %75 : vector<16x64xf32>
    %cst_25 = arith.constant 1.000000e+00 : f32
    %77 = vector.broadcast %cst_25 : f32 to vector<16x64xf32>
    %78 = arith.addf %77, %76 : vector<16x64xf32>
    %79 = tpu.reciprocal %78 {approx = true} : vector<16x64xf32> -> vector<16x64xf32>
    %80 = arith.mulf %73, %79 : vector<16x64xf32>
    %c0_26 = arith.constant 0 : index
    %c0_27 = arith.constant 0 : index
    %c0_28 = arith.constant 0 : index
    %81 = vector.load %arg9[%c0_26, %c0_27, %c0_28] : memref<4x64x96xf32, #tpu.memory_space<vmem>>, vector<1x64x96xf32>
    %82 = vector.shape_cast %81 : vector<1x64x96xf32> to vector<64x96xf32>
    %cst_29 = arith.constant dense<0.000000e+00> : vector<16x96xf32>
    %83 = tpu.matmul %80, %82, %cst_29 {dimension_numbers = #tpu.dot_dimension_numbers<[1], [0], [0], [1], [0, 0, 1, 1], [], []>} : vector<16x64xf32>, vector<64x96xf32>, vector<16x96xf32> -> vector<16x96xf32>
    %c0_30 = arith.constant 0 : index
    %c0_31 = arith.constant 0 : index
    %c0_32 = arith.constant 0 : index
    %84 = vector.load %arg10[%c0_30, %c0_31, %c0_32] : memref<4x1x96xf32, #tpu.memory_space<vmem>>, vector<1x1x96xf32>
    %85 = vector.shape_cast %84 : vector<1x1x96xf32> to vector<1x96xf32>
    %86 = vector.broadcast %85 : vector<1x96xf32> to vector<16x96xf32>
    %87 = arith.addf %83, %86 : vector<16x96xf32>
    %88 = vector.extract_strided_slice %87 {offsets = [0, 32], sizes = [16, 64], strides = [1, 1]} : vector<16x96xf32> to vector<16x64xf32>
    %cst_33 = arith.constant 0.000000e+00 : f32
    %89 = vector.broadcast %cst_33 : f32 to vector<16x64xf32>
    %90 = arith.maximumf %88, %89 : vector<16x64xf32>
    %91 = math.absf %88 : vector<16x64xf32>
    %cst_34 = arith.constant 0.000000e+00 : f32
    %92 = vector.broadcast %cst_34 : f32 to vector<16x64xf32>
    %93 = arith.subf %92, %91 : vector<16x64xf32>
    %94 = math.exp %93 : vector<16x64xf32>
    %cst_35 = arith.constant 1.000000e+00 : f32
    %95 = vector.broadcast %cst_35 : f32 to vector<16x64xf32>
    %96 = arith.addf %95, %94 : vector<16x64xf32>
    %97 = math.log %96 : vector<16x64xf32>
    %98 = arith.addf %90, %97 : vector<16x64xf32>
    %99 = arith.mulf %98, %80 : vector<16x64xf32>
    %c0_36 = arith.constant 0 : index
    %c0_37 = arith.constant 0 : index
    %c0_38 = arith.constant 0 : index
    %100 = vector.load %arg11[%c0_36, %c0_37, %c0_38] : memref<4x16x64xf32, #tpu.memory_space<vmem>>, vector<1x16x64xf32>
    %101 = vector.shape_cast %100 : vector<1x16x64xf32> to vector<16x64xf32>
    %102 = math.exp %101 : vector<16x64xf32>
    %cst_39 = arith.constant 0.000000e+00 : f32
    %103 = vector.broadcast %cst_39 : f32 to vector<16x64xf32>
    %104 = arith.subf %103, %102 : vector<16x64xf32>
    %105 = vector.extract_strided_slice %87 {offsets = [0, 0], sizes = [8, 16], strides = [1, 1]} : vector<16x96xf32> to vector<8x16xf32>
    %106 = vector.shape_cast %105 : vector<8x16xf32> to vector<8x16x1xf32>
    %107 = vector.extract_strided_slice %87 {offsets = [0, 16], sizes = [8, 16], strides = [1, 1]} : vector<16x96xf32> to vector<8x16xf32>
    %108 = vector.shape_cast %107 : vector<8x16xf32> to vector<8x16x1xf32>
    %cst_40 = arith.constant 0.000000e+00 : f32
    %109 = vector.broadcast %cst_40 : f32 to vector<16x64xf32>
    %110 = vector.extract_strided_slice %98 {offsets = [0, 0], sizes = [1, 64], strides = [1, 1]} : vector<16x64xf32> to vector<1x64xf32>
    %111 = vector.broadcast %110 : vector<1x64xf32> to vector<16x64xf32>
    %112 = arith.mulf %104, %111 : vector<16x64xf32>
    %113 = math.exp %112 : vector<16x64xf32>
    %114 = arith.mulf %113, %109 : vector<16x64xf32>
    %115 = vector.extract_strided_slice %106 {offsets = [0, 0, 0], sizes = [1, 16, 1], strides = [1, 1, 1]} : vector<8x16x1xf32> to vector<1x16x1xf32>
    %116 = vector.shape_cast %115 : vector<1x16x1xf32> to vector<16x1xf32>
    %117 = vector.extract_strided_slice %99 {offsets = [0, 0], sizes = [1, 64], strides = [1, 1]} : vector<16x64xf32> to vector<1x64xf32>
    %118 = vector.broadcast %116 : vector<16x1xf32> to vector<16x64xf32>
    %119 = vector.broadcast %117 : vector<1x64xf32> to vector<16x64xf32>
    %120 = arith.mulf %118, %119 : vector<16x64xf32>
    %121 = arith.addf %114, %120 : vector<16x64xf32>
    %122 = vector.extract_strided_slice %108 {offsets = [0, 0, 0], sizes = [1, 16, 1], strides = [1, 1, 1]} : vector<8x16x1xf32> to vector<1x16x1xf32>
    %123 = vector.shape_cast %122 : vector<1x16x1xf32> to vector<16x1xf32>
    %124 = vector.broadcast %123 : vector<16x1xf32> to vector<16x64xf32>
    %125 = arith.mulf %121, %124 : vector<16x64xf32>
    %cst_41 = arith.constant dense<0.000000e+00> : vector<64xf32>
    %126 = vector.multi_reduction <add>, %125, %cst_41 [0] : vector<16x64xf32> to vector<64xf32>
    %127 = vector.shape_cast %126 : vector<64xf32> to vector<1x64xf32>
    %128 = vector.extract_strided_slice %98 {offsets = [1, 0], sizes = [1, 64], strides = [1, 1]} : vector<16x64xf32> to vector<1x64xf32>
    %129 = vector.broadcast %128 : vector<1x64xf32> to vector<16x64xf32>
    %130 = arith.mulf %104, %129 : vector<16x64xf32>
    %131 = math.exp %130 : vector<16x64xf32>
    %132 = arith.mulf %131, %121 : vector<16x64xf32>
    %133 = vector.extract_strided_slice %106 {offsets = [1, 0, 0], sizes = [1, 16, 1], strides = [1, 1, 1]} : vector<8x16x1xf32> to vector<1x16x1xf32>
    %134 = vector.shape_cast %133 : vector<1x16x1xf32> to vector<16x1xf32>
    %135 = vector.extract_strided_slice %99 {offsets = [1, 0], sizes = [1, 64], strides = [1, 1]} : vector<16x64xf32> to vector<1x64xf32>
    %136 = vector.broadcast %134 : vector<16x1xf32> to vector<16x64xf32>
    %137 = vector.broadcast %135 : vector<1x64xf32> to vector<16x64xf32>
    %138 = arith.mulf %136, %137 : vector<16x64xf32>
    %139 = arith.addf %132, %138 : vector<16x64xf32>
    %140 = vector.extract_strided_slice %108 {offsets = [1, 0, 0], sizes = [1, 16, 1], strides = [1, 1, 1]} : vector<8x16x1xf32> to vector<1x16x1xf32>
    %141 = vector.shape_cast %140 : vector<1x16x1xf32> to vector<16x1xf32>
    %142 = vector.broadcast %141 : vector<16x1xf32> to vector<16x64xf32>
    %143 = arith.mulf %139, %142 : vector<16x64xf32>
    %cst_42 = arith.constant dense<0.000000e+00> : vector<64xf32>
    %144 = vector.multi_reduction <add>, %143, %cst_42 [0] : vector<16x64xf32> to vector<64xf32>
    %145 = vector.shape_cast %144 : vector<64xf32> to vector<1x64xf32>
    %146 = vector.extract_strided_slice %98 {offsets = [2, 0], sizes = [1, 64], strides = [1, 1]} : vector<16x64xf32> to vector<1x64xf32>
    %147 = vector.broadcast %146 : vector<1x64xf32> to vector<16x64xf32>
    %148 = arith.mulf %104, %147 : vector<16x64xf32>
    %149 = math.exp %148 : vector<16x64xf32>
    %150 = arith.mulf %149, %139 : vector<16x64xf32>
    %151 = vector.extract_strided_slice %106 {offsets = [2, 0, 0], sizes = [1, 16, 1], strides = [1, 1, 1]} : vector<8x16x1xf32> to vector<1x16x1xf32>
    %152 = vector.shape_cast %151 : vector<1x16x1xf32> to vector<16x1xf32>
    %153 = vector.extract_strided_slice %99 {offsets = [2, 0], sizes = [1, 64], strides = [1, 1]} : vector<16x64xf32> to vector<1x64xf32>
    %154 = vector.broadcast %152 : vector<16x1xf32> to vector<16x64xf32>
    %155 = vector.broadcast %153 : vector<1x64xf32> to vector<16x64xf32>
    %156 = arith.mulf %154, %155 : vector<16x64xf32>
    %157 = arith.addf %150, %156 : vector<16x64xf32>
    %158 = vector.extract_strided_slice %108 {offsets = [2, 0, 0], sizes = [1, 16, 1], strides = [1, 1, 1]} : vector<8x16x1xf32> to vector<1x16x1xf32>
    %159 = vector.shape_cast %158 : vector<1x16x1xf32> to vector<16x1xf32>
    %160 = vector.broadcast %159 : vector<16x1xf32> to vector<16x64xf32>
    %161 = arith.mulf %157, %160 : vector<16x64xf32>
    %cst_43 = arith.constant dense<0.000000e+00> : vector<64xf32>
    %162 = vector.multi_reduction <add>, %161, %cst_43 [0] : vector<16x64xf32> to vector<64xf32>
    %163 = vector.shape_cast %162 : vector<64xf32> to vector<1x64xf32>
    %164 = vector.extract_strided_slice %98 {offsets = [3, 0], sizes = [1, 64], strides = [1, 1]} : vector<16x64xf32> to vector<1x64xf32>
    %165 = vector.broadcast %164 : vector<1x64xf32> to vector<16x64xf32>
    %166 = arith.mulf %104, %165 : vector<16x64xf32>
    %167 = math.exp %166 : vector<16x64xf32>
    %168 = arith.mulf %167, %157 : vector<16x64xf32>
    %169 = vector.extract_strided_slice %106 {offsets = [3, 0, 0], sizes = [1, 16, 1], strides = [1, 1, 1]} : vector<8x16x1xf32> to vector<1x16x1xf32>
    %170 = vector.shape_cast %169 : vector<1x16x1xf32> to vector<16x1xf32>
    %171 = vector.extract_strided_slice %99 {offsets = [3, 0], sizes = [1, 64], strides = [1, 1]} : vector<16x64xf32> to vector<1x64xf32>
    %172 = vector.broadcast %170 : vector<16x1xf32> to vector<16x64xf32>
    %173 = vector.broadcast %171 : vector<1x64xf32> to vector<16x64xf32>
    %174 = arith.mulf %172, %173 : vector<16x64xf32>
    %175 = arith.addf %168, %174 : vector<16x64xf32>
    %176 = vector.extract_strided_slice %108 {offsets = [3, 0, 0], sizes = [1, 16, 1], strides = [1, 1, 1]} : vector<8x16x1xf32> to vector<1x16x1xf32>
    %177 = vector.shape_cast %176 : vector<1x16x1xf32> to vector<16x1xf32>
    %178 = vector.broadcast %177 : vector<16x1xf32> to vector<16x64xf32>
    %179 = arith.mulf %175, %178 : vector<16x64xf32>
    %cst_44 = arith.constant dense<0.000000e+00> : vector<64xf32>
    %180 = vector.multi_reduction <add>, %179, %cst_44 [0] : vector<16x64xf32> to vector<64xf32>
    %181 = vector.shape_cast %180 : vector<64xf32> to vector<1x64xf32>
    %182 = vector.extract_strided_slice %98 {offsets = [4, 0], sizes = [1, 64], strides = [1, 1]} : vector<16x64xf32> to vector<1x64xf32>
    %183 = vector.broadcast %182 : vector<1x64xf32> to vector<16x64xf32>
    %184 = arith.mulf %104, %183 : vector<16x64xf32>
    %185 = math.exp %184 : vector<16x64xf32>
    %186 = arith.mulf %185, %175 : vector<16x64xf32>
    %187 = vector.extract_strided_slice %106 {offsets = [4, 0, 0], sizes = [1, 16, 1], strides = [1, 1, 1]} : vector<8x16x1xf32> to vector<1x16x1xf32>
    %188 = vector.shape_cast %187 : vector<1x16x1xf32> to vector<16x1xf32>
    %189 = vector.extract_strided_slice %99 {offsets = [4, 0], sizes = [1, 64], strides = [1, 1]} : vector<16x64xf32> to vector<1x64xf32>
    %190 = vector.broadcast %188 : vector<16x1xf32> to vector<16x64xf32>
    %191 = vector.broadcast %189 : vector<1x64xf32> to vector<16x64xf32>
    %192 = arith.mulf %190, %191 : vector<16x64xf32>
    %193 = arith.addf %186, %192 : vector<16x64xf32>
    %194 = vector.extract_strided_slice %108 {offsets = [4, 0, 0], sizes = [1, 16, 1], strides = [1, 1, 1]} : vector<8x16x1xf32> to vector<1x16x1xf32>
    %195 = vector.shape_cast %194 : vector<1x16x1xf32> to vector<16x1xf32>
    %196 = vector.broadcast %195 : vector<16x1xf32> to vector<16x64xf32>
    %197 = arith.mulf %193, %196 : vector<16x64xf32>
    %cst_45 = arith.constant dense<0.000000e+00> : vector<64xf32>
    %198 = vector.multi_reduction <add>, %197, %cst_45 [0] : vector<16x64xf32> to vector<64xf32>
    %199 = vector.shape_cast %198 : vector<64xf32> to vector<1x64xf32>
    %200 = vector.extract_strided_slice %98 {offsets = [5, 0], sizes = [1, 64], strides = [1, 1]} : vector<16x64xf32> to vector<1x64xf32>
    %201 = vector.broadcast %200 : vector<1x64xf32> to vector<16x64xf32>
    %202 = arith.mulf %104, %201 : vector<16x64xf32>
    %203 = math.exp %202 : vector<16x64xf32>
    %204 = arith.mulf %203, %193 : vector<16x64xf32>
    %205 = vector.extract_strided_slice %106 {offsets = [5, 0, 0], sizes = [1, 16, 1], strides = [1, 1, 1]} : vector<8x16x1xf32> to vector<1x16x1xf32>
    %206 = vector.shape_cast %205 : vector<1x16x1xf32> to vector<16x1xf32>
    %207 = vector.extract_strided_slice %99 {offsets = [5, 0], sizes = [1, 64], strides = [1, 1]} : vector<16x64xf32> to vector<1x64xf32>
    %208 = vector.broadcast %206 : vector<16x1xf32> to vector<16x64xf32>
    %209 = vector.broadcast %207 : vector<1x64xf32> to vector<16x64xf32>
    %210 = arith.mulf %208, %209 : vector<16x64xf32>
    %211 = arith.addf %204, %210 : vector<16x64xf32>
    %212 = vector.extract_strided_slice %108 {offsets = [5, 0, 0], sizes = [1, 16, 1], strides = [1, 1, 1]} : vector<8x16x1xf32> to vector<1x16x1xf32>
    %213 = vector.shape_cast %212 : vector<1x16x1xf32> to vector<16x1xf32>
    %214 = vector.broadcast %213 : vector<16x1xf32> to vector<16x64xf32>
    %215 = arith.mulf %211, %214 : vector<16x64xf32>
    %cst_46 = arith.constant dense<0.000000e+00> : vector<64xf32>
    %216 = vector.multi_reduction <add>, %215, %cst_46 [0] : vector<16x64xf32> to vector<64xf32>
    %217 = vector.shape_cast %216 : vector<64xf32> to vector<1x64xf32>
    %218 = vector.extract_strided_slice %98 {offsets = [6, 0], sizes = [1, 64], strides = [1, 1]} : vector<16x64xf32> to vector<1x64xf32>
    %219 = vector.broadcast %218 : vector<1x64xf32> to vector<16x64xf32>
    %220 = arith.mulf %104, %219 : vector<16x64xf32>
    %221 = math.exp %220 : vector<16x64xf32>
    %222 = arith.mulf %221, %211 : vector<16x64xf32>
    %223 = vector.extract_strided_slice %106 {offsets = [6, 0, 0], sizes = [1, 16, 1], strides = [1, 1, 1]} : vector<8x16x1xf32> to vector<1x16x1xf32>
    %224 = vector.shape_cast %223 : vector<1x16x1xf32> to vector<16x1xf32>
    %225 = vector.extract_strided_slice %99 {offsets = [6, 0], sizes = [1, 64], strides = [1, 1]} : vector<16x64xf32> to vector<1x64xf32>
    %226 = vector.broadcast %224 : vector<16x1xf32> to vector<16x64xf32>
    %227 = vector.broadcast %225 : vector<1x64xf32> to vector<16x64xf32>
    %228 = arith.mulf %226, %227 : vector<16x64xf32>
    %229 = arith.addf %222, %228 : vector<16x64xf32>
    %230 = vector.extract_strided_slice %108 {offsets = [6, 0, 0], sizes = [1, 16, 1], strides = [1, 1, 1]} : vector<8x16x1xf32> to vector<1x16x1xf32>
    %231 = vector.shape_cast %230 : vector<1x16x1xf32> to vector<16x1xf32>
    %232 = vector.broadcast %231 : vector<16x1xf32> to vector<16x64xf32>
    %233 = arith.mulf %229, %232 : vector<16x64xf32>
    %cst_47 = arith.constant dense<0.000000e+00> : vector<64xf32>
    %234 = vector.multi_reduction <add>, %233, %cst_47 [0] : vector<16x64xf32> to vector<64xf32>
    %235 = vector.shape_cast %234 : vector<64xf32> to vector<1x64xf32>
    %236 = vector.extract_strided_slice %98 {offsets = [7, 0], sizes = [1, 64], strides = [1, 1]} : vector<16x64xf32> to vector<1x64xf32>
    %237 = vector.broadcast %236 : vector<1x64xf32> to vector<16x64xf32>
    %238 = arith.mulf %104, %237 : vector<16x64xf32>
    %239 = math.exp %238 : vector<16x64xf32>
    %240 = arith.mulf %239, %229 : vector<16x64xf32>
    %241 = vector.extract_strided_slice %106 {offsets = [7, 0, 0], sizes = [1, 16, 1], strides = [1, 1, 1]} : vector<8x16x1xf32> to vector<1x16x1xf32>
    %242 = vector.shape_cast %241 : vector<1x16x1xf32> to vector<16x1xf32>
    %243 = vector.extract_strided_slice %99 {offsets = [7, 0], sizes = [1, 64], strides = [1, 1]} : vector<16x64xf32> to vector<1x64xf32>
    %244 = vector.broadcast %242 : vector<16x1xf32> to vector<16x64xf32>
    %245 = vector.broadcast %243 : vector<1x64xf32> to vector<16x64xf32>
    %246 = arith.mulf %244, %245 : vector<16x64xf32>
    %247 = arith.addf %240, %246 : vector<16x64xf32>
    %248 = vector.extract_strided_slice %108 {offsets = [7, 0, 0], sizes = [1, 16, 1], strides = [1, 1, 1]} : vector<8x16x1xf32> to vector<1x16x1xf32>
    %249 = vector.shape_cast %248 : vector<1x16x1xf32> to vector<16x1xf32>
    %250 = vector.broadcast %249 : vector<16x1xf32> to vector<16x64xf32>
    %251 = arith.mulf %247, %250 : vector<16x64xf32>
    %cst_48 = arith.constant dense<0.000000e+00> : vector<64xf32>
    %252 = vector.multi_reduction <add>, %251, %cst_48 [0] : vector<16x64xf32> to vector<64xf32>
    %253 = vector.shape_cast %252 : vector<64xf32> to vector<1x64xf32>
    %254 = vector.extract_strided_slice %87 {offsets = [8, 0], sizes = [8, 16], strides = [1, 1]} : vector<16x96xf32> to vector<8x16xf32>
    %255 = vector.shape_cast %254 : vector<8x16xf32> to vector<8x16x1xf32>
    %256 = vector.extract_strided_slice %87 {offsets = [8, 16], sizes = [8, 16], strides = [1, 1]} : vector<16x96xf32> to vector<8x16xf32>
    %257 = vector.shape_cast %256 : vector<8x16xf32> to vector<8x16x1xf32>
    %cst_49 = arith.constant 0.000000e+00 : f32
    %258 = vector.broadcast %cst_49 : f32 to vector<16x64xf32>
    %259 = vector.extract_strided_slice %98 {offsets = [8, 0], sizes = [1, 64], strides = [1, 1]} : vector<16x64xf32> to vector<1x64xf32>
    %260 = vector.broadcast %259 : vector<1x64xf32> to vector<16x64xf32>
    %261 = arith.mulf %104, %260 : vector<16x64xf32>
    %262 = math.exp %261 : vector<16x64xf32>
    %263 = arith.mulf %262, %258 : vector<16x64xf32>
    %264 = vector.extract_strided_slice %255 {offsets = [0, 0, 0], sizes = [1, 16, 1], strides = [1, 1, 1]} : vector<8x16x1xf32> to vector<1x16x1xf32>
    %265 = vector.shape_cast %264 : vector<1x16x1xf32> to vector<16x1xf32>
    %266 = vector.extract_strided_slice %99 {offsets = [8, 0], sizes = [1, 64], strides = [1, 1]} : vector<16x64xf32> to vector<1x64xf32>
    %267 = vector.broadcast %265 : vector<16x1xf32> to vector<16x64xf32>
    %268 = vector.broadcast %266 : vector<1x64xf32> to vector<16x64xf32>
    %269 = arith.mulf %267, %268 : vector<16x64xf32>
    %270 = arith.addf %263, %269 : vector<16x64xf32>
    %271 = vector.extract_strided_slice %257 {offsets = [0, 0, 0], sizes = [1, 16, 1], strides = [1, 1, 1]} : vector<8x16x1xf32> to vector<1x16x1xf32>
    %272 = vector.shape_cast %271 : vector<1x16x1xf32> to vector<16x1xf32>
    %273 = vector.broadcast %272 : vector<16x1xf32> to vector<16x64xf32>
    %274 = arith.mulf %270, %273 : vector<16x64xf32>
    %cst_50 = arith.constant dense<0.000000e+00> : vector<64xf32>
    %275 = vector.multi_reduction <add>, %274, %cst_50 [0] : vector<16x64xf32> to vector<64xf32>
    %276 = vector.shape_cast %275 : vector<64xf32> to vector<1x64xf32>
    %277 = vector.extract_strided_slice %98 {offsets = [9, 0], sizes = [1, 64], strides = [1, 1]} : vector<16x64xf32> to vector<1x64xf32>
    %278 = vector.broadcast %277 : vector<1x64xf32> to vector<16x64xf32>
    %279 = arith.mulf %104, %278 : vector<16x64xf32>
    %280 = math.exp %279 : vector<16x64xf32>
    %281 = arith.mulf %280, %270 : vector<16x64xf32>
    %282 = vector.extract_strided_slice %255 {offsets = [1, 0, 0], sizes = [1, 16, 1], strides = [1, 1, 1]} : vector<8x16x1xf32> to vector<1x16x1xf32>
    %283 = vector.shape_cast %282 : vector<1x16x1xf32> to vector<16x1xf32>
    %284 = vector.extract_strided_slice %99 {offsets = [9, 0], sizes = [1, 64], strides = [1, 1]} : vector<16x64xf32> to vector<1x64xf32>
    %285 = vector.broadcast %283 : vector<16x1xf32> to vector<16x64xf32>
    %286 = vector.broadcast %284 : vector<1x64xf32> to vector<16x64xf32>
    %287 = arith.mulf %285, %286 : vector<16x64xf32>
    %288 = arith.addf %281, %287 : vector<16x64xf32>
    %289 = vector.extract_strided_slice %257 {offsets = [1, 0, 0], sizes = [1, 16, 1], strides = [1, 1, 1]} : vector<8x16x1xf32> to vector<1x16x1xf32>
    %290 = vector.shape_cast %289 : vector<1x16x1xf32> to vector<16x1xf32>
    %291 = vector.broadcast %290 : vector<16x1xf32> to vector<16x64xf32>
    %292 = arith.mulf %288, %291 : vector<16x64xf32>
    %cst_51 = arith.constant dense<0.000000e+00> : vector<64xf32>
    %293 = vector.multi_reduction <add>, %292, %cst_51 [0] : vector<16x64xf32> to vector<64xf32>
    %294 = vector.shape_cast %293 : vector<64xf32> to vector<1x64xf32>
    %295 = vector.extract_strided_slice %98 {offsets = [10, 0], sizes = [1, 64], strides = [1, 1]} : vector<16x64xf32> to vector<1x64xf32>
    %296 = vector.broadcast %295 : vector<1x64xf32> to vector<16x64xf32>
    %297 = arith.mulf %104, %296 : vector<16x64xf32>
    %298 = math.exp %297 : vector<16x64xf32>
    %299 = arith.mulf %298, %288 : vector<16x64xf32>
    %300 = vector.extract_strided_slice %255 {offsets = [2, 0, 0], sizes = [1, 16, 1], strides = [1, 1, 1]} : vector<8x16x1xf32> to vector<1x16x1xf32>
    %301 = vector.shape_cast %300 : vector<1x16x1xf32> to vector<16x1xf32>
    %302 = vector.extract_strided_slice %99 {offsets = [10, 0], sizes = [1, 64], strides = [1, 1]} : vector<16x64xf32> to vector<1x64xf32>
    %303 = vector.broadcast %301 : vector<16x1xf32> to vector<16x64xf32>
    %304 = vector.broadcast %302 : vector<1x64xf32> to vector<16x64xf32>
    %305 = arith.mulf %303, %304 : vector<16x64xf32>
    %306 = arith.addf %299, %305 : vector<16x64xf32>
    %307 = vector.extract_strided_slice %257 {offsets = [2, 0, 0], sizes = [1, 16, 1], strides = [1, 1, 1]} : vector<8x16x1xf32> to vector<1x16x1xf32>
    %308 = vector.shape_cast %307 : vector<1x16x1xf32> to vector<16x1xf32>
    %309 = vector.broadcast %308 : vector<16x1xf32> to vector<16x64xf32>
    %310 = arith.mulf %306, %309 : vector<16x64xf32>
    %cst_52 = arith.constant dense<0.000000e+00> : vector<64xf32>
    %311 = vector.multi_reduction <add>, %310, %cst_52 [0] : vector<16x64xf32> to vector<64xf32>
    %312 = vector.shape_cast %311 : vector<64xf32> to vector<1x64xf32>
    %313 = vector.extract_strided_slice %98 {offsets = [11, 0], sizes = [1, 64], strides = [1, 1]} : vector<16x64xf32> to vector<1x64xf32>
    %314 = vector.broadcast %313 : vector<1x64xf32> to vector<16x64xf32>
    %315 = arith.mulf %104, %314 : vector<16x64xf32>
    %316 = math.exp %315 : vector<16x64xf32>
    %317 = arith.mulf %316, %306 : vector<16x64xf32>
    %318 = vector.extract_strided_slice %255 {offsets = [3, 0, 0], sizes = [1, 16, 1], strides = [1, 1, 1]} : vector<8x16x1xf32> to vector<1x16x1xf32>
    %319 = vector.shape_cast %318 : vector<1x16x1xf32> to vector<16x1xf32>
    %320 = vector.extract_strided_slice %99 {offsets = [11, 0], sizes = [1, 64], strides = [1, 1]} : vector<16x64xf32> to vector<1x64xf32>
    %321 = vector.broadcast %319 : vector<16x1xf32> to vector<16x64xf32>
    %322 = vector.broadcast %320 : vector<1x64xf32> to vector<16x64xf32>
    %323 = arith.mulf %321, %322 : vector<16x64xf32>
    %324 = arith.addf %317, %323 : vector<16x64xf32>
    %325 = vector.extract_strided_slice %257 {offsets = [3, 0, 0], sizes = [1, 16, 1], strides = [1, 1, 1]} : vector<8x16x1xf32> to vector<1x16x1xf32>
    %326 = vector.shape_cast %325 : vector<1x16x1xf32> to vector<16x1xf32>
    %327 = vector.broadcast %326 : vector<16x1xf32> to vector<16x64xf32>
    %328 = arith.mulf %324, %327 : vector<16x64xf32>
    %cst_53 = arith.constant dense<0.000000e+00> : vector<64xf32>
    %329 = vector.multi_reduction <add>, %328, %cst_53 [0] : vector<16x64xf32> to vector<64xf32>
    %330 = vector.shape_cast %329 : vector<64xf32> to vector<1x64xf32>
    %331 = vector.extract_strided_slice %98 {offsets = [12, 0], sizes = [1, 64], strides = [1, 1]} : vector<16x64xf32> to vector<1x64xf32>
    %332 = vector.broadcast %331 : vector<1x64xf32> to vector<16x64xf32>
    %333 = arith.mulf %104, %332 : vector<16x64xf32>
    %334 = math.exp %333 : vector<16x64xf32>
    %335 = arith.mulf %334, %324 : vector<16x64xf32>
    %336 = vector.extract_strided_slice %255 {offsets = [4, 0, 0], sizes = [1, 16, 1], strides = [1, 1, 1]} : vector<8x16x1xf32> to vector<1x16x1xf32>
    %337 = vector.shape_cast %336 : vector<1x16x1xf32> to vector<16x1xf32>
    %338 = vector.extract_strided_slice %99 {offsets = [12, 0], sizes = [1, 64], strides = [1, 1]} : vector<16x64xf32> to vector<1x64xf32>
    %339 = vector.broadcast %337 : vector<16x1xf32> to vector<16x64xf32>
    %340 = vector.broadcast %338 : vector<1x64xf32> to vector<16x64xf32>
    %341 = arith.mulf %339, %340 : vector<16x64xf32>
    %342 = arith.addf %335, %341 : vector<16x64xf32>
    %343 = vector.extract_strided_slice %257 {offsets = [4, 0, 0], sizes = [1, 16, 1], strides = [1, 1, 1]} : vector<8x16x1xf32> to vector<1x16x1xf32>
    %344 = vector.shape_cast %343 : vector<1x16x1xf32> to vector<16x1xf32>
    %345 = vector.broadcast %344 : vector<16x1xf32> to vector<16x64xf32>
    %346 = arith.mulf %342, %345 : vector<16x64xf32>
    %cst_54 = arith.constant dense<0.000000e+00> : vector<64xf32>
    %347 = vector.multi_reduction <add>, %346, %cst_54 [0] : vector<16x64xf32> to vector<64xf32>
    %348 = vector.shape_cast %347 : vector<64xf32> to vector<1x64xf32>
    %349 = vector.extract_strided_slice %98 {offsets = [13, 0], sizes = [1, 64], strides = [1, 1]} : vector<16x64xf32> to vector<1x64xf32>
    %350 = vector.broadcast %349 : vector<1x64xf32> to vector<16x64xf32>
    %351 = arith.mulf %104, %350 : vector<16x64xf32>
    %352 = math.exp %351 : vector<16x64xf32>
    %353 = arith.mulf %352, %342 : vector<16x64xf32>
    %354 = vector.extract_strided_slice %255 {offsets = [5, 0, 0], sizes = [1, 16, 1], strides = [1, 1, 1]} : vector<8x16x1xf32> to vector<1x16x1xf32>
    %355 = vector.shape_cast %354 : vector<1x16x1xf32> to vector<16x1xf32>
    %356 = vector.extract_strided_slice %99 {offsets = [13, 0], sizes = [1, 64], strides = [1, 1]} : vector<16x64xf32> to vector<1x64xf32>
    %357 = vector.broadcast %355 : vector<16x1xf32> to vector<16x64xf32>
    %358 = vector.broadcast %356 : vector<1x64xf32> to vector<16x64xf32>
    %359 = arith.mulf %357, %358 : vector<16x64xf32>
    %360 = arith.addf %353, %359 : vector<16x64xf32>
    %361 = vector.extract_strided_slice %257 {offsets = [5, 0, 0], sizes = [1, 16, 1], strides = [1, 1, 1]} : vector<8x16x1xf32> to vector<1x16x1xf32>
    %362 = vector.shape_cast %361 : vector<1x16x1xf32> to vector<16x1xf32>
    %363 = vector.broadcast %362 : vector<16x1xf32> to vector<16x64xf32>
    %364 = arith.mulf %360, %363 : vector<16x64xf32>
    %cst_55 = arith.constant dense<0.000000e+00> : vector<64xf32>
    %365 = vector.multi_reduction <add>, %364, %cst_55 [0] : vector<16x64xf32> to vector<64xf32>
    %366 = vector.shape_cast %365 : vector<64xf32> to vector<1x64xf32>
    %367 = vector.extract_strided_slice %98 {offsets = [14, 0], sizes = [1, 64], strides = [1, 1]} : vector<16x64xf32> to vector<1x64xf32>
    %368 = vector.broadcast %367 : vector<1x64xf32> to vector<16x64xf32>
    %369 = arith.mulf %104, %368 : vector<16x64xf32>
    %370 = math.exp %369 : vector<16x64xf32>
    %371 = arith.mulf %370, %360 : vector<16x64xf32>
    %372 = vector.extract_strided_slice %255 {offsets = [6, 0, 0], sizes = [1, 16, 1], strides = [1, 1, 1]} : vector<8x16x1xf32> to vector<1x16x1xf32>
    %373 = vector.shape_cast %372 : vector<1x16x1xf32> to vector<16x1xf32>
    %374 = vector.extract_strided_slice %99 {offsets = [14, 0], sizes = [1, 64], strides = [1, 1]} : vector<16x64xf32> to vector<1x64xf32>
    %375 = vector.broadcast %373 : vector<16x1xf32> to vector<16x64xf32>
    %376 = vector.broadcast %374 : vector<1x64xf32> to vector<16x64xf32>
    %377 = arith.mulf %375, %376 : vector<16x64xf32>
    %378 = arith.addf %371, %377 : vector<16x64xf32>
    %379 = vector.extract_strided_slice %257 {offsets = [6, 0, 0], sizes = [1, 16, 1], strides = [1, 1, 1]} : vector<8x16x1xf32> to vector<1x16x1xf32>
    %380 = vector.shape_cast %379 : vector<1x16x1xf32> to vector<16x1xf32>
    %381 = vector.broadcast %380 : vector<16x1xf32> to vector<16x64xf32>
    %382 = arith.mulf %378, %381 : vector<16x64xf32>
    %cst_56 = arith.constant dense<0.000000e+00> : vector<64xf32>
    %383 = vector.multi_reduction <add>, %382, %cst_56 [0] : vector<16x64xf32> to vector<64xf32>
    %384 = vector.shape_cast %383 : vector<64xf32> to vector<1x64xf32>
    %385 = vector.extract_strided_slice %98 {offsets = [15, 0], sizes = [1, 64], strides = [1, 1]} : vector<16x64xf32> to vector<1x64xf32>
    %386 = vector.broadcast %385 : vector<1x64xf32> to vector<16x64xf32>
    %387 = arith.mulf %104, %386 : vector<16x64xf32>
    %388 = math.exp %387 : vector<16x64xf32>
    %389 = arith.mulf %388, %378 : vector<16x64xf32>
    %390 = vector.extract_strided_slice %255 {offsets = [7, 0, 0], sizes = [1, 16, 1], strides = [1, 1, 1]} : vector<8x16x1xf32> to vector<1x16x1xf32>
    %391 = vector.shape_cast %390 : vector<1x16x1xf32> to vector<16x1xf32>
    %392 = vector.extract_strided_slice %99 {offsets = [15, 0], sizes = [1, 64], strides = [1, 1]} : vector<16x64xf32> to vector<1x64xf32>
    %393 = vector.broadcast %391 : vector<16x1xf32> to vector<16x64xf32>
    %394 = vector.broadcast %392 : vector<1x64xf32> to vector<16x64xf32>
    %395 = arith.mulf %393, %394 : vector<16x64xf32>
    %396 = arith.addf %389, %395 : vector<16x64xf32>
    %397 = vector.extract_strided_slice %257 {offsets = [7, 0, 0], sizes = [1, 16, 1], strides = [1, 1, 1]} : vector<8x16x1xf32> to vector<1x16x1xf32>
    %398 = vector.shape_cast %397 : vector<1x16x1xf32> to vector<16x1xf32>
    %399 = vector.broadcast %398 : vector<16x1xf32> to vector<16x64xf32>
    %400 = arith.mulf %396, %399 : vector<16x64xf32>
    %cst_57 = arith.constant dense<0.000000e+00> : vector<64xf32>
    %401 = vector.multi_reduction <add>, %400, %cst_57 [0] : vector<16x64xf32> to vector<64xf32>
    %402 = vector.shape_cast %401 : vector<64xf32> to vector<1x64xf32>
    %403 = tpu.concatenate %127, %145, %163, %181, %199, %217, %235, %253, %276, %294, %312, %330, %348, %366, %384, %402 in 0 : vector<1x64xf32>, vector<1x64xf32>, vector<1x64xf32>, vector<1x64xf32>, vector<1x64xf32>, vector<1x64xf32>, vector<1x64xf32>, vector<1x64xf32>, vector<1x64xf32>, vector<1x64xf32>, vector<1x64xf32>, vector<1x64xf32>, vector<1x64xf32>, vector<1x64xf32>, vector<1x64xf32>, vector<1x64xf32> -> vector<16x64xf32>
    %c0_58 = arith.constant 0 : index
    %c0_59 = arith.constant 0 : index
    %c0_60 = arith.constant 0 : index
    %404 = vector.load %arg12[%c0_58, %c0_59, %c0_60] : memref<4x1x64xf32, #tpu.memory_space<vmem>>, vector<1x1x64xf32>
    %405 = vector.shape_cast %404 : vector<1x1x64xf32> to vector<1x64xf32>
    %406 = vector.broadcast %405 : vector<1x64xf32> to vector<16x64xf32>
    %407 = arith.mulf %80, %406 : vector<16x64xf32>
    %408 = arith.addf %403, %407 : vector<16x64xf32>
    %cst_61 = arith.constant 0.000000e+00 : f32
    %409 = vector.broadcast %cst_61 : f32 to vector<16x64xf32>
    %410 = arith.subf %409, %26 : vector<16x64xf32>
    %411 = math.exp %410 : vector<16x64xf32>
    %cst_62 = arith.constant 1.000000e+00 : f32
    %412 = vector.broadcast %cst_62 : f32 to vector<16x64xf32>
    %413 = arith.addf %412, %411 : vector<16x64xf32>
    %414 = tpu.reciprocal %413 {approx = true} : vector<16x64xf32> -> vector<16x64xf32>
    %415 = arith.mulf %26, %414 : vector<16x64xf32>
    %416 = arith.mulf %408, %415 : vector<16x64xf32>
    %c0_63 = arith.constant 0 : index
    %c0_64 = arith.constant 0 : index
    %c0_65 = arith.constant 0 : index
    %417 = vector.load %arg13[%c0_63, %c0_64, %c0_65] : memref<4x64x32xf32, #tpu.memory_space<vmem>>, vector<1x64x32xf32>
    %418 = vector.shape_cast %417 : vector<1x64x32xf32> to vector<64x32xf32>
    %cst_66 = arith.constant dense<0.000000e+00> : vector<16x32xf32>
    %419 = tpu.matmul %416, %418, %cst_66 {dimension_numbers = #tpu.dot_dimension_numbers<[1], [0], [0], [1], [0, 0, 1, 1], [], []>} : vector<16x64xf32>, vector<64x32xf32>, vector<16x32xf32> -> vector<16x32xf32>
    %c0_67 = arith.constant 0 : index
    %c0_68 = arith.constant 0 : index
    %c0_69 = arith.constant 0 : index
    %420 = vector.load %arg14[%c0_67, %c0_68, %c0_69] : memref<4x1x32xf32, #tpu.memory_space<vmem>>, vector<1x1x32xf32>
    %421 = vector.shape_cast %420 : vector<1x1x32xf32> to vector<1x32xf32>
    %422 = vector.broadcast %421 : vector<1x32xf32> to vector<16x32xf32>
    %423 = arith.addf %419, %422 : vector<16x32xf32>
    %424 = arith.addf %423, %10 : vector<16x32xf32>
    %c0_70 = arith.constant 0 : index
    %c0_71 = arith.constant 0 : index
    %c0_72 = arith.constant 0 : index
    %425 = vector.load %arg15[%c0_70, %c0_71, %c0_72] : memref<4x1x32xf32, #tpu.memory_space<vmem>>, vector<1x1x32xf32>
    %426 = vector.shape_cast %425 : vector<1x1x32xf32> to vector<1x32xf32>
    %c0_73 = arith.constant 0 : index
    %c0_74 = arith.constant 0 : index
    %c0_75 = arith.constant 0 : index
    %427 = vector.load %arg16[%c0_73, %c0_74, %c0_75] : memref<4x1x32xf32, #tpu.memory_space<vmem>>, vector<1x1x32xf32>
    %428 = vector.shape_cast %427 : vector<1x1x32xf32> to vector<1x32xf32>
    %cst_76 = arith.constant dense<0.000000e+00> : vector<16xf32>
    %429 = vector.multi_reduction <add>, %424, %cst_76 [1] : vector<16x32xf32> to vector<16xf32>
    %430 = vector.shape_cast %429 : vector<16xf32> to vector<16x1xf32>
    %cst_77 = arith.constant 3.200000e+01 : f32
    %431 = vector.broadcast %cst_77 : f32 to vector<16x1xf32>
    %432 = arith.divf %430, %431 : vector<16x1xf32>
    %433 = vector.broadcast %432 : vector<16x1xf32> to vector<16x32xf32>
    %434 = arith.subf %424, %433 : vector<16x32xf32>
    %435 = arith.mulf %434, %434 : vector<16x32xf32>
    %cst_78 = arith.constant dense<0.000000e+00> : vector<16xf32>
    %436 = vector.multi_reduction <add>, %435, %cst_78 [1] : vector<16x32xf32> to vector<16xf32>
    %437 = vector.shape_cast %436 : vector<16xf32> to vector<16x1xf32>
    %cst_79 = arith.constant 3.200000e+01 : f32
    %438 = vector.broadcast %cst_79 : f32 to vector<16x1xf32>
    %439 = arith.divf %437, %438 : vector<16x1xf32>
    %440 = vector.broadcast %432 : vector<16x1xf32> to vector<16x32xf32>
    %441 = arith.subf %424, %440 : vector<16x32xf32>
    %cst_80 = arith.constant 9.99999974E-6 : f32
    %442 = vector.broadcast %cst_80 : f32 to vector<16x1xf32>
    %443 = arith.addf %439, %442 : vector<16x1xf32>
    %444 = math.rsqrt %443 : vector<16x1xf32>
    %445 = vector.broadcast %444 : vector<16x1xf32> to vector<16x32xf32>
    %446 = arith.mulf %441, %445 : vector<16x32xf32>
    %447 = vector.broadcast %426 : vector<1x32xf32> to vector<16x32xf32>
    %448 = arith.mulf %446, %447 : vector<16x32xf32>
    %449 = vector.broadcast %428 : vector<1x32xf32> to vector<16x32xf32>
    %450 = arith.addf %448, %449 : vector<16x32xf32>
    %c1_81 = arith.constant 1 : index
    %c0_82 = arith.constant 0 : index
    %c0_83 = arith.constant 0 : index
    %451 = vector.load %arg5[%c1_81, %c0_82, %c0_83] : memref<4x32x128xf32, #tpu.memory_space<vmem>>, vector<1x32x128xf32>
    %452 = vector.shape_cast %451 : vector<1x32x128xf32> to vector<32x128xf32>
    %cst_84 = arith.constant dense<0.000000e+00> : vector<16x128xf32>
    %453 = tpu.matmul %450, %452, %cst_84 {dimension_numbers = #tpu.dot_dimension_numbers<[1], [0], [0], [1], [0, 0, 1, 1], [], []>} : vector<16x32xf32>, vector<32x128xf32>, vector<16x128xf32> -> vector<16x128xf32>
    %c1_85 = arith.constant 1 : index
    %c0_86 = arith.constant 0 : index
    %c0_87 = arith.constant 0 : index
    %454 = vector.load %arg6[%c1_85, %c0_86, %c0_87] : memref<4x1x128xf32, #tpu.memory_space<vmem>>, vector<1x1x128xf32>
    %455 = vector.shape_cast %454 : vector<1x1x128xf32> to vector<1x128xf32>
    %456 = vector.broadcast %455 : vector<1x128xf32> to vector<16x128xf32>
    %457 = arith.addf %453, %456 : vector<16x128xf32>
    %458 = vector.extract_strided_slice %457 {offsets = [0, 0], sizes = [16, 64], strides = [1, 1]} : vector<16x128xf32> to vector<16x64xf32>
    %cst_88 = arith.constant 0.000000e+00 : f32
    %459 = vector.broadcast %cst_88 : f32 to vector<16x64xf32>
    %460 = arith.subf %459, %458 : vector<16x64xf32>
    %461 = math.exp %460 : vector<16x64xf32>
    %cst_89 = arith.constant 1.000000e+00 : f32
    %462 = vector.broadcast %cst_89 : f32 to vector<16x64xf32>
    %463 = arith.addf %462, %461 : vector<16x64xf32>
    %464 = tpu.reciprocal %463 {approx = true} : vector<16x64xf32> -> vector<16x64xf32>
    %465 = arith.mulf %458, %464 : vector<16x64xf32>
    %466 = vector.extract_strided_slice %457 {offsets = [0, 64], sizes = [16, 64], strides = [1, 1]} : vector<16x128xf32> to vector<16x64xf32>
    %c1_90 = arith.constant 1 : index
    %c0_91 = arith.constant 0 : index
    %c0_92 = arith.constant 0 : index
    %467 = vector.load %arg7[%c1_90, %c0_91, %c0_92] : memref<4x4x64xf32, #tpu.memory_space<vmem>>, vector<1x4x64xf32>
    %468 = vector.shape_cast %467 : vector<1x4x64xf32> to vector<4x64xf32>
    %c1_93 = arith.constant 1 : index
    %c0_94 = arith.constant 0 : index
    %c0_95 = arith.constant 0 : index
    %469 = vector.load %arg8[%c1_93, %c0_94, %c0_95] : memref<4x1x64xf32, #tpu.memory_space<vmem>>, vector<1x1x64xf32>
    %470 = vector.shape_cast %469 : vector<1x1x64xf32> to vector<1x64xf32>
    %471 = vector.extract_strided_slice %468 {offsets = [0, 0], sizes = [1, 64], strides = [1, 1]} : vector<4x64xf32> to vector<1x64xf32>
    %472 = vector.extract_strided_slice %468 {offsets = [1, 0], sizes = [1, 64], strides = [1, 1]} : vector<4x64xf32> to vector<1x64xf32>
    %473 = vector.extract_strided_slice %468 {offsets = [2, 0], sizes = [1, 64], strides = [1, 1]} : vector<4x64xf32> to vector<1x64xf32>
    %474 = vector.extract_strided_slice %468 {offsets = [3, 0], sizes = [1, 64], strides = [1, 1]} : vector<4x64xf32> to vector<1x64xf32>
    %475 = vector.extract_strided_slice %465 {offsets = [0, 0], sizes = [8, 64], strides = [1, 1]} : vector<16x64xf32> to vector<8x64xf32>
    %476 = tpu.concatenate %0, %475 in 0 : vector<3x64xf32>, vector<8x64xf32> -> vector<11x64xf32>
    %477 = vector.extract_strided_slice %476 {offsets = [0, 0], sizes = [8, 64], strides = [1, 1]} : vector<11x64xf32> to vector<8x64xf32>
    %478 = vector.broadcast %471 : vector<1x64xf32> to vector<8x64xf32>
    %479 = arith.mulf %477, %478 : vector<8x64xf32>
    %480 = vector.extract_strided_slice %476 {offsets = [1, 0], sizes = [8, 64], strides = [1, 1]} : vector<11x64xf32> to vector<8x64xf32>
    %481 = vector.broadcast %472 : vector<1x64xf32> to vector<8x64xf32>
    %482 = arith.mulf %480, %481 : vector<8x64xf32>
    %483 = arith.addf %479, %482 : vector<8x64xf32>
    %484 = vector.extract_strided_slice %476 {offsets = [2, 0], sizes = [8, 64], strides = [1, 1]} : vector<11x64xf32> to vector<8x64xf32>
    %485 = vector.broadcast %473 : vector<1x64xf32> to vector<8x64xf32>
    %486 = arith.mulf %484, %485 : vector<8x64xf32>
    %487 = arith.addf %483, %486 : vector<8x64xf32>
    %488 = vector.extract_strided_slice %476 {offsets = [3, 0], sizes = [8, 64], strides = [1, 1]} : vector<11x64xf32> to vector<8x64xf32>
    %489 = vector.broadcast %474 : vector<1x64xf32> to vector<8x64xf32>
    %490 = arith.mulf %488, %489 : vector<8x64xf32>
    %491 = arith.addf %487, %490 : vector<8x64xf32>
    %492 = vector.broadcast %470 : vector<1x64xf32> to vector<8x64xf32>
    %493 = arith.addf %491, %492 : vector<8x64xf32>
    %494 = vector.extract_strided_slice %465 {offsets = [8, 0], sizes = [8, 64], strides = [1, 1]} : vector<16x64xf32> to vector<8x64xf32>
    %495 = tpu.concatenate %0, %494 in 0 : vector<3x64xf32>, vector<8x64xf32> -> vector<11x64xf32>
    %496 = vector.extract_strided_slice %495 {offsets = [0, 0], sizes = [8, 64], strides = [1, 1]} : vector<11x64xf32> to vector<8x64xf32>
    %497 = vector.broadcast %471 : vector<1x64xf32> to vector<8x64xf32>
    %498 = arith.mulf %496, %497 : vector<8x64xf32>
    %499 = vector.extract_strided_slice %495 {offsets = [1, 0], sizes = [8, 64], strides = [1, 1]} : vector<11x64xf32> to vector<8x64xf32>
    %500 = vector.broadcast %472 : vector<1x64xf32> to vector<8x64xf32>
    %501 = arith.mulf %499, %500 : vector<8x64xf32>
    %502 = arith.addf %498, %501 : vector<8x64xf32>
    %503 = vector.extract_strided_slice %495 {offsets = [2, 0], sizes = [8, 64], strides = [1, 1]} : vector<11x64xf32> to vector<8x64xf32>
    %504 = vector.broadcast %473 : vector<1x64xf32> to vector<8x64xf32>
    %505 = arith.mulf %503, %504 : vector<8x64xf32>
    %506 = arith.addf %502, %505 : vector<8x64xf32>
    %507 = vector.extract_strided_slice %495 {offsets = [3, 0], sizes = [8, 64], strides = [1, 1]} : vector<11x64xf32> to vector<8x64xf32>
    %508 = vector.broadcast %474 : vector<1x64xf32> to vector<8x64xf32>
    %509 = arith.mulf %507, %508 : vector<8x64xf32>
    %510 = arith.addf %506, %509 : vector<8x64xf32>
    %511 = vector.broadcast %470 : vector<1x64xf32> to vector<8x64xf32>
    %512 = arith.addf %510, %511 : vector<8x64xf32>
    %513 = tpu.concatenate %493, %512 in 0 : vector<8x64xf32>, vector<8x64xf32> -> vector<16x64xf32>
    %cst_96 = arith.constant 0.000000e+00 : f32
    %514 = vector.broadcast %cst_96 : f32 to vector<16x64xf32>
    %515 = arith.subf %514, %513 : vector<16x64xf32>
    %516 = math.exp %515 : vector<16x64xf32>
    %cst_97 = arith.constant 1.000000e+00 : f32
    %517 = vector.broadcast %cst_97 : f32 to vector<16x64xf32>
    %518 = arith.addf %517, %516 : vector<16x64xf32>
    %519 = tpu.reciprocal %518 {approx = true} : vector<16x64xf32> -> vector<16x64xf32>
    %520 = arith.mulf %513, %519 : vector<16x64xf32>
    %c1_98 = arith.constant 1 : index
    %c0_99 = arith.constant 0 : index
    %c0_100 = arith.constant 0 : index
    %521 = vector.load %arg9[%c1_98, %c0_99, %c0_100] : memref<4x64x96xf32, #tpu.memory_space<vmem>>, vector<1x64x96xf32>
    %522 = vector.shape_cast %521 : vector<1x64x96xf32> to vector<64x96xf32>
    %cst_101 = arith.constant dense<0.000000e+00> : vector<16x96xf32>
    %523 = tpu.matmul %520, %522, %cst_101 {dimension_numbers = #tpu.dot_dimension_numbers<[1], [0], [0], [1], [0, 0, 1, 1], [], []>} : vector<16x64xf32>, vector<64x96xf32>, vector<16x96xf32> -> vector<16x96xf32>
    %c1_102 = arith.constant 1 : index
    %c0_103 = arith.constant 0 : index
    %c0_104 = arith.constant 0 : index
    %524 = vector.load %arg10[%c1_102, %c0_103, %c0_104] : memref<4x1x96xf32, #tpu.memory_space<vmem>>, vector<1x1x96xf32>
    %525 = vector.shape_cast %524 : vector<1x1x96xf32> to vector<1x96xf32>
    %526 = vector.broadcast %525 : vector<1x96xf32> to vector<16x96xf32>
    %527 = arith.addf %523, %526 : vector<16x96xf32>
    %528 = vector.extract_strided_slice %527 {offsets = [0, 32], sizes = [16, 64], strides = [1, 1]} : vector<16x96xf32> to vector<16x64xf32>
    %cst_105 = arith.constant 0.000000e+00 : f32
    %529 = vector.broadcast %cst_105 : f32 to vector<16x64xf32>
    %530 = arith.maximumf %528, %529 : vector<16x64xf32>
    %531 = math.absf %528 : vector<16x64xf32>
    %cst_106 = arith.constant 0.000000e+00 : f32
    %532 = vector.broadcast %cst_106 : f32 to vector<16x64xf32>
    %533 = arith.subf %532, %531 : vector<16x64xf32>
    %534 = math.exp %533 : vector<16x64xf32>
    %cst_107 = arith.constant 1.000000e+00 : f32
    %535 = vector.broadcast %cst_107 : f32 to vector<16x64xf32>
    %536 = arith.addf %535, %534 : vector<16x64xf32>
    %537 = math.log %536 : vector<16x64xf32>
    %538 = arith.addf %530, %537 : vector<16x64xf32>
    %539 = arith.mulf %538, %520 : vector<16x64xf32>
    %c1_108 = arith.constant 1 : index
    %c0_109 = arith.constant 0 : index
    %c0_110 = arith.constant 0 : index
    %540 = vector.load %arg11[%c1_108, %c0_109, %c0_110] : memref<4x16x64xf32, #tpu.memory_space<vmem>>, vector<1x16x64xf32>
    %541 = vector.shape_cast %540 : vector<1x16x64xf32> to vector<16x64xf32>
    %542 = math.exp %541 : vector<16x64xf32>
    %cst_111 = arith.constant 0.000000e+00 : f32
    %543 = vector.broadcast %cst_111 : f32 to vector<16x64xf32>
    %544 = arith.subf %543, %542 : vector<16x64xf32>
    %545 = vector.extract_strided_slice %527 {offsets = [0, 0], sizes = [8, 16], strides = [1, 1]} : vector<16x96xf32> to vector<8x16xf32>
    %546 = vector.shape_cast %545 : vector<8x16xf32> to vector<8x16x1xf32>
    %547 = vector.extract_strided_slice %527 {offsets = [0, 16], sizes = [8, 16], strides = [1, 1]} : vector<16x96xf32> to vector<8x16xf32>
    %548 = vector.shape_cast %547 : vector<8x16xf32> to vector<8x16x1xf32>
    %cst_112 = arith.constant 0.000000e+00 : f32
    %549 = vector.broadcast %cst_112 : f32 to vector<16x64xf32>
    %550 = vector.extract_strided_slice %538 {offsets = [0, 0], sizes = [1, 64], strides = [1, 1]} : vector<16x64xf32> to vector<1x64xf32>
    %551 = vector.broadcast %550 : vector<1x64xf32> to vector<16x64xf32>
    %552 = arith.mulf %544, %551 : vector<16x64xf32>
    %553 = math.exp %552 : vector<16x64xf32>
    %554 = arith.mulf %553, %549 : vector<16x64xf32>
    %555 = vector.extract_strided_slice %546 {offsets = [0, 0, 0], sizes = [1, 16, 1], strides = [1, 1, 1]} : vector<8x16x1xf32> to vector<1x16x1xf32>
    %556 = vector.shape_cast %555 : vector<1x16x1xf32> to vector<16x1xf32>
    %557 = vector.extract_strided_slice %539 {offsets = [0, 0], sizes = [1, 64], strides = [1, 1]} : vector<16x64xf32> to vector<1x64xf32>
    %558 = vector.broadcast %556 : vector<16x1xf32> to vector<16x64xf32>
    %559 = vector.broadcast %557 : vector<1x64xf32> to vector<16x64xf32>
    %560 = arith.mulf %558, %559 : vector<16x64xf32>
    %561 = arith.addf %554, %560 : vector<16x64xf32>
    %562 = vector.extract_strided_slice %548 {offsets = [0, 0, 0], sizes = [1, 16, 1], strides = [1, 1, 1]} : vector<8x16x1xf32> to vector<1x16x1xf32>
    %563 = vector.shape_cast %562 : vector<1x16x1xf32> to vector<16x1xf32>
    %564 = vector.broadcast %563 : vector<16x1xf32> to vector<16x64xf32>
    %565 = arith.mulf %561, %564 : vector<16x64xf32>
    %cst_113 = arith.constant dense<0.000000e+00> : vector<64xf32>
    %566 = vector.multi_reduction <add>, %565, %cst_113 [0] : vector<16x64xf32> to vector<64xf32>
    %567 = vector.shape_cast %566 : vector<64xf32> to vector<1x64xf32>
    %568 = vector.extract_strided_slice %538 {offsets = [1, 0], sizes = [1, 64], strides = [1, 1]} : vector<16x64xf32> to vector<1x64xf32>
    %569 = vector.broadcast %568 : vector<1x64xf32> to vector<16x64xf32>
    %570 = arith.mulf %544, %569 : vector<16x64xf32>
    %571 = math.exp %570 : vector<16x64xf32>
    %572 = arith.mulf %571, %561 : vector<16x64xf32>
    %573 = vector.extract_strided_slice %546 {offsets = [1, 0, 0], sizes = [1, 16, 1], strides = [1, 1, 1]} : vector<8x16x1xf32> to vector<1x16x1xf32>
    %574 = vector.shape_cast %573 : vector<1x16x1xf32> to vector<16x1xf32>
    %575 = vector.extract_strided_slice %539 {offsets = [1, 0], sizes = [1, 64], strides = [1, 1]} : vector<16x64xf32> to vector<1x64xf32>
    %576 = vector.broadcast %574 : vector<16x1xf32> to vector<16x64xf32>
    %577 = vector.broadcast %575 : vector<1x64xf32> to vector<16x64xf32>
    %578 = arith.mulf %576, %577 : vector<16x64xf32>
    %579 = arith.addf %572, %578 : vector<16x64xf32>
    %580 = vector.extract_strided_slice %548 {offsets = [1, 0, 0], sizes = [1, 16, 1], strides = [1, 1, 1]} : vector<8x16x1xf32> to vector<1x16x1xf32>
    %581 = vector.shape_cast %580 : vector<1x16x1xf32> to vector<16x1xf32>
    %582 = vector.broadcast %581 : vector<16x1xf32> to vector<16x64xf32>
    %583 = arith.mulf %579, %582 : vector<16x64xf32>
    %cst_114 = arith.constant dense<0.000000e+00> : vector<64xf32>
    %584 = vector.multi_reduction <add>, %583, %cst_114 [0] : vector<16x64xf32> to vector<64xf32>
    %585 = vector.shape_cast %584 : vector<64xf32> to vector<1x64xf32>
    %586 = vector.extract_strided_slice %538 {offsets = [2, 0], sizes = [1, 64], strides = [1, 1]} : vector<16x64xf32> to vector<1x64xf32>
    %587 = vector.broadcast %586 : vector<1x64xf32> to vector<16x64xf32>
    %588 = arith.mulf %544, %587 : vector<16x64xf32>
    %589 = math.exp %588 : vector<16x64xf32>
    %590 = arith.mulf %589, %579 : vector<16x64xf32>
    %591 = vector.extract_strided_slice %546 {offsets = [2, 0, 0], sizes = [1, 16, 1], strides = [1, 1, 1]} : vector<8x16x1xf32> to vector<1x16x1xf32>
    %592 = vector.shape_cast %591 : vector<1x16x1xf32> to vector<16x1xf32>
    %593 = vector.extract_strided_slice %539 {offsets = [2, 0], sizes = [1, 64], strides = [1, 1]} : vector<16x64xf32> to vector<1x64xf32>
    %594 = vector.broadcast %592 : vector<16x1xf32> to vector<16x64xf32>
    %595 = vector.broadcast %593 : vector<1x64xf32> to vector<16x64xf32>
    %596 = arith.mulf %594, %595 : vector<16x64xf32>
    %597 = arith.addf %590, %596 : vector<16x64xf32>
    %598 = vector.extract_strided_slice %548 {offsets = [2, 0, 0], sizes = [1, 16, 1], strides = [1, 1, 1]} : vector<8x16x1xf32> to vector<1x16x1xf32>
    %599 = vector.shape_cast %598 : vector<1x16x1xf32> to vector<16x1xf32>
    %600 = vector.broadcast %599 : vector<16x1xf32> to vector<16x64xf32>
    %601 = arith.mulf %597, %600 : vector<16x64xf32>
    %cst_115 = arith.constant dense<0.000000e+00> : vector<64xf32>
    %602 = vector.multi_reduction <add>, %601, %cst_115 [0] : vector<16x64xf32> to vector<64xf32>
    %603 = vector.shape_cast %602 : vector<64xf32> to vector<1x64xf32>
    %604 = vector.extract_strided_slice %538 {offsets = [3, 0], sizes = [1, 64], strides = [1, 1]} : vector<16x64xf32> to vector<1x64xf32>
    %605 = vector.broadcast %604 : vector<1x64xf32> to vector<16x64xf32>
    %606 = arith.mulf %544, %605 : vector<16x64xf32>
    %607 = math.exp %606 : vector<16x64xf32>
    %608 = arith.mulf %607, %597 : vector<16x64xf32>
    %609 = vector.extract_strided_slice %546 {offsets = [3, 0, 0], sizes = [1, 16, 1], strides = [1, 1, 1]} : vector<8x16x1xf32> to vector<1x16x1xf32>
    %610 = vector.shape_cast %609 : vector<1x16x1xf32> to vector<16x1xf32>
    %611 = vector.extract_strided_slice %539 {offsets = [3, 0], sizes = [1, 64], strides = [1, 1]} : vector<16x64xf32> to vector<1x64xf32>
    %612 = vector.broadcast %610 : vector<16x1xf32> to vector<16x64xf32>
    %613 = vector.broadcast %611 : vector<1x64xf32> to vector<16x64xf32>
    %614 = arith.mulf %612, %613 : vector<16x64xf32>
    %615 = arith.addf %608, %614 : vector<16x64xf32>
    %616 = vector.extract_strided_slice %548 {offsets = [3, 0, 0], sizes = [1, 16, 1], strides = [1, 1, 1]} : vector<8x16x1xf32> to vector<1x16x1xf32>
    %617 = vector.shape_cast %616 : vector<1x16x1xf32> to vector<16x1xf32>
    %618 = vector.broadcast %617 : vector<16x1xf32> to vector<16x64xf32>
    %619 = arith.mulf %615, %618 : vector<16x64xf32>
    %cst_116 = arith.constant dense<0.000000e+00> : vector<64xf32>
    %620 = vector.multi_reduction <add>, %619, %cst_116 [0] : vector<16x64xf32> to vector<64xf32>
    %621 = vector.shape_cast %620 : vector<64xf32> to vector<1x64xf32>
    %622 = vector.extract_strided_slice %538 {offsets = [4, 0], sizes = [1, 64], strides = [1, 1]} : vector<16x64xf32> to vector<1x64xf32>
    %623 = vector.broadcast %622 : vector<1x64xf32> to vector<16x64xf32>
    %624 = arith.mulf %544, %623 : vector<16x64xf32>
    %625 = math.exp %624 : vector<16x64xf32>
    %626 = arith.mulf %625, %615 : vector<16x64xf32>
    %627 = vector.extract_strided_slice %546 {offsets = [4, 0, 0], sizes = [1, 16, 1], strides = [1, 1, 1]} : vector<8x16x1xf32> to vector<1x16x1xf32>
    %628 = vector.shape_cast %627 : vector<1x16x1xf32> to vector<16x1xf32>
    %629 = vector.extract_strided_slice %539 {offsets = [4, 0], sizes = [1, 64], strides = [1, 1]} : vector<16x64xf32> to vector<1x64xf32>
    %630 = vector.broadcast %628 : vector<16x1xf32> to vector<16x64xf32>
    %631 = vector.broadcast %629 : vector<1x64xf32> to vector<16x64xf32>
    %632 = arith.mulf %630, %631 : vector<16x64xf32>
    %633 = arith.addf %626, %632 : vector<16x64xf32>
    %634 = vector.extract_strided_slice %548 {offsets = [4, 0, 0], sizes = [1, 16, 1], strides = [1, 1, 1]} : vector<8x16x1xf32> to vector<1x16x1xf32>
    %635 = vector.shape_cast %634 : vector<1x16x1xf32> to vector<16x1xf32>
    %636 = vector.broadcast %635 : vector<16x1xf32> to vector<16x64xf32>
    %637 = arith.mulf %633, %636 : vector<16x64xf32>
    %cst_117 = arith.constant dense<0.000000e+00> : vector<64xf32>
    %638 = vector.multi_reduction <add>, %637, %cst_117 [0] : vector<16x64xf32> to vector<64xf32>
    %639 = vector.shape_cast %638 : vector<64xf32> to vector<1x64xf32>
    %640 = vector.extract_strided_slice %538 {offsets = [5, 0], sizes = [1, 64], strides = [1, 1]} : vector<16x64xf32> to vector<1x64xf32>
    %641 = vector.broadcast %640 : vector<1x64xf32> to vector<16x64xf32>
    %642 = arith.mulf %544, %641 : vector<16x64xf32>
    %643 = math.exp %642 : vector<16x64xf32>
    %644 = arith.mulf %643, %633 : vector<16x64xf32>
    %645 = vector.extract_strided_slice %546 {offsets = [5, 0, 0], sizes = [1, 16, 1], strides = [1, 1, 1]} : vector<8x16x1xf32> to vector<1x16x1xf32>
    %646 = vector.shape_cast %645 : vector<1x16x1xf32> to vector<16x1xf32>
    %647 = vector.extract_strided_slice %539 {offsets = [5, 0], sizes = [1, 64], strides = [1, 1]} : vector<16x64xf32> to vector<1x64xf32>
    %648 = vector.broadcast %646 : vector<16x1xf32> to vector<16x64xf32>
    %649 = vector.broadcast %647 : vector<1x64xf32> to vector<16x64xf32>
    %650 = arith.mulf %648, %649 : vector<16x64xf32>
    %651 = arith.addf %644, %650 : vector<16x64xf32>
    %652 = vector.extract_strided_slice %548 {offsets = [5, 0, 0], sizes = [1, 16, 1], strides = [1, 1, 1]} : vector<8x16x1xf32> to vector<1x16x1xf32>
    %653 = vector.shape_cast %652 : vector<1x16x1xf32> to vector<16x1xf32>
    %654 = vector.broadcast %653 : vector<16x1xf32> to vector<16x64xf32>
    %655 = arith.mulf %651, %654 : vector<16x64xf32>
    %cst_118 = arith.constant dense<0.000000e+00> : vector<64xf32>
    %656 = vector.multi_reduction <add>, %655, %cst_118 [0] : vector<16x64xf32> to vector<64xf32>
    %657 = vector.shape_cast %656 : vector<64xf32> to vector<1x64xf32>
    %658 = vector.extract_strided_slice %538 {offsets = [6, 0], sizes = [1, 64], strides = [1, 1]} : vector<16x64xf32> to vector<1x64xf32>
    %659 = vector.broadcast %658 : vector<1x64xf32> to vector<16x64xf32>
    %660 = arith.mulf %544, %659 : vector<16x64xf32>
    %661 = math.exp %660 : vector<16x64xf32>
    %662 = arith.mulf %661, %651 : vector<16x64xf32>
    %663 = vector.extract_strided_slice %546 {offsets = [6, 0, 0], sizes = [1, 16, 1], strides = [1, 1, 1]} : vector<8x16x1xf32> to vector<1x16x1xf32>
    %664 = vector.shape_cast %663 : vector<1x16x1xf32> to vector<16x1xf32>
    %665 = vector.extract_strided_slice %539 {offsets = [6, 0], sizes = [1, 64], strides = [1, 1]} : vector<16x64xf32> to vector<1x64xf32>
    %666 = vector.broadcast %664 : vector<16x1xf32> to vector<16x64xf32>
    %667 = vector.broadcast %665 : vector<1x64xf32> to vector<16x64xf32>
    %668 = arith.mulf %666, %667 : vector<16x64xf32>
    %669 = arith.addf %662, %668 : vector<16x64xf32>
    %670 = vector.extract_strided_slice %548 {offsets = [6, 0, 0], sizes = [1, 16, 1], strides = [1, 1, 1]} : vector<8x16x1xf32> to vector<1x16x1xf32>
    %671 = vector.shape_cast %670 : vector<1x16x1xf32> to vector<16x1xf32>
    %672 = vector.broadcast %671 : vector<16x1xf32> to vector<16x64xf32>
    %673 = arith.mulf %669, %672 : vector<16x64xf32>
    %cst_119 = arith.constant dense<0.000000e+00> : vector<64xf32>
    %674 = vector.multi_reduction <add>, %673, %cst_119 [0] : vector<16x64xf32> to vector<64xf32>
    %675 = vector.shape_cast %674 : vector<64xf32> to vector<1x64xf32>
    %676 = vector.extract_strided_slice %538 {offsets = [7, 0], sizes = [1, 64], strides = [1, 1]} : vector<16x64xf32> to vector<1x64xf32>
    %677 = vector.broadcast %676 : vector<1x64xf32> to vector<16x64xf32>
    %678 = arith.mulf %544, %677 : vector<16x64xf32>
    %679 = math.exp %678 : vector<16x64xf32>
    %680 = arith.mulf %679, %669 : vector<16x64xf32>
    %681 = vector.extract_strided_slice %546 {offsets = [7, 0, 0], sizes = [1, 16, 1], strides = [1, 1, 1]} : vector<8x16x1xf32> to vector<1x16x1xf32>
    %682 = vector.shape_cast %681 : vector<1x16x1xf32> to vector<16x1xf32>
    %683 = vector.extract_strided_slice %539 {offsets = [7, 0], sizes = [1, 64], strides = [1, 1]} : vector<16x64xf32> to vector<1x64xf32>
    %684 = vector.broadcast %682 : vector<16x1xf32> to vector<16x64xf32>
    %685 = vector.broadcast %683 : vector<1x64xf32> to vector<16x64xf32>
    %686 = arith.mulf %684, %685 : vector<16x64xf32>
    %687 = arith.addf %680, %686 : vector<16x64xf32>
    %688 = vector.extract_strided_slice %548 {offsets = [7, 0, 0], sizes = [1, 16, 1], strides = [1, 1, 1]} : vector<8x16x1xf32> to vector<1x16x1xf32>
    %689 = vector.shape_cast %688 : vector<1x16x1xf32> to vector<16x1xf32>
    %690 = vector.broadcast %689 : vector<16x1xf32> to vector<16x64xf32>
    %691 = arith.mulf %687, %690 : vector<16x64xf32>
    %cst_120 = arith.constant dense<0.000000e+00> : vector<64xf32>
    %692 = vector.multi_reduction <add>, %691, %cst_120 [0] : vector<16x64xf32> to vector<64xf32>
    %693 = vector.shape_cast %692 : vector<64xf32> to vector<1x64xf32>
    %694 = vector.extract_strided_slice %527 {offsets = [8, 0], sizes = [8, 16], strides = [1, 1]} : vector<16x96xf32> to vector<8x16xf32>
    %695 = vector.shape_cast %694 : vector<8x16xf32> to vector<8x16x1xf32>
    %696 = vector.extract_strided_slice %527 {offsets = [8, 16], sizes = [8, 16], strides = [1, 1]} : vector<16x96xf32> to vector<8x16xf32>
    %697 = vector.shape_cast %696 : vector<8x16xf32> to vector<8x16x1xf32>
    %cst_121 = arith.constant 0.000000e+00 : f32
    %698 = vector.broadcast %cst_121 : f32 to vector<16x64xf32>
    %699 = vector.extract_strided_slice %538 {offsets = [8, 0], sizes = [1, 64], strides = [1, 1]} : vector<16x64xf32> to vector<1x64xf32>
    %700 = vector.broadcast %699 : vector<1x64xf32> to vector<16x64xf32>
    %701 = arith.mulf %544, %700 : vector<16x64xf32>
    %702 = math.exp %701 : vector<16x64xf32>
    %703 = arith.mulf %702, %698 : vector<16x64xf32>
    %704 = vector.extract_strided_slice %695 {offsets = [0, 0, 0], sizes = [1, 16, 1], strides = [1, 1, 1]} : vector<8x16x1xf32> to vector<1x16x1xf32>
    %705 = vector.shape_cast %704 : vector<1x16x1xf32> to vector<16x1xf32>
    %706 = vector.extract_strided_slice %539 {offsets = [8, 0], sizes = [1, 64], strides = [1, 1]} : vector<16x64xf32> to vector<1x64xf32>
    %707 = vector.broadcast %705 : vector<16x1xf32> to vector<16x64xf32>
    %708 = vector.broadcast %706 : vector<1x64xf32> to vector<16x64xf32>
    %709 = arith.mulf %707, %708 : vector<16x64xf32>
    %710 = arith.addf %703, %709 : vector<16x64xf32>
    %711 = vector.extract_strided_slice %697 {offsets = [0, 0, 0], sizes = [1, 16, 1], strides = [1, 1, 1]} : vector<8x16x1xf32> to vector<1x16x1xf32>
    %712 = vector.shape_cast %711 : vector<1x16x1xf32> to vector<16x1xf32>
    %713 = vector.broadcast %712 : vector<16x1xf32> to vector<16x64xf32>
    %714 = arith.mulf %710, %713 : vector<16x64xf32>
    %cst_122 = arith.constant dense<0.000000e+00> : vector<64xf32>
    %715 = vector.multi_reduction <add>, %714, %cst_122 [0] : vector<16x64xf32> to vector<64xf32>
    %716 = vector.shape_cast %715 : vector<64xf32> to vector<1x64xf32>
    %717 = vector.extract_strided_slice %538 {offsets = [9, 0], sizes = [1, 64], strides = [1, 1]} : vector<16x64xf32> to vector<1x64xf32>
    %718 = vector.broadcast %717 : vector<1x64xf32> to vector<16x64xf32>
    %719 = arith.mulf %544, %718 : vector<16x64xf32>
    %720 = math.exp %719 : vector<16x64xf32>
    %721 = arith.mulf %720, %710 : vector<16x64xf32>
    %722 = vector.extract_strided_slice %695 {offsets = [1, 0, 0], sizes = [1, 16, 1], strides = [1, 1, 1]} : vector<8x16x1xf32> to vector<1x16x1xf32>
    %723 = vector.shape_cast %722 : vector<1x16x1xf32> to vector<16x1xf32>
    %724 = vector.extract_strided_slice %539 {offsets = [9, 0], sizes = [1, 64], strides = [1, 1]} : vector<16x64xf32> to vector<1x64xf32>
    %725 = vector.broadcast %723 : vector<16x1xf32> to vector<16x64xf32>
    %726 = vector.broadcast %724 : vector<1x64xf32> to vector<16x64xf32>
    %727 = arith.mulf %725, %726 : vector<16x64xf32>
    %728 = arith.addf %721, %727 : vector<16x64xf32>
    %729 = vector.extract_strided_slice %697 {offsets = [1, 0, 0], sizes = [1, 16, 1], strides = [1, 1, 1]} : vector<8x16x1xf32> to vector<1x16x1xf32>
    %730 = vector.shape_cast %729 : vector<1x16x1xf32> to vector<16x1xf32>
    %731 = vector.broadcast %730 : vector<16x1xf32> to vector<16x64xf32>
    %732 = arith.mulf %728, %731 : vector<16x64xf32>
    %cst_123 = arith.constant dense<0.000000e+00> : vector<64xf32>
    %733 = vector.multi_reduction <add>, %732, %cst_123 [0] : vector<16x64xf32> to vector<64xf32>
    %734 = vector.shape_cast %733 : vector<64xf32> to vector<1x64xf32>
    %735 = vector.extract_strided_slice %538 {offsets = [10, 0], sizes = [1, 64], strides = [1, 1]} : vector<16x64xf32> to vector<1x64xf32>
    %736 = vector.broadcast %735 : vector<1x64xf32> to vector<16x64xf32>
    %737 = arith.mulf %544, %736 : vector<16x64xf32>
    %738 = math.exp %737 : vector<16x64xf32>
    %739 = arith.mulf %738, %728 : vector<16x64xf32>
    %740 = vector.extract_strided_slice %695 {offsets = [2, 0, 0], sizes = [1, 16, 1], strides = [1, 1, 1]} : vector<8x16x1xf32> to vector<1x16x1xf32>
    %741 = vector.shape_cast %740 : vector<1x16x1xf32> to vector<16x1xf32>
    %742 = vector.extract_strided_slice %539 {offsets = [10, 0], sizes = [1, 64], strides = [1, 1]} : vector<16x64xf32> to vector<1x64xf32>
    %743 = vector.broadcast %741 : vector<16x1xf32> to vector<16x64xf32>
    %744 = vector.broadcast %742 : vector<1x64xf32> to vector<16x64xf32>
    %745 = arith.mulf %743, %744 : vector<16x64xf32>
    %746 = arith.addf %739, %745 : vector<16x64xf32>
    %747 = vector.extract_strided_slice %697 {offsets = [2, 0, 0], sizes = [1, 16, 1], strides = [1, 1, 1]} : vector<8x16x1xf32> to vector<1x16x1xf32>
    %748 = vector.shape_cast %747 : vector<1x16x1xf32> to vector<16x1xf32>
    %749 = vector.broadcast %748 : vector<16x1xf32> to vector<16x64xf32>
    %750 = arith.mulf %746, %749 : vector<16x64xf32>
    %cst_124 = arith.constant dense<0.000000e+00> : vector<64xf32>
    %751 = vector.multi_reduction <add>, %750, %cst_124 [0] : vector<16x64xf32> to vector<64xf32>
    %752 = vector.shape_cast %751 : vector<64xf32> to vector<1x64xf32>
    %753 = vector.extract_strided_slice %538 {offsets = [11, 0], sizes = [1, 64], strides = [1, 1]} : vector<16x64xf32> to vector<1x64xf32>
    %754 = vector.broadcast %753 : vector<1x64xf32> to vector<16x64xf32>
    %755 = arith.mulf %544, %754 : vector<16x64xf32>
    %756 = math.exp %755 : vector<16x64xf32>
    %757 = arith.mulf %756, %746 : vector<16x64xf32>
    %758 = vector.extract_strided_slice %695 {offsets = [3, 0, 0], sizes = [1, 16, 1], strides = [1, 1, 1]} : vector<8x16x1xf32> to vector<1x16x1xf32>
    %759 = vector.shape_cast %758 : vector<1x16x1xf32> to vector<16x1xf32>
    %760 = vector.extract_strided_slice %539 {offsets = [11, 0], sizes = [1, 64], strides = [1, 1]} : vector<16x64xf32> to vector<1x64xf32>
    %761 = vector.broadcast %759 : vector<16x1xf32> to vector<16x64xf32>
    %762 = vector.broadcast %760 : vector<1x64xf32> to vector<16x64xf32>
    %763 = arith.mulf %761, %762 : vector<16x64xf32>
    %764 = arith.addf %757, %763 : vector<16x64xf32>
    %765 = vector.extract_strided_slice %697 {offsets = [3, 0, 0], sizes = [1, 16, 1], strides = [1, 1, 1]} : vector<8x16x1xf32> to vector<1x16x1xf32>
    %766 = vector.shape_cast %765 : vector<1x16x1xf32> to vector<16x1xf32>
    %767 = vector.broadcast %766 : vector<16x1xf32> to vector<16x64xf32>
    %768 = arith.mulf %764, %767 : vector<16x64xf32>
    %cst_125 = arith.constant dense<0.000000e+00> : vector<64xf32>
    %769 = vector.multi_reduction <add>, %768, %cst_125 [0] : vector<16x64xf32> to vector<64xf32>
    %770 = vector.shape_cast %769 : vector<64xf32> to vector<1x64xf32>
    %771 = vector.extract_strided_slice %538 {offsets = [12, 0], sizes = [1, 64], strides = [1, 1]} : vector<16x64xf32> to vector<1x64xf32>
    %772 = vector.broadcast %771 : vector<1x64xf32> to vector<16x64xf32>
    %773 = arith.mulf %544, %772 : vector<16x64xf32>
    %774 = math.exp %773 : vector<16x64xf32>
    %775 = arith.mulf %774, %764 : vector<16x64xf32>
    %776 = vector.extract_strided_slice %695 {offsets = [4, 0, 0], sizes = [1, 16, 1], strides = [1, 1, 1]} : vector<8x16x1xf32> to vector<1x16x1xf32>
    %777 = vector.shape_cast %776 : vector<1x16x1xf32> to vector<16x1xf32>
    %778 = vector.extract_strided_slice %539 {offsets = [12, 0], sizes = [1, 64], strides = [1, 1]} : vector<16x64xf32> to vector<1x64xf32>
    %779 = vector.broadcast %777 : vector<16x1xf32> to vector<16x64xf32>
    %780 = vector.broadcast %778 : vector<1x64xf32> to vector<16x64xf32>
    %781 = arith.mulf %779, %780 : vector<16x64xf32>
    %782 = arith.addf %775, %781 : vector<16x64xf32>
    %783 = vector.extract_strided_slice %697 {offsets = [4, 0, 0], sizes = [1, 16, 1], strides = [1, 1, 1]} : vector<8x16x1xf32> to vector<1x16x1xf32>
    %784 = vector.shape_cast %783 : vector<1x16x1xf32> to vector<16x1xf32>
    %785 = vector.broadcast %784 : vector<16x1xf32> to vector<16x64xf32>
    %786 = arith.mulf %782, %785 : vector<16x64xf32>
    %cst_126 = arith.constant dense<0.000000e+00> : vector<64xf32>
    %787 = vector.multi_reduction <add>, %786, %cst_126 [0] : vector<16x64xf32> to vector<64xf32>
    %788 = vector.shape_cast %787 : vector<64xf32> to vector<1x64xf32>
    %789 = vector.extract_strided_slice %538 {offsets = [13, 0], sizes = [1, 64], strides = [1, 1]} : vector<16x64xf32> to vector<1x64xf32>
    %790 = vector.broadcast %789 : vector<1x64xf32> to vector<16x64xf32>
    %791 = arith.mulf %544, %790 : vector<16x64xf32>
    %792 = math.exp %791 : vector<16x64xf32>
    %793 = arith.mulf %792, %782 : vector<16x64xf32>
    %794 = vector.extract_strided_slice %695 {offsets = [5, 0, 0], sizes = [1, 16, 1], strides = [1, 1, 1]} : vector<8x16x1xf32> to vector<1x16x1xf32>
    %795 = vector.shape_cast %794 : vector<1x16x1xf32> to vector<16x1xf32>
    %796 = vector.extract_strided_slice %539 {offsets = [13, 0], sizes = [1, 64], strides = [1, 1]} : vector<16x64xf32> to vector<1x64xf32>
    %797 = vector.broadcast %795 : vector<16x1xf32> to vector<16x64xf32>
    %798 = vector.broadcast %796 : vector<1x64xf32> to vector<16x64xf32>
    %799 = arith.mulf %797, %798 : vector<16x64xf32>
    %800 = arith.addf %793, %799 : vector<16x64xf32>
    %801 = vector.extract_strided_slice %697 {offsets = [5, 0, 0], sizes = [1, 16, 1], strides = [1, 1, 1]} : vector<8x16x1xf32> to vector<1x16x1xf32>
    %802 = vector.shape_cast %801 : vector<1x16x1xf32> to vector<16x1xf32>
    %803 = vector.broadcast %802 : vector<16x1xf32> to vector<16x64xf32>
    %804 = arith.mulf %800, %803 : vector<16x64xf32>
    %cst_127 = arith.constant dense<0.000000e+00> : vector<64xf32>
    %805 = vector.multi_reduction <add>, %804, %cst_127 [0] : vector<16x64xf32> to vector<64xf32>
    %806 = vector.shape_cast %805 : vector<64xf32> to vector<1x64xf32>
    %807 = vector.extract_strided_slice %538 {offsets = [14, 0], sizes = [1, 64], strides = [1, 1]} : vector<16x64xf32> to vector<1x64xf32>
    %808 = vector.broadcast %807 : vector<1x64xf32> to vector<16x64xf32>
    %809 = arith.mulf %544, %808 : vector<16x64xf32>
    %810 = math.exp %809 : vector<16x64xf32>
    %811 = arith.mulf %810, %800 : vector<16x64xf32>
    %812 = vector.extract_strided_slice %695 {offsets = [6, 0, 0], sizes = [1, 16, 1], strides = [1, 1, 1]} : vector<8x16x1xf32> to vector<1x16x1xf32>
    %813 = vector.shape_cast %812 : vector<1x16x1xf32> to vector<16x1xf32>
    %814 = vector.extract_strided_slice %539 {offsets = [14, 0], sizes = [1, 64], strides = [1, 1]} : vector<16x64xf32> to vector<1x64xf32>
    %815 = vector.broadcast %813 : vector<16x1xf32> to vector<16x64xf32>
    %816 = vector.broadcast %814 : vector<1x64xf32> to vector<16x64xf32>
    %817 = arith.mulf %815, %816 : vector<16x64xf32>
    %818 = arith.addf %811, %817 : vector<16x64xf32>
    %819 = vector.extract_strided_slice %697 {offsets = [6, 0, 0], sizes = [1, 16, 1], strides = [1, 1, 1]} : vector<8x16x1xf32> to vector<1x16x1xf32>
    %820 = vector.shape_cast %819 : vector<1x16x1xf32> to vector<16x1xf32>
    %821 = vector.broadcast %820 : vector<16x1xf32> to vector<16x64xf32>
    %822 = arith.mulf %818, %821 : vector<16x64xf32>
    %cst_128 = arith.constant dense<0.000000e+00> : vector<64xf32>
    %823 = vector.multi_reduction <add>, %822, %cst_128 [0] : vector<16x64xf32> to vector<64xf32>
    %824 = vector.shape_cast %823 : vector<64xf32> to vector<1x64xf32>
    %825 = vector.extract_strided_slice %538 {offsets = [15, 0], sizes = [1, 64], strides = [1, 1]} : vector<16x64xf32> to vector<1x64xf32>
    %826 = vector.broadcast %825 : vector<1x64xf32> to vector<16x64xf32>
    %827 = arith.mulf %544, %826 : vector<16x64xf32>
    %828 = math.exp %827 : vector<16x64xf32>
    %829 = arith.mulf %828, %818 : vector<16x64xf32>
    %830 = vector.extract_strided_slice %695 {offsets = [7, 0, 0], sizes = [1, 16, 1], strides = [1, 1, 1]} : vector<8x16x1xf32> to vector<1x16x1xf32>
    %831 = vector.shape_cast %830 : vector<1x16x1xf32> to vector<16x1xf32>
    %832 = vector.extract_strided_slice %539 {offsets = [15, 0], sizes = [1, 64], strides = [1, 1]} : vector<16x64xf32> to vector<1x64xf32>
    %833 = vector.broadcast %831 : vector<16x1xf32> to vector<16x64xf32>
    %834 = vector.broadcast %832 : vector<1x64xf32> to vector<16x64xf32>
    %835 = arith.mulf %833, %834 : vector<16x64xf32>
    %836 = arith.addf %829, %835 : vector<16x64xf32>
    %837 = vector.extract_strided_slice %697 {offsets = [7, 0, 0], sizes = [1, 16, 1], strides = [1, 1, 1]} : vector<8x16x1xf32> to vector<1x16x1xf32>
    %838 = vector.shape_cast %837 : vector<1x16x1xf32> to vector<16x1xf32>
    %839 = vector.broadcast %838 : vector<16x1xf32> to vector<16x64xf32>
    %840 = arith.mulf %836, %839 : vector<16x64xf32>
    %cst_129 = arith.constant dense<0.000000e+00> : vector<64xf32>
    %841 = vector.multi_reduction <add>, %840, %cst_129 [0] : vector<16x64xf32> to vector<64xf32>
    %842 = vector.shape_cast %841 : vector<64xf32> to vector<1x64xf32>
    %843 = tpu.concatenate %567, %585, %603, %621, %639, %657, %675, %693, %716, %734, %752, %770, %788, %806, %824, %842 in 0 : vector<1x64xf32>, vector<1x64xf32>, vector<1x64xf32>, vector<1x64xf32>, vector<1x64xf32>, vector<1x64xf32>, vector<1x64xf32>, vector<1x64xf32>, vector<1x64xf32>, vector<1x64xf32>, vector<1x64xf32>, vector<1x64xf32>, vector<1x64xf32>, vector<1x64xf32>, vector<1x64xf32>, vector<1x64xf32> -> vector<16x64xf32>
    %c1_130 = arith.constant 1 : index
    %c0_131 = arith.constant 0 : index
    %c0_132 = arith.constant 0 : index
    %844 = vector.load %arg12[%c1_130, %c0_131, %c0_132] : memref<4x1x64xf32, #tpu.memory_space<vmem>>, vector<1x1x64xf32>
    %845 = vector.shape_cast %844 : vector<1x1x64xf32> to vector<1x64xf32>
    %846 = vector.broadcast %845 : vector<1x64xf32> to vector<16x64xf32>
    %847 = arith.mulf %520, %846 : vector<16x64xf32>
    %848 = arith.addf %843, %847 : vector<16x64xf32>
    %cst_133 = arith.constant 0.000000e+00 : f32
    %849 = vector.broadcast %cst_133 : f32 to vector<16x64xf32>
    %850 = arith.subf %849, %466 : vector<16x64xf32>
    %851 = math.exp %850 : vector<16x64xf32>
    %cst_134 = arith.constant 1.000000e+00 : f32
    %852 = vector.broadcast %cst_134 : f32 to vector<16x64xf32>
    %853 = arith.addf %852, %851 : vector<16x64xf32>
    %854 = tpu.reciprocal %853 {approx = true} : vector<16x64xf32> -> vector<16x64xf32>
    %855 = arith.mulf %466, %854 : vector<16x64xf32>
    %856 = arith.mulf %848, %855 : vector<16x64xf32>
    %c1_135 = arith.constant 1 : index
    %c0_136 = arith.constant 0 : index
    %c0_137 = arith.constant 0 : index
    %857 = vector.load %arg13[%c1_135, %c0_136, %c0_137] : memref<4x64x32xf32, #tpu.memory_space<vmem>>, vector<1x64x32xf32>
    %858 = vector.shape_cast %857 : vector<1x64x32xf32> to vector<64x32xf32>
    %cst_138 = arith.constant dense<0.000000e+00> : vector<16x32xf32>
    %859 = tpu.matmul %856, %858, %cst_138 {dimension_numbers = #tpu.dot_dimension_numbers<[1], [0], [0], [1], [0, 0, 1, 1], [], []>} : vector<16x64xf32>, vector<64x32xf32>, vector<16x32xf32> -> vector<16x32xf32>
    %c1_139 = arith.constant 1 : index
    %c0_140 = arith.constant 0 : index
    %c0_141 = arith.constant 0 : index
    %860 = vector.load %arg14[%c1_139, %c0_140, %c0_141] : memref<4x1x32xf32, #tpu.memory_space<vmem>>, vector<1x1x32xf32>
    %861 = vector.shape_cast %860 : vector<1x1x32xf32> to vector<1x32xf32>
    %862 = vector.broadcast %861 : vector<1x32xf32> to vector<16x32xf32>
    %863 = arith.addf %859, %862 : vector<16x32xf32>
    %864 = arith.addf %863, %450 : vector<16x32xf32>
    %c1_142 = arith.constant 1 : index
    %c0_143 = arith.constant 0 : index
    %c0_144 = arith.constant 0 : index
    %865 = vector.load %arg15[%c1_142, %c0_143, %c0_144] : memref<4x1x32xf32, #tpu.memory_space<vmem>>, vector<1x1x32xf32>
    %866 = vector.shape_cast %865 : vector<1x1x32xf32> to vector<1x32xf32>
    %c1_145 = arith.constant 1 : index
    %c0_146 = arith.constant 0 : index
    %c0_147 = arith.constant 0 : index
    %867 = vector.load %arg16[%c1_145, %c0_146, %c0_147] : memref<4x1x32xf32, #tpu.memory_space<vmem>>, vector<1x1x32xf32>
    %868 = vector.shape_cast %867 : vector<1x1x32xf32> to vector<1x32xf32>
    %cst_148 = arith.constant dense<0.000000e+00> : vector<16xf32>
    %869 = vector.multi_reduction <add>, %864, %cst_148 [1] : vector<16x32xf32> to vector<16xf32>
    %870 = vector.shape_cast %869 : vector<16xf32> to vector<16x1xf32>
    %cst_149 = arith.constant 3.200000e+01 : f32
    %871 = vector.broadcast %cst_149 : f32 to vector<16x1xf32>
    %872 = arith.divf %870, %871 : vector<16x1xf32>
    %873 = vector.broadcast %872 : vector<16x1xf32> to vector<16x32xf32>
    %874 = arith.subf %864, %873 : vector<16x32xf32>
    %875 = arith.mulf %874, %874 : vector<16x32xf32>
    %cst_150 = arith.constant dense<0.000000e+00> : vector<16xf32>
    %876 = vector.multi_reduction <add>, %875, %cst_150 [1] : vector<16x32xf32> to vector<16xf32>
    %877 = vector.shape_cast %876 : vector<16xf32> to vector<16x1xf32>
    %cst_151 = arith.constant 3.200000e+01 : f32
    %878 = vector.broadcast %cst_151 : f32 to vector<16x1xf32>
    %879 = arith.divf %877, %878 : vector<16x1xf32>
    %880 = vector.broadcast %872 : vector<16x1xf32> to vector<16x32xf32>
    %881 = arith.subf %864, %880 : vector<16x32xf32>
    %cst_152 = arith.constant 9.99999974E-6 : f32
    %882 = vector.broadcast %cst_152 : f32 to vector<16x1xf32>
    %883 = arith.addf %879, %882 : vector<16x1xf32>
    %884 = math.rsqrt %883 : vector<16x1xf32>
    %885 = vector.broadcast %884 : vector<16x1xf32> to vector<16x32xf32>
    %886 = arith.mulf %881, %885 : vector<16x32xf32>
    %887 = vector.broadcast %866 : vector<1x32xf32> to vector<16x32xf32>
    %888 = arith.mulf %886, %887 : vector<16x32xf32>
    %889 = vector.broadcast %868 : vector<1x32xf32> to vector<16x32xf32>
    %890 = arith.addf %888, %889 : vector<16x32xf32>
    %c2 = arith.constant 2 : index
    %c0_153 = arith.constant 0 : index
    %c0_154 = arith.constant 0 : index
    %891 = vector.load %arg5[%c2, %c0_153, %c0_154] : memref<4x32x128xf32, #tpu.memory_space<vmem>>, vector<1x32x128xf32>
    %892 = vector.shape_cast %891 : vector<1x32x128xf32> to vector<32x128xf32>
    %cst_155 = arith.constant dense<0.000000e+00> : vector<16x128xf32>
    %893 = tpu.matmul %890, %892, %cst_155 {dimension_numbers = #tpu.dot_dimension_numbers<[1], [0], [0], [1], [0, 0, 1, 1], [], []>} : vector<16x32xf32>, vector<32x128xf32>, vector<16x128xf32> -> vector<16x128xf32>
    %c2_156 = arith.constant 2 : index
    %c0_157 = arith.constant 0 : index
    %c0_158 = arith.constant 0 : index
    %894 = vector.load %arg6[%c2_156, %c0_157, %c0_158] : memref<4x1x128xf32, #tpu.memory_space<vmem>>, vector<1x1x128xf32>
    %895 = vector.shape_cast %894 : vector<1x1x128xf32> to vector<1x128xf32>
    %896 = vector.broadcast %895 : vector<1x128xf32> to vector<16x128xf32>
    %897 = arith.addf %893, %896 : vector<16x128xf32>
    %898 = vector.extract_strided_slice %897 {offsets = [0, 0], sizes = [16, 64], strides = [1, 1]} : vector<16x128xf32> to vector<16x64xf32>
    %cst_159 = arith.constant 0.000000e+00 : f32
    %899 = vector.broadcast %cst_159 : f32 to vector<16x64xf32>
    %900 = arith.subf %899, %898 : vector<16x64xf32>
    %901 = math.exp %900 : vector<16x64xf32>
    %cst_160 = arith.constant 1.000000e+00 : f32
    %902 = vector.broadcast %cst_160 : f32 to vector<16x64xf32>
    %903 = arith.addf %902, %901 : vector<16x64xf32>
    %904 = tpu.reciprocal %903 {approx = true} : vector<16x64xf32> -> vector<16x64xf32>
    %905 = arith.mulf %898, %904 : vector<16x64xf32>
    %906 = vector.extract_strided_slice %897 {offsets = [0, 64], sizes = [16, 64], strides = [1, 1]} : vector<16x128xf32> to vector<16x64xf32>
    %c2_161 = arith.constant 2 : index
    %c0_162 = arith.constant 0 : index
    %c0_163 = arith.constant 0 : index
    %907 = vector.load %arg7[%c2_161, %c0_162, %c0_163] : memref<4x4x64xf32, #tpu.memory_space<vmem>>, vector<1x4x64xf32>
    %908 = vector.shape_cast %907 : vector<1x4x64xf32> to vector<4x64xf32>
    %c2_164 = arith.constant 2 : index
    %c0_165 = arith.constant 0 : index
    %c0_166 = arith.constant 0 : index
    %909 = vector.load %arg8[%c2_164, %c0_165, %c0_166] : memref<4x1x64xf32, #tpu.memory_space<vmem>>, vector<1x1x64xf32>
    %910 = vector.shape_cast %909 : vector<1x1x64xf32> to vector<1x64xf32>
    %911 = vector.extract_strided_slice %908 {offsets = [0, 0], sizes = [1, 64], strides = [1, 1]} : vector<4x64xf32> to vector<1x64xf32>
    %912 = vector.extract_strided_slice %908 {offsets = [1, 0], sizes = [1, 64], strides = [1, 1]} : vector<4x64xf32> to vector<1x64xf32>
    %913 = vector.extract_strided_slice %908 {offsets = [2, 0], sizes = [1, 64], strides = [1, 1]} : vector<4x64xf32> to vector<1x64xf32>
    %914 = vector.extract_strided_slice %908 {offsets = [3, 0], sizes = [1, 64], strides = [1, 1]} : vector<4x64xf32> to vector<1x64xf32>
    %915 = vector.extract_strided_slice %905 {offsets = [0, 0], sizes = [8, 64], strides = [1, 1]} : vector<16x64xf32> to vector<8x64xf32>
    %916 = tpu.concatenate %0, %915 in 0 : vector<3x64xf32>, vector<8x64xf32> -> vector<11x64xf32>
    %917 = vector.extract_strided_slice %916 {offsets = [0, 0], sizes = [8, 64], strides = [1, 1]} : vector<11x64xf32> to vector<8x64xf32>
    %918 = vector.broadcast %911 : vector<1x64xf32> to vector<8x64xf32>
    %919 = arith.mulf %917, %918 : vector<8x64xf32>
    %920 = vector.extract_strided_slice %916 {offsets = [1, 0], sizes = [8, 64], strides = [1, 1]} : vector<11x64xf32> to vector<8x64xf32>
    %921 = vector.broadcast %912 : vector<1x64xf32> to vector<8x64xf32>
    %922 = arith.mulf %920, %921 : vector<8x64xf32>
    %923 = arith.addf %919, %922 : vector<8x64xf32>
    %924 = vector.extract_strided_slice %916 {offsets = [2, 0], sizes = [8, 64], strides = [1, 1]} : vector<11x64xf32> to vector<8x64xf32>
    %925 = vector.broadcast %913 : vector<1x64xf32> to vector<8x64xf32>
    %926 = arith.mulf %924, %925 : vector<8x64xf32>
    %927 = arith.addf %923, %926 : vector<8x64xf32>
    %928 = vector.extract_strided_slice %916 {offsets = [3, 0], sizes = [8, 64], strides = [1, 1]} : vector<11x64xf32> to vector<8x64xf32>
    %929 = vector.broadcast %914 : vector<1x64xf32> to vector<8x64xf32>
    %930 = arith.mulf %928, %929 : vector<8x64xf32>
    %931 = arith.addf %927, %930 : vector<8x64xf32>
    %932 = vector.broadcast %910 : vector<1x64xf32> to vector<8x64xf32>
    %933 = arith.addf %931, %932 : vector<8x64xf32>
    %934 = vector.extract_strided_slice %905 {offsets = [8, 0], sizes = [8, 64], strides = [1, 1]} : vector<16x64xf32> to vector<8x64xf32>
    %935 = tpu.concatenate %0, %934 in 0 : vector<3x64xf32>, vector<8x64xf32> -> vector<11x64xf32>
    %936 = vector.extract_strided_slice %935 {offsets = [0, 0], sizes = [8, 64], strides = [1, 1]} : vector<11x64xf32> to vector<8x64xf32>
    %937 = vector.broadcast %911 : vector<1x64xf32> to vector<8x64xf32>
    %938 = arith.mulf %936, %937 : vector<8x64xf32>
    %939 = vector.extract_strided_slice %935 {offsets = [1, 0], sizes = [8, 64], strides = [1, 1]} : vector<11x64xf32> to vector<8x64xf32>
    %940 = vector.broadcast %912 : vector<1x64xf32> to vector<8x64xf32>
    %941 = arith.mulf %939, %940 : vector<8x64xf32>
    %942 = arith.addf %938, %941 : vector<8x64xf32>
    %943 = vector.extract_strided_slice %935 {offsets = [2, 0], sizes = [8, 64], strides = [1, 1]} : vector<11x64xf32> to vector<8x64xf32>
    %944 = vector.broadcast %913 : vector<1x64xf32> to vector<8x64xf32>
    %945 = arith.mulf %943, %944 : vector<8x64xf32>
    %946 = arith.addf %942, %945 : vector<8x64xf32>
    %947 = vector.extract_strided_slice %935 {offsets = [3, 0], sizes = [8, 64], strides = [1, 1]} : vector<11x64xf32> to vector<8x64xf32>
    %948 = vector.broadcast %914 : vector<1x64xf32> to vector<8x64xf32>
    %949 = arith.mulf %947, %948 : vector<8x64xf32>
    %950 = arith.addf %946, %949 : vector<8x64xf32>
    %951 = vector.broadcast %910 : vector<1x64xf32> to vector<8x64xf32>
    %952 = arith.addf %950, %951 : vector<8x64xf32>
    %953 = tpu.concatenate %933, %952 in 0 : vector<8x64xf32>, vector<8x64xf32> -> vector<16x64xf32>
    %cst_167 = arith.constant 0.000000e+00 : f32
    %954 = vector.broadcast %cst_167 : f32 to vector<16x64xf32>
    %955 = arith.subf %954, %953 : vector<16x64xf32>
    %956 = math.exp %955 : vector<16x64xf32>
    %cst_168 = arith.constant 1.000000e+00 : f32
    %957 = vector.broadcast %cst_168 : f32 to vector<16x64xf32>
    %958 = arith.addf %957, %956 : vector<16x64xf32>
    %959 = tpu.reciprocal %958 {approx = true} : vector<16x64xf32> -> vector<16x64xf32>
    %960 = arith.mulf %953, %959 : vector<16x64xf32>
    %c2_169 = arith.constant 2 : index
    %c0_170 = arith.constant 0 : index
    %c0_171 = arith.constant 0 : index
    %961 = vector.load %arg9[%c2_169, %c0_170, %c0_171] : memref<4x64x96xf32, #tpu.memory_space<vmem>>, vector<1x64x96xf32>
    %962 = vector.shape_cast %961 : vector<1x64x96xf32> to vector<64x96xf32>
    %cst_172 = arith.constant dense<0.000000e+00> : vector<16x96xf32>
    %963 = tpu.matmul %960, %962, %cst_172 {dimension_numbers = #tpu.dot_dimension_numbers<[1], [0], [0], [1], [0, 0, 1, 1], [], []>} : vector<16x64xf32>, vector<64x96xf32>, vector<16x96xf32> -> vector<16x96xf32>
    %c2_173 = arith.constant 2 : index
    %c0_174 = arith.constant 0 : index
    %c0_175 = arith.constant 0 : index
    %964 = vector.load %arg10[%c2_173, %c0_174, %c0_175] : memref<4x1x96xf32, #tpu.memory_space<vmem>>, vector<1x1x96xf32>
    %965 = vector.shape_cast %964 : vector<1x1x96xf32> to vector<1x96xf32>
    %966 = vector.broadcast %965 : vector<1x96xf32> to vector<16x96xf32>
    %967 = arith.addf %963, %966 : vector<16x96xf32>
    %968 = vector.extract_strided_slice %967 {offsets = [0, 32], sizes = [16, 64], strides = [1, 1]} : vector<16x96xf32> to vector<16x64xf32>
    %cst_176 = arith.constant 0.000000e+00 : f32
    %969 = vector.broadcast %cst_176 : f32 to vector<16x64xf32>
    %970 = arith.maximumf %968, %969 : vector<16x64xf32>
    %971 = math.absf %968 : vector<16x64xf32>
    %cst_177 = arith.constant 0.000000e+00 : f32
    %972 = vector.broadcast %cst_177 : f32 to vector<16x64xf32>
    %973 = arith.subf %972, %971 : vector<16x64xf32>
    %974 = math.exp %973 : vector<16x64xf32>
    %cst_178 = arith.constant 1.000000e+00 : f32
    %975 = vector.broadcast %cst_178 : f32 to vector<16x64xf32>
    %976 = arith.addf %975, %974 : vector<16x64xf32>
    %977 = math.log %976 : vector<16x64xf32>
    %978 = arith.addf %970, %977 : vector<16x64xf32>
    %979 = arith.mulf %978, %960 : vector<16x64xf32>
    %c2_179 = arith.constant 2 : index
    %c0_180 = arith.constant 0 : index
    %c0_181 = arith.constant 0 : index
    %980 = vector.load %arg11[%c2_179, %c0_180, %c0_181] : memref<4x16x64xf32, #tpu.memory_space<vmem>>, vector<1x16x64xf32>
    %981 = vector.shape_cast %980 : vector<1x16x64xf32> to vector<16x64xf32>
    %982 = math.exp %981 : vector<16x64xf32>
    %cst_182 = arith.constant 0.000000e+00 : f32
    %983 = vector.broadcast %cst_182 : f32 to vector<16x64xf32>
    %984 = arith.subf %983, %982 : vector<16x64xf32>
    %985 = vector.extract_strided_slice %967 {offsets = [0, 0], sizes = [8, 16], strides = [1, 1]} : vector<16x96xf32> to vector<8x16xf32>
    %986 = vector.shape_cast %985 : vector<8x16xf32> to vector<8x16x1xf32>
    %987 = vector.extract_strided_slice %967 {offsets = [0, 16], sizes = [8, 16], strides = [1, 1]} : vector<16x96xf32> to vector<8x16xf32>
    %988 = vector.shape_cast %987 : vector<8x16xf32> to vector<8x16x1xf32>
    %cst_183 = arith.constant 0.000000e+00 : f32
    %989 = vector.broadcast %cst_183 : f32 to vector<16x64xf32>
    %990 = vector.extract_strided_slice %978 {offsets = [0, 0], sizes = [1, 64], strides = [1, 1]} : vector<16x64xf32> to vector<1x64xf32>
    %991 = vector.broadcast %990 : vector<1x64xf32> to vector<16x64xf32>
    %992 = arith.mulf %984, %991 : vector<16x64xf32>
    %993 = math.exp %992 : vector<16x64xf32>
    %994 = arith.mulf %993, %989 : vector<16x64xf32>
    %995 = vector.extract_strided_slice %986 {offsets = [0, 0, 0], sizes = [1, 16, 1], strides = [1, 1, 1]} : vector<8x16x1xf32> to vector<1x16x1xf32>
    %996 = vector.shape_cast %995 : vector<1x16x1xf32> to vector<16x1xf32>
    %997 = vector.extract_strided_slice %979 {offsets = [0, 0], sizes = [1, 64], strides = [1, 1]} : vector<16x64xf32> to vector<1x64xf32>
    %998 = vector.broadcast %996 : vector<16x1xf32> to vector<16x64xf32>
    %999 = vector.broadcast %997 : vector<1x64xf32> to vector<16x64xf32>
    %1000 = arith.mulf %998, %999 : vector<16x64xf32>
    %1001 = arith.addf %994, %1000 : vector<16x64xf32>
    %1002 = vector.extract_strided_slice %988 {offsets = [0, 0, 0], sizes = [1, 16, 1], strides = [1, 1, 1]} : vector<8x16x1xf32> to vector<1x16x1xf32>
    %1003 = vector.shape_cast %1002 : vector<1x16x1xf32> to vector<16x1xf32>
    %1004 = vector.broadcast %1003 : vector<16x1xf32> to vector<16x64xf32>
    %1005 = arith.mulf %1001, %1004 : vector<16x64xf32>
    %cst_184 = arith.constant dense<0.000000e+00> : vector<64xf32>
    %1006 = vector.multi_reduction <add>, %1005, %cst_184 [0] : vector<16x64xf32> to vector<64xf32>
    %1007 = vector.shape_cast %1006 : vector<64xf32> to vector<1x64xf32>
    %1008 = vector.extract_strided_slice %978 {offsets = [1, 0], sizes = [1, 64], strides = [1, 1]} : vector<16x64xf32> to vector<1x64xf32>
    %1009 = vector.broadcast %1008 : vector<1x64xf32> to vector<16x64xf32>
    %1010 = arith.mulf %984, %1009 : vector<16x64xf32>
    %1011 = math.exp %1010 : vector<16x64xf32>
    %1012 = arith.mulf %1011, %1001 : vector<16x64xf32>
    %1013 = vector.extract_strided_slice %986 {offsets = [1, 0, 0], sizes = [1, 16, 1], strides = [1, 1, 1]} : vector<8x16x1xf32> to vector<1x16x1xf32>
    %1014 = vector.shape_cast %1013 : vector<1x16x1xf32> to vector<16x1xf32>
    %1015 = vector.extract_strided_slice %979 {offsets = [1, 0], sizes = [1, 64], strides = [1, 1]} : vector<16x64xf32> to vector<1x64xf32>
    %1016 = vector.broadcast %1014 : vector<16x1xf32> to vector<16x64xf32>
    %1017 = vector.broadcast %1015 : vector<1x64xf32> to vector<16x64xf32>
    %1018 = arith.mulf %1016, %1017 : vector<16x64xf32>
    %1019 = arith.addf %1012, %1018 : vector<16x64xf32>
    %1020 = vector.extract_strided_slice %988 {offsets = [1, 0, 0], sizes = [1, 16, 1], strides = [1, 1, 1]} : vector<8x16x1xf32> to vector<1x16x1xf32>
    %1021 = vector.shape_cast %1020 : vector<1x16x1xf32> to vector<16x1xf32>
    %1022 = vector.broadcast %1021 : vector<16x1xf32> to vector<16x64xf32>
    %1023 = arith.mulf %1019, %1022 : vector<16x64xf32>
    %cst_185 = arith.constant dense<0.000000e+00> : vector<64xf32>
    %1024 = vector.multi_reduction <add>, %1023, %cst_185 [0] : vector<16x64xf32> to vector<64xf32>
    %1025 = vector.shape_cast %1024 : vector<64xf32> to vector<1x64xf32>
    %1026 = vector.extract_strided_slice %978 {offsets = [2, 0], sizes = [1, 64], strides = [1, 1]} : vector<16x64xf32> to vector<1x64xf32>
    %1027 = vector.broadcast %1026 : vector<1x64xf32> to vector<16x64xf32>
    %1028 = arith.mulf %984, %1027 : vector<16x64xf32>
    %1029 = math.exp %1028 : vector<16x64xf32>
    %1030 = arith.mulf %1029, %1019 : vector<16x64xf32>
    %1031 = vector.extract_strided_slice %986 {offsets = [2, 0, 0], sizes = [1, 16, 1], strides = [1, 1, 1]} : vector<8x16x1xf32> to vector<1x16x1xf32>
    %1032 = vector.shape_cast %1031 : vector<1x16x1xf32> to vector<16x1xf32>
    %1033 = vector.extract_strided_slice %979 {offsets = [2, 0], sizes = [1, 64], strides = [1, 1]} : vector<16x64xf32> to vector<1x64xf32>
    %1034 = vector.broadcast %1032 : vector<16x1xf32> to vector<16x64xf32>
    %1035 = vector.broadcast %1033 : vector<1x64xf32> to vector<16x64xf32>
    %1036 = arith.mulf %1034, %1035 : vector<16x64xf32>
    %1037 = arith.addf %1030, %1036 : vector<16x64xf32>
    %1038 = vector.extract_strided_slice %988 {offsets = [2, 0, 0], sizes = [1, 16, 1], strides = [1, 1, 1]} : vector<8x16x1xf32> to vector<1x16x1xf32>
    %1039 = vector.shape_cast %1038 : vector<1x16x1xf32> to vector<16x1xf32>
    %1040 = vector.broadcast %1039 : vector<16x1xf32> to vector<16x64xf32>
    %1041 = arith.mulf %1037, %1040 : vector<16x64xf32>
    %cst_186 = arith.constant dense<0.000000e+00> : vector<64xf32>
    %1042 = vector.multi_reduction <add>, %1041, %cst_186 [0] : vector<16x64xf32> to vector<64xf32>
    %1043 = vector.shape_cast %1042 : vector<64xf32> to vector<1x64xf32>
    %1044 = vector.extract_strided_slice %978 {offsets = [3, 0], sizes = [1, 64], strides = [1, 1]} : vector<16x64xf32> to vector<1x64xf32>
    %1045 = vector.broadcast %1044 : vector<1x64xf32> to vector<16x64xf32>
    %1046 = arith.mulf %984, %1045 : vector<16x64xf32>
    %1047 = math.exp %1046 : vector<16x64xf32>
    %1048 = arith.mulf %1047, %1037 : vector<16x64xf32>
    %1049 = vector.extract_strided_slice %986 {offsets = [3, 0, 0], sizes = [1, 16, 1], strides = [1, 1, 1]} : vector<8x16x1xf32> to vector<1x16x1xf32>
    %1050 = vector.shape_cast %1049 : vector<1x16x1xf32> to vector<16x1xf32>
    %1051 = vector.extract_strided_slice %979 {offsets = [3, 0], sizes = [1, 64], strides = [1, 1]} : vector<16x64xf32> to vector<1x64xf32>
    %1052 = vector.broadcast %1050 : vector<16x1xf32> to vector<16x64xf32>
    %1053 = vector.broadcast %1051 : vector<1x64xf32> to vector<16x64xf32>
    %1054 = arith.mulf %1052, %1053 : vector<16x64xf32>
    %1055 = arith.addf %1048, %1054 : vector<16x64xf32>
    %1056 = vector.extract_strided_slice %988 {offsets = [3, 0, 0], sizes = [1, 16, 1], strides = [1, 1, 1]} : vector<8x16x1xf32> to vector<1x16x1xf32>
    %1057 = vector.shape_cast %1056 : vector<1x16x1xf32> to vector<16x1xf32>
    %1058 = vector.broadcast %1057 : vector<16x1xf32> to vector<16x64xf32>
    %1059 = arith.mulf %1055, %1058 : vector<16x64xf32>
    %cst_187 = arith.constant dense<0.000000e+00> : vector<64xf32>
    %1060 = vector.multi_reduction <add>, %1059, %cst_187 [0] : vector<16x64xf32> to vector<64xf32>
    %1061 = vector.shape_cast %1060 : vector<64xf32> to vector<1x64xf32>
    %1062 = vector.extract_strided_slice %978 {offsets = [4, 0], sizes = [1, 64], strides = [1, 1]} : vector<16x64xf32> to vector<1x64xf32>
    %1063 = vector.broadcast %1062 : vector<1x64xf32> to vector<16x64xf32>
    %1064 = arith.mulf %984, %1063 : vector<16x64xf32>
    %1065 = math.exp %1064 : vector<16x64xf32>
    %1066 = arith.mulf %1065, %1055 : vector<16x64xf32>
    %1067 = vector.extract_strided_slice %986 {offsets = [4, 0, 0], sizes = [1, 16, 1], strides = [1, 1, 1]} : vector<8x16x1xf32> to vector<1x16x1xf32>
    %1068 = vector.shape_cast %1067 : vector<1x16x1xf32> to vector<16x1xf32>
    %1069 = vector.extract_strided_slice %979 {offsets = [4, 0], sizes = [1, 64], strides = [1, 1]} : vector<16x64xf32> to vector<1x64xf32>
    %1070 = vector.broadcast %1068 : vector<16x1xf32> to vector<16x64xf32>
    %1071 = vector.broadcast %1069 : vector<1x64xf32> to vector<16x64xf32>
    %1072 = arith.mulf %1070, %1071 : vector<16x64xf32>
    %1073 = arith.addf %1066, %1072 : vector<16x64xf32>
    %1074 = vector.extract_strided_slice %988 {offsets = [4, 0, 0], sizes = [1, 16, 1], strides = [1, 1, 1]} : vector<8x16x1xf32> to vector<1x16x1xf32>
    %1075 = vector.shape_cast %1074 : vector<1x16x1xf32> to vector<16x1xf32>
    %1076 = vector.broadcast %1075 : vector<16x1xf32> to vector<16x64xf32>
    %1077 = arith.mulf %1073, %1076 : vector<16x64xf32>
    %cst_188 = arith.constant dense<0.000000e+00> : vector<64xf32>
    %1078 = vector.multi_reduction <add>, %1077, %cst_188 [0] : vector<16x64xf32> to vector<64xf32>
    %1079 = vector.shape_cast %1078 : vector<64xf32> to vector<1x64xf32>
    %1080 = vector.extract_strided_slice %978 {offsets = [5, 0], sizes = [1, 64], strides = [1, 1]} : vector<16x64xf32> to vector<1x64xf32>
    %1081 = vector.broadcast %1080 : vector<1x64xf32> to vector<16x64xf32>
    %1082 = arith.mulf %984, %1081 : vector<16x64xf32>
    %1083 = math.exp %1082 : vector<16x64xf32>
    %1084 = arith.mulf %1083, %1073 : vector<16x64xf32>
    %1085 = vector.extract_strided_slice %986 {offsets = [5, 0, 0], sizes = [1, 16, 1], strides = [1, 1, 1]} : vector<8x16x1xf32> to vector<1x16x1xf32>
    %1086 = vector.shape_cast %1085 : vector<1x16x1xf32> to vector<16x1xf32>
    %1087 = vector.extract_strided_slice %979 {offsets = [5, 0], sizes = [1, 64], strides = [1, 1]} : vector<16x64xf32> to vector<1x64xf32>
    %1088 = vector.broadcast %1086 : vector<16x1xf32> to vector<16x64xf32>
    %1089 = vector.broadcast %1087 : vector<1x64xf32> to vector<16x64xf32>
    %1090 = arith.mulf %1088, %1089 : vector<16x64xf32>
    %1091 = arith.addf %1084, %1090 : vector<16x64xf32>
    %1092 = vector.extract_strided_slice %988 {offsets = [5, 0, 0], sizes = [1, 16, 1], strides = [1, 1, 1]} : vector<8x16x1xf32> to vector<1x16x1xf32>
    %1093 = vector.shape_cast %1092 : vector<1x16x1xf32> to vector<16x1xf32>
    %1094 = vector.broadcast %1093 : vector<16x1xf32> to vector<16x64xf32>
    %1095 = arith.mulf %1091, %1094 : vector<16x64xf32>
    %cst_189 = arith.constant dense<0.000000e+00> : vector<64xf32>
    %1096 = vector.multi_reduction <add>, %1095, %cst_189 [0] : vector<16x64xf32> to vector<64xf32>
    %1097 = vector.shape_cast %1096 : vector<64xf32> to vector<1x64xf32>
    %1098 = vector.extract_strided_slice %978 {offsets = [6, 0], sizes = [1, 64], strides = [1, 1]} : vector<16x64xf32> to vector<1x64xf32>
    %1099 = vector.broadcast %1098 : vector<1x64xf32> to vector<16x64xf32>
    %1100 = arith.mulf %984, %1099 : vector<16x64xf32>
    %1101 = math.exp %1100 : vector<16x64xf32>
    %1102 = arith.mulf %1101, %1091 : vector<16x64xf32>
    %1103 = vector.extract_strided_slice %986 {offsets = [6, 0, 0], sizes = [1, 16, 1], strides = [1, 1, 1]} : vector<8x16x1xf32> to vector<1x16x1xf32>
    %1104 = vector.shape_cast %1103 : vector<1x16x1xf32> to vector<16x1xf32>
    %1105 = vector.extract_strided_slice %979 {offsets = [6, 0], sizes = [1, 64], strides = [1, 1]} : vector<16x64xf32> to vector<1x64xf32>
    %1106 = vector.broadcast %1104 : vector<16x1xf32> to vector<16x64xf32>
    %1107 = vector.broadcast %1105 : vector<1x64xf32> to vector<16x64xf32>
    %1108 = arith.mulf %1106, %1107 : vector<16x64xf32>
    %1109 = arith.addf %1102, %1108 : vector<16x64xf32>
    %1110 = vector.extract_strided_slice %988 {offsets = [6, 0, 0], sizes = [1, 16, 1], strides = [1, 1, 1]} : vector<8x16x1xf32> to vector<1x16x1xf32>
    %1111 = vector.shape_cast %1110 : vector<1x16x1xf32> to vector<16x1xf32>
    %1112 = vector.broadcast %1111 : vector<16x1xf32> to vector<16x64xf32>
    %1113 = arith.mulf %1109, %1112 : vector<16x64xf32>
    %cst_190 = arith.constant dense<0.000000e+00> : vector<64xf32>
    %1114 = vector.multi_reduction <add>, %1113, %cst_190 [0] : vector<16x64xf32> to vector<64xf32>
    %1115 = vector.shape_cast %1114 : vector<64xf32> to vector<1x64xf32>
    %1116 = vector.extract_strided_slice %978 {offsets = [7, 0], sizes = [1, 64], strides = [1, 1]} : vector<16x64xf32> to vector<1x64xf32>
    %1117 = vector.broadcast %1116 : vector<1x64xf32> to vector<16x64xf32>
    %1118 = arith.mulf %984, %1117 : vector<16x64xf32>
    %1119 = math.exp %1118 : vector<16x64xf32>
    %1120 = arith.mulf %1119, %1109 : vector<16x64xf32>
    %1121 = vector.extract_strided_slice %986 {offsets = [7, 0, 0], sizes = [1, 16, 1], strides = [1, 1, 1]} : vector<8x16x1xf32> to vector<1x16x1xf32>
    %1122 = vector.shape_cast %1121 : vector<1x16x1xf32> to vector<16x1xf32>
    %1123 = vector.extract_strided_slice %979 {offsets = [7, 0], sizes = [1, 64], strides = [1, 1]} : vector<16x64xf32> to vector<1x64xf32>
    %1124 = vector.broadcast %1122 : vector<16x1xf32> to vector<16x64xf32>
    %1125 = vector.broadcast %1123 : vector<1x64xf32> to vector<16x64xf32>
    %1126 = arith.mulf %1124, %1125 : vector<16x64xf32>
    %1127 = arith.addf %1120, %1126 : vector<16x64xf32>
    %1128 = vector.extract_strided_slice %988 {offsets = [7, 0, 0], sizes = [1, 16, 1], strides = [1, 1, 1]} : vector<8x16x1xf32> to vector<1x16x1xf32>
    %1129 = vector.shape_cast %1128 : vector<1x16x1xf32> to vector<16x1xf32>
    %1130 = vector.broadcast %1129 : vector<16x1xf32> to vector<16x64xf32>
    %1131 = arith.mulf %1127, %1130 : vector<16x64xf32>
    %cst_191 = arith.constant dense<0.000000e+00> : vector<64xf32>
    %1132 = vector.multi_reduction <add>, %1131, %cst_191 [0] : vector<16x64xf32> to vector<64xf32>
    %1133 = vector.shape_cast %1132 : vector<64xf32> to vector<1x64xf32>
    %1134 = vector.extract_strided_slice %967 {offsets = [8, 0], sizes = [8, 16], strides = [1, 1]} : vector<16x96xf32> to vector<8x16xf32>
    %1135 = vector.shape_cast %1134 : vector<8x16xf32> to vector<8x16x1xf32>
    %1136 = vector.extract_strided_slice %967 {offsets = [8, 16], sizes = [8, 16], strides = [1, 1]} : vector<16x96xf32> to vector<8x16xf32>
    %1137 = vector.shape_cast %1136 : vector<8x16xf32> to vector<8x16x1xf32>
    %cst_192 = arith.constant 0.000000e+00 : f32
    %1138 = vector.broadcast %cst_192 : f32 to vector<16x64xf32>
    %1139 = vector.extract_strided_slice %978 {offsets = [8, 0], sizes = [1, 64], strides = [1, 1]} : vector<16x64xf32> to vector<1x64xf32>
    %1140 = vector.broadcast %1139 : vector<1x64xf32> to vector<16x64xf32>
    %1141 = arith.mulf %984, %1140 : vector<16x64xf32>
    %1142 = math.exp %1141 : vector<16x64xf32>
    %1143 = arith.mulf %1142, %1138 : vector<16x64xf32>
    %1144 = vector.extract_strided_slice %1135 {offsets = [0, 0, 0], sizes = [1, 16, 1], strides = [1, 1, 1]} : vector<8x16x1xf32> to vector<1x16x1xf32>
    %1145 = vector.shape_cast %1144 : vector<1x16x1xf32> to vector<16x1xf32>
    %1146 = vector.extract_strided_slice %979 {offsets = [8, 0], sizes = [1, 64], strides = [1, 1]} : vector<16x64xf32> to vector<1x64xf32>
    %1147 = vector.broadcast %1145 : vector<16x1xf32> to vector<16x64xf32>
    %1148 = vector.broadcast %1146 : vector<1x64xf32> to vector<16x64xf32>
    %1149 = arith.mulf %1147, %1148 : vector<16x64xf32>
    %1150 = arith.addf %1143, %1149 : vector<16x64xf32>
    %1151 = vector.extract_strided_slice %1137 {offsets = [0, 0, 0], sizes = [1, 16, 1], strides = [1, 1, 1]} : vector<8x16x1xf32> to vector<1x16x1xf32>
    %1152 = vector.shape_cast %1151 : vector<1x16x1xf32> to vector<16x1xf32>
    %1153 = vector.broadcast %1152 : vector<16x1xf32> to vector<16x64xf32>
    %1154 = arith.mulf %1150, %1153 : vector<16x64xf32>
    %cst_193 = arith.constant dense<0.000000e+00> : vector<64xf32>
    %1155 = vector.multi_reduction <add>, %1154, %cst_193 [0] : vector<16x64xf32> to vector<64xf32>
    %1156 = vector.shape_cast %1155 : vector<64xf32> to vector<1x64xf32>
    %1157 = vector.extract_strided_slice %978 {offsets = [9, 0], sizes = [1, 64], strides = [1, 1]} : vector<16x64xf32> to vector<1x64xf32>
    %1158 = vector.broadcast %1157 : vector<1x64xf32> to vector<16x64xf32>
    %1159 = arith.mulf %984, %1158 : vector<16x64xf32>
    %1160 = math.exp %1159 : vector<16x64xf32>
    %1161 = arith.mulf %1160, %1150 : vector<16x64xf32>
    %1162 = vector.extract_strided_slice %1135 {offsets = [1, 0, 0], sizes = [1, 16, 1], strides = [1, 1, 1]} : vector<8x16x1xf32> to vector<1x16x1xf32>
    %1163 = vector.shape_cast %1162 : vector<1x16x1xf32> to vector<16x1xf32>
    %1164 = vector.extract_strided_slice %979 {offsets = [9, 0], sizes = [1, 64], strides = [1, 1]} : vector<16x64xf32> to vector<1x64xf32>
    %1165 = vector.broadcast %1163 : vector<16x1xf32> to vector<16x64xf32>
    %1166 = vector.broadcast %1164 : vector<1x64xf32> to vector<16x64xf32>
    %1167 = arith.mulf %1165, %1166 : vector<16x64xf32>
    %1168 = arith.addf %1161, %1167 : vector<16x64xf32>
    %1169 = vector.extract_strided_slice %1137 {offsets = [1, 0, 0], sizes = [1, 16, 1], strides = [1, 1, 1]} : vector<8x16x1xf32> to vector<1x16x1xf32>
    %1170 = vector.shape_cast %1169 : vector<1x16x1xf32> to vector<16x1xf32>
    %1171 = vector.broadcast %1170 : vector<16x1xf32> to vector<16x64xf32>
    %1172 = arith.mulf %1168, %1171 : vector<16x64xf32>
    %cst_194 = arith.constant dense<0.000000e+00> : vector<64xf32>
    %1173 = vector.multi_reduction <add>, %1172, %cst_194 [0] : vector<16x64xf32> to vector<64xf32>
    %1174 = vector.shape_cast %1173 : vector<64xf32> to vector<1x64xf32>
    %1175 = vector.extract_strided_slice %978 {offsets = [10, 0], sizes = [1, 64], strides = [1, 1]} : vector<16x64xf32> to vector<1x64xf32>
    %1176 = vector.broadcast %1175 : vector<1x64xf32> to vector<16x64xf32>
    %1177 = arith.mulf %984, %1176 : vector<16x64xf32>
    %1178 = math.exp %1177 : vector<16x64xf32>
    %1179 = arith.mulf %1178, %1168 : vector<16x64xf32>
    %1180 = vector.extract_strided_slice %1135 {offsets = [2, 0, 0], sizes = [1, 16, 1], strides = [1, 1, 1]} : vector<8x16x1xf32> to vector<1x16x1xf32>
    %1181 = vector.shape_cast %1180 : vector<1x16x1xf32> to vector<16x1xf32>
    %1182 = vector.extract_strided_slice %979 {offsets = [10, 0], sizes = [1, 64], strides = [1, 1]} : vector<16x64xf32> to vector<1x64xf32>
    %1183 = vector.broadcast %1181 : vector<16x1xf32> to vector<16x64xf32>
    %1184 = vector.broadcast %1182 : vector<1x64xf32> to vector<16x64xf32>
    %1185 = arith.mulf %1183, %1184 : vector<16x64xf32>
    %1186 = arith.addf %1179, %1185 : vector<16x64xf32>
    %1187 = vector.extract_strided_slice %1137 {offsets = [2, 0, 0], sizes = [1, 16, 1], strides = [1, 1, 1]} : vector<8x16x1xf32> to vector<1x16x1xf32>
    %1188 = vector.shape_cast %1187 : vector<1x16x1xf32> to vector<16x1xf32>
    %1189 = vector.broadcast %1188 : vector<16x1xf32> to vector<16x64xf32>
    %1190 = arith.mulf %1186, %1189 : vector<16x64xf32>
    %cst_195 = arith.constant dense<0.000000e+00> : vector<64xf32>
    %1191 = vector.multi_reduction <add>, %1190, %cst_195 [0] : vector<16x64xf32> to vector<64xf32>
    %1192 = vector.shape_cast %1191 : vector<64xf32> to vector<1x64xf32>
    %1193 = vector.extract_strided_slice %978 {offsets = [11, 0], sizes = [1, 64], strides = [1, 1]} : vector<16x64xf32> to vector<1x64xf32>
    %1194 = vector.broadcast %1193 : vector<1x64xf32> to vector<16x64xf32>
    %1195 = arith.mulf %984, %1194 : vector<16x64xf32>
    %1196 = math.exp %1195 : vector<16x64xf32>
    %1197 = arith.mulf %1196, %1186 : vector<16x64xf32>
    %1198 = vector.extract_strided_slice %1135 {offsets = [3, 0, 0], sizes = [1, 16, 1], strides = [1, 1, 1]} : vector<8x16x1xf32> to vector<1x16x1xf32>
    %1199 = vector.shape_cast %1198 : vector<1x16x1xf32> to vector<16x1xf32>
    %1200 = vector.extract_strided_slice %979 {offsets = [11, 0], sizes = [1, 64], strides = [1, 1]} : vector<16x64xf32> to vector<1x64xf32>
    %1201 = vector.broadcast %1199 : vector<16x1xf32> to vector<16x64xf32>
    %1202 = vector.broadcast %1200 : vector<1x64xf32> to vector<16x64xf32>
    %1203 = arith.mulf %1201, %1202 : vector<16x64xf32>
    %1204 = arith.addf %1197, %1203 : vector<16x64xf32>
    %1205 = vector.extract_strided_slice %1137 {offsets = [3, 0, 0], sizes = [1, 16, 1], strides = [1, 1, 1]} : vector<8x16x1xf32> to vector<1x16x1xf32>
    %1206 = vector.shape_cast %1205 : vector<1x16x1xf32> to vector<16x1xf32>
    %1207 = vector.broadcast %1206 : vector<16x1xf32> to vector<16x64xf32>
    %1208 = arith.mulf %1204, %1207 : vector<16x64xf32>
    %cst_196 = arith.constant dense<0.000000e+00> : vector<64xf32>
    %1209 = vector.multi_reduction <add>, %1208, %cst_196 [0] : vector<16x64xf32> to vector<64xf32>
    %1210 = vector.shape_cast %1209 : vector<64xf32> to vector<1x64xf32>
    %1211 = vector.extract_strided_slice %978 {offsets = [12, 0], sizes = [1, 64], strides = [1, 1]} : vector<16x64xf32> to vector<1x64xf32>
    %1212 = vector.broadcast %1211 : vector<1x64xf32> to vector<16x64xf32>
    %1213 = arith.mulf %984, %1212 : vector<16x64xf32>
    %1214 = math.exp %1213 : vector<16x64xf32>
    %1215 = arith.mulf %1214, %1204 : vector<16x64xf32>
    %1216 = vector.extract_strided_slice %1135 {offsets = [4, 0, 0], sizes = [1, 16, 1], strides = [1, 1, 1]} : vector<8x16x1xf32> to vector<1x16x1xf32>
    %1217 = vector.shape_cast %1216 : vector<1x16x1xf32> to vector<16x1xf32>
    %1218 = vector.extract_strided_slice %979 {offsets = [12, 0], sizes = [1, 64], strides = [1, 1]} : vector<16x64xf32> to vector<1x64xf32>
    %1219 = vector.broadcast %1217 : vector<16x1xf32> to vector<16x64xf32>
    %1220 = vector.broadcast %1218 : vector<1x64xf32> to vector<16x64xf32>
    %1221 = arith.mulf %1219, %1220 : vector<16x64xf32>
    %1222 = arith.addf %1215, %1221 : vector<16x64xf32>
    %1223 = vector.extract_strided_slice %1137 {offsets = [4, 0, 0], sizes = [1, 16, 1], strides = [1, 1, 1]} : vector<8x16x1xf32> to vector<1x16x1xf32>
    %1224 = vector.shape_cast %1223 : vector<1x16x1xf32> to vector<16x1xf32>
    %1225 = vector.broadcast %1224 : vector<16x1xf32> to vector<16x64xf32>
    %1226 = arith.mulf %1222, %1225 : vector<16x64xf32>
    %cst_197 = arith.constant dense<0.000000e+00> : vector<64xf32>
    %1227 = vector.multi_reduction <add>, %1226, %cst_197 [0] : vector<16x64xf32> to vector<64xf32>
    %1228 = vector.shape_cast %1227 : vector<64xf32> to vector<1x64xf32>
    %1229 = vector.extract_strided_slice %978 {offsets = [13, 0], sizes = [1, 64], strides = [1, 1]} : vector<16x64xf32> to vector<1x64xf32>
    %1230 = vector.broadcast %1229 : vector<1x64xf32> to vector<16x64xf32>
    %1231 = arith.mulf %984, %1230 : vector<16x64xf32>
    %1232 = math.exp %1231 : vector<16x64xf32>
    %1233 = arith.mulf %1232, %1222 : vector<16x64xf32>
    %1234 = vector.extract_strided_slice %1135 {offsets = [5, 0, 0], sizes = [1, 16, 1], strides = [1, 1, 1]} : vector<8x16x1xf32> to vector<1x16x1xf32>
    %1235 = vector.shape_cast %1234 : vector<1x16x1xf32> to vector<16x1xf32>
    %1236 = vector.extract_strided_slice %979 {offsets = [13, 0], sizes = [1, 64], strides = [1, 1]} : vector<16x64xf32> to vector<1x64xf32>
    %1237 = vector.broadcast %1235 : vector<16x1xf32> to vector<16x64xf32>
    %1238 = vector.broadcast %1236 : vector<1x64xf32> to vector<16x64xf32>
    %1239 = arith.mulf %1237, %1238 : vector<16x64xf32>
    %1240 = arith.addf %1233, %1239 : vector<16x64xf32>
    %1241 = vector.extract_strided_slice %1137 {offsets = [5, 0, 0], sizes = [1, 16, 1], strides = [1, 1, 1]} : vector<8x16x1xf32> to vector<1x16x1xf32>
    %1242 = vector.shape_cast %1241 : vector<1x16x1xf32> to vector<16x1xf32>
    %1243 = vector.broadcast %1242 : vector<16x1xf32> to vector<16x64xf32>
    %1244 = arith.mulf %1240, %1243 : vector<16x64xf32>
    %cst_198 = arith.constant dense<0.000000e+00> : vector<64xf32>
    %1245 = vector.multi_reduction <add>, %1244, %cst_198 [0] : vector<16x64xf32> to vector<64xf32>
    %1246 = vector.shape_cast %1245 : vector<64xf32> to vector<1x64xf32>
    %1247 = vector.extract_strided_slice %978 {offsets = [14, 0], sizes = [1, 64], strides = [1, 1]} : vector<16x64xf32> to vector<1x64xf32>
    %1248 = vector.broadcast %1247 : vector<1x64xf32> to vector<16x64xf32>
    %1249 = arith.mulf %984, %1248 : vector<16x64xf32>
    %1250 = math.exp %1249 : vector<16x64xf32>
    %1251 = arith.mulf %1250, %1240 : vector<16x64xf32>
    %1252 = vector.extract_strided_slice %1135 {offsets = [6, 0, 0], sizes = [1, 16, 1], strides = [1, 1, 1]} : vector<8x16x1xf32> to vector<1x16x1xf32>
    %1253 = vector.shape_cast %1252 : vector<1x16x1xf32> to vector<16x1xf32>
    %1254 = vector.extract_strided_slice %979 {offsets = [14, 0], sizes = [1, 64], strides = [1, 1]} : vector<16x64xf32> to vector<1x64xf32>
    %1255 = vector.broadcast %1253 : vector<16x1xf32> to vector<16x64xf32>
    %1256 = vector.broadcast %1254 : vector<1x64xf32> to vector<16x64xf32>
    %1257 = arith.mulf %1255, %1256 : vector<16x64xf32>
    %1258 = arith.addf %1251, %1257 : vector<16x64xf32>
    %1259 = vector.extract_strided_slice %1137 {offsets = [6, 0, 0], sizes = [1, 16, 1], strides = [1, 1, 1]} : vector<8x16x1xf32> to vector<1x16x1xf32>
    %1260 = vector.shape_cast %1259 : vector<1x16x1xf32> to vector<16x1xf32>
    %1261 = vector.broadcast %1260 : vector<16x1xf32> to vector<16x64xf32>
    %1262 = arith.mulf %1258, %1261 : vector<16x64xf32>
    %cst_199 = arith.constant dense<0.000000e+00> : vector<64xf32>
    %1263 = vector.multi_reduction <add>, %1262, %cst_199 [0] : vector<16x64xf32> to vector<64xf32>
    %1264 = vector.shape_cast %1263 : vector<64xf32> to vector<1x64xf32>
    %1265 = vector.extract_strided_slice %978 {offsets = [15, 0], sizes = [1, 64], strides = [1, 1]} : vector<16x64xf32> to vector<1x64xf32>
    %1266 = vector.broadcast %1265 : vector<1x64xf32> to vector<16x64xf32>
    %1267 = arith.mulf %984, %1266 : vector<16x64xf32>
    %1268 = math.exp %1267 : vector<16x64xf32>
    %1269 = arith.mulf %1268, %1258 : vector<16x64xf32>
    %1270 = vector.extract_strided_slice %1135 {offsets = [7, 0, 0], sizes = [1, 16, 1], strides = [1, 1, 1]} : vector<8x16x1xf32> to vector<1x16x1xf32>
    %1271 = vector.shape_cast %1270 : vector<1x16x1xf32> to vector<16x1xf32>
    %1272 = vector.extract_strided_slice %979 {offsets = [15, 0], sizes = [1, 64], strides = [1, 1]} : vector<16x64xf32> to vector<1x64xf32>
    %1273 = vector.broadcast %1271 : vector<16x1xf32> to vector<16x64xf32>
    %1274 = vector.broadcast %1272 : vector<1x64xf32> to vector<16x64xf32>
    %1275 = arith.mulf %1273, %1274 : vector<16x64xf32>
    %1276 = arith.addf %1269, %1275 : vector<16x64xf32>
    %1277 = vector.extract_strided_slice %1137 {offsets = [7, 0, 0], sizes = [1, 16, 1], strides = [1, 1, 1]} : vector<8x16x1xf32> to vector<1x16x1xf32>
    %1278 = vector.shape_cast %1277 : vector<1x16x1xf32> to vector<16x1xf32>
    %1279 = vector.broadcast %1278 : vector<16x1xf32> to vector<16x64xf32>
    %1280 = arith.mulf %1276, %1279 : vector<16x64xf32>
    %cst_200 = arith.constant dense<0.000000e+00> : vector<64xf32>
    %1281 = vector.multi_reduction <add>, %1280, %cst_200 [0] : vector<16x64xf32> to vector<64xf32>
    %1282 = vector.shape_cast %1281 : vector<64xf32> to vector<1x64xf32>
    %1283 = tpu.concatenate %1007, %1025, %1043, %1061, %1079, %1097, %1115, %1133, %1156, %1174, %1192, %1210, %1228, %1246, %1264, %1282 in 0 : vector<1x64xf32>, vector<1x64xf32>, vector<1x64xf32>, vector<1x64xf32>, vector<1x64xf32>, vector<1x64xf32>, vector<1x64xf32>, vector<1x64xf32>, vector<1x64xf32>, vector<1x64xf32>, vector<1x64xf32>, vector<1x64xf32>, vector<1x64xf32>, vector<1x64xf32>, vector<1x64xf32>, vector<1x64xf32> -> vector<16x64xf32>
    %c2_201 = arith.constant 2 : index
    %c0_202 = arith.constant 0 : index
    %c0_203 = arith.constant 0 : index
    %1284 = vector.load %arg12[%c2_201, %c0_202, %c0_203] : memref<4x1x64xf32, #tpu.memory_space<vmem>>, vector<1x1x64xf32>
    %1285 = vector.shape_cast %1284 : vector<1x1x64xf32> to vector<1x64xf32>
    %1286 = vector.broadcast %1285 : vector<1x64xf32> to vector<16x64xf32>
    %1287 = arith.mulf %960, %1286 : vector<16x64xf32>
    %1288 = arith.addf %1283, %1287 : vector<16x64xf32>
    %cst_204 = arith.constant 0.000000e+00 : f32
    %1289 = vector.broadcast %cst_204 : f32 to vector<16x64xf32>
    %1290 = arith.subf %1289, %906 : vector<16x64xf32>
    %1291 = math.exp %1290 : vector<16x64xf32>
    %cst_205 = arith.constant 1.000000e+00 : f32
    %1292 = vector.broadcast %cst_205 : f32 to vector<16x64xf32>
    %1293 = arith.addf %1292, %1291 : vector<16x64xf32>
    %1294 = tpu.reciprocal %1293 {approx = true} : vector<16x64xf32> -> vector<16x64xf32>
    %1295 = arith.mulf %906, %1294 : vector<16x64xf32>
    %1296 = arith.mulf %1288, %1295 : vector<16x64xf32>
    %c2_206 = arith.constant 2 : index
    %c0_207 = arith.constant 0 : index
    %c0_208 = arith.constant 0 : index
    %1297 = vector.load %arg13[%c2_206, %c0_207, %c0_208] : memref<4x64x32xf32, #tpu.memory_space<vmem>>, vector<1x64x32xf32>
    %1298 = vector.shape_cast %1297 : vector<1x64x32xf32> to vector<64x32xf32>
    %cst_209 = arith.constant dense<0.000000e+00> : vector<16x32xf32>
    %1299 = tpu.matmul %1296, %1298, %cst_209 {dimension_numbers = #tpu.dot_dimension_numbers<[1], [0], [0], [1], [0, 0, 1, 1], [], []>} : vector<16x64xf32>, vector<64x32xf32>, vector<16x32xf32> -> vector<16x32xf32>
    %c2_210 = arith.constant 2 : index
    %c0_211 = arith.constant 0 : index
    %c0_212 = arith.constant 0 : index
    %1300 = vector.load %arg14[%c2_210, %c0_211, %c0_212] : memref<4x1x32xf32, #tpu.memory_space<vmem>>, vector<1x1x32xf32>
    %1301 = vector.shape_cast %1300 : vector<1x1x32xf32> to vector<1x32xf32>
    %1302 = vector.broadcast %1301 : vector<1x32xf32> to vector<16x32xf32>
    %1303 = arith.addf %1299, %1302 : vector<16x32xf32>
    %1304 = arith.addf %1303, %890 : vector<16x32xf32>
    %c2_213 = arith.constant 2 : index
    %c0_214 = arith.constant 0 : index
    %c0_215 = arith.constant 0 : index
    %1305 = vector.load %arg15[%c2_213, %c0_214, %c0_215] : memref<4x1x32xf32, #tpu.memory_space<vmem>>, vector<1x1x32xf32>
    %1306 = vector.shape_cast %1305 : vector<1x1x32xf32> to vector<1x32xf32>
    %c2_216 = arith.constant 2 : index
    %c0_217 = arith.constant 0 : index
    %c0_218 = arith.constant 0 : index
    %1307 = vector.load %arg16[%c2_216, %c0_217, %c0_218] : memref<4x1x32xf32, #tpu.memory_space<vmem>>, vector<1x1x32xf32>
    %1308 = vector.shape_cast %1307 : vector<1x1x32xf32> to vector<1x32xf32>
    %cst_219 = arith.constant dense<0.000000e+00> : vector<16xf32>
    %1309 = vector.multi_reduction <add>, %1304, %cst_219 [1] : vector<16x32xf32> to vector<16xf32>
    %1310 = vector.shape_cast %1309 : vector<16xf32> to vector<16x1xf32>
    %cst_220 = arith.constant 3.200000e+01 : f32
    %1311 = vector.broadcast %cst_220 : f32 to vector<16x1xf32>
    %1312 = arith.divf %1310, %1311 : vector<16x1xf32>
    %1313 = vector.broadcast %1312 : vector<16x1xf32> to vector<16x32xf32>
    %1314 = arith.subf %1304, %1313 : vector<16x32xf32>
    %1315 = arith.mulf %1314, %1314 : vector<16x32xf32>
    %cst_221 = arith.constant dense<0.000000e+00> : vector<16xf32>
    %1316 = vector.multi_reduction <add>, %1315, %cst_221 [1] : vector<16x32xf32> to vector<16xf32>
    %1317 = vector.shape_cast %1316 : vector<16xf32> to vector<16x1xf32>
    %cst_222 = arith.constant 3.200000e+01 : f32
    %1318 = vector.broadcast %cst_222 : f32 to vector<16x1xf32>
    %1319 = arith.divf %1317, %1318 : vector<16x1xf32>
    %1320 = vector.broadcast %1312 : vector<16x1xf32> to vector<16x32xf32>
    %1321 = arith.subf %1304, %1320 : vector<16x32xf32>
    %cst_223 = arith.constant 9.99999974E-6 : f32
    %1322 = vector.broadcast %cst_223 : f32 to vector<16x1xf32>
    %1323 = arith.addf %1319, %1322 : vector<16x1xf32>
    %1324 = math.rsqrt %1323 : vector<16x1xf32>
    %1325 = vector.broadcast %1324 : vector<16x1xf32> to vector<16x32xf32>
    %1326 = arith.mulf %1321, %1325 : vector<16x32xf32>
    %1327 = vector.broadcast %1306 : vector<1x32xf32> to vector<16x32xf32>
    %1328 = arith.mulf %1326, %1327 : vector<16x32xf32>
    %1329 = vector.broadcast %1308 : vector<1x32xf32> to vector<16x32xf32>
    %1330 = arith.addf %1328, %1329 : vector<16x32xf32>
    %c3 = arith.constant 3 : index
    %c0_224 = arith.constant 0 : index
    %c0_225 = arith.constant 0 : index
    %1331 = vector.load %arg5[%c3, %c0_224, %c0_225] : memref<4x32x128xf32, #tpu.memory_space<vmem>>, vector<1x32x128xf32>
    %1332 = vector.shape_cast %1331 : vector<1x32x128xf32> to vector<32x128xf32>
    %cst_226 = arith.constant dense<0.000000e+00> : vector<16x128xf32>
    %1333 = tpu.matmul %1330, %1332, %cst_226 {dimension_numbers = #tpu.dot_dimension_numbers<[1], [0], [0], [1], [0, 0, 1, 1], [], []>} : vector<16x32xf32>, vector<32x128xf32>, vector<16x128xf32> -> vector<16x128xf32>
    %c3_227 = arith.constant 3 : index
    %c0_228 = arith.constant 0 : index
    %c0_229 = arith.constant 0 : index
    %1334 = vector.load %arg6[%c3_227, %c0_228, %c0_229] : memref<4x1x128xf32, #tpu.memory_space<vmem>>, vector<1x1x128xf32>
    %1335 = vector.shape_cast %1334 : vector<1x1x128xf32> to vector<1x128xf32>
    %1336 = vector.broadcast %1335 : vector<1x128xf32> to vector<16x128xf32>
    %1337 = arith.addf %1333, %1336 : vector<16x128xf32>
    %1338 = vector.extract_strided_slice %1337 {offsets = [0, 0], sizes = [16, 64], strides = [1, 1]} : vector<16x128xf32> to vector<16x64xf32>
    %cst_230 = arith.constant 0.000000e+00 : f32
    %1339 = vector.broadcast %cst_230 : f32 to vector<16x64xf32>
    %1340 = arith.subf %1339, %1338 : vector<16x64xf32>
    %1341 = math.exp %1340 : vector<16x64xf32>
    %cst_231 = arith.constant 1.000000e+00 : f32
    %1342 = vector.broadcast %cst_231 : f32 to vector<16x64xf32>
    %1343 = arith.addf %1342, %1341 : vector<16x64xf32>
    %1344 = tpu.reciprocal %1343 {approx = true} : vector<16x64xf32> -> vector<16x64xf32>
    %1345 = arith.mulf %1338, %1344 : vector<16x64xf32>
    %1346 = vector.extract_strided_slice %1337 {offsets = [0, 64], sizes = [16, 64], strides = [1, 1]} : vector<16x128xf32> to vector<16x64xf32>
    %c3_232 = arith.constant 3 : index
    %c0_233 = arith.constant 0 : index
    %c0_234 = arith.constant 0 : index
    %1347 = vector.load %arg7[%c3_232, %c0_233, %c0_234] : memref<4x4x64xf32, #tpu.memory_space<vmem>>, vector<1x4x64xf32>
    %1348 = vector.shape_cast %1347 : vector<1x4x64xf32> to vector<4x64xf32>
    %c3_235 = arith.constant 3 : index
    %c0_236 = arith.constant 0 : index
    %c0_237 = arith.constant 0 : index
    %1349 = vector.load %arg8[%c3_235, %c0_236, %c0_237] : memref<4x1x64xf32, #tpu.memory_space<vmem>>, vector<1x1x64xf32>
    %1350 = vector.shape_cast %1349 : vector<1x1x64xf32> to vector<1x64xf32>
    %1351 = vector.extract_strided_slice %1348 {offsets = [0, 0], sizes = [1, 64], strides = [1, 1]} : vector<4x64xf32> to vector<1x64xf32>
    %1352 = vector.extract_strided_slice %1348 {offsets = [1, 0], sizes = [1, 64], strides = [1, 1]} : vector<4x64xf32> to vector<1x64xf32>
    %1353 = vector.extract_strided_slice %1348 {offsets = [2, 0], sizes = [1, 64], strides = [1, 1]} : vector<4x64xf32> to vector<1x64xf32>
    %1354 = vector.extract_strided_slice %1348 {offsets = [3, 0], sizes = [1, 64], strides = [1, 1]} : vector<4x64xf32> to vector<1x64xf32>
    %1355 = vector.extract_strided_slice %1345 {offsets = [0, 0], sizes = [8, 64], strides = [1, 1]} : vector<16x64xf32> to vector<8x64xf32>
    %1356 = tpu.concatenate %0, %1355 in 0 : vector<3x64xf32>, vector<8x64xf32> -> vector<11x64xf32>
    %1357 = vector.extract_strided_slice %1356 {offsets = [0, 0], sizes = [8, 64], strides = [1, 1]} : vector<11x64xf32> to vector<8x64xf32>
    %1358 = vector.broadcast %1351 : vector<1x64xf32> to vector<8x64xf32>
    %1359 = arith.mulf %1357, %1358 : vector<8x64xf32>
    %1360 = vector.extract_strided_slice %1356 {offsets = [1, 0], sizes = [8, 64], strides = [1, 1]} : vector<11x64xf32> to vector<8x64xf32>
    %1361 = vector.broadcast %1352 : vector<1x64xf32> to vector<8x64xf32>
    %1362 = arith.mulf %1360, %1361 : vector<8x64xf32>
    %1363 = arith.addf %1359, %1362 : vector<8x64xf32>
    %1364 = vector.extract_strided_slice %1356 {offsets = [2, 0], sizes = [8, 64], strides = [1, 1]} : vector<11x64xf32> to vector<8x64xf32>
    %1365 = vector.broadcast %1353 : vector<1x64xf32> to vector<8x64xf32>
    %1366 = arith.mulf %1364, %1365 : vector<8x64xf32>
    %1367 = arith.addf %1363, %1366 : vector<8x64xf32>
    %1368 = vector.extract_strided_slice %1356 {offsets = [3, 0], sizes = [8, 64], strides = [1, 1]} : vector<11x64xf32> to vector<8x64xf32>
    %1369 = vector.broadcast %1354 : vector<1x64xf32> to vector<8x64xf32>
    %1370 = arith.mulf %1368, %1369 : vector<8x64xf32>
    %1371 = arith.addf %1367, %1370 : vector<8x64xf32>
    %1372 = vector.broadcast %1350 : vector<1x64xf32> to vector<8x64xf32>
    %1373 = arith.addf %1371, %1372 : vector<8x64xf32>
    %1374 = vector.extract_strided_slice %1345 {offsets = [8, 0], sizes = [8, 64], strides = [1, 1]} : vector<16x64xf32> to vector<8x64xf32>
    %1375 = tpu.concatenate %0, %1374 in 0 : vector<3x64xf32>, vector<8x64xf32> -> vector<11x64xf32>
    %1376 = vector.extract_strided_slice %1375 {offsets = [0, 0], sizes = [8, 64], strides = [1, 1]} : vector<11x64xf32> to vector<8x64xf32>
    %1377 = vector.broadcast %1351 : vector<1x64xf32> to vector<8x64xf32>
    %1378 = arith.mulf %1376, %1377 : vector<8x64xf32>
    %1379 = vector.extract_strided_slice %1375 {offsets = [1, 0], sizes = [8, 64], strides = [1, 1]} : vector<11x64xf32> to vector<8x64xf32>
    %1380 = vector.broadcast %1352 : vector<1x64xf32> to vector<8x64xf32>
    %1381 = arith.mulf %1379, %1380 : vector<8x64xf32>
    %1382 = arith.addf %1378, %1381 : vector<8x64xf32>
    %1383 = vector.extract_strided_slice %1375 {offsets = [2, 0], sizes = [8, 64], strides = [1, 1]} : vector<11x64xf32> to vector<8x64xf32>
    %1384 = vector.broadcast %1353 : vector<1x64xf32> to vector<8x64xf32>
    %1385 = arith.mulf %1383, %1384 : vector<8x64xf32>
    %1386 = arith.addf %1382, %1385 : vector<8x64xf32>
    %1387 = vector.extract_strided_slice %1375 {offsets = [3, 0], sizes = [8, 64], strides = [1, 1]} : vector<11x64xf32> to vector<8x64xf32>
    %1388 = vector.broadcast %1354 : vector<1x64xf32> to vector<8x64xf32>
    %1389 = arith.mulf %1387, %1388 : vector<8x64xf32>
    %1390 = arith.addf %1386, %1389 : vector<8x64xf32>
    %1391 = vector.broadcast %1350 : vector<1x64xf32> to vector<8x64xf32>
    %1392 = arith.addf %1390, %1391 : vector<8x64xf32>
    %1393 = tpu.concatenate %1373, %1392 in 0 : vector<8x64xf32>, vector<8x64xf32> -> vector<16x64xf32>
    %cst_238 = arith.constant 0.000000e+00 : f32
    %1394 = vector.broadcast %cst_238 : f32 to vector<16x64xf32>
    %1395 = arith.subf %1394, %1393 : vector<16x64xf32>
    %1396 = math.exp %1395 : vector<16x64xf32>
    %cst_239 = arith.constant 1.000000e+00 : f32
    %1397 = vector.broadcast %cst_239 : f32 to vector<16x64xf32>
    %1398 = arith.addf %1397, %1396 : vector<16x64xf32>
    %1399 = tpu.reciprocal %1398 {approx = true} : vector<16x64xf32> -> vector<16x64xf32>
    %1400 = arith.mulf %1393, %1399 : vector<16x64xf32>
    %c3_240 = arith.constant 3 : index
    %c0_241 = arith.constant 0 : index
    %c0_242 = arith.constant 0 : index
    %1401 = vector.load %arg9[%c3_240, %c0_241, %c0_242] : memref<4x64x96xf32, #tpu.memory_space<vmem>>, vector<1x64x96xf32>
    %1402 = vector.shape_cast %1401 : vector<1x64x96xf32> to vector<64x96xf32>
    %cst_243 = arith.constant dense<0.000000e+00> : vector<16x96xf32>
    %1403 = tpu.matmul %1400, %1402, %cst_243 {dimension_numbers = #tpu.dot_dimension_numbers<[1], [0], [0], [1], [0, 0, 1, 1], [], []>} : vector<16x64xf32>, vector<64x96xf32>, vector<16x96xf32> -> vector<16x96xf32>
    %c3_244 = arith.constant 3 : index
    %c0_245 = arith.constant 0 : index
    %c0_246 = arith.constant 0 : index
    %1404 = vector.load %arg10[%c3_244, %c0_245, %c0_246] : memref<4x1x96xf32, #tpu.memory_space<vmem>>, vector<1x1x96xf32>
    %1405 = vector.shape_cast %1404 : vector<1x1x96xf32> to vector<1x96xf32>
    %1406 = vector.broadcast %1405 : vector<1x96xf32> to vector<16x96xf32>
    %1407 = arith.addf %1403, %1406 : vector<16x96xf32>
    %1408 = vector.extract_strided_slice %1407 {offsets = [0, 32], sizes = [16, 64], strides = [1, 1]} : vector<16x96xf32> to vector<16x64xf32>
    %cst_247 = arith.constant 0.000000e+00 : f32
    %1409 = vector.broadcast %cst_247 : f32 to vector<16x64xf32>
    %1410 = arith.maximumf %1408, %1409 : vector<16x64xf32>
    %1411 = math.absf %1408 : vector<16x64xf32>
    %cst_248 = arith.constant 0.000000e+00 : f32
    %1412 = vector.broadcast %cst_248 : f32 to vector<16x64xf32>
    %1413 = arith.subf %1412, %1411 : vector<16x64xf32>
    %1414 = math.exp %1413 : vector<16x64xf32>
    %cst_249 = arith.constant 1.000000e+00 : f32
    %1415 = vector.broadcast %cst_249 : f32 to vector<16x64xf32>
    %1416 = arith.addf %1415, %1414 : vector<16x64xf32>
    %1417 = math.log %1416 : vector<16x64xf32>
    %1418 = arith.addf %1410, %1417 : vector<16x64xf32>
    %1419 = arith.mulf %1418, %1400 : vector<16x64xf32>
    %c3_250 = arith.constant 3 : index
    %c0_251 = arith.constant 0 : index
    %c0_252 = arith.constant 0 : index
    %1420 = vector.load %arg11[%c3_250, %c0_251, %c0_252] : memref<4x16x64xf32, #tpu.memory_space<vmem>>, vector<1x16x64xf32>
    %1421 = vector.shape_cast %1420 : vector<1x16x64xf32> to vector<16x64xf32>
    %1422 = math.exp %1421 : vector<16x64xf32>
    %cst_253 = arith.constant 0.000000e+00 : f32
    %1423 = vector.broadcast %cst_253 : f32 to vector<16x64xf32>
    %1424 = arith.subf %1423, %1422 : vector<16x64xf32>
    %1425 = vector.extract_strided_slice %1407 {offsets = [0, 0], sizes = [8, 16], strides = [1, 1]} : vector<16x96xf32> to vector<8x16xf32>
    %1426 = vector.shape_cast %1425 : vector<8x16xf32> to vector<8x16x1xf32>
    %1427 = vector.extract_strided_slice %1407 {offsets = [0, 16], sizes = [8, 16], strides = [1, 1]} : vector<16x96xf32> to vector<8x16xf32>
    %1428 = vector.shape_cast %1427 : vector<8x16xf32> to vector<8x16x1xf32>
    %cst_254 = arith.constant 0.000000e+00 : f32
    %1429 = vector.broadcast %cst_254 : f32 to vector<16x64xf32>
    %1430 = vector.extract_strided_slice %1418 {offsets = [0, 0], sizes = [1, 64], strides = [1, 1]} : vector<16x64xf32> to vector<1x64xf32>
    %1431 = vector.broadcast %1430 : vector<1x64xf32> to vector<16x64xf32>
    %1432 = arith.mulf %1424, %1431 : vector<16x64xf32>
    %1433 = math.exp %1432 : vector<16x64xf32>
    %1434 = arith.mulf %1433, %1429 : vector<16x64xf32>
    %1435 = vector.extract_strided_slice %1426 {offsets = [0, 0, 0], sizes = [1, 16, 1], strides = [1, 1, 1]} : vector<8x16x1xf32> to vector<1x16x1xf32>
    %1436 = vector.shape_cast %1435 : vector<1x16x1xf32> to vector<16x1xf32>
    %1437 = vector.extract_strided_slice %1419 {offsets = [0, 0], sizes = [1, 64], strides = [1, 1]} : vector<16x64xf32> to vector<1x64xf32>
    %1438 = vector.broadcast %1436 : vector<16x1xf32> to vector<16x64xf32>
    %1439 = vector.broadcast %1437 : vector<1x64xf32> to vector<16x64xf32>
    %1440 = arith.mulf %1438, %1439 : vector<16x64xf32>
    %1441 = arith.addf %1434, %1440 : vector<16x64xf32>
    %1442 = vector.extract_strided_slice %1428 {offsets = [0, 0, 0], sizes = [1, 16, 1], strides = [1, 1, 1]} : vector<8x16x1xf32> to vector<1x16x1xf32>
    %1443 = vector.shape_cast %1442 : vector<1x16x1xf32> to vector<16x1xf32>
    %1444 = vector.broadcast %1443 : vector<16x1xf32> to vector<16x64xf32>
    %1445 = arith.mulf %1441, %1444 : vector<16x64xf32>
    %cst_255 = arith.constant dense<0.000000e+00> : vector<64xf32>
    %1446 = vector.multi_reduction <add>, %1445, %cst_255 [0] : vector<16x64xf32> to vector<64xf32>
    %1447 = vector.shape_cast %1446 : vector<64xf32> to vector<1x64xf32>
    %1448 = vector.extract_strided_slice %1418 {offsets = [1, 0], sizes = [1, 64], strides = [1, 1]} : vector<16x64xf32> to vector<1x64xf32>
    %1449 = vector.broadcast %1448 : vector<1x64xf32> to vector<16x64xf32>
    %1450 = arith.mulf %1424, %1449 : vector<16x64xf32>
    %1451 = math.exp %1450 : vector<16x64xf32>
    %1452 = arith.mulf %1451, %1441 : vector<16x64xf32>
    %1453 = vector.extract_strided_slice %1426 {offsets = [1, 0, 0], sizes = [1, 16, 1], strides = [1, 1, 1]} : vector<8x16x1xf32> to vector<1x16x1xf32>
    %1454 = vector.shape_cast %1453 : vector<1x16x1xf32> to vector<16x1xf32>
    %1455 = vector.extract_strided_slice %1419 {offsets = [1, 0], sizes = [1, 64], strides = [1, 1]} : vector<16x64xf32> to vector<1x64xf32>
    %1456 = vector.broadcast %1454 : vector<16x1xf32> to vector<16x64xf32>
    %1457 = vector.broadcast %1455 : vector<1x64xf32> to vector<16x64xf32>
    %1458 = arith.mulf %1456, %1457 : vector<16x64xf32>
    %1459 = arith.addf %1452, %1458 : vector<16x64xf32>
    %1460 = vector.extract_strided_slice %1428 {offsets = [1, 0, 0], sizes = [1, 16, 1], strides = [1, 1, 1]} : vector<8x16x1xf32> to vector<1x16x1xf32>
    %1461 = vector.shape_cast %1460 : vector<1x16x1xf32> to vector<16x1xf32>
    %1462 = vector.broadcast %1461 : vector<16x1xf32> to vector<16x64xf32>
    %1463 = arith.mulf %1459, %1462 : vector<16x64xf32>
    %cst_256 = arith.constant dense<0.000000e+00> : vector<64xf32>
    %1464 = vector.multi_reduction <add>, %1463, %cst_256 [0] : vector<16x64xf32> to vector<64xf32>
    %1465 = vector.shape_cast %1464 : vector<64xf32> to vector<1x64xf32>
    %1466 = vector.extract_strided_slice %1418 {offsets = [2, 0], sizes = [1, 64], strides = [1, 1]} : vector<16x64xf32> to vector<1x64xf32>
    %1467 = vector.broadcast %1466 : vector<1x64xf32> to vector<16x64xf32>
    %1468 = arith.mulf %1424, %1467 : vector<16x64xf32>
    %1469 = math.exp %1468 : vector<16x64xf32>
    %1470 = arith.mulf %1469, %1459 : vector<16x64xf32>
    %1471 = vector.extract_strided_slice %1426 {offsets = [2, 0, 0], sizes = [1, 16, 1], strides = [1, 1, 1]} : vector<8x16x1xf32> to vector<1x16x1xf32>
    %1472 = vector.shape_cast %1471 : vector<1x16x1xf32> to vector<16x1xf32>
    %1473 = vector.extract_strided_slice %1419 {offsets = [2, 0], sizes = [1, 64], strides = [1, 1]} : vector<16x64xf32> to vector<1x64xf32>
    %1474 = vector.broadcast %1472 : vector<16x1xf32> to vector<16x64xf32>
    %1475 = vector.broadcast %1473 : vector<1x64xf32> to vector<16x64xf32>
    %1476 = arith.mulf %1474, %1475 : vector<16x64xf32>
    %1477 = arith.addf %1470, %1476 : vector<16x64xf32>
    %1478 = vector.extract_strided_slice %1428 {offsets = [2, 0, 0], sizes = [1, 16, 1], strides = [1, 1, 1]} : vector<8x16x1xf32> to vector<1x16x1xf32>
    %1479 = vector.shape_cast %1478 : vector<1x16x1xf32> to vector<16x1xf32>
    %1480 = vector.broadcast %1479 : vector<16x1xf32> to vector<16x64xf32>
    %1481 = arith.mulf %1477, %1480 : vector<16x64xf32>
    %cst_257 = arith.constant dense<0.000000e+00> : vector<64xf32>
    %1482 = vector.multi_reduction <add>, %1481, %cst_257 [0] : vector<16x64xf32> to vector<64xf32>
    %1483 = vector.shape_cast %1482 : vector<64xf32> to vector<1x64xf32>
    %1484 = vector.extract_strided_slice %1418 {offsets = [3, 0], sizes = [1, 64], strides = [1, 1]} : vector<16x64xf32> to vector<1x64xf32>
    %1485 = vector.broadcast %1484 : vector<1x64xf32> to vector<16x64xf32>
    %1486 = arith.mulf %1424, %1485 : vector<16x64xf32>
    %1487 = math.exp %1486 : vector<16x64xf32>
    %1488 = arith.mulf %1487, %1477 : vector<16x64xf32>
    %1489 = vector.extract_strided_slice %1426 {offsets = [3, 0, 0], sizes = [1, 16, 1], strides = [1, 1, 1]} : vector<8x16x1xf32> to vector<1x16x1xf32>
    %1490 = vector.shape_cast %1489 : vector<1x16x1xf32> to vector<16x1xf32>
    %1491 = vector.extract_strided_slice %1419 {offsets = [3, 0], sizes = [1, 64], strides = [1, 1]} : vector<16x64xf32> to vector<1x64xf32>
    %1492 = vector.broadcast %1490 : vector<16x1xf32> to vector<16x64xf32>
    %1493 = vector.broadcast %1491 : vector<1x64xf32> to vector<16x64xf32>
    %1494 = arith.mulf %1492, %1493 : vector<16x64xf32>
    %1495 = arith.addf %1488, %1494 : vector<16x64xf32>
    %1496 = vector.extract_strided_slice %1428 {offsets = [3, 0, 0], sizes = [1, 16, 1], strides = [1, 1, 1]} : vector<8x16x1xf32> to vector<1x16x1xf32>
    %1497 = vector.shape_cast %1496 : vector<1x16x1xf32> to vector<16x1xf32>
    %1498 = vector.broadcast %1497 : vector<16x1xf32> to vector<16x64xf32>
    %1499 = arith.mulf %1495, %1498 : vector<16x64xf32>
    %cst_258 = arith.constant dense<0.000000e+00> : vector<64xf32>
    %1500 = vector.multi_reduction <add>, %1499, %cst_258 [0] : vector<16x64xf32> to vector<64xf32>
    %1501 = vector.shape_cast %1500 : vector<64xf32> to vector<1x64xf32>
    %1502 = vector.extract_strided_slice %1418 {offsets = [4, 0], sizes = [1, 64], strides = [1, 1]} : vector<16x64xf32> to vector<1x64xf32>
    %1503 = vector.broadcast %1502 : vector<1x64xf32> to vector<16x64xf32>
    %1504 = arith.mulf %1424, %1503 : vector<16x64xf32>
    %1505 = math.exp %1504 : vector<16x64xf32>
    %1506 = arith.mulf %1505, %1495 : vector<16x64xf32>
    %1507 = vector.extract_strided_slice %1426 {offsets = [4, 0, 0], sizes = [1, 16, 1], strides = [1, 1, 1]} : vector<8x16x1xf32> to vector<1x16x1xf32>
    %1508 = vector.shape_cast %1507 : vector<1x16x1xf32> to vector<16x1xf32>
    %1509 = vector.extract_strided_slice %1419 {offsets = [4, 0], sizes = [1, 64], strides = [1, 1]} : vector<16x64xf32> to vector<1x64xf32>
    %1510 = vector.broadcast %1508 : vector<16x1xf32> to vector<16x64xf32>
    %1511 = vector.broadcast %1509 : vector<1x64xf32> to vector<16x64xf32>
    %1512 = arith.mulf %1510, %1511 : vector<16x64xf32>
    %1513 = arith.addf %1506, %1512 : vector<16x64xf32>
    %1514 = vector.extract_strided_slice %1428 {offsets = [4, 0, 0], sizes = [1, 16, 1], strides = [1, 1, 1]} : vector<8x16x1xf32> to vector<1x16x1xf32>
    %1515 = vector.shape_cast %1514 : vector<1x16x1xf32> to vector<16x1xf32>
    %1516 = vector.broadcast %1515 : vector<16x1xf32> to vector<16x64xf32>
    %1517 = arith.mulf %1513, %1516 : vector<16x64xf32>
    %cst_259 = arith.constant dense<0.000000e+00> : vector<64xf32>
    %1518 = vector.multi_reduction <add>, %1517, %cst_259 [0] : vector<16x64xf32> to vector<64xf32>
    %1519 = vector.shape_cast %1518 : vector<64xf32> to vector<1x64xf32>
    %1520 = vector.extract_strided_slice %1418 {offsets = [5, 0], sizes = [1, 64], strides = [1, 1]} : vector<16x64xf32> to vector<1x64xf32>
    %1521 = vector.broadcast %1520 : vector<1x64xf32> to vector<16x64xf32>
    %1522 = arith.mulf %1424, %1521 : vector<16x64xf32>
    %1523 = math.exp %1522 : vector<16x64xf32>
    %1524 = arith.mulf %1523, %1513 : vector<16x64xf32>
    %1525 = vector.extract_strided_slice %1426 {offsets = [5, 0, 0], sizes = [1, 16, 1], strides = [1, 1, 1]} : vector<8x16x1xf32> to vector<1x16x1xf32>
    %1526 = vector.shape_cast %1525 : vector<1x16x1xf32> to vector<16x1xf32>
    %1527 = vector.extract_strided_slice %1419 {offsets = [5, 0], sizes = [1, 64], strides = [1, 1]} : vector<16x64xf32> to vector<1x64xf32>
    %1528 = vector.broadcast %1526 : vector<16x1xf32> to vector<16x64xf32>
    %1529 = vector.broadcast %1527 : vector<1x64xf32> to vector<16x64xf32>
    %1530 = arith.mulf %1528, %1529 : vector<16x64xf32>
    %1531 = arith.addf %1524, %1530 : vector<16x64xf32>
    %1532 = vector.extract_strided_slice %1428 {offsets = [5, 0, 0], sizes = [1, 16, 1], strides = [1, 1, 1]} : vector<8x16x1xf32> to vector<1x16x1xf32>
    %1533 = vector.shape_cast %1532 : vector<1x16x1xf32> to vector<16x1xf32>
    %1534 = vector.broadcast %1533 : vector<16x1xf32> to vector<16x64xf32>
    %1535 = arith.mulf %1531, %1534 : vector<16x64xf32>
    %cst_260 = arith.constant dense<0.000000e+00> : vector<64xf32>
    %1536 = vector.multi_reduction <add>, %1535, %cst_260 [0] : vector<16x64xf32> to vector<64xf32>
    %1537 = vector.shape_cast %1536 : vector<64xf32> to vector<1x64xf32>
    %1538 = vector.extract_strided_slice %1418 {offsets = [6, 0], sizes = [1, 64], strides = [1, 1]} : vector<16x64xf32> to vector<1x64xf32>
    %1539 = vector.broadcast %1538 : vector<1x64xf32> to vector<16x64xf32>
    %1540 = arith.mulf %1424, %1539 : vector<16x64xf32>
    %1541 = math.exp %1540 : vector<16x64xf32>
    %1542 = arith.mulf %1541, %1531 : vector<16x64xf32>
    %1543 = vector.extract_strided_slice %1426 {offsets = [6, 0, 0], sizes = [1, 16, 1], strides = [1, 1, 1]} : vector<8x16x1xf32> to vector<1x16x1xf32>
    %1544 = vector.shape_cast %1543 : vector<1x16x1xf32> to vector<16x1xf32>
    %1545 = vector.extract_strided_slice %1419 {offsets = [6, 0], sizes = [1, 64], strides = [1, 1]} : vector<16x64xf32> to vector<1x64xf32>
    %1546 = vector.broadcast %1544 : vector<16x1xf32> to vector<16x64xf32>
    %1547 = vector.broadcast %1545 : vector<1x64xf32> to vector<16x64xf32>
    %1548 = arith.mulf %1546, %1547 : vector<16x64xf32>
    %1549 = arith.addf %1542, %1548 : vector<16x64xf32>
    %1550 = vector.extract_strided_slice %1428 {offsets = [6, 0, 0], sizes = [1, 16, 1], strides = [1, 1, 1]} : vector<8x16x1xf32> to vector<1x16x1xf32>
    %1551 = vector.shape_cast %1550 : vector<1x16x1xf32> to vector<16x1xf32>
    %1552 = vector.broadcast %1551 : vector<16x1xf32> to vector<16x64xf32>
    %1553 = arith.mulf %1549, %1552 : vector<16x64xf32>
    %cst_261 = arith.constant dense<0.000000e+00> : vector<64xf32>
    %1554 = vector.multi_reduction <add>, %1553, %cst_261 [0] : vector<16x64xf32> to vector<64xf32>
    %1555 = vector.shape_cast %1554 : vector<64xf32> to vector<1x64xf32>
    %1556 = vector.extract_strided_slice %1418 {offsets = [7, 0], sizes = [1, 64], strides = [1, 1]} : vector<16x64xf32> to vector<1x64xf32>
    %1557 = vector.broadcast %1556 : vector<1x64xf32> to vector<16x64xf32>
    %1558 = arith.mulf %1424, %1557 : vector<16x64xf32>
    %1559 = math.exp %1558 : vector<16x64xf32>
    %1560 = arith.mulf %1559, %1549 : vector<16x64xf32>
    %1561 = vector.extract_strided_slice %1426 {offsets = [7, 0, 0], sizes = [1, 16, 1], strides = [1, 1, 1]} : vector<8x16x1xf32> to vector<1x16x1xf32>
    %1562 = vector.shape_cast %1561 : vector<1x16x1xf32> to vector<16x1xf32>
    %1563 = vector.extract_strided_slice %1419 {offsets = [7, 0], sizes = [1, 64], strides = [1, 1]} : vector<16x64xf32> to vector<1x64xf32>
    %1564 = vector.broadcast %1562 : vector<16x1xf32> to vector<16x64xf32>
    %1565 = vector.broadcast %1563 : vector<1x64xf32> to vector<16x64xf32>
    %1566 = arith.mulf %1564, %1565 : vector<16x64xf32>
    %1567 = arith.addf %1560, %1566 : vector<16x64xf32>
    %1568 = vector.extract_strided_slice %1428 {offsets = [7, 0, 0], sizes = [1, 16, 1], strides = [1, 1, 1]} : vector<8x16x1xf32> to vector<1x16x1xf32>
    %1569 = vector.shape_cast %1568 : vector<1x16x1xf32> to vector<16x1xf32>
    %1570 = vector.broadcast %1569 : vector<16x1xf32> to vector<16x64xf32>
    %1571 = arith.mulf %1567, %1570 : vector<16x64xf32>
    %cst_262 = arith.constant dense<0.000000e+00> : vector<64xf32>
    %1572 = vector.multi_reduction <add>, %1571, %cst_262 [0] : vector<16x64xf32> to vector<64xf32>
    %1573 = vector.shape_cast %1572 : vector<64xf32> to vector<1x64xf32>
    %1574 = vector.extract_strided_slice %1407 {offsets = [8, 0], sizes = [8, 16], strides = [1, 1]} : vector<16x96xf32> to vector<8x16xf32>
    %1575 = vector.shape_cast %1574 : vector<8x16xf32> to vector<8x16x1xf32>
    %1576 = vector.extract_strided_slice %1407 {offsets = [8, 16], sizes = [8, 16], strides = [1, 1]} : vector<16x96xf32> to vector<8x16xf32>
    %1577 = vector.shape_cast %1576 : vector<8x16xf32> to vector<8x16x1xf32>
    %cst_263 = arith.constant 0.000000e+00 : f32
    %1578 = vector.broadcast %cst_263 : f32 to vector<16x64xf32>
    %1579 = vector.extract_strided_slice %1418 {offsets = [8, 0], sizes = [1, 64], strides = [1, 1]} : vector<16x64xf32> to vector<1x64xf32>
    %1580 = vector.broadcast %1579 : vector<1x64xf32> to vector<16x64xf32>
    %1581 = arith.mulf %1424, %1580 : vector<16x64xf32>
    %1582 = math.exp %1581 : vector<16x64xf32>
    %1583 = arith.mulf %1582, %1578 : vector<16x64xf32>
    %1584 = vector.extract_strided_slice %1575 {offsets = [0, 0, 0], sizes = [1, 16, 1], strides = [1, 1, 1]} : vector<8x16x1xf32> to vector<1x16x1xf32>
    %1585 = vector.shape_cast %1584 : vector<1x16x1xf32> to vector<16x1xf32>
    %1586 = vector.extract_strided_slice %1419 {offsets = [8, 0], sizes = [1, 64], strides = [1, 1]} : vector<16x64xf32> to vector<1x64xf32>
    %1587 = vector.broadcast %1585 : vector<16x1xf32> to vector<16x64xf32>
    %1588 = vector.broadcast %1586 : vector<1x64xf32> to vector<16x64xf32>
    %1589 = arith.mulf %1587, %1588 : vector<16x64xf32>
    %1590 = arith.addf %1583, %1589 : vector<16x64xf32>
    %1591 = vector.extract_strided_slice %1577 {offsets = [0, 0, 0], sizes = [1, 16, 1], strides = [1, 1, 1]} : vector<8x16x1xf32> to vector<1x16x1xf32>
    %1592 = vector.shape_cast %1591 : vector<1x16x1xf32> to vector<16x1xf32>
    %1593 = vector.broadcast %1592 : vector<16x1xf32> to vector<16x64xf32>
    %1594 = arith.mulf %1590, %1593 : vector<16x64xf32>
    %cst_264 = arith.constant dense<0.000000e+00> : vector<64xf32>
    %1595 = vector.multi_reduction <add>, %1594, %cst_264 [0] : vector<16x64xf32> to vector<64xf32>
    %1596 = vector.shape_cast %1595 : vector<64xf32> to vector<1x64xf32>
    %1597 = vector.extract_strided_slice %1418 {offsets = [9, 0], sizes = [1, 64], strides = [1, 1]} : vector<16x64xf32> to vector<1x64xf32>
    %1598 = vector.broadcast %1597 : vector<1x64xf32> to vector<16x64xf32>
    %1599 = arith.mulf %1424, %1598 : vector<16x64xf32>
    %1600 = math.exp %1599 : vector<16x64xf32>
    %1601 = arith.mulf %1600, %1590 : vector<16x64xf32>
    %1602 = vector.extract_strided_slice %1575 {offsets = [1, 0, 0], sizes = [1, 16, 1], strides = [1, 1, 1]} : vector<8x16x1xf32> to vector<1x16x1xf32>
    %1603 = vector.shape_cast %1602 : vector<1x16x1xf32> to vector<16x1xf32>
    %1604 = vector.extract_strided_slice %1419 {offsets = [9, 0], sizes = [1, 64], strides = [1, 1]} : vector<16x64xf32> to vector<1x64xf32>
    %1605 = vector.broadcast %1603 : vector<16x1xf32> to vector<16x64xf32>
    %1606 = vector.broadcast %1604 : vector<1x64xf32> to vector<16x64xf32>
    %1607 = arith.mulf %1605, %1606 : vector<16x64xf32>
    %1608 = arith.addf %1601, %1607 : vector<16x64xf32>
    %1609 = vector.extract_strided_slice %1577 {offsets = [1, 0, 0], sizes = [1, 16, 1], strides = [1, 1, 1]} : vector<8x16x1xf32> to vector<1x16x1xf32>
    %1610 = vector.shape_cast %1609 : vector<1x16x1xf32> to vector<16x1xf32>
    %1611 = vector.broadcast %1610 : vector<16x1xf32> to vector<16x64xf32>
    %1612 = arith.mulf %1608, %1611 : vector<16x64xf32>
    %cst_265 = arith.constant dense<0.000000e+00> : vector<64xf32>
    %1613 = vector.multi_reduction <add>, %1612, %cst_265 [0] : vector<16x64xf32> to vector<64xf32>
    %1614 = vector.shape_cast %1613 : vector<64xf32> to vector<1x64xf32>
    %1615 = vector.extract_strided_slice %1418 {offsets = [10, 0], sizes = [1, 64], strides = [1, 1]} : vector<16x64xf32> to vector<1x64xf32>
    %1616 = vector.broadcast %1615 : vector<1x64xf32> to vector<16x64xf32>
    %1617 = arith.mulf %1424, %1616 : vector<16x64xf32>
    %1618 = math.exp %1617 : vector<16x64xf32>
    %1619 = arith.mulf %1618, %1608 : vector<16x64xf32>
    %1620 = vector.extract_strided_slice %1575 {offsets = [2, 0, 0], sizes = [1, 16, 1], strides = [1, 1, 1]} : vector<8x16x1xf32> to vector<1x16x1xf32>
    %1621 = vector.shape_cast %1620 : vector<1x16x1xf32> to vector<16x1xf32>
    %1622 = vector.extract_strided_slice %1419 {offsets = [10, 0], sizes = [1, 64], strides = [1, 1]} : vector<16x64xf32> to vector<1x64xf32>
    %1623 = vector.broadcast %1621 : vector<16x1xf32> to vector<16x64xf32>
    %1624 = vector.broadcast %1622 : vector<1x64xf32> to vector<16x64xf32>
    %1625 = arith.mulf %1623, %1624 : vector<16x64xf32>
    %1626 = arith.addf %1619, %1625 : vector<16x64xf32>
    %1627 = vector.extract_strided_slice %1577 {offsets = [2, 0, 0], sizes = [1, 16, 1], strides = [1, 1, 1]} : vector<8x16x1xf32> to vector<1x16x1xf32>
    %1628 = vector.shape_cast %1627 : vector<1x16x1xf32> to vector<16x1xf32>
    %1629 = vector.broadcast %1628 : vector<16x1xf32> to vector<16x64xf32>
    %1630 = arith.mulf %1626, %1629 : vector<16x64xf32>
    %cst_266 = arith.constant dense<0.000000e+00> : vector<64xf32>
    %1631 = vector.multi_reduction <add>, %1630, %cst_266 [0] : vector<16x64xf32> to vector<64xf32>
    %1632 = vector.shape_cast %1631 : vector<64xf32> to vector<1x64xf32>
    %1633 = vector.extract_strided_slice %1418 {offsets = [11, 0], sizes = [1, 64], strides = [1, 1]} : vector<16x64xf32> to vector<1x64xf32>
    %1634 = vector.broadcast %1633 : vector<1x64xf32> to vector<16x64xf32>
    %1635 = arith.mulf %1424, %1634 : vector<16x64xf32>
    %1636 = math.exp %1635 : vector<16x64xf32>
    %1637 = arith.mulf %1636, %1626 : vector<16x64xf32>
    %1638 = vector.extract_strided_slice %1575 {offsets = [3, 0, 0], sizes = [1, 16, 1], strides = [1, 1, 1]} : vector<8x16x1xf32> to vector<1x16x1xf32>
    %1639 = vector.shape_cast %1638 : vector<1x16x1xf32> to vector<16x1xf32>
    %1640 = vector.extract_strided_slice %1419 {offsets = [11, 0], sizes = [1, 64], strides = [1, 1]} : vector<16x64xf32> to vector<1x64xf32>
    %1641 = vector.broadcast %1639 : vector<16x1xf32> to vector<16x64xf32>
    %1642 = vector.broadcast %1640 : vector<1x64xf32> to vector<16x64xf32>
    %1643 = arith.mulf %1641, %1642 : vector<16x64xf32>
    %1644 = arith.addf %1637, %1643 : vector<16x64xf32>
    %1645 = vector.extract_strided_slice %1577 {offsets = [3, 0, 0], sizes = [1, 16, 1], strides = [1, 1, 1]} : vector<8x16x1xf32> to vector<1x16x1xf32>
    %1646 = vector.shape_cast %1645 : vector<1x16x1xf32> to vector<16x1xf32>
    %1647 = vector.broadcast %1646 : vector<16x1xf32> to vector<16x64xf32>
    %1648 = arith.mulf %1644, %1647 : vector<16x64xf32>
    %cst_267 = arith.constant dense<0.000000e+00> : vector<64xf32>
    %1649 = vector.multi_reduction <add>, %1648, %cst_267 [0] : vector<16x64xf32> to vector<64xf32>
    %1650 = vector.shape_cast %1649 : vector<64xf32> to vector<1x64xf32>
    %1651 = vector.extract_strided_slice %1418 {offsets = [12, 0], sizes = [1, 64], strides = [1, 1]} : vector<16x64xf32> to vector<1x64xf32>
    %1652 = vector.broadcast %1651 : vector<1x64xf32> to vector<16x64xf32>
    %1653 = arith.mulf %1424, %1652 : vector<16x64xf32>
    %1654 = math.exp %1653 : vector<16x64xf32>
    %1655 = arith.mulf %1654, %1644 : vector<16x64xf32>
    %1656 = vector.extract_strided_slice %1575 {offsets = [4, 0, 0], sizes = [1, 16, 1], strides = [1, 1, 1]} : vector<8x16x1xf32> to vector<1x16x1xf32>
    %1657 = vector.shape_cast %1656 : vector<1x16x1xf32> to vector<16x1xf32>
    %1658 = vector.extract_strided_slice %1419 {offsets = [12, 0], sizes = [1, 64], strides = [1, 1]} : vector<16x64xf32> to vector<1x64xf32>
    %1659 = vector.broadcast %1657 : vector<16x1xf32> to vector<16x64xf32>
    %1660 = vector.broadcast %1658 : vector<1x64xf32> to vector<16x64xf32>
    %1661 = arith.mulf %1659, %1660 : vector<16x64xf32>
    %1662 = arith.addf %1655, %1661 : vector<16x64xf32>
    %1663 = vector.extract_strided_slice %1577 {offsets = [4, 0, 0], sizes = [1, 16, 1], strides = [1, 1, 1]} : vector<8x16x1xf32> to vector<1x16x1xf32>
    %1664 = vector.shape_cast %1663 : vector<1x16x1xf32> to vector<16x1xf32>
    %1665 = vector.broadcast %1664 : vector<16x1xf32> to vector<16x64xf32>
    %1666 = arith.mulf %1662, %1665 : vector<16x64xf32>
    %cst_268 = arith.constant dense<0.000000e+00> : vector<64xf32>
    %1667 = vector.multi_reduction <add>, %1666, %cst_268 [0] : vector<16x64xf32> to vector<64xf32>
    %1668 = vector.shape_cast %1667 : vector<64xf32> to vector<1x64xf32>
    %1669 = vector.extract_strided_slice %1418 {offsets = [13, 0], sizes = [1, 64], strides = [1, 1]} : vector<16x64xf32> to vector<1x64xf32>
    %1670 = vector.broadcast %1669 : vector<1x64xf32> to vector<16x64xf32>
    %1671 = arith.mulf %1424, %1670 : vector<16x64xf32>
    %1672 = math.exp %1671 : vector<16x64xf32>
    %1673 = arith.mulf %1672, %1662 : vector<16x64xf32>
    %1674 = vector.extract_strided_slice %1575 {offsets = [5, 0, 0], sizes = [1, 16, 1], strides = [1, 1, 1]} : vector<8x16x1xf32> to vector<1x16x1xf32>
    %1675 = vector.shape_cast %1674 : vector<1x16x1xf32> to vector<16x1xf32>
    %1676 = vector.extract_strided_slice %1419 {offsets = [13, 0], sizes = [1, 64], strides = [1, 1]} : vector<16x64xf32> to vector<1x64xf32>
    %1677 = vector.broadcast %1675 : vector<16x1xf32> to vector<16x64xf32>
    %1678 = vector.broadcast %1676 : vector<1x64xf32> to vector<16x64xf32>
    %1679 = arith.mulf %1677, %1678 : vector<16x64xf32>
    %1680 = arith.addf %1673, %1679 : vector<16x64xf32>
    %1681 = vector.extract_strided_slice %1577 {offsets = [5, 0, 0], sizes = [1, 16, 1], strides = [1, 1, 1]} : vector<8x16x1xf32> to vector<1x16x1xf32>
    %1682 = vector.shape_cast %1681 : vector<1x16x1xf32> to vector<16x1xf32>
    %1683 = vector.broadcast %1682 : vector<16x1xf32> to vector<16x64xf32>
    %1684 = arith.mulf %1680, %1683 : vector<16x64xf32>
    %cst_269 = arith.constant dense<0.000000e+00> : vector<64xf32>
    %1685 = vector.multi_reduction <add>, %1684, %cst_269 [0] : vector<16x64xf32> to vector<64xf32>
    %1686 = vector.shape_cast %1685 : vector<64xf32> to vector<1x64xf32>
    %1687 = vector.extract_strided_slice %1418 {offsets = [14, 0], sizes = [1, 64], strides = [1, 1]} : vector<16x64xf32> to vector<1x64xf32>
    %1688 = vector.broadcast %1687 : vector<1x64xf32> to vector<16x64xf32>
    %1689 = arith.mulf %1424, %1688 : vector<16x64xf32>
    %1690 = math.exp %1689 : vector<16x64xf32>
    %1691 = arith.mulf %1690, %1680 : vector<16x64xf32>
    %1692 = vector.extract_strided_slice %1575 {offsets = [6, 0, 0], sizes = [1, 16, 1], strides = [1, 1, 1]} : vector<8x16x1xf32> to vector<1x16x1xf32>
    %1693 = vector.shape_cast %1692 : vector<1x16x1xf32> to vector<16x1xf32>
    %1694 = vector.extract_strided_slice %1419 {offsets = [14, 0], sizes = [1, 64], strides = [1, 1]} : vector<16x64xf32> to vector<1x64xf32>
    %1695 = vector.broadcast %1693 : vector<16x1xf32> to vector<16x64xf32>
    %1696 = vector.broadcast %1694 : vector<1x64xf32> to vector<16x64xf32>
    %1697 = arith.mulf %1695, %1696 : vector<16x64xf32>
    %1698 = arith.addf %1691, %1697 : vector<16x64xf32>
    %1699 = vector.extract_strided_slice %1577 {offsets = [6, 0, 0], sizes = [1, 16, 1], strides = [1, 1, 1]} : vector<8x16x1xf32> to vector<1x16x1xf32>
    %1700 = vector.shape_cast %1699 : vector<1x16x1xf32> to vector<16x1xf32>
    %1701 = vector.broadcast %1700 : vector<16x1xf32> to vector<16x64xf32>
    %1702 = arith.mulf %1698, %1701 : vector<16x64xf32>
    %cst_270 = arith.constant dense<0.000000e+00> : vector<64xf32>
    %1703 = vector.multi_reduction <add>, %1702, %cst_270 [0] : vector<16x64xf32> to vector<64xf32>
    %1704 = vector.shape_cast %1703 : vector<64xf32> to vector<1x64xf32>
    %1705 = vector.extract_strided_slice %1418 {offsets = [15, 0], sizes = [1, 64], strides = [1, 1]} : vector<16x64xf32> to vector<1x64xf32>
    %1706 = vector.broadcast %1705 : vector<1x64xf32> to vector<16x64xf32>
    %1707 = arith.mulf %1424, %1706 : vector<16x64xf32>
    %1708 = math.exp %1707 : vector<16x64xf32>
    %1709 = arith.mulf %1708, %1698 : vector<16x64xf32>
    %1710 = vector.extract_strided_slice %1575 {offsets = [7, 0, 0], sizes = [1, 16, 1], strides = [1, 1, 1]} : vector<8x16x1xf32> to vector<1x16x1xf32>
    %1711 = vector.shape_cast %1710 : vector<1x16x1xf32> to vector<16x1xf32>
    %1712 = vector.extract_strided_slice %1419 {offsets = [15, 0], sizes = [1, 64], strides = [1, 1]} : vector<16x64xf32> to vector<1x64xf32>
    %1713 = vector.broadcast %1711 : vector<16x1xf32> to vector<16x64xf32>
    %1714 = vector.broadcast %1712 : vector<1x64xf32> to vector<16x64xf32>
    %1715 = arith.mulf %1713, %1714 : vector<16x64xf32>
    %1716 = arith.addf %1709, %1715 : vector<16x64xf32>
    %1717 = vector.extract_strided_slice %1577 {offsets = [7, 0, 0], sizes = [1, 16, 1], strides = [1, 1, 1]} : vector<8x16x1xf32> to vector<1x16x1xf32>
    %1718 = vector.shape_cast %1717 : vector<1x16x1xf32> to vector<16x1xf32>
    %1719 = vector.broadcast %1718 : vector<16x1xf32> to vector<16x64xf32>
    %1720 = arith.mulf %1716, %1719 : vector<16x64xf32>
    %cst_271 = arith.constant dense<0.000000e+00> : vector<64xf32>
    %1721 = vector.multi_reduction <add>, %1720, %cst_271 [0] : vector<16x64xf32> to vector<64xf32>
    %1722 = vector.shape_cast %1721 : vector<64xf32> to vector<1x64xf32>
    %1723 = tpu.concatenate %1447, %1465, %1483, %1501, %1519, %1537, %1555, %1573, %1596, %1614, %1632, %1650, %1668, %1686, %1704, %1722 in 0 : vector<1x64xf32>, vector<1x64xf32>, vector<1x64xf32>, vector<1x64xf32>, vector<1x64xf32>, vector<1x64xf32>, vector<1x64xf32>, vector<1x64xf32>, vector<1x64xf32>, vector<1x64xf32>, vector<1x64xf32>, vector<1x64xf32>, vector<1x64xf32>, vector<1x64xf32>, vector<1x64xf32>, vector<1x64xf32> -> vector<16x64xf32>
    %c3_272 = arith.constant 3 : index
    %c0_273 = arith.constant 0 : index
    %c0_274 = arith.constant 0 : index
    %1724 = vector.load %arg12[%c3_272, %c0_273, %c0_274] : memref<4x1x64xf32, #tpu.memory_space<vmem>>, vector<1x1x64xf32>
    %1725 = vector.shape_cast %1724 : vector<1x1x64xf32> to vector<1x64xf32>
    %1726 = vector.broadcast %1725 : vector<1x64xf32> to vector<16x64xf32>
    %1727 = arith.mulf %1400, %1726 : vector<16x64xf32>
    %1728 = arith.addf %1723, %1727 : vector<16x64xf32>
    %cst_275 = arith.constant 0.000000e+00 : f32
    %1729 = vector.broadcast %cst_275 : f32 to vector<16x64xf32>
    %1730 = arith.subf %1729, %1346 : vector<16x64xf32>
    %1731 = math.exp %1730 : vector<16x64xf32>
    %cst_276 = arith.constant 1.000000e+00 : f32
    %1732 = vector.broadcast %cst_276 : f32 to vector<16x64xf32>
    %1733 = arith.addf %1732, %1731 : vector<16x64xf32>
    %1734 = tpu.reciprocal %1733 {approx = true} : vector<16x64xf32> -> vector<16x64xf32>
    %1735 = arith.mulf %1346, %1734 : vector<16x64xf32>
    %1736 = arith.mulf %1728, %1735 : vector<16x64xf32>
    %c3_277 = arith.constant 3 : index
    %c0_278 = arith.constant 0 : index
    %c0_279 = arith.constant 0 : index
    %1737 = vector.load %arg13[%c3_277, %c0_278, %c0_279] : memref<4x64x32xf32, #tpu.memory_space<vmem>>, vector<1x64x32xf32>
    %1738 = vector.shape_cast %1737 : vector<1x64x32xf32> to vector<64x32xf32>
    %cst_280 = arith.constant dense<0.000000e+00> : vector<16x32xf32>
    %1739 = tpu.matmul %1736, %1738, %cst_280 {dimension_numbers = #tpu.dot_dimension_numbers<[1], [0], [0], [1], [0, 0, 1, 1], [], []>} : vector<16x64xf32>, vector<64x32xf32>, vector<16x32xf32> -> vector<16x32xf32>
    %c3_281 = arith.constant 3 : index
    %c0_282 = arith.constant 0 : index
    %c0_283 = arith.constant 0 : index
    %1740 = vector.load %arg14[%c3_281, %c0_282, %c0_283] : memref<4x1x32xf32, #tpu.memory_space<vmem>>, vector<1x1x32xf32>
    %1741 = vector.shape_cast %1740 : vector<1x1x32xf32> to vector<1x32xf32>
    %1742 = vector.broadcast %1741 : vector<1x32xf32> to vector<16x32xf32>
    %1743 = arith.addf %1739, %1742 : vector<16x32xf32>
    %1744 = arith.addf %1743, %1330 : vector<16x32xf32>
    %c3_284 = arith.constant 3 : index
    %c0_285 = arith.constant 0 : index
    %c0_286 = arith.constant 0 : index
    %1745 = vector.load %arg15[%c3_284, %c0_285, %c0_286] : memref<4x1x32xf32, #tpu.memory_space<vmem>>, vector<1x1x32xf32>
    %1746 = vector.shape_cast %1745 : vector<1x1x32xf32> to vector<1x32xf32>
    %c3_287 = arith.constant 3 : index
    %c0_288 = arith.constant 0 : index
    %c0_289 = arith.constant 0 : index
    %1747 = vector.load %arg16[%c3_287, %c0_288, %c0_289] : memref<4x1x32xf32, #tpu.memory_space<vmem>>, vector<1x1x32xf32>
    %1748 = vector.shape_cast %1747 : vector<1x1x32xf32> to vector<1x32xf32>
    %cst_290 = arith.constant dense<0.000000e+00> : vector<16xf32>
    %1749 = vector.multi_reduction <add>, %1744, %cst_290 [1] : vector<16x32xf32> to vector<16xf32>
    %1750 = vector.shape_cast %1749 : vector<16xf32> to vector<16x1xf32>
    %cst_291 = arith.constant 3.200000e+01 : f32
    %1751 = vector.broadcast %cst_291 : f32 to vector<16x1xf32>
    %1752 = arith.divf %1750, %1751 : vector<16x1xf32>
    %1753 = vector.broadcast %1752 : vector<16x1xf32> to vector<16x32xf32>
    %1754 = arith.subf %1744, %1753 : vector<16x32xf32>
    %1755 = arith.mulf %1754, %1754 : vector<16x32xf32>
    %cst_292 = arith.constant dense<0.000000e+00> : vector<16xf32>
    %1756 = vector.multi_reduction <add>, %1755, %cst_292 [1] : vector<16x32xf32> to vector<16xf32>
    %1757 = vector.shape_cast %1756 : vector<16xf32> to vector<16x1xf32>
    %cst_293 = arith.constant 3.200000e+01 : f32
    %1758 = vector.broadcast %cst_293 : f32 to vector<16x1xf32>
    %1759 = arith.divf %1757, %1758 : vector<16x1xf32>
    %1760 = vector.broadcast %1752 : vector<16x1xf32> to vector<16x32xf32>
    %1761 = arith.subf %1744, %1760 : vector<16x32xf32>
    %cst_294 = arith.constant 9.99999974E-6 : f32
    %1762 = vector.broadcast %cst_294 : f32 to vector<16x1xf32>
    %1763 = arith.addf %1759, %1762 : vector<16x1xf32>
    %1764 = math.rsqrt %1763 : vector<16x1xf32>
    %1765 = vector.broadcast %1764 : vector<16x1xf32> to vector<16x32xf32>
    %1766 = arith.mulf %1761, %1765 : vector<16x32xf32>
    %1767 = vector.broadcast %1746 : vector<1x32xf32> to vector<16x32xf32>
    %1768 = arith.mulf %1766, %1767 : vector<16x32xf32>
    %1769 = vector.broadcast %1748 : vector<1x32xf32> to vector<16x32xf32>
    %1770 = arith.addf %1768, %1769 : vector<16x32xf32>
    %1771 = vector.extract_strided_slice %1770 {offsets = [0, 0], sizes = [8, 32], strides = [1, 1]} : vector<16x32xf32> to vector<8x32xf32>
    %cst_295 = arith.constant dense<0.000000e+00> : vector<32xf32>
    %1772 = vector.multi_reduction <add>, %1771, %cst_295 [0] : vector<8x32xf32> to vector<32xf32>
    %1773 = vector.shape_cast %1772 : vector<32xf32> to vector<1x32xf32>
    %cst_296 = arith.constant 8.000000e+00 : f32
    %1774 = vector.broadcast %cst_296 : f32 to vector<1x32xf32>
    %1775 = arith.divf %1773, %1774 : vector<1x32xf32>
    %1776 = vector.extract_strided_slice %1770 {offsets = [8, 0], sizes = [8, 32], strides = [1, 1]} : vector<16x32xf32> to vector<8x32xf32>
    %cst_297 = arith.constant dense<0.000000e+00> : vector<32xf32>
    %1777 = vector.multi_reduction <add>, %1776, %cst_297 [0] : vector<8x32xf32> to vector<32xf32>
    %1778 = vector.shape_cast %1777 : vector<32xf32> to vector<1x32xf32>
    %cst_298 = arith.constant 8.000000e+00 : f32
    %1779 = vector.broadcast %cst_298 : f32 to vector<1x32xf32>
    %1780 = arith.divf %1778, %1779 : vector<1x32xf32>
    %1781 = tpu.concatenate %1775, %1780 in 0 : vector<1x32xf32>, vector<1x32xf32> -> vector<2x32xf32>
    %c0_299 = arith.constant 0 : index
    %c0_300 = arith.constant 0 : index
    %c0_301 = arith.constant 0 : index
    %1782 = vector.load %arg2[%c0_299, %c0_300, %c0_301] : memref<2x1x2xf32, #tpu.memory_space<vmem>>, vector<2x1x2xf32>
    %1783 = vector.shape_cast %1782 : vector<2x1x2xf32> to vector<2x2xf32>
    %1784 = vector.extract_strided_slice %1783 {offsets = [0, 0], sizes = [2, 1], strides = [1, 1]} : vector<2x2xf32> to vector<2x1xf32>
    %c0_302 = arith.constant 0 : index
    %c0_303 = arith.constant 0 : index
    %1785 = vector.load %arg17[%c0_302, %c0_303] : memref<2x8xf32, #tpu.memory_space<vmem>>, vector<1x8xf32>
    %1786 = vector.broadcast %1784 : vector<2x1xf32> to vector<2x8xf32>
    %1787 = vector.broadcast %1785 : vector<1x8xf32> to vector<2x8xf32>
    %1788 = arith.mulf %1786, %1787 : vector<2x8xf32>
    %1789 = vector.extract_strided_slice %1783 {offsets = [0, 1], sizes = [2, 1], strides = [1, 1]} : vector<2x2xf32> to vector<2x1xf32>
    %c1_304 = arith.constant 1 : index
    %c0_305 = arith.constant 0 : index
    %1790 = vector.load %arg17[%c1_304, %c0_305] : memref<2x8xf32, #tpu.memory_space<vmem>>, vector<1x8xf32>
    %1791 = vector.broadcast %1789 : vector<2x1xf32> to vector<2x8xf32>
    %1792 = vector.broadcast %1790 : vector<1x8xf32> to vector<2x8xf32>
    %1793 = arith.mulf %1791, %1792 : vector<2x8xf32>
    %1794 = arith.addf %1788, %1793 : vector<2x8xf32>
    %c0_306 = arith.constant 0 : index
    %c0_307 = arith.constant 0 : index
    %1795 = vector.load %arg18[%c0_306, %c0_307] : memref<1x8xf32, #tpu.memory_space<vmem>>, vector<1x8xf32>
    %1796 = vector.broadcast %1795 : vector<1x8xf32> to vector<2x8xf32>
    %1797 = arith.addf %1794, %1796 : vector<2x8xf32>
    %cst_308 = arith.constant 0.000000e+00 : f32
    %1798 = vector.broadcast %cst_308 : f32 to vector<2x8xf32>
    %1799 = arith.maximumf %1797, %1798 : vector<2x8xf32>
    %c0_309 = arith.constant 0 : index
    %c0_310 = arith.constant 0 : index
    %1800 = vector.load %arg19[%c0_309, %c0_310] : memref<32x32xf32, #tpu.memory_space<vmem>>, vector<32x32xf32>
    %cst_311 = arith.constant dense<0.000000e+00> : vector<2x32xf32>
    %1801 = tpu.matmul %1781, %1800, %cst_311 {dimension_numbers = #tpu.dot_dimension_numbers<[1], [0], [0], [1], [0, 0, 1, 1], [], []>} : vector<2x32xf32>, vector<32x32xf32>, vector<2x32xf32> -> vector<2x32xf32>
    %c0_312 = arith.constant 0 : index
    %c0_313 = arith.constant 0 : index
    %1802 = vector.load %arg20[%c0_312, %c0_313] : memref<8x32xf32, #tpu.memory_space<vmem>>, vector<8x32xf32>
    %cst_314 = arith.constant dense<0.000000e+00> : vector<2x32xf32>
    %1803 = tpu.matmul %1799, %1802, %cst_314 {dimension_numbers = #tpu.dot_dimension_numbers<[1], [0], [0], [1], [0, 0, 1, 1], [], []>} : vector<2x8xf32>, vector<8x32xf32>, vector<2x32xf32> -> vector<2x32xf32>
    %1804 = arith.addf %1801, %1803 : vector<2x32xf32>
    %c0_315 = arith.constant 0 : index
    %c0_316 = arith.constant 0 : index
    %1805 = vector.load %arg21[%c0_315, %c0_316] : memref<1x32xf32, #tpu.memory_space<vmem>>, vector<1x32xf32>
    %1806 = vector.broadcast %1805 : vector<1x32xf32> to vector<2x32xf32>
    %1807 = arith.addf %1804, %1806 : vector<2x32xf32>
    %c0_317 = arith.constant 0 : index
    %c0_318 = arith.constant 0 : index
    %1808 = vector.load %arg22[%c0_317, %c0_318] : memref<1x32xf32, #tpu.memory_space<vmem>>, vector<1x32xf32>
    %c0_319 = arith.constant 0 : index
    %c0_320 = arith.constant 0 : index
    %1809 = vector.load %arg23[%c0_319, %c0_320] : memref<1x32xf32, #tpu.memory_space<vmem>>, vector<1x32xf32>
    %cst_321 = arith.constant dense<0.000000e+00> : vector<2xf32>
    %1810 = vector.multi_reduction <add>, %1807, %cst_321 [1] : vector<2x32xf32> to vector<2xf32>
    %1811 = vector.shape_cast %1810 : vector<2xf32> to vector<2x1xf32>
    %cst_322 = arith.constant 3.200000e+01 : f32
    %1812 = vector.broadcast %cst_322 : f32 to vector<2x1xf32>
    %1813 = arith.divf %1811, %1812 : vector<2x1xf32>
    %1814 = vector.broadcast %1813 : vector<2x1xf32> to vector<2x32xf32>
    %1815 = arith.subf %1807, %1814 : vector<2x32xf32>
    %1816 = arith.mulf %1815, %1815 : vector<2x32xf32>
    %cst_323 = arith.constant dense<0.000000e+00> : vector<2xf32>
    %1817 = vector.multi_reduction <add>, %1816, %cst_323 [1] : vector<2x32xf32> to vector<2xf32>
    %1818 = vector.shape_cast %1817 : vector<2xf32> to vector<2x1xf32>
    %cst_324 = arith.constant 3.200000e+01 : f32
    %1819 = vector.broadcast %cst_324 : f32 to vector<2x1xf32>
    %1820 = arith.divf %1818, %1819 : vector<2x1xf32>
    %1821 = vector.broadcast %1813 : vector<2x1xf32> to vector<2x32xf32>
    %1822 = arith.subf %1807, %1821 : vector<2x32xf32>
    %cst_325 = arith.constant 9.99999974E-6 : f32
    %1823 = vector.broadcast %cst_325 : f32 to vector<2x1xf32>
    %1824 = arith.addf %1820, %1823 : vector<2x1xf32>
    %1825 = math.rsqrt %1824 : vector<2x1xf32>
    %1826 = vector.broadcast %1825 : vector<2x1xf32> to vector<2x32xf32>
    %1827 = arith.mulf %1822, %1826 : vector<2x32xf32>
    %1828 = vector.broadcast %1808 : vector<1x32xf32> to vector<2x32xf32>
    %1829 = arith.mulf %1827, %1828 : vector<2x32xf32>
    %1830 = vector.broadcast %1809 : vector<1x32xf32> to vector<2x32xf32>
    %1831 = arith.addf %1829, %1830 : vector<2x32xf32>
    %cst_326 = arith.constant 0.000000e+00 : f32
    %1832 = vector.broadcast %cst_326 : f32 to vector<2x32xf32>
    %1833 = arith.maximumf %1831, %1832 : vector<2x32xf32>
    %c0_327 = arith.constant 0 : index
    %c0_328 = arith.constant 0 : index
    %1834 = vector.load %arg24[%c0_327, %c0_328] : memref<32x32xf32, #tpu.memory_space<vmem>>, vector<32x32xf32>
    %cst_329 = arith.constant dense<0.000000e+00> : vector<2x32xf32>
    %1835 = tpu.matmul %1833, %1834, %cst_329 {dimension_numbers = #tpu.dot_dimension_numbers<[1], [0], [0], [1], [0, 0, 1, 1], [], []>} : vector<2x32xf32>, vector<32x32xf32>, vector<2x32xf32> -> vector<2x32xf32>
    %c0_330 = arith.constant 0 : index
    %c0_331 = arith.constant 0 : index
    %1836 = vector.load %arg25[%c0_330, %c0_331] : memref<1x32xf32, #tpu.memory_space<vmem>>, vector<1x32xf32>
    %1837 = vector.broadcast %1836 : vector<1x32xf32> to vector<2x32xf32>
    %1838 = arith.addf %1835, %1837 : vector<2x32xf32>
    %c0_332 = arith.constant 0 : index
    %c0_333 = arith.constant 0 : index
    %1839 = vector.load %arg26[%c0_332, %c0_333] : memref<1x32xf32, #tpu.memory_space<vmem>>, vector<1x32xf32>
    %c0_334 = arith.constant 0 : index
    %c0_335 = arith.constant 0 : index
    %1840 = vector.load %arg27[%c0_334, %c0_335] : memref<1x32xf32, #tpu.memory_space<vmem>>, vector<1x32xf32>
    %cst_336 = arith.constant dense<0.000000e+00> : vector<2xf32>
    %1841 = vector.multi_reduction <add>, %1838, %cst_336 [1] : vector<2x32xf32> to vector<2xf32>
    %1842 = vector.shape_cast %1841 : vector<2xf32> to vector<2x1xf32>
    %cst_337 = arith.constant 3.200000e+01 : f32
    %1843 = vector.broadcast %cst_337 : f32 to vector<2x1xf32>
    %1844 = arith.divf %1842, %1843 : vector<2x1xf32>
    %1845 = vector.broadcast %1844 : vector<2x1xf32> to vector<2x32xf32>
    %1846 = arith.subf %1838, %1845 : vector<2x32xf32>
    %1847 = arith.mulf %1846, %1846 : vector<2x32xf32>
    %cst_338 = arith.constant dense<0.000000e+00> : vector<2xf32>
    %1848 = vector.multi_reduction <add>, %1847, %cst_338 [1] : vector<2x32xf32> to vector<2xf32>
    %1849 = vector.shape_cast %1848 : vector<2xf32> to vector<2x1xf32>
    %cst_339 = arith.constant 3.200000e+01 : f32
    %1850 = vector.broadcast %cst_339 : f32 to vector<2x1xf32>
    %1851 = arith.divf %1849, %1850 : vector<2x1xf32>
    %1852 = vector.broadcast %1844 : vector<2x1xf32> to vector<2x32xf32>
    %1853 = arith.subf %1838, %1852 : vector<2x32xf32>
    %cst_340 = arith.constant 9.99999974E-6 : f32
    %1854 = vector.broadcast %cst_340 : f32 to vector<2x1xf32>
    %1855 = arith.addf %1851, %1854 : vector<2x1xf32>
    %1856 = math.rsqrt %1855 : vector<2x1xf32>
    %1857 = vector.broadcast %1856 : vector<2x1xf32> to vector<2x32xf32>
    %1858 = arith.mulf %1853, %1857 : vector<2x32xf32>
    %1859 = vector.broadcast %1839 : vector<1x32xf32> to vector<2x32xf32>
    %1860 = arith.mulf %1858, %1859 : vector<2x32xf32>
    %1861 = vector.broadcast %1840 : vector<1x32xf32> to vector<2x32xf32>
    %1862 = arith.addf %1860, %1861 : vector<2x32xf32>
    %cst_341 = arith.constant 0.000000e+00 : f32
    %1863 = vector.broadcast %cst_341 : f32 to vector<2x32xf32>
    %1864 = arith.maximumf %1862, %1863 : vector<2x32xf32>
    %c0_342 = arith.constant 0 : index
    %c0_343 = arith.constant 0 : index
    %1865 = vector.load %arg28[%c0_342, %c0_343] : memref<32x2xf32, #tpu.memory_space<vmem>>, vector<32x2xf32>
    %cst_344 = arith.constant dense<0.000000e+00> : vector<2x2xf32>
    %1866 = tpu.matmul %1864, %1865, %cst_344 {dimension_numbers = #tpu.dot_dimension_numbers<[1], [0], [0], [1], [0, 0, 1, 1], [], []>} : vector<2x32xf32>, vector<32x2xf32>, vector<2x2xf32> -> vector<2x2xf32>
    %c0_345 = arith.constant 0 : index
    %c0_346 = arith.constant 0 : index
    %1867 = vector.load %arg29[%c0_345, %c0_346] : memref<1x2xf32, #tpu.memory_space<vmem>>, vector<1x2xf32>
    %1868 = vector.broadcast %1867 : vector<1x2xf32> to vector<2x2xf32>
    %1869 = arith.addf %1866, %1868 : vector<2x2xf32>
    %1870 = tpu.iota {dimensions = array<i32: 1>} : vector<2x2xi32>
    %c1_i32 = arith.constant 1 : i32
    %1871 = vector.broadcast %c1_i32 : i32 to vector<2x2xi32>
    %1872 = arith.cmpi slt, %1870, %1871 : vector<2x2xi32>
    %cst_347 = arith.constant -2.000000e+00 : f32
    %cst_348 = arith.constant 2.000000e+00 : f32
    %1873 = vector.broadcast %cst_347 : f32 to vector<2x2xf32>
    %1874 = arith.maximumf %1873, %1869 : vector<2x2xf32>
    %1875 = vector.broadcast %cst_348 : f32 to vector<2x2xf32>
    %1876 = arith.minimumf %1875, %1874 : vector<2x2xf32>
    %1877 = arith.select %1872, %1869, %1876 : vector<2x2xi1>, vector<2x2xf32>
    %c0_349 = arith.constant 0 : index
    %c0_350 = arith.constant 0 : index
    %c0_351 = arith.constant 0 : index
    %1878 = vector.load %arg30[%c0_349, %c0_350, %c0_351] : memref<2x1x2xf32, #tpu.memory_space<vmem>>, vector<2x1x2xf32>
    %1879 = vector.shape_cast %1878 : vector<2x1x2xf32> to vector<2x2xf32>
    %1880 = vector.shape_cast %1877 : vector<2x2xf32> to vector<2x1x2xf32>
    tpu.vector_store %arg30[%c0_349, %c0_350, %c0_351], %1880 {strides = array<i32>} : memref<2x1x2xf32, #tpu.memory_space<vmem>>, vector<2x1x2xf32>,
    return
  }
  func.func @transform_0(%arg0: i32) -> (i32, i32, i32) {
    %c0_i32 = arith.constant 0 : i32
    %c0_i32_0 = arith.constant 0 : i32
    %c0_i32_1 = arith.constant 0 : i32
    return %arg0, %c0_i32, %c0_i32_0 : i32, i32, i32
  }
  func.func @transform_1(%arg0: i32) -> (i32, i32, i32) {
    %c0_i32 = arith.constant 0 : i32
    %c0_i32_0 = arith.constant 0 : i32
    %c0_i32_1 = arith.constant 0 : i32
    return %arg0, %c0_i32, %c0_i32_0 : i32, i32, i32
  }
  func.func @transform_2(%arg0: i32) -> (i32, i32) {
    %c0_i32 = arith.constant 0 : i32
    %c0_i32_0 = arith.constant 0 : i32
    %c0_i32_1 = arith.constant 0 : i32
    return %c0_i32, %c0_i32_0 : i32, i32
  }
  func.func @transform_3(%arg0: i32) -> (i32, i32) {
    %c0_i32 = arith.constant 0 : i32
    %c0_i32_0 = arith.constant 0 : i32
    %c0_i32_1 = arith.constant 0 : i32
    return %c0_i32, %c0_i32_0 : i32, i32
  }
  func.func @transform_4(%arg0: i32) -> (i32, i32, i32) {
    %c0_i32 = arith.constant 0 : i32
    %c0_i32_0 = arith.constant 0 : i32
    %c0_i32_1 = arith.constant 0 : i32
    %c0_i32_2 = arith.constant 0 : i32
    return %c0_i32, %c0_i32_0, %c0_i32_1 : i32, i32, i32
  }
  func.func @transform_5(%arg0: i32) -> (i32, i32, i32) {
    %c0_i32 = arith.constant 0 : i32
    %c0_i32_0 = arith.constant 0 : i32
    %c0_i32_1 = arith.constant 0 : i32
    %c0_i32_2 = arith.constant 0 : i32
    return %c0_i32, %c0_i32_0, %c0_i32_1 : i32, i32, i32
  }
  func.func @transform_6(%arg0: i32) -> (i32, i32, i32) {
    %c0_i32 = arith.constant 0 : i32
    %c0_i32_0 = arith.constant 0 : i32
    %c0_i32_1 = arith.constant 0 : i32
    %c0_i32_2 = arith.constant 0 : i32
    return %c0_i32, %c0_i32_0, %c0_i32_1 : i32, i32, i32
  }
  func.func @transform_7(%arg0: i32) -> (i32, i32, i32) {
    %c0_i32 = arith.constant 0 : i32
    %c0_i32_0 = arith.constant 0 : i32
    %c0_i32_1 = arith.constant 0 : i32
    %c0_i32_2 = arith.constant 0 : i32
    return %c0_i32, %c0_i32_0, %c0_i32_1 : i32, i32, i32
  }
  func.func @transform_8(%arg0: i32) -> (i32, i32, i32) {
    %c0_i32 = arith.constant 0 : i32
    %c0_i32_0 = arith.constant 0 : i32
    %c0_i32_1 = arith.constant 0 : i32
    %c0_i32_2 = arith.constant 0 : i32
    return %c0_i32, %c0_i32_0, %c0_i32_1 : i32, i32, i32
  }
  func.func @transform_9(%arg0: i32) -> (i32, i32, i32) {
    %c0_i32 = arith.constant 0 : i32
    %c0_i32_0 = arith.constant 0 : i32
    %c0_i32_1 = arith.constant 0 : i32
    %c0_i32_2 = arith.constant 0 : i32
    return %c0_i32, %c0_i32_0, %c0_i32_1 : i32, i32, i32
  }
  func.func @transform_10(%arg0: i32) -> (i32, i32, i32) {
    %c0_i32 = arith.constant 0 : i32
    %c0_i32_0 = arith.constant 0 : i32
    %c0_i32_1 = arith.constant 0 : i32
    %c0_i32_2 = arith.constant 0 : i32
    return %c0_i32, %c0_i32_0, %c0_i32_1 : i32, i32, i32
  }
  func.func @transform_11(%arg0: i32) -> (i32, i32, i32) {
    %c0_i32 = arith.constant 0 : i32
    %c0_i32_0 = arith.constant 0 : i32
    %c0_i32_1 = arith.constant 0 : i32
    %c0_i32_2 = arith.constant 0 : i32
    return %c0_i32, %c0_i32_0, %c0_i32_1 : i32, i32, i32
  }
  func.func @transform_12(%arg0: i32) -> (i32, i32, i32) {
    %c0_i32 = arith.constant 0 : i32
    %c0_i32_0 = arith.constant 0 : i32
    %c0_i32_1 = arith.constant 0 : i32
    %c0_i32_2 = arith.constant 0 : i32
    return %c0_i32, %c0_i32_0, %c0_i32_1 : i32, i32, i32
  }
  func.func @transform_13(%arg0: i32) -> (i32, i32, i32) {
    %c0_i32 = arith.constant 0 : i32
    %c0_i32_0 = arith.constant 0 : i32
    %c0_i32_1 = arith.constant 0 : i32
    %c0_i32_2 = arith.constant 0 : i32
    return %c0_i32, %c0_i32_0, %c0_i32_1 : i32, i32, i32
  }
  func.func @transform_14(%arg0: i32) -> (i32, i32, i32) {
    %c0_i32 = arith.constant 0 : i32
    %c0_i32_0 = arith.constant 0 : i32
    %c0_i32_1 = arith.constant 0 : i32
    %c0_i32_2 = arith.constant 0 : i32
    return %c0_i32, %c0_i32_0, %c0_i32_1 : i32, i32, i32
  }
  func.func @transform_15(%arg0: i32) -> (i32, i32, i32) {
    %c0_i32 = arith.constant 0 : i32
    %c0_i32_0 = arith.constant 0 : i32
    %c0_i32_1 = arith.constant 0 : i32
    %c0_i32_2 = arith.constant 0 : i32
    return %c0_i32, %c0_i32_0, %c0_i32_1 : i32, i32, i32
  }
  func.func @transform_16(%arg0: i32) -> (i32, i32) {
    %c0_i32 = arith.constant 0 : i32
    %c0_i32_0 = arith.constant 0 : i32
    %c0_i32_1 = arith.constant 0 : i32
    return %c0_i32, %c0_i32_0 : i32, i32
  }
  func.func @transform_17(%arg0: i32) -> (i32, i32) {
    %c0_i32 = arith.constant 0 : i32
    %c0_i32_0 = arith.constant 0 : i32
    %c0_i32_1 = arith.constant 0 : i32
    return %c0_i32, %c0_i32_0 : i32, i32
  }
  func.func @transform_18(%arg0: i32) -> (i32, i32) {
    %c0_i32 = arith.constant 0 : i32
    %c0_i32_0 = arith.constant 0 : i32
    %c0_i32_1 = arith.constant 0 : i32
    return %c0_i32, %c0_i32_0 : i32, i32
  }
  func.func @transform_19(%arg0: i32) -> (i32, i32) {
    %c0_i32 = arith.constant 0 : i32
    %c0_i32_0 = arith.constant 0 : i32
    %c0_i32_1 = arith.constant 0 : i32
    return %c0_i32, %c0_i32_0 : i32, i32
  }
  func.func @transform_20(%arg0: i32) -> (i32, i32) {
    %c0_i32 = arith.constant 0 : i32
    %c0_i32_0 = arith.constant 0 : i32
    %c0_i32_1 = arith.constant 0 : i32
    return %c0_i32, %c0_i32_0 : i32, i32
  }
  func.func @transform_21(%arg0: i32) -> (i32, i32) {
    %c0_i32 = arith.constant 0 : i32
    %c0_i32_0 = arith.constant 0 : i32
    %c0_i32_1 = arith.constant 0 : i32
    return %c0_i32, %c0_i32_0 : i32, i32
  }
  func.func @transform_22(%arg0: i32) -> (i32, i32) {
    %c0_i32 = arith.constant 0 : i32
    %c0_i32_0 = arith.constant 0 : i32
    %c0_i32_1 = arith.constant 0 : i32
    return %c0_i32, %c0_i32_0 : i32, i32
  }
  func.func @transform_23(%arg0: i32) -> (i32, i32) {
    %c0_i32 = arith.constant 0 : i32
    %c0_i32_0 = arith.constant 0 : i32
    %c0_i32_1 = arith.constant 0 : i32
    return %c0_i32, %c0_i32_0 : i32, i32
  }
  func.func @transform_24(%arg0: i32) -> (i32, i32) {
    %c0_i32 = arith.constant 0 : i32
    %c0_i32_0 = arith.constant 0 : i32
    %c0_i32_1 = arith.constant 0 : i32
    return %c0_i32, %c0_i32_0 : i32, i32
  }
  func.func @transform_25(%arg0: i32) -> (i32, i32) {
    %c0_i32 = arith.constant 0 : i32
    %c0_i32_0 = arith.constant 0 : i32
    %c0_i32_1 = arith.constant 0 : i32
    return %c0_i32, %c0_i32_0 : i32, i32
  }
  func.func @transform_26(%arg0: i32) -> (i32, i32) {
    %c0_i32 = arith.constant 0 : i32
    %c0_i32_0 = arith.constant 0 : i32
    %c0_i32_1 = arith.constant 0 : i32
    return %c0_i32, %c0_i32_0 : i32, i32
  }
  func.func @transform_27(%arg0: i32) -> (i32, i32) {
    %c0_i32 = arith.constant 0 : i32
    %c0_i32_0 = arith.constant 0 : i32
    %c0_i32_1 = arith.constant 0 : i32
    return %c0_i32, %c0_i32_0 : i32, i32
  }
  func.func @transform_28(%arg0: i32) -> (i32, i32) {
    %c0_i32 = arith.constant 0 : i32
    %c0_i32_0 = arith.constant 0 : i32
    %c0_i32_1 = arith.constant 0 : i32
    return %c0_i32, %c0_i32_0 : i32, i32
  }
  func.func @transform_29(%arg0: i32) -> (i32, i32, i32) {
    %c0_i32 = arith.constant 0 : i32
    %c0_i32_0 = arith.constant 0 : i32
    %c0_i32_1 = arith.constant 0 : i32
    return %arg0, %c0_i32, %c0_i32_0 : i32, i32, i32
  }
}

</mosaic_0001>

<bundles_post_ra>
// kernel: tpu_custom_call.1
= control target key start
LH: loop header
LB: loop body
LE: loop exit
PB: predicated region body
PF: predicated region fallthrough
CT: control target
= control target key end

     0   :  { %s8579_s6 = smov 1   ;;  %s8580_s10 = smov 2   ;;  %s11072_s0 = inlined_call_operand.smem [shape: u32[30], index: -1, kind: input, shape index: {}] }
   0x1   :  { %s8645_s5 = sld [smem:[%s11072_s0]]   ;;  %s8581_s14 = smov 3  }
   0x2   :  { %s8650_s9 = sld [smem:[%s11072_s0 + %s8579_s6]]   ;;  %s8582_s18 = smov 4  }
   0x3   :  { %s8655_s13 = sld [smem:[%s11072_s0 + %s8580_s10]]   ;;  %s8583_s22 = smov 5  }
   0x4   :  { %s8660_s17 = sld [smem:[%s11072_s0 + %s8581_s14]]   ;;  %s8584_s26 = smov 6  }
   0x5   :  { %s8665_s21 = sld [smem:[%s11072_s0 + %s8582_s18]]   ;;  %s8585_s30 = smov 7  }
   0x6   :  { %s8670_s25 = sld [smem:[%s11072_s0 + %s8583_s22]]   ;;  %s8586_s4 = smov 8  }
   0x7   :  { %s8675_s29 = sld [smem:[%s11072_s0 + %s8584_s26]]   ;;  %s8587_s10 = smov 9  }
   0x8   :  { %s8680_s3 = sld [smem:[%s11072_s0 + %s8585_s30]]   ;;  %s8588_s15 = smov 10  }
   0x9   :  { %s8685_s8 = sld [smem:[%s11072_s0 + %s8586_s4]]   ;;  %s8589_s20 = smov 11  }
   0xa   :  { %s8690_s14 = sld [smem:[%s11072_s0 + %s8587_s10]]   ;;  %s8590_s26 = smov 12  }
   0xb   :  { %11131 = sst [smem:[#allocation35_spill]] %s8665_s21  ;;  %s8591_s1 = smov 13  }
   0xc   :  { %s8695_s19 = sld [smem:[%s11072_s0 + %s8588_s15]]   ;;  %s8592_s7 = smov 14  }
   0xd   :  { %s8700_s24 = sld [smem:[%s11072_s0 + %s8589_s20]]   ;;  %s8593_s15 = smov 15  }
   0xe   :  { %s8705_s30 = sld [smem:[%s11072_s0 + %s8590_s26]]   ;;  %s8594_s22 = smov 16  }
   0xf   :  { %11132 = sst [smem:[#allocation36_spill]] %s8685_s8  ;;  %s8595_s28 = smov 17  }
  0x10   :  { %s8710_s6 = sld [smem:[%s11072_s0 + %s8591_s1]]  }
  0x11   :  { %s8715_s12 = sld [smem:[%s11072_s0 + %s8592_s7]]   ;;  %s8596_s7 = smov 18  }
  0x12   :  { %11133 = sst [smem:[#allocation37_spill]] %s8695_s19 }
  0x13   :  { %11134 = sst [smem:[#allocation38_spill]] %s8700_s24 }
  0x14   :  { %11135 = sst [smem:[#allocation39_spill]] %s8705_s30 }
  0x15   :  { %s8720_s20 = sld [smem:[%s11072_s0 + %s8593_s15]]   ;;  %s8597_s15 = smov 19  }
  0x16   :  { %s8725_s27 = sld [smem:[%s11072_s0 + %s8594_s22]]   ;;  %s8598_s22 = smov 20  }
  0x17   :  { %s8730_s4 = sld [smem:[%s11072_s0 + %s8595_s28]]   ;;  %s8599_s28 = smov 21  }
  0x18   :  { %s8735_s24 = sld [smem:[%s11072_s0 + %s8596_s7]]   ;;  %s8600_s7 = smov 22  }
  0x19   :  { %s8740_s19 = sld [smem:[%s11072_s0 + %s8597_s15]]   ;;  %s8601_s15 = smov 23  }
  0x1a   :  { %s8750_s30 = sld [smem:[%s11072_s0 + %s8599_s28]]   ;;  %s8603_s28 = smov 25  }
  0x1b   :  { %s8760_s8 = sld [smem:[%s11072_s0 + %s8601_s15]]   ;;  %s8605_s15 = smov 27  }
  0x1c   :  { %11136 = sst [smem:[#allocation40_spill]] %s8725_s27 }
  0x1d   :  { %s8745_s27 = sld [smem:[%s11072_s0 + %s8598_s22]]   ;;  %s8602_s22 = smov 24  }
  0x1e   :  { %11137 = sst [smem:[#allocation41_spill]] %s8735_s24 }
  0x1f   :  { %s8755_s24 = sld [smem:[%s11072_s0 + %s8600_s7]]   ;;  %s8604_s7 = smov 26  }
  0x20   :  { %11139 = sst [smem:[#allocation43_spill]] %s8750_s30 }
  0x21   :  { %s8770_s30 = sld [smem:[%s11072_s0 + %s8603_s28]]   ;;  %s8607_s28 = smov 29  }
  0x22   :  { %s8780_s21 = sld [smem:[%s11072_s0 + %s8605_s15]]  }
  0x23   :  { %11138 = sst [smem:[#allocation42_spill]] %s8745_s27 }
  0x24   :  { %s8765_s27 = sld [smem:[%s11072_s0 + %s8602_s22]]   ;;  %s8606_s22 = smov 28  }
  0x25   :  { %11140 = sst [smem:[#allocation44_spill]] %s8755_s24 }
  0x26   :  { %s8775_s24 = sld [smem:[%s11072_s0 + %s8604_s7]]  }
  0x27   :  { %11142 = sst [smem:[#allocation46_spill]] %s8770_s30 }
  0x28   :  { %s8790_s30 = sld [smem:[%s11072_s0 + %s8607_s28]]  }
  0x2a   :  { %11141 = sst [smem:[#allocation45_spill]] %s8765_s27 }
  0x2b   :  { %s8785_s27 = sld [smem:[%s11072_s0 + %s8606_s22]]  }
  0x2c   :  { %64 = vsyncpa [#allocation3], 0 }
  0x2d   :  { %65 = vsyncpa [#allocation6], 0 }
  0x2e   :  { %66 = vsyncpa [#allocation9], 0 }
  0x2f   :  { %67 = vsyncpa [#allocation12], 0 }
  0x30   :  { %68 = vsyncpa [#allocation15], 0 }
  0x31   :  { %69 = vsyncpa [#allocation18], 0 }
  0x32   :  { %70 = vsyncpa [#allocation21], 0 }
  0x33   :  { %71 = vsyncpa [#allocation24], 0 }
  0x34   :  { %72 = vsyncpa [#allocation4], 0  ;;  %s8608_s7 = smov [#allocation5]   ;;  %s8231_s11 = scalar_lea.hbm %s8650_s9, 32 }
  0x35   :  { %s90_s10 = sshll.u32 %s8608_s7, 4  ;;  %p8232_p0 = scmp.ne.s32.totalorder %s8650_s9, %s8231_s11  ;;  %s91_s10 = int_to_ptr.vmem [resolvable:$true] %s90_s10 }
  0x36   :  { %p8235_p1 = scmp.lt.u32.totalorder %s8231_s11, %s8650_s9 }
  0x38   :  { %p8237_p2 = pnand %p8235_p1, %p8232_p0 }
  0x3a   :  { %8240 = shalt.err (!%p8237_p2)
}
  0x3b   :  { %s8241_s0 = scalar_lea.vmem %s91_s10, 32  ;;  %p8246_p4 = scmp.lt.s32.totalorder %s91_s10, %s91_s10 }
  0x3c   :  { %p8242_p3 = scmp.ne.s32.totalorder %s91_s10, %s8241_s0  ;;  %p8247_p5 = scmp.lt.s32.totalorder %s8241_s0, %s8241_s0 }
  0x3e   :  { %p8248_p6 = por %p8247_p5, %p8246_p4 }
  0x40   :  { %p8249_p7 = pnand %p8248_p6, %p8242_p3 }
  0x42   :  { %8252 = shalt.err (!%p8249_p7)
}
  0x43   :  { %s8609_s15 = smov 16   ;;  %s8610_s16 = smov 1  }
  0x44   :  { %96 = dma.hbm_to_vmem [thread:$0]  %s8650_s9, 32, %s91_s10, [#allocation6], %s8609_s15, %s8609_s15, %s8610_s16  }
  0x45   :  { %s8611_s18 = smov [#allocation8]   ;;  %s8612_s23 = smov [#allocation11]  }
  0x46   :  { %s113_s22 = sshll.u32 %s8611_s18, 4  ;;  %s136_s26 = sshll.u32 %s8612_s23, 4  ;;  %s114_s22 = int_to_ptr.vmem [resolvable:$true] %s113_s22  ;;  %s137_s26 = int_to_ptr.vmem [resolvable:$true] %s136_s26 }
  0x47   :  { %s8253_s28 = scalar_lea.hbm %s8660_s17, 16 }
  0x48   :  { %p8254_p8 = scmp.ne.s32.totalorder %s8660_s17, %s8253_s28  ;;  %p8257_p9 = scmp.lt.u32.totalorder %s8253_s28, %s8660_s17 }
  0x4a   :  { %p8259_p10 = pnand %p8257_p9, %p8254_p8 }
  0x4c   :  { %8262 = shalt.err (!%p8259_p10)
}
  0x4d   :  { %s8263_s1 = scalar_lea.vmem %s114_s22, 16  ;;  %s8267_s2 = scalar_lea.vmem %s114_s22, 32 }
  0x4e   :  { %p8264_p11 = scmp.ne.s32.totalorder %s114_s22, %s8263_s1  ;;  %p8268_p12 = scmp.lt.s32.totalorder %s114_s22, %s114_s22 }
  0x4f   :  { %p8269_p13 = scmp.lt.s32.totalorder %s8267_s2, %s8263_s1 }
  0x51   :  { %p8270_p0 = por %p8269_p13, %p8268_p12 }
  0x53   :  { %p8271_p1 = pnand %p8270_p0, %p8264_p11 }
  0x55   :  { %8274 = shalt.err (!%p8271_p1)
}
  0x56   :  { %116 = dma.hbm_to_vmem [thread:$0]  %s8660_s17, 16, %s114_s22, [#allocation9]  }
  0x57   :  { %s8275_s9 = scalar_lea.hbm %s8675_s29, 256 }
  0x58   :  { %p8276_p2 = scmp.ne.s32.totalorder %s8675_s29, %s8275_s9  ;;  %p8279_p3 = scmp.lt.u32.totalorder %s8275_s9, %s8675_s29 }
  0x5a   :  { %p8281_p4 = pnand %p8279_p3, %p8276_p2 }
  0x5c   :  { %8284 = shalt.err (!%p8281_p4)
}
  0x5d   :  { %s8285_s7 = scalar_lea.vmem %s137_s26, 256  ;;  %p8290_p6 = scmp.lt.s32.totalorder %s137_s26, %s137_s26 }
  0x5e   :  { %p8286_p5 = scmp.ne.s32.totalorder %s137_s26, %s8285_s7  ;;  %p8291_p7 = scmp.lt.s32.totalorder %s8285_s7, %s8285_s7 }
  0x60   :  { %p8292_p8 = por %p8291_p7, %p8290_p6 }
  0x62   :  { %p8293_p9 = pnand %p8292_p8, %p8286_p5 }
  0x64   :  { %8296 = shalt.err (!%p8293_p9)
}
  0x65   :  { %s8613_s10 = smov 64   ;;  %s8614_s11 = smov 4  }
  0x66   :  { %142 = dma.hbm_to_vmem [thread:$0]  %s8675_s29, 256, %s137_s26, [#allocation12], %s8613_s10, %s8613_s10, %s8614_s11  }
  0x67   :  { %s8615_s17 = smov [#allocation14]   ;;  %s8616_s18 = smov [#allocation17]  }
  0x68   :  { %s162_s0 = sshll.u32 %s8615_s17, 4  ;;  %s192_s22 = sshll.u32 %s8616_s18, 4  ;;  %s163_s0 = int_to_ptr.vmem [resolvable:$true] %s162_s0  ;;  %s193_s22 = int_to_ptr.vmem [resolvable:$true] %s192_s22 }
  0x69   :  { %s8297_s23 = scalar_lea.hbm %s8690_s14, 64 }
  0x6a   :  { %p8298_p10 = scmp.ne.s32.totalorder %s8690_s14, %s8297_s23  ;;  %p8301_p11 = scmp.lt.u32.totalorder %s8297_s23, %s8690_s14 }
  0x6c   :  { %p8303_p12 = pnand %p8301_p11, %p8298_p10 }
  0x6e   :  { %8306 = shalt.err (!%p8303_p12)
}
  0x6f   :  { %s8307_s28 = scalar_lea.vmem %s163_s0, 64  ;;  %p8312_p0 = scmp.lt.s32.totalorder %s163_s0, %s163_s0 }
  0x70   :  { %p8308_p13 = scmp.ne.s32.totalorder %s163_s0, %s8307_s28  ;;  %p8313_p1 = scmp.lt.s32.totalorder %s8307_s28, %s8307_s28 }
  0x72   :  { %p8314_p2 = por %p8313_p1, %p8312_p0 }
  0x74   :  { %p8315_p3 = pnand %p8314_p2, %p8308_p13 }
  0x76   :  { %8318 = shalt.err (!%p8315_p3)
}
  0x77   :  { %168 = dma.hbm_to_vmem [thread:$0]  %s8690_s14, 64, %s163_s0, [#allocation15], %s8609_s15, %s8609_s15, %s8610_s16  }
  0x78   :  { %s8319_s29 = scalar_lea.hbm %s8715_s12, 64 }
  0x79   :  { %p8320_p4 = scmp.ne.s32.totalorder %s8715_s12, %s8319_s29  ;;  %p8323_p5 = scmp.lt.u32.totalorder %s8319_s29, %s8715_s12 }
  0x7b   :  { %p8325_p6 = pnand %p8323_p5, %p8320_p4 }
  0x7d   :  { %8328 = shalt.err (!%p8325_p6)
}
  0x7e   :  { %s8329_s26 = scalar_lea.vmem %s193_s22, 64  ;;  %p8334_p8 = scmp.lt.s32.totalorder %s193_s22, %s193_s22 }
  0x7f   :  { %p8330_p7 = scmp.ne.s32.totalorder %s193_s22, %s8329_s26  ;;  %p8335_p9 = scmp.lt.s32.totalorder %s8329_s26, %s8329_s26 }
  0x81   :  { %p8336_p10 = por %p8335_p9, %p8334_p8 }
  0x83   :  { %p8337_p11 = pnand %p8336_p10, %p8330_p7 }
  0x85   :  { %8340 = shalt.err (!%p8337_p11)
}
  0x86   :  { %198 = dma.hbm_to_vmem [thread:$0]  %s8715_s12, 64, %s193_s22, [#allocation18], %s8609_s15, %s8609_s15, %s8610_s16  }
  0x87   :  { %s8617_s14 = smov [#allocation20]   ;;  %s8618_s2 = smov [#allocation2]  }
  0x88   :  { %s219_s1 = sshll.u32 %s8617_s14, 4  ;;  %s78_s9 = sshll.u32 %s8618_s2, 4  ;;  %s220_s1 = int_to_ptr.vmem [resolvable:$true] %s219_s1  ;;  %s79_s9 = int_to_ptr.vmem [resolvable:$true] %s78_s9 }
  0x89   :  { %s8341_s7 = scalar_lea.hbm %s8730_s4, 16 }
  0x8a   :  { %p8342_p12 = scmp.ne.s32.totalorder %s8730_s4, %s8341_s7  ;;  %p8345_p13 = scmp.lt.u32.totalorder %s8341_s7, %s8730_s4 }
  0x8c   :  { %p8347_p0 = pnand %p8345_p13, %p8342_p12 }
  0x8e   :  { %8350 = shalt.err (!%p8347_p0)
}
  0x8f   :  { %s8351_s11 = scalar_lea.vmem %s220_s1, 16  ;;  %s8355_s17 = scalar_lea.vmem %s220_s1, 32 }
  0x90   :  { %p8352_p1 = scmp.ne.s32.totalorder %s220_s1, %s8351_s11  ;;  %p8356_p2 = scmp.lt.s32.totalorder %s220_s1, %s220_s1 }
  0x91   :  { %p8357_p3 = scmp.lt.s32.totalorder %s8355_s17, %s8351_s11 }
  0x93   :  { %p8358_p4 = por %p8357_p3, %p8356_p2 }
  0x95   :  { %p8359_p5 = pnand %p8358_p4, %p8352_p1 }
  0x97   :  { %8362 = shalt.err (!%p8359_p5)
}
  0x98   :  { %222 = dma.hbm_to_vmem [thread:$0]  %s8730_s4, 16, %s220_s1, [#allocation21]  }
  0x99   :  { %s8363_s12 = scalar_lea.hbm %s8645_s5, 256 }
  0x9a   :  { %p8364_p6 = scmp.ne.s32.totalorder %s8645_s5, %s8363_s12  ;;  %p8367_p7 = scmp.lt.u32.totalorder %s8363_s12, %s8645_s5 }
  0x9c   :  { %p8369_p8 = pnand %p8367_p7, %p8364_p6 }
  0x9e   :  { %8372 = shalt.err (!%p8369_p8)
}
  0x9f   :  { %s8373_s0 = scalar_lea.vmem %s79_s9, 256  ;;  %p8378_p10 = scmp.lt.s32.totalorder %s79_s9, %s79_s9 }
  0xa0   :  { %p8374_p9 = scmp.ne.s32.totalorder %s79_s9, %s8373_s0  ;;  %p8379_p11 = scmp.lt.s32.totalorder %s8373_s0, %s8373_s0 }
  0xa2   :  { %p8380_p12 = por %p8379_p11, %p8378_p10 }
  0xa4   :  { %p8381_p13 = pnand %p8380_p12, %p8374_p9 }
  0xa6   :  { %8384 = shalt.err (!%p8381_p13)
}
  0xa7   :  { %s8619_s18 = smov 128   ;;  %s8620_s22 = smov 8  }
  0xa8   :  { %84 = dma.hbm_to_vmem [thread:$0]  %s8645_s5, 256, %s79_s9, [#allocation3], %s8619_s18, %s8619_s18, %s8620_s22  }
  0xa9   :  { %s8621_s4 = smov [#allocation7]   ;;  %s8622_s28 = smov [#allocation10]  }
  0xaa   :  { %s103_s23 = sshll.u32 %s8621_s4, 4  ;;  %s124_s29 = sshll.u32 %s8622_s28, 4  ;;  %s104_s23 = int_to_ptr.vmem [resolvable:$true] %s103_s23  ;;  %s125_s29 = int_to_ptr.vmem [resolvable:$true] %s124_s29 }
  0xab   :  { %s8385_s26 = scalar_lea.hbm %s8655_s13, 128 }
  0xac   :  { %p8386_p0 = scmp.ne.s32.totalorder %s8655_s13, %s8385_s26  ;;  %p8389_p1 = scmp.lt.u32.totalorder %s8385_s26, %s8655_s13 }
  0xae   :  { %p8391_p2 = pnand %p8389_p1, %p8386_p0 }
  0xb0   :  { %8394 = shalt.err (!%p8391_p2)
}
  0xb1   :  { %s8395_s14 = scalar_lea.vmem %s104_s23, 128  ;;  %p8400_p4 = scmp.lt.s32.totalorder %s104_s23, %s104_s23 }
  0xb2   :  { %p8396_p3 = scmp.ne.s32.totalorder %s104_s23, %s8395_s14  ;;  %p8401_p5 = scmp.lt.s32.totalorder %s8395_s14, %s8395_s14 }
  0xb4   :  { %p8402_p6 = por %p8401_p5, %p8400_p4 }
  0xb6   :  { %p8403_p7 = pnand %p8402_p6, %p8396_p3 }
  0xb8   :  { %8406 = shalt.err (!%p8403_p7)
}
  0xb9   :  { %106 = dma.hbm_to_vmem [thread:$0]  %s8655_s13, 128, %s104_s23, [#allocation6]  }
  0xba   :  { %s8407_s5 = scalar_lea.hbm %s8670_s25, 64 }
  0xbb   :  { %p8408_p8 = scmp.ne.s32.totalorder %s8670_s25, %s8407_s5  ;;  %p8411_p9 = scmp.lt.u32.totalorder %s8407_s5, %s8670_s25 }
  0xbd   :  { %p8413_p10 = pnand %p8411_p9, %p8408_p8 }
  0xbf   :  { %8416 = shalt.err (!%p8413_p10)
}
  0xc0   :  { %s8417_s1 = scalar_lea.vmem %s125_s29, 64  ;;  %p8422_p12 = scmp.lt.s32.totalorder %s125_s29, %s125_s29 }
  0xc1   :  { %p8418_p11 = scmp.ne.s32.totalorder %s125_s29, %s8417_s1  ;;  %p8423_p13 = scmp.lt.s32.totalorder %s8417_s1, %s8417_s1 }
  0xc3   :  { %p8424_p0 = por %p8423_p13, %p8422_p12 }
  0xc5   :  { %p8425_p1 = pnand %p8424_p0, %p8418_p11 }
  0xc7   :  { %8428 = shalt.err (!%p8425_p1)
}
  0xc8   :  { %130 = dma.hbm_to_vmem [thread:$0]  %s8670_s25, 64, %s125_s29, [#allocation9], %s8609_s15, %s8609_s15, %s8610_s16  }
  0xc9   :  { %s8623_s13 = smov [#allocation13]   ;;  %s8624_s9 = smov [#allocation16]  }
  0xca   :  { %s148_s2 = sshll.u32 %s8623_s13, 4  ;;  %s180_s7 = sshll.u32 %s8624_s9, 4  ;;  %s149_s2 = int_to_ptr.vmem [resolvable:$true] %s148_s2  ;;  %s181_s7 = int_to_ptr.vmem [resolvable:$true] %s180_s7 }
  0xcb   :  { %s8429_s11 = scalar_lea.hbm %s8680_s3, 64 }
  0xcc   :  { %p8430_p2 = scmp.ne.s32.totalorder %s8680_s3, %s8429_s11  ;;  %p8433_p3 = scmp.lt.u32.totalorder %s8429_s11, %s8680_s3 }
  0xce   :  { %p8435_p4 = pnand %p8433_p3, %p8430_p2 }
  0xd0   :  { %8438 = shalt.err (!%p8435_p4)
}
  0xd1   :  { %s8439_s17 = scalar_lea.vmem %s149_s2, 64  ;;  %p8444_p6 = scmp.lt.s32.totalorder %s149_s2, %s149_s2 }
  0xd2   :  { %p8440_p5 = scmp.ne.s32.totalorder %s149_s2, %s8439_s17  ;;  %p8445_p7 = scmp.lt.s32.totalorder %s8439_s17, %s8439_s17 }
  0xd4   :  { %p8446_p8 = por %p8445_p7, %p8444_p6 }
  0xd6   :  { %p8447_p9 = pnand %p8446_p8, %p8440_p5 }
  0xd8   :  { %8450 = shalt.err (!%p8447_p9)
}
  0xd9   :  { %154 = dma.hbm_to_vmem [thread:$0]  %s8680_s3, 64, %s149_s2, [#allocation12], %s8609_s15, %s8609_s15, %s8610_s16  }
  0xda   :  { %s8451_s25 = scalar_lea.hbm %s8710_s6, 64 }
  0xdb   :  { %p8452_p10 = scmp.ne.s32.totalorder %s8710_s6, %s8451_s25  ;;  %p8455_p11 = scmp.lt.u32.totalorder %s8451_s25, %s8710_s6 }
  0xdd   :  { %p8457_p12 = pnand %p8455_p11, %p8452_p10 }
  0xdf   :  { %8460 = shalt.err (!%p8457_p12)
}
  0xe0   :  { %s8461_s12 = scalar_lea.vmem %s181_s7, 64  ;;  %p8466_p0 = scmp.lt.s32.totalorder %s181_s7, %s181_s7 }
  0xe1   :  { %p8462_p13 = scmp.ne.s32.totalorder %s181_s7, %s8461_s12  ;;  %p8467_p1 = scmp.lt.s32.totalorder %s8461_s12, %s8461_s12 }
  0xe3   :  { %p8468_p2 = por %p8467_p1, %p8466_p0 }
  0xe5   :  { %p8469_p3 = pnand %p8468_p2, %p8462_p13 }
  0xe7   :  { %8472 = shalt.err (!%p8469_p3)
}
  0xe8   :  { %186 = dma.hbm_to_vmem [thread:$0]  %s8710_s6, 64, %s181_s7, [#allocation15], %s8609_s15, %s8609_s15, %s8610_s16  }
  0xe9   :  { %s8625_s3 = smov [#allocation19]   ;;  %s8626_s4 = smov [#allocation22]  }
  0xea   :  { %s204_s0 = sshll.u32 %s8625_s3, 4  ;;  %s231_s23 = sshll.u32 %s8626_s4, 4  ;;  %s205_s0 = int_to_ptr.vmem [resolvable:$true] %s204_s0  ;;  %s232_s23 = int_to_ptr.vmem [resolvable:$true] %s231_s23 }
  0xeb   :  { %s8473_s28 = scalar_lea.hbm %s8720_s20, 64 }
  0xec   :  { %p8474_p4 = scmp.ne.s32.totalorder %s8720_s20, %s8473_s28  ;;  %p8477_p5 = scmp.lt.u32.totalorder %s8473_s28, %s8720_s20 }
  0xee   :  { %p8479_p6 = pnand %p8477_p5, %p8474_p4 }
  0xf0   :  { %8482 = shalt.err (!%p8479_p6)
}
  0xf1   :  { %s8483_s29 = scalar_lea.vmem %s205_s0, 64  ;;  %p8488_p8 = scmp.lt.s32.totalorder %s205_s0, %s205_s0 }
  0xf2   :  { %p8484_p7 = scmp.ne.s32.totalorder %s205_s0, %s8483_s29  ;;  %p8489_p9 = scmp.lt.s32.totalorder %s8483_s29, %s8483_s29 }
  0xf4   :  { %p8490_p10 = por %p8489_p9, %p8488_p8 }
  0xf6   :  { %p8491_p11 = pnand %p8490_p10, %p8484_p7 }
  0xf8   :  { %8494 = shalt.err (!%p8491_p11)
}
  0xf9   :  { %210 = dma.hbm_to_vmem [thread:$0]  %s8720_s20, 64, %s205_s0, [#allocation18], %s8609_s15, %s8609_s15, %s8610_s16  }
  0xfa   :  { %s8495_s6 = scalar_lea.hbm %s8740_s19, 128 }
  0xfb   :  { %p8496_p12 = scmp.ne.s32.totalorder %s8740_s19, %s8495_s6  ;;  %p8499_p13 = scmp.lt.u32.totalorder %s8495_s6, %s8740_s19 }
  0xfd   :  { %p8501_p0 = pnand %p8499_p13, %p8496_p12 }
  0xff   :  { %8504 = shalt.err (!%p8501_p0)
}
 0x100   :  { %s8505_s26 = scalar_lea.vmem %s232_s23, 128  ;;  %p8510_p2 = scmp.lt.s32.totalorder %s232_s23, %s232_s23 }
 0x101   :  { %p8506_p1 = scmp.ne.s32.totalorder %s232_s23, %s8505_s26  ;;  %p8511_p3 = scmp.lt.s32.totalorder %s8505_s26, %s8505_s26 }
 0x103   :  { %p8512_p4 = por %p8511_p3, %p8510_p2 }
 0x105   :  { %p8513_p5 = pnand %p8512_p4, %p8506_p1 }
 0x107   :  { %8516 = shalt.err (!%p8513_p5)
}
 0x108   :  { %234 = dma.hbm_to_vmem [thread:$0]  %s8740_s19, 128, %s232_s23, [#allocation21]  }
 0x109   :  { %s8627_s14 = smov [#allocation23]   ;;  %s8517_s5 = scalar_lea.hbm %s8760_s8, 512 }
 0x10a   :  { %s246_s20 = sshll.u32 %s8627_s14, 4  ;;  %p8518_p6 = scmp.ne.s32.totalorder %s8760_s8, %s8517_s5  ;;  %s247_s20 = int_to_ptr.vmem [resolvable:$true] %s246_s20 }
 0x10b   :  { %p8521_p7 = scmp.lt.u32.totalorder %s8517_s5, %s8760_s8 }
 0x10d   :  { %p8523_p8 = pnand %p8521_p7, %p8518_p6 }
 0x10f   :  { %8526 = shalt.err (!%p8523_p8)
}
 0x110   :  { %s8527_s1 = scalar_lea.vmem %s247_s20, 512  ;;  %p8532_p10 = scmp.lt.s32.totalorder %s247_s20, %s247_s20 }
 0x111   :  { %p8528_p9 = scmp.ne.s32.totalorder %s247_s20, %s8527_s1  ;;  %p8533_p11 = scmp.lt.s32.totalorder %s8527_s1, %s8527_s1 }
 0x113   :  { %p8534_p12 = por %p8533_p11, %p8532_p10 }
 0x115   :  { %p8535_p13 = pnand %p8534_p12, %p8528_p9 }
 0x117   :  { %8538 = shalt.err (!%p8535_p13)
}
 0x118   :  { %252 = dma.hbm_to_vmem [thread:$0]  %s8760_s8, 512, %s247_s20, [#allocation24], %s8619_s18, %s8619_s18, %s8620_s22  }
 0x119   :  { %8561 = dma.done.wait [#allocation3], 256  }
 0x11a   :  { %8562 = vsyncadd [#allocation3], 4294967040 }
 0x11b   :  { %8563 = dma.done.wait [#allocation6], 160  }
 0x11c   :  { %8564 = vsyncadd [#allocation6], 4294967136 }
 0x11d   :  { %8565 = dma.done.wait [#allocation9], 80  }
 0x11e   :  { %8566 = vsyncadd [#allocation9], 4294967216 }
 0x11f   :  { %8567 = dma.done.wait [#allocation12], 320  }
 0x120   :  { %8568 = vsyncadd [#allocation12], 4294966976 }
 0x121   :  { %8569 = dma.done.wait [#allocation15], 128  }
 0x122   :  { %8570 = vsyncadd [#allocation15], 4294967168 }
 0x123   :  { %8571 = dma.done.wait [#allocation18], 128  }
 0x124   :  { %8572 = vsyncadd [#allocation18], 4294967168 }
 0x125   :  { %8573 = dma.done.wait [#allocation21], 144  }
 0x126   :  { %8574 = vsyncadd [#allocation21], 4294967152 }
 0x127   :  { %8575 = dma.done.wait [#allocation24], 512  }
 0x128   :  { %8576 = vsyncadd [#allocation24], 4294966784  ;;  %s11143_s19 = sld [smem:[#allocation35_spill]]  ;;  %vm316_vm0 = vcmask 64512   ;;  %v308_v0 = vld [vmem:[#allocation7] sm:$0xff]  ;;  %v305_v1 = vld [vmem:[#allocation2] sm:$0xff]  ;;  %v11080_v38 = vlaneseq }
 0x129   :  { %v307_v2 = vld [vmem:[#allocation2 + $0x8] sm:$0xff]  ;;  %7364 = vmatprep.subr.mxu1 %v308_v0  ;;  %7366 = vmatprep.mubr.msk.f32.mxu1 %vm316_vm0, %v305_v1  ;;  %s11144_s8 = sld [smem:[#allocation36_spill]]  ;;  %v7101_v9 = vld [vmem:[#allocation8] ss:$0 sm:$0xff]  ;;  %vm409_vm1 = vcmask 261120   ;;  %vm508_vm2 = vcmask 1042432  }
 0x12a   :  { %7365 = vmatpush3.msra.mxu1 %v308_v0  ;;  %v7104_v26 = vld [vmem:[#allocation10] ss:$0 sm:$0xff]  ;;  %v8900_v40 = vshrl.u32 %v11080_v38, 7  ;;  %v503_v44 = vld [vmem:[#allocation11] sm:$0xf]  ;;  %vm523_vm3 = vcmask 1046528  }
 0x12b   :  { %7367 = vmatmul.mubr.msk.f32.vlgmr.msra.gmra.mrb[0].mxu1 %vm316_vm0, %v307_v2  ;;  %vm537_vm4 = vcmask 1045504   ;;  %vm551_vm5 = vcmask 1044480   ;;  %vm624_vm6 = vcmask 523264   ;;  %s8628_s18 = smov 32   ;;  %s8629_s22 = smov 96   ;;  %vm1732_vm7 = vcmask 1040384  }
 0x12c   :  { %11147 = vst [vmem:[#allocation49_spill] sm:$0xff] %v8900_v40  ;;  %v8903_v41 = vsub.s32 1, %v8900_v40  ;;  %v8906_v42 = vsub.s32 2, %v8900_v40  ;;  %v8909_v43 = vsub.s32 3, %v8900_v40  ;;  %v8912_v46 = vsub.s32 0, %v8900_v40  ;;  %s11158_s13 = sld [smem:[#allocation39_spill]] }
 0x12d   :  { %s11159_s2 = sld [smem:[#allocation37_spill]]  ;;  %vm1734_vm8 = vcmask 1041408   ;;  %vm1737_vm9 = vcmask 1043456   ;;  %s11168_s9 = sld [smem:[#allocation38_spill]]  ;;  %vm8633_vm10 = vmmov 0   ;;  %vm6787_vm11 = vcmask 254976  }
 0x12e   :  { %v398_v3 = vld [vmem:[%s11143_s19] sm:$0xff]  ;;  %v399_v4 = vld [vmem:[%s11143_s19 + $0x8] sm:$0xff]  ;;  %v400_v6 = vld [vmem:[%s11143_s19 + $0x10] sm:$0xff]  ;;  %11148 = vst [vmem:[#allocation50_spill] sm:$0xff] %v8903_v41  ;;  %v518_v49 = vrot.slane %v503_v44, %v8903_v41  ;;  %v532_v50 = vrot.slane %v503_v44, %v8906_v42  ;;  %v546_v51 = vrot.slane %v503_v44, %v8909_v43  ;;  %v513_v55 = vrot.slane %v503_v44, %v8912_v46  ;;  %s11246_s7 = sld [smem:[#allocation40_spill]]  ;;  %s11249_s11 = sld [smem:[#allocation42_spill]] }
 0x12f   :  { %v7603_v5 = vpack.c.bf16 %v399_v4, %v398_v3  ;;  %v401_v7 = vld [vmem:[%s11143_s19 + $0x18] sm:$0xff]  ;;  %v609_v14 = vld [vmem:[%s11144_s8] sm:$0xff]  ;;  %v610_v15 = vld [vmem:[%s11144_s8 + $0x8] sm:$0xff]  ;;  %11149 = vst [vmem:[#allocation51_spill] sm:$0xff] %v8906_v42  ;;  %s11250_s17 = sld [smem:[#allocation43_spill]]  ;;  %s11251_s25 = sld [smem:[#allocation44_spill]] }
 0x130   :  { %v7607_v8 = vpack.c.bf16 %v401_v7, %v400_v6  ;;  %v611_v16 = vld [vmem:[%s11144_s8 + $0x10] sm:$0xff]  ;;  %v7611_v17 = vpack.c.bf16 %v610_v15, %v609_v14  ;;  %v612_v18 = vld [vmem:[%s11144_s8 + $0x18] sm:$0xff]  ;;  %v613_v20 = vld [vmem:[%s11144_s8 + $0x20] sm:$0xff]  ;;  %11150 = vst [vmem:[#allocation52_spill] sm:$0xff] %v8909_v43  ;;  %s11252_s12 = sld [smem:[#allocation45_spill]]  ;;  %s11253_s3 = sld [smem:[#allocation46_spill]] }
 0x131   :  { %7604 = vmatprep.subr.bf16.mxu1 %v7603_v5  ;;  %v7615_v19 = vpack.c.bf16 %v612_v18, %v611_v16  ;;  %v614_v21 = vld [vmem:[%s11144_s8 + $0x28] sm:$0xff]  ;;  %v615_v23 = vld [vmem:[%s11144_s8 + $0x30] sm:$0xff]  ;;  %v616_v24 = vld [vmem:[%s11144_s8 + $0x38] sm:$0xff]  ;;  %11151 = vst [vmem:[#allocation53_spill] sm:$0xff] %v8912_v46  ;;  %vm7045_vm13 = vcmask 8192  }
 0x132   :  { %7606 = vmatpush3.bf16.msra.mxu1 %v7603_v5  ;;  %7612 = vmatprep.subr.bf16.mxu0 %v7611_v17  ;;  %v7619_v22 = vpack.c.bf16 %v614_v21, %v613_v20  ;;  %v7623_v25 = vpack.c.bf16 %v616_v24, %v615_v23 }
 0x133   :  { %7608 = vmatprep.subr.bf16.mxu1 %v7607_v8  ;;  %7614 = vmatpush3.bf16.msra.mxu0 %v7611_v17 }
 0x134   :  { %7616 = vmatprep.subr.bf16.mxu0 %v7615_v19 }
 0x136   :  { %7610 = vmatpush3.bf16.msra.mxu1 %v7607_v8 }
 0x137   :  { %7618 = vmatpush3.bf16.msra.mxu0 %v7615_v19 }
 0x138   :  { %7620 = vmatprep.subr.bf16.mxu0 %v7619_v22 }
 0x13b   :  { %7622 = vmatpush3.bf16.msra.mxu0 %v7619_v22 }
 0x13c   :  { %7624 = vmatprep.subr.bf16.mxu0 %v7623_v25 }
 0x13f   :  { %7626 = vmatpush3.bf16.msra.mxu0 %v7623_v25 }
 0x1fe   :  { %v7368_v10 = vpop.f32.mrb[0].mxu1 }
 0x1ff   :  { %v389_v11 = vpop.f32.mrb[1].mxu1  ;;  %v8885_v13 = vadd.f32 %v7368_v10, %v7101_v9 }
 0x200   :  { %v8883_v12 = vadd.f32 %v7101_v9, %v389_v11 }
 0x201   :  { %11146 = vst [vmem:[#allocation48_spill] sm:$0xff] %v8885_v13 }
 0x202   :  { %11145 = vst [vmem:[#allocation47_spill] sm:$0xff] %v8883_v12  ;;  %7377 = vmatprep.mubr.msk.f32.mxu1 %vm409_vm1, %v8883_v12 }
 0x203   :  { %7378 = vmatmul.mubr.msk.f32.vlgmr.msra.gmra.mrb[2].mxu1 %vm409_vm1, %v8885_v13 }
 0x2d6   :  { %v7379_v27 = vpop.f32.mrb[2].mxu1 }
 0x2d7   :  { %v488_v28 = vadd.f32 %v7379_v27, %v7104_v26  ;;  %v482_v29 = vpop.f32.mrb[3].mxu1 }
 0x2d8   :  { %v483_v30 = vadd.f32 %v7104_v26, %v482_v29  ;;  %v7107_v29 = vld [vmem:[#allocation13] ss:$0 sm:$0xff] }
 0x2d9   :  { %v492_v31 = vsub.f32 0.0, %v488_v28 }
 0x2da   :  { %v491_v32 = vsub.f32 0.0, %v483_v30 }
 0x2db   :  { %v495_v33 = vmul.f32 1.442695, %v492_v31 }
 0x2dc   :  { %v493_v34 = vmul.f32 1.442695, %v491_v32 }
 0x2dd   :  { %7843 = vpow2.f32 %v495_v33 }
 0x2de   :  { %7845 = vpow2.f32 %v493_v34 }
 0x2e7   :  { %v7844_v35 = vpop.eup %7843 }
 0x2e8   :  { %v7846_v36 = vpop.eup %7845  ;;  %v498_v37 = vadd.f32 1.0, %v7844_v35 }
 0x2e9   :  { %v497_v39 = vadd.f32 1.0, %v7846_v36 }
 0x2ea   :  { %7847 = vrcp.f32 %v498_v37 }
 0x2eb   :  { %7849 = vrcp.f32 %v497_v39 }
 0x2f4   :  { %v7848_v45 = vpop.eup %7847 }
 0x2f5   :  { %v7850_v47 = vpop.eup %7849  ;;  %v8914_v48 = vmul.f32 %v7848_v45, %v488_v28 }
 0x2f6   :  { %v8919_v52 = vmul.f32 %v7850_v47, %v483_v30 }
 0x2f7   :  { %v565_v53 = vrot.slane %v8914_v48, 5 }
 0x2f8   :  { %v506_v54 = vrot.slane %v8919_v52, 5 }
 0x2f9   :  { %v567_v56 = vsel %vm508_vm2, 0.0, %v565_v53  ;;  %v570_v57 = vmul.f32 %v565_v53, %v518_v49  ;;  %v579_v58 = vmul.f32 %v565_v53, %v532_v50  ;;  %v588_v59 = vmul.f32 %v565_v53, %v546_v51 }
 0x2fa   :  { %v569_v60 = vmul.f32 %v567_v56, %v518_v49  ;;  %v509_v61 = vsel %vm508_vm2, 0.0, %v506_v54  ;;  %v520_v62 = vmul.f32 %v518_v49, %v506_v54  ;;  %v534_v63 = vmul.f32 %v532_v50, %v506_v54 }
 0x2fb   :  { %v574_v0 = vrot.slane %v570_v57, 1  ;;  %v583_v1 = vrot.slane %v579_v58, 2  ;;  %v519_v2 = vmul.f32 %v518_v49, %v509_v61  ;;  %v592_v4 = vrot.slane %v588_v59, 3  ;;  %v7108_v57 = vld [vmem:[#allocation14] ss:$0 sm:$0xff] }
 0x2fc   :  { %v573_v3 = vrot.slane %v569_v60, 1  ;;  %v525_v5 = vrot.slane %v520_v62, 1  ;;  %v548_v6 = vmul.f32 %v546_v51, %v506_v54  ;;  %v568_v8 = vmul.f32 %v567_v56, %v513_v55 }
 0x2fd   :  { %v524_v7 = vrot.slane %v519_v2, 1  ;;  %v578_v9 = vmul.f32 %v567_v56, %v532_v50  ;;  %v587_v10 = vmul.f32 %v567_v56, %v546_v51  ;;  %v539_v11 = vrot.slane %v534_v63, 2 }
 0x2fe   :  { %v575_v14 = vsel %vm523_vm3, %v573_v3, %v574_v0  ;;  %v514_v15 = vmul.f32 %v513_v55, %v509_v61  ;;  %v533_v16 = vmul.f32 %v532_v50, %v509_v61  ;;  %v553_v21 = vrot.slane %v548_v6, 3 }
 0x2ff   :  { %v577_v17 = vadd.f32 %v575_v14, %v568_v8  ;;  %v582_v18 = vrot.slane %v578_v9, 2  ;;  %v591_v19 = vrot.slane %v587_v10, 3  ;;  %v526_v20 = vsel %vm523_vm3, %v524_v7, %v525_v5 }
 0x300   :  { %v528_v22 = vadd.f32 %v526_v20, %v514_v15  ;;  %v538_v23 = vrot.slane %v533_v16, 2  ;;  %v547_v24 = vmul.f32 %v546_v51, %v509_v61  ;;  %v8960_v3 = vsub.s32 5, %v8900_v40 }
 0x301   :  { %v584_v25 = vsel %vm537_vm4, %v582_v18, %v583_v1  ;;  %v593_v30 = vsel %vm551_vm5, %v591_v19, %v592_v4  ;;  %v8955_v1 = vsub.s32 4, %v8900_v40  ;;  %v8965_v5 = vsub.s32 6, %v8900_v40 }
 0x302   :  { %v586_v26 = vadd.f32 %v584_v25, %v577_v17  ;;  %v540_v27 = vsel %vm537_vm4, %v538_v23, %v539_v11  ;;  %v552_v28 = vrot.slane %v547_v24, 3  ;;  %11155 = vst [vmem:[#allocation57_spill] sm:$0xff] %v8960_v3  ;;  %v8970_v7 = vsub.s32 7, %v8900_v40 }
 0x303   :  { %v542_v31 = vadd.f32 %v540_v27, %v528_v22  ;;  %11154 = vst [vmem:[#allocation56_spill] sm:$0xff] %v8955_v1  ;;  %11156 = vst [vmem:[#allocation58_spill] sm:$0xff] %v8965_v5 }
 0x304   :  { %v595_v32 = vadd.f32 %v593_v30, %v586_v26  ;;  %v554_v33 = vsel %vm551_vm5, %v552_v28, %v553_v21  ;;  %11157 = vst [vmem:[#allocation59_spill] sm:$0xff] %v8970_v7 }
 0x305   :  { %v556_v34 = vadd.f32 %v554_v33, %v542_v31 }
 0x306   :  { %v596_v35 = vadd.f32 %v7107_v29, %v595_v32 }
 0x307   :  { %v563_v36 = vadd.f32 %v7107_v29, %v556_v34 }
 0x308   :  { %v598_v37 = vsub.f32 0.0, %v596_v35 }
 0x309   :  { %v597_v39 = vsub.f32 0.0, %v563_v36 }
 0x30a   :  { %v601_v44 = vmul.f32 1.442695, %v598_v37 }
 0x30b   :  { %v599_v45 = vmul.f32 1.442695, %v597_v39 }
 0x30c   :  { %7851 = vpow2.f32 %v601_v44 }
 0x30d   :  { %7853 = vpow2.f32 %v599_v45 }
 0x316   :  { %v7852_v47 = vpop.eup %7851 }
 0x317   :  { %v7854_v49 = vpop.eup %7853  ;;  %v604_v50 = vadd.f32 1.0, %v7852_v47 }
 0x318   :  { %v603_v51 = vadd.f32 1.0, %v7854_v49 }
 0x319   :  { %7855 = vrcp.f32 %v604_v50 }
 0x31a   :  { %7857 = vrcp.f32 %v603_v51 }
 0x323   :  { %v7856_v53 = vpop.eup %7855 }
 0x324   :  { %v7858_v54 = vpop.eup %7857  ;;  %v8932_v55 = vmul.f32 %v7856_v53, %v596_v35 }
 0x325   :  { %v8934_v56 = vmul.f32 %v7858_v54, %v563_v36 }
 0x326   :  { %11152 = vst [vmem:[#allocation54_spill] sm:$0xff] %v8932_v55  ;;  %726 = vrot.lane.b32.xlu0 %v8932_v55, %s8628_s18 }
 0x327   :  { %11153 = vst [vmem:[#allocation55_spill] sm:$0xff] %v8934_v56  ;;  %7396 = vmatprep.mubr.msk.f32.mxu0 %vm624_vm6, %v8934_v56 }
 0x328   :  { %7397 = vmatmul.mubr.msk.f32.vlgmr.msra.gmra.mrb[0].mxu0 %vm624_vm6, %v8932_v55 }
 0x32a   :  { %724 = vrot.lane.b32.xlu0 %v8934_v56, %s8628_s18 }
 0x398   :  { %v727_v30 = vpop.permute.xlu0 %726 }
 0x39c   :  { %v8987_v32 = vpop.permute.xlu0 %724 }
 0x3fb   :  { %v7398_v58 = vpop.f32.mrb[0].mxu0 }
 0x3fc   :  { %v8944_v59 = vadd.f32 %v7398_v58, %v7108_v57  ;;  %v697_v60 = vpop.f32.mrb[1].mxu0 }
 0x3fd   :  { %v698_v9 = vadd.f32 %v7108_v57, %v697_v60 }
 0x3fe   :  { %v1239_v61 = vrot.slane %v8944_v59, %v8912_v46  ;;  %v1250_v62 = vrot.slane %v8944_v59, %v8903_v41  ;;  %v1261_v63 = vrot.slane %v8944_v59, %v8906_v42  ;;  %v1272_v0 = vrot.slane %v8944_v59, %v8909_v43 }
 0x3ff   :  { %v1283_v2 = vrot.slane %v8944_v59, %v8955_v1  ;;  %v1294_v4 = vrot.slane %v8944_v59, %v8960_v3  ;;  %v1305_v6 = vrot.slane %v8944_v59, %v8965_v5  ;;  %v8974_v8 = vrot.slane %v8944_v59, %v8970_v7 }
 0x400   :  { %1245 = vbcast.lane.b32.xlu1 %v1239_v61, 264  ;;  %1241 = vbcast.lane.b32.xlu0 %v1239_v61, 256  ;;  %v754_v10 = vrot.slane %v698_v9, %v8903_v41  ;;  %v743_v11 = vrot.slane %v698_v9, %v8912_v46  ;;  %v765_v14 = vrot.slane %v698_v9, %v8906_v42  ;;  %v708_v16 = vand.u32 2147483647, %v698_v9 }
 0x401   :  { %v776_v15 = vrot.slane %v698_v9, %v8909_v43  ;;  %v787_v17 = vrot.slane %v698_v9, %v8955_v1  ;;  %v798_v19 = vrot.slane %v698_v9, %v8960_v3  ;;  %v709_v20 = vand.u32 2147483647, %v8944_v59 }
 0x402   :  { %v710_v18 = vsub.f32 0.0, %v708_v16  ;;  %v809_v22 = vrot.slane %v698_v9, %v8965_v5  ;;  %v820_v24 = vrot.slane %v698_v9, %v8970_v7  ;;  %v706_v34 = vmax.f32 %v698_v9, 0.0 }
 0x403   :  { %v711_v23 = vsub.f32 0.0, %v709_v20  ;;  %v707_v50 = vmax.f32 %v8944_v59, 0.0 }
 0x404   :  { %1256 = vbcast.lane.b32.xlu1 %v1250_v62, 264  ;;  %1252 = vbcast.lane.b32.xlu0 %v1250_v62, 256  ;;  %v712_v21 = vmul.f32 1.442695, %v710_v18 }
 0x405   :  { %v714_v25 = vmul.f32 1.442695, %v711_v23 }
 0x406   :  { %7859 = vpow2.f32 %v712_v21 }
 0x407   :  { %7861 = vpow2.f32 %v714_v25 }
 0x408   :  { %1267 = vbcast.lane.b32.xlu1 %v1261_v63, 264  ;;  %1263 = vbcast.lane.b32.xlu0 %v1261_v63, 256 }
 0x40c   :  { %1278 = vbcast.lane.b32.xlu1 %v1272_v0, 264  ;;  %1274 = vbcast.lane.b32.xlu0 %v1272_v0, 256 }
 0x410   :  { %1289 = vbcast.lane.b32.xlu1 %v1283_v2, 264  ;;  %1285 = vbcast.lane.b32.xlu0 %v1283_v2, 256  ;;  %v7860_v26 = vpop.eup %7859 }
 0x411   :  { %v716_v27 = vadd.f32 1.0, %v7860_v26  ;;  %v7862_v28 = vpop.eup %7861 }
 0x412   :  { %v717_v29 = vadd.f32 1.0, %v7862_v28 }
 0x413   :  { %7863 = vlog2.f32 %v716_v27 }
 0x414   :  { %1300 = vbcast.lane.b32.xlu1 %v1294_v4, 264  ;;  %1296 = vbcast.lane.b32.xlu0 %v1294_v4, 256  ;;  %7865 = vlog2.f32 %v717_v29 }
 0x418   :  { %1311 = vbcast.lane.b32.xlu1 %v1305_v6, 264  ;;  %1307 = vbcast.lane.b32.xlu0 %v1305_v6, 256 }
 0x41c   :  { %1322 = vbcast.lane.b32.xlu1 %v8974_v8, 264  ;;  %1318 = vbcast.lane.b32.xlu0 %v8974_v8, 256 }
 0x41d   :  { %v7864_v31 = vpop.eup %7863 }
 0x41e   :  { %v719_v33 = vmul.f32 0.6931472, %v7864_v31  ;;  %v7866_v39 = vpop.eup %7865 }
 0x41f   :  { %v721_v44 = vmul.f32 0.6931472, %v7866_v39 }
 0x420   :  { %1330 = vbcast.lane.b32.xlu1 %v1239_v61, 280  ;;  %1326 = vbcast.lane.b32.xlu0 %v1239_v61, 272  ;;  %v8991_v37 = vadd.f32 %v719_v33, %v706_v34 }
 0x421   :  { %v723_v51 = vadd.f32 %v721_v44, %v707_v50 }
 0x422   :  { %v895_v49 = vrot.slane %v8991_v37, %v8912_v46  ;;  %v938_v57 = vrot.slane %v8991_v37, %v8903_v41  ;;  %v981_v59 = vrot.slane %v8991_v37, %v8906_v42  ;;  %v1110_v16 = vrot.slane %v8991_v37, %v8960_v3 }
 0x423   :  { %v1391_v61 = vrot.slane %v723_v51, %v8912_v46  ;;  %v1477_v9 = vrot.slane %v723_v51, %v8906_v42  ;;  %v1153_v20 = vrot.slane %v8991_v37, %v8965_v5  ;;  %v731_v21 = vmul.f32 %v727_v30, %v723_v51 }
 0x424   :  { %1338 = vbcast.lane.b32.xlu1 %v1250_v62, 280  ;;  %1334 = vbcast.lane.b32.xlu0 %v1250_v62, 272  ;;  %v1196_v25 = vrot.slane %v8991_v37, %v8970_v7  ;;  %v1649_v30 = vrot.slane %v723_v51, %v8965_v5  ;;  %v1692_v44 = vrot.slane %v723_v51, %v8970_v7 }
 0x425   :  { %v1407_v26 = vrot.slane %v731_v21, %v8912_v46  ;;  %v1450_v31 = vrot.slane %v731_v21, %v8903_v41 }
 0x428   :  { %1346 = vbcast.lane.b32.xlu1 %v1261_v63, 280  ;;  %1342 = vbcast.lane.b32.xlu0 %v1261_v63, 272 }
 0x42c   :  { %1354 = vbcast.lane.b32.xlu1 %v1272_v0, 280  ;;  %1350 = vbcast.lane.b32.xlu0 %v1272_v0, 272  ;;  %v1434_v0 = vrot.slane %v723_v51, %v8903_v41 }
 0x430   :  { %1362 = vbcast.lane.b32.xlu1 %v1283_v2, 280  ;;  %1358 = vbcast.lane.b32.xlu0 %v1283_v2, 272  ;;  %v1024_v2 = vrot.slane %v8991_v37, %v8909_v43 }
 0x434   :  { %1370 = vbcast.lane.b32.xlu1 %v1294_v4, 280  ;;  %1366 = vbcast.lane.b32.xlu0 %v1294_v4, 272 }
 0x438   :  { %1378 = vbcast.lane.b32.xlu1 %v1305_v6, 280  ;;  %1374 = vbcast.lane.b32.xlu0 %v1305_v6, 272 }
 0x43c   :  { %756 = vbcast.lane.b32.xlu0 %v754_v10, 256  ;;  %745 = vbcast.lane.b32.xlu1 %v743_v11, 256 }
 0x440   :  { %767 = vbcast.lane.b32.xlu0 %v765_v14, 256  ;;  %749 = vbcast.lane.b32.xlu1 %v743_v11, 264 }
 0x444   :  { %778 = vbcast.lane.b32.xlu0 %v776_v15, 256  ;;  %760 = vbcast.lane.b32.xlu1 %v754_v10, 264 }
 0x448   :  { %789 = vbcast.lane.b32.xlu0 %v787_v17, 256  ;;  %771 = vbcast.lane.b32.xlu1 %v765_v14, 264 }
 0x44c   :  { %800 = vbcast.lane.b32.xlu0 %v798_v19, 256  ;;  %782 = vbcast.lane.b32.xlu1 %v776_v15, 264 }
 0x450   :  { %811 = vbcast.lane.b32.xlu0 %v809_v22, 256  ;;  %793 = vbcast.lane.b32.xlu1 %v787_v17, 264 }
 0x454   :  { %822 = vbcast.lane.b32.xlu0 %v820_v24, 256  ;;  %804 = vbcast.lane.b32.xlu1 %v798_v19, 264 }
 0x458   :  { %830 = vbcast.lane.b32.xlu0 %v743_v11, 272  ;;  %815 = vbcast.lane.b32.xlu1 %v809_v22, 264 }
 0x45c   :  { %838 = vbcast.lane.b32.xlu0 %v754_v10, 272  ;;  %826 = vbcast.lane.b32.xlu1 %v820_v24, 264 }
 0x460   :  { %846 = vbcast.lane.b32.xlu0 %v765_v14, 272  ;;  %834 = vbcast.lane.b32.xlu1 %v743_v11, 280 }
 0x464   :  { %854 = vbcast.lane.b32.xlu0 %v776_v15, 272  ;;  %842 = vbcast.lane.b32.xlu1 %v754_v10, 280  ;;  %v1067_v10 = vrot.slane %v8991_v37, %v8955_v1 }
 0x468   :  { %862 = vbcast.lane.b32.xlu0 %v787_v17, 272  ;;  %850 = vbcast.lane.b32.xlu1 %v765_v14, 280 }
 0x46c   :  { %870 = vbcast.lane.b32.xlu0 %v798_v19, 272  ;;  %858 = vbcast.lane.b32.xlu1 %v776_v15, 280  ;;  %v1520_v15 = vrot.slane %v723_v51, %v8909_v43 }
 0x470   :  { %878 = vbcast.lane.b32.xlu0 %v809_v22, 272  ;;  %866 = vbcast.lane.b32.xlu1 %v787_v17, 280 }
 0x472   :  { %v8989_v35 = vpop.permute.xlu1 %1245  ;;  %v1242_v36 = vpop.permute.xlu0 %1241 }
 0x473   :  { %v1408_v27 = vmul.f32 %v1407_v26, %v1242_v36  ;;  %v1493_v36 = vrot.slane %v731_v21, %v8906_v42 }
 0x474   :  { %886 = vbcast.lane.b32.xlu0 %v820_v24, 272  ;;  %874 = vbcast.lane.b32.xlu1 %v798_v19, 280  ;;  %v1563_v19 = vrot.slane %v723_v51, %v8955_v1 }
 0x476   :  { %v8993_v45 = vpop.permute.xlu1 %1256  ;;  %v1253_v47 = vpop.permute.xlu0 %1252 }
 0x477   :  { %v1451_v33 = vmul.f32 %v1450_v31, %v1253_v47  ;;  %v1536_v47 = vrot.slane %v731_v21, %v8909_v43 }
 0x478   :  { %882 = vbcast.lane.b32.xlu1 %v809_v22, 280  ;;  %897 = vrot.lane.b32.xlu0 %v895_v49, %s8629_s22  ;;  %v1409_v49 = vmul.f32 %v1407_v26, %v8989_v35  ;;  %v1579_v35 = vrot.slane %v731_v21, %v8955_v1 }
 0x47a   :  { %v8999_v53 = vpop.permute.xlu1 %1267  ;;  %v1264_v54 = vpop.permute.xlu0 %1263 }
 0x47b   :  { %v1494_v50 = vmul.f32 %v1493_v36, %v1264_v54  ;;  %v1495_v54 = vmul.f32 %v1493_v36, %v8999_v53  ;;  %v1665_v53 = vrot.slane %v731_v21, %v8965_v5 }
 0x47c   :  { %890 = vbcast.lane.b32.xlu1 %v820_v24, 280  ;;  %940 = vrot.lane.b32.xlu0 %v938_v57, %s8629_s22  ;;  %v1606_v24 = vrot.slane %v723_v51, %v8960_v3  ;;  %v1452_v51 = vmul.f32 %v1450_v31, %v8993_v45  ;;  %v1622_v45 = vrot.slane %v731_v21, %v8960_v3 }
 0x47e   :  { %v9004_v58 = vpop.permute.xlu1 %1278  ;;  %v1275_v60 = vpop.permute.xlu0 %1274 }
 0x480   :  { %1393 = vrot.lane.b32.xlu1 %v1391_v61, %s8629_s22  ;;  %983 = vrot.lane.b32.xlu0 %v981_v59, %s8629_s22  ;;  %v1537_v59 = vmul.f32 %v1536_v47, %v1275_v60  ;;  %v1538_v60 = vmul.f32 %v1536_v47, %v9004_v58  ;;  %v730_v58 = vmul.f32 %v8987_v32, %v8991_v37 }
 0x482   :  { %v9011_v62 = vpop.permute.xlu1 %1289  ;;  %v1286_v63 = vpop.permute.xlu0 %1285 }
 0x484   :  { %1436 = vrot.lane.b32.xlu1 %v1434_v0, %s8629_s22  ;;  %1026 = vrot.lane.b32.xlu0 %v1024_v2, %s8629_s22 }
 0x486   :  { %v9018_v4 = vpop.permute.xlu1 %1300  ;;  %v1297_v6 = vpop.permute.xlu0 %1296 }
 0x488   :  { %1479 = vrot.lane.b32.xlu1 %v1477_v9, %s8629_s22  ;;  %1069 = vrot.lane.b32.xlu0 %v1067_v10, %s8629_s22  ;;  %v1580_v9 = vmul.f32 %v1579_v35, %v1286_v63  ;;  %v1581_v63 = vmul.f32 %v1579_v35, %v9011_v62  ;;  %v911_v62 = vrot.slane %v730_v58, %v8912_v46 }
 0x489   :  { %v1040_v35 = vrot.slane %v730_v58, %v8909_v43 }
 0x48a   :  { %v9025_v11 = vpop.permute.xlu1 %1311  ;;  %v1308_v14 = vpop.permute.xlu0 %1307 }
 0x48c   :  { %1522 = vrot.lane.b32.xlu1 %v1520_v15, %s8629_s22  ;;  %1112 = vrot.lane.b32.xlu0 %v1110_v16, %s8629_s22  ;;  %v1623_v16 = vmul.f32 %v1622_v45, %v1297_v6  ;;  %v1624_v6 = vmul.f32 %v1622_v45, %v9018_v4 }
 0x48e   :  { %v9032_v17 = vpop.permute.xlu1 %1322  ;;  %v9034_v18 = vpop.permute.xlu0 %1318 }
 0x490   :  { %1565 = vrot.lane.b32.xlu1 %v1563_v19, %s8629_s22  ;;  %1155 = vrot.lane.b32.xlu0 %v1153_v20, %s8629_s22 }
 0x492   :  { %v9041_v22 = vpop.permute.xlu1 %1330  ;;  %v9043_v23 = vpop.permute.xlu0 %1326 }
 0x494   :  { %1608 = vrot.lane.b32.xlu1 %v1606_v24, %s8629_s22  ;;  %1198 = vrot.lane.b32.xlu0 %v1196_v25, %s8629_s22  ;;  %v1666_v24 = vmul.f32 %v1665_v53, %v1308_v14  ;;  %v1667_v14 = vmul.f32 %v1665_v53, %v9025_v11 }
 0x496   :  { %v9051_v28 = vpop.permute.xlu1 %1338  ;;  %v9053_v29 = vpop.permute.xlu0 %1334 }
 0x498   :  { %1651 = vrot.lane.b32.xlu1 %v1649_v30, %s8629_s22  ;;  %1412 = vrot.lane.b32.xlu0 %v1408_v27, %s8629_s22  ;;  %v1708_v27 = vrot.slane %v731_v21, %v8970_v7 }
 0x49a   :  { %v9059_v34 = vpop.permute.xlu1 %1346  ;;  %v9061_v39 = vpop.permute.xlu0 %1342  ;;  %v1709_v30 = vmul.f32 %v1708_v27, %v9034_v18  ;;  %v1710_v4 = vmul.f32 %v1708_v27, %v9032_v17 }
 0x49c   :  { %1694 = vrot.lane.b32.xlu1 %v1692_v44, %s8629_s22  ;;  %1455 = vrot.lane.b32.xlu0 %v1451_v33, %s8629_s22  ;;  %v954_v44 = vrot.slane %v730_v58, %v8903_v41 }
 0x49e   :  { %v9068_v57 = vpop.permute.xlu1 %1354  ;;  %v9070_v61 = vpop.permute.xlu0 %1350 }
 0x4a0   :  { %1414 = vrot.lane.b32.xlu1 %v1409_v49, %s8629_s22  ;;  %1498 = vrot.lane.b32.xlu0 %v1494_v50, %s8629_s22  ;;  %v997_v50 = vrot.slane %v730_v58, %v8906_v42 }
 0x4a2   :  { %v9076_v0 = vpop.permute.xlu1 %1362  ;;  %v9078_v2 = vpop.permute.xlu0 %1358 }
 0x4a4   :  { %1457 = vrot.lane.b32.xlu1 %v1452_v51, %s8629_s22  ;;  %1541 = vrot.lane.b32.xlu0 %v1537_v59, %s8629_s22 }
 0x4a6   :  { %v9084_v10 = vpop.permute.xlu1 %1370  ;;  %v9086_v15 = vpop.permute.xlu0 %1366 }
 0x4a8   :  { %1500 = vrot.lane.b32.xlu1 %v1495_v54, %s8629_s22  ;;  %1584 = vrot.lane.b32.xlu0 %v1580_v9, %s8629_s22 }
 0x4aa   :  { %v9092_v19 = vpop.permute.xlu1 %1378  ;;  %v9094_v20 = vpop.permute.xlu0 %1374 }
 0x4ac   :  { %1543 = vrot.lane.b32.xlu1 %v1538_v60, %s8629_s22  ;;  %1627 = vrot.lane.b32.xlu0 %v1623_v16, %s8629_s22  ;;  %v1083_v60 = vrot.slane %v730_v58, %v8955_v1 }
 0x4ae   :  { %v757_v25 = vpop.permute.xlu0 %756  ;;  %v746_v26 = vpop.permute.xlu1 %745 }
 0x4af   :  { %v912_v11 = vmul.f32 %v911_v62, %v746_v26  ;;  %v955_v17 = vmul.f32 %v954_v44, %v757_v25  ;;  %v1126_v26 = vrot.slane %v730_v58, %v8960_v3 }
 0x4b0   :  { %1586 = vrot.lane.b32.xlu1 %v1581_v63, %s8629_s22  ;;  %1670 = vrot.lane.b32.xlu0 %v1666_v24, %s8629_s22 }
 0x4b2   :  { %v768_v31 = vpop.permute.xlu0 %767  ;;  %v750_v33 = vpop.permute.xlu1 %749 }
 0x4b3   :  { %v913_v21 = vmul.f32 %v911_v62, %v750_v33  ;;  %v998_v16 = vmul.f32 %v997_v50, %v768_v31  ;;  %v1169_v33 = vrot.slane %v730_v58, %v8965_v5 }
 0x4b4   :  { %1629 = vrot.lane.b32.xlu1 %v1624_v6, %s8629_s22  ;;  %1713 = vrot.lane.b32.xlu0 %v1709_v30, %s8629_s22 }
 0x4b6   :  { %v779_v32 = vpop.permute.xlu0 %778  ;;  %v761_v37 = vpop.permute.xlu1 %760 }
 0x4b7   :  { %v956_v18 = vmul.f32 %v954_v44, %v761_v37  ;;  %v1041_v25 = vmul.f32 %v1040_v35, %v779_v32  ;;  %v1212_v37 = vrot.slane %v730_v58, %v8970_v7 }
 0x4b8   :  { %1672 = vrot.lane.b32.xlu1 %v1667_v14, %s8629_s22  ;;  %918 = vrot.lane.b32.xlu0 %v913_v21, %s8629_s22 }
 0x4ba   :  { %v790_v36 = vpop.permute.xlu0 %789  ;;  %v772_v49 = vpop.permute.xlu1 %771 }
 0x4bb   :  { %v999_v47 = vmul.f32 %v997_v50, %v772_v49  ;;  %v1084_v53 = vmul.f32 %v1083_v60, %v790_v36 }
 0x4bc   :  { %1715 = vrot.lane.b32.xlu1 %v1710_v4, %s8629_s22  ;;  %961 = vrot.lane.b32.xlu0 %v956_v18, %s8629_s22 }
 0x4be   :  { %v801_v51 = vpop.permute.xlu0 %800  ;;  %v783_v59 = vpop.permute.xlu1 %782 }
 0x4bf   :  { %v1042_v54 = vmul.f32 %v1040_v35, %v783_v59  ;;  %v1127_v27 = vmul.f32 %v1126_v26, %v801_v51  ;;  %v1768_v51 = vld [vmem:[%s11158_s13] sm:$0xff]  ;;  %v1769_v59 = vld [vmem:[%s11158_s13 + $0x8] sm:$0xff] }
 0x4c0   :  { %1004 = vrot.lane.b32.xlu0 %v999_v47, %s8629_s22  ;;  %916 = vrot.lane.b32.xlu1 %v912_v11, %s8629_s22 }
 0x4c2   :  { %v812_v9 = vpop.permute.xlu0 %811  ;;  %v794_v45 = vpop.permute.xlu1 %793 }
 0x4c3   :  { %v1170_v31 = vmul.f32 %v1169_v33, %v812_v9  ;;  %v1085_v62 = vmul.f32 %v1083_v60, %v794_v45  ;;  %v7627_v9 = vpack.c.bf16 %v1769_v59, %v1768_v51  ;;  %v1771_v60 = vld [vmem:[%s11158_s13 + $0x18] sm:$0xff] }
 0x4c4   :  { %1047 = vrot.lane.b32.xlu0 %v1042_v54, %s8629_s22  ;;  %959 = vrot.lane.b32.xlu1 %v955_v17, %s8629_s22  ;;  %v732_v54 = vld [vmem:[%s11159_s2] sm:$0xff] }
 0x4c5   :  { %7628 = vmatprep.subr.bf16.mxu1 %v7627_v9  ;;  %v734_v45 = vmul.f32 1.442695, %v732_v54 }
 0x4c6   :  { %v823_v63 = vpop.permute.xlu0 %822  ;;  %v805_v24 = vpop.permute.xlu1 %804  ;;  %7630 = vmatpush3.bf16.msra.mxu1 %v7627_v9 }
 0x4c7   :  { %v1213_v32 = vmul.f32 %v1212_v37, %v823_v63  ;;  %v1128_v44 = vmul.f32 %v1126_v26, %v805_v24  ;;  %7867 = vpow2.f32 %v734_v45  ;;  %v1773_v24 = vld [vmem:[%s11158_s13 + $0x28] sm:$0xff] }
 0x4c8   :  { %1088 = vrot.lane.b32.xlu0 %v1084_v53, %s8629_s22  ;;  %1002 = vrot.lane.b32.xlu1 %v998_v16, %s8629_s22 }
 0x4ca   :  { %v9127_v6 = vpop.permute.xlu0 %830  ;;  %v816_v30 = vpop.permute.xlu1 %815 }
 0x4cb   :  { %v1171_v36 = vmul.f32 %v1169_v33, %v816_v30  ;;  %v1774_v33 = vld [vmem:[%s11158_s13 + $0x30] sm:$0xff] }
 0x4cc   :  { %1131 = vrot.lane.b32.xlu0 %v1127_v27, %s8629_s22  ;;  %1045 = vrot.lane.b32.xlu1 %v1041_v25, %s8629_s22  ;;  %v733_v27 = vld [vmem:[%s11159_s2 + $0x8] sm:$0xff] }
 0x4ce   :  { %v9132_v14 = vpop.permute.xlu0 %838  ;;  %v827_v21 = vpop.permute.xlu1 %826 }
 0x4cf   :  { %v1214_v50 = vmul.f32 %v1212_v37, %v827_v21  ;;  %v736_v21 = vmul.f32 1.442695, %v733_v27 }
 0x4d0   :  { %1174 = vrot.lane.b32.xlu0 %v1170_v31, %s8629_s22  ;;  %1090 = vrot.lane.b32.xlu1 %v1085_v62, %s8629_s22  ;;  %v1775_v31 = vld [vmem:[%s11158_s13 + $0x38] sm:$0xff] }
 0x4d1   :  { %v7639_v62 = vpack.c.bf16 %v1775_v31, %v1774_v33  ;;  %7869 = vpow2.f32 %v736_v21 }
 0x4d2   :  { %v9137_v4 = vpop.permute.xlu0 %846  ;;  %v9139_v18 = vpop.permute.xlu1 %834 }
 0x4d4   :  { %1217 = vrot.lane.b32.xlu0 %v1213_v32, %s8629_s22  ;;  %1133 = vrot.lane.b32.xlu1 %v1128_v44, %s8629_s22 }
 0x4d6   :  { %v9143_v49 = vpop.permute.xlu0 %854  ;;  %v9145_v58 = vpop.permute.xlu1 %842 }
 0x4d8   :  { %1382 = vbcast.lane.b32.xlu0 %v8974_v8, 272  ;;  %1176 = vrot.lane.b32.xlu1 %v1171_v36, %s8629_s22  ;;  %v7868_v36 = vpop.eup %7867 }
 0x4da   :  { %v9149_v11 = vpop.permute.xlu0 %862  ;;  %v9151_v47 = vpop.permute.xlu1 %850 }
 0x4dc   :  { %1760 = vrot.lane.b32.xlu0 %v8919_v52, %s8613_s10  ;;  %1219 = vrot.lane.b32.xlu1 %v1214_v50, %s8629_s22  ;;  %v1770_v52 = vld [vmem:[%s11158_s13 + $0x10] sm:$0xff]  ;;  %v9185_v50 = vsub.f32 0.0, %v7868_v36 }
 0x4dd   :  { %v7631_v63 = vpack.c.bf16 %v1771_v60, %v1770_v52  ;;  %v7870_v52 = vpop.eup %7869 }
 0x4de   :  { %v9158_v35 = vpop.permute.xlu0 %870  ;;  %v9160_v17 = vpop.permute.xlu1 %858 }
 0x4df   :  { %7632 = vmatprep.subr.bf16.mxu1 %v7631_v63 }
 0x4e0   :  { %1386 = vbcast.lane.b32.xlu1 %v8974_v8, 280  ;;  %7634 = vmatpush3.bf16.msra.mxu1 %v7631_v63  ;;  %v1772_v8 = vld [vmem:[%s11158_s13 + $0x20] sm:$0xff]  ;;  %v9192_v63 = vsub.f32 0.0, %v7870_v52 }
 0x4e1   :  { %v7635_v30 = vpack.c.bf16 %v1773_v24, %v1772_v8 }
 0x4e2   :  { %v9166_v16 = vpop.permute.xlu0 %878  ;;  %v9168_v53 = vpop.permute.xlu1 %866 }
 0x4e3   :  { %11160 = vst [vmem:[#allocation60_spill] sm:$0xff] %v9166_v16  ;;  %7636 = vmatprep.subr.bf16.mxu1 %v7635_v30 }
 0x4e4   :  { %1762 = vrot.lane.b32.xlu1 %v8914_v48, %s8613_s10  ;;  %7638 = vmatpush3.bf16.msra.mxu1 %v7635_v30 }
 0x4e5   :  { %7640 = vmatprep.subr.bf16.mxu1 %v7639_v62 }
 0x4e6   :  { %v9174_v26 = vpop.permute.xlu0 %886  ;;  %v9176_v25 = vpop.permute.xlu1 %874 }
 0x4e7   :  { %11161 = vst [vmem:[#allocation61_spill] sm:$0xff] %v9174_v26 }
 0x4e8   :  { %7642 = vmatpush3.bf16.msra.mxu1 %v7639_v62 }
 0x4ea   :  { %v9181_v37 = vpop.permute.xlu1 %882  ;;  %v898_v48 = vpop.permute.xlu0 %897 }
 0x4eb   :  { %11162 = vst [vmem:[#allocation62_spill] sm:$0xff] %v9181_v37  ;;  %v901_v41 = vmul.f32 %v898_v48, %v9192_v63 }
 0x4ed   :  { %v904_v55 = vmul.f32 1.442695, %v901_v41 }
 0x4ee   :  { %v9183_v32 = vpop.permute.xlu1 %890  ;;  %v941_v44 = vpop.permute.xlu0 %940 }
 0x4ef   :  { %11163 = vst [vmem:[#allocation63_spill] sm:$0xff] %v9183_v32 }
 0x4f2   :  { %v1394_v51 = vpop.permute.xlu1 %1393  ;;  %v9187_v59 = vpop.permute.xlu0 %983 }
 0x4f3   :  { %v1396_v54 = vmul.f32 %v1394_v51, %v9185_v50  ;;  %v1397_v30 = vmul.f32 %v1394_v51, %v9192_v63  ;;  %v986_v56 = vmul.f32 %v9187_v59, %v9185_v50  ;;  %v987_v41 = vmul.f32 %v9187_v59, %v9192_v63 }
 0x4f5   :  { %v1398_v60 = vmul.f32 1.442695, %v1396_v54  ;;  %v1400_v36 = vmul.f32 1.442695, %v1397_v30 }
 0x4f6   :  { %v1437_v9 = vpop.permute.xlu1 %1436  ;;  %v9190_v45 = vpop.permute.xlu0 %1026 }
 0x4f7   :  { %v1439_v27 = vmul.f32 %v1437_v9, %v9185_v50  ;;  %7871 = vpow2.f32 %v1398_v60  ;;  %v1440_v38 = vmul.f32 %v1437_v9, %v9192_v63 }
 0x4f9   :  { %v1441_v62 = vmul.f32 1.442695, %v1439_v27  ;;  %v1443_v51 = vmul.f32 1.442695, %v1440_v38 }
 0x4fa   :  { %v1480_v8 = vpop.permute.xlu1 %1479  ;;  %v9194_v24 = vpop.permute.xlu0 %1069 }
 0x4fb   :  { %v1482_v21 = vmul.f32 %v1480_v8, %v9185_v50  ;;  %7873 = vpow2.f32 %v1441_v62  ;;  %v1483_v60 = vmul.f32 %v1480_v8, %v9192_v63  ;;  %v900_v8 = vmul.f32 %v898_v48, %v9185_v50 }
 0x4fc   :  { %7875 = vpow2.f32 %v1400_v36 }
 0x4fd   :  { %v1484_v40 = vmul.f32 1.442695, %v1482_v21  ;;  %v1486_v9 = vmul.f32 1.442695, %v1483_v60  ;;  %v902_v12 = vmul.f32 1.442695, %v900_v8 }
 0x4fe   :  { %v1523_v33 = vpop.permute.xlu1 %1522  ;;  %v9198_v31 = vpop.permute.xlu0 %1112 }
 0x4ff   :  { %v1525_v7 = vmul.f32 %v1523_v33, %v9185_v50  ;;  %7877 = vpow2.f32 %v1484_v40  ;;  %v1526_v21 = vmul.f32 %v1523_v33, %v9192_v63  ;;  %v944_v33 = vmul.f32 %v941_v44, %v9192_v63 }
 0x500   :  { %7879 = vpow2.f32 %v1443_v51  ;;  %v943_v51 = vmul.f32 %v941_v44, %v9185_v50 }
 0x501   :  { %v7872_v5 = vpop.eup %7871  ;;  %v1527_v30 = vmul.f32 1.442695, %v1525_v7  ;;  %v1529_v60 = vmul.f32 1.442695, %v1526_v21  ;;  %v947_v16 = vmul.f32 1.442695, %v944_v33 }
 0x502   :  { %v1566_v54 = vpop.permute.xlu1 %1565  ;;  %v9202_v52 = vpop.permute.xlu0 %1155  ;;  %v1402_v1 = vmul.f32 0.0, %v7872_v5  ;;  %v945_v26 = vmul.f32 1.442695, %v943_v51 }
 0x503   :  { %7881 = vpow2.f32 %v1527_v30  ;;  %v1568_v38 = vmul.f32 %v1566_v54, %v9185_v50 }
 0x504   :  { %7883 = vpow2.f32 %v1486_v9 }
 0x505   :  { %v7874_v43 = vpop.eup %7873  ;;  %7885 = vpow2.f32 %v1529_v60 }
 0x506   :  { %v9206_v3 = vpop.permute.xlu1 %1608  ;;  %v9208_v27 = vpop.permute.xlu0 %1198 }
 0x507   :  { %v7876_v42 = vpop.eup %7875  ;;  %v1611_v44 = vmul.f32 %v9206_v3, %v9185_v50 }
 0x508   :  { %v1403_v13 = vmul.f32 0.0, %v7876_v42 }
 0x50a   :  { %v9210_v46 = vpop.permute.xlu1 %1651  ;;  %v1413_v62 = vpop.permute.xlu0 %1412 }
 0x50b   :  { %v1418_v36 = vadd.f32 %v1413_v62, %v1402_v1  ;;  %v1570_v1 = vmul.f32 1.442695, %v1568_v38  ;;  %v7878_v62 = vpop.eup %7877 }
 0x50c   :  { %v7880_v21 = vpop.eup %7879 }
 0x50d   :  { %v1445_v5 = vmul.f32 %v7874_v43, %v1418_v36  ;;  %v1569_v43 = vmul.f32 %v1566_v54, %v9192_v63  ;;  %7887 = vpow2.f32 %v1570_v1  ;;  %v7882_v8 = vpop.eup %7881  ;;  %v1613_v1 = vmul.f32 1.442695, %v1611_v44 }
 0x50e   :  { %v9216_v40 = vpop.permute.xlu1 %1694  ;;  %v1456_v7 = vpop.permute.xlu0 %1455  ;;  %7889 = vpow2.f32 %v902_v12  ;;  %v1029_v12 = vmul.f32 %v9190_v45, %v9185_v50 }
 0x50f   :  { %v1461_v30 = vadd.f32 %v1456_v7, %v1445_v5  ;;  %7891 = vpow2.f32 %v904_v55  ;;  %v988_v5 = vmul.f32 1.442695, %v986_v56  ;;  %v1572_v54 = vmul.f32 1.442695, %v1569_v43  ;;  %v7884_v33 = vpop.eup %7883 }
 0x510   :  { %7893 = vpow2.f32 %v945_v26  ;;  %v1030_v55 = vmul.f32 %v9190_v45, %v9192_v63  ;;  %v1612_v56 = vmul.f32 %v9206_v3, %v9192_v63  ;;  %v7886_v45 = vpop.eup %7885  ;;  %v1031_v44 = vmul.f32 1.442695, %v1029_v12 }
 0x511   :  { %v1488_v9 = vmul.f32 %v7878_v62, %v1461_v30  ;;  %7895 = vpow2.f32 %v947_v16  ;;  %v990_v62 = vmul.f32 1.442695, %v987_v41  ;;  %v1420_v16 = vmul.f32 %v1418_v36, %v9043_v23 }
 0x512   :  { %v1415_v48 = vpop.permute.xlu1 %1414  ;;  %v1499_v32 = vpop.permute.xlu0 %1498  ;;  %7897 = vpow2.f32 %v988_v5  ;;  %v1033_v41 = vmul.f32 1.442695, %v1030_v55 }
 0x513   :  { %v1419_v37 = vadd.f32 %v1415_v48, %v1403_v13  ;;  %v1504_v38 = vadd.f32 %v1499_v32, %v1488_v9  ;;  %7899 = vpow2.f32 %v1572_v54 }
 0x514   :  { %7901 = vpow2.f32 %v1613_v1 }
 0x515   :  { %v1446_v42 = vmul.f32 %v7880_v21, %v1419_v37  ;;  %v1531_v60 = vmul.f32 %v7882_v8, %v1504_v38  ;;  %v1421_v32 = vmul.f32 %v1419_v37, %v9041_v22  ;;  %v1654_v22 = vmul.f32 %v9210_v46, %v9185_v50 }
 0x516   :  { %v1458_v7 = vpop.permute.xlu1 %1457  ;;  %v1542_v51 = vpop.permute.xlu0 %1541  ;;  %v1463_v37 = vmul.f32 %v1461_v30, %v9053_v29  ;;  %7903 = vpow2.f32 %v990_v62  ;;  %v1422_v29 = vsel %vm624_vm6, %v1420_v16, 0.0 }
 0x517   :  { %v1462_v13 = vadd.f32 %v1458_v7, %v1446_v42  ;;  %v9236_v43 = vadd.f32 %v1542_v51, %v1531_v60  ;;  %v1423_v3 = vsel %vm624_vm6, %v1421_v32, 0.0  ;;  %v1072_v42 = vmul.f32 %v9194_v24, %v9185_v50 }
 0x518   :  { %v1615_v51 = vmul.f32 1.442695, %v1612_v56  ;;  %v1073_v60 = vmul.f32 %v9194_v24, %v9192_v63  ;;  %v1465_v1 = vsel %vm624_vm6, %v1463_v37, 0.0  ;;  %v1424_v62 = vadd.f32 %v1423_v3, %v1422_v29 }
 0x519   :  { %v1489_v59 = vmul.f32 %v7884_v33, %v1462_v13  ;;  %v1464_v26 = vmul.f32 %v1462_v13, %v9051_v28  ;;  %v7888_v28 = vpop.eup %7887  ;;  %v1656_v33 = vmul.f32 1.442695, %v1654_v22  ;;  %7905 = vpow2.f32 %v1031_v44 }
 0x51a   :  { %v1501_v48 = vpop.permute.xlu1 %1500  ;;  %v1585_v9 = vpop.permute.xlu0 %1584  ;;  %v1574_v54 = vmul.f32 %v7888_v28, %v9236_v43  ;;  %v1115_v32 = vmul.f32 %v9198_v31, %v9185_v50  ;;  %7907 = vpow2.f32 %v1033_v41  ;;  %v1074_v56 = vmul.f32 1.442695, %v1072_v42 }
 0x51b   :  { %v1505_v21 = vadd.f32 %v1501_v48, %v1489_v59  ;;  %v1466_v23 = vsel %vm624_vm6, %v1464_v26, 0.0  ;;  %v9247_v7 = vpop.eup %7889  ;;  %v1506_v59 = vmul.f32 %v1504_v38, %v9061_v39  ;;  %v1116_v26 = vmul.f32 %v9198_v31, %v9192_v63 }
 0x51c   :  { %v7892_v13 = vpop.eup %7891  ;;  %v1467_v55 = vadd.f32 %v1466_v23, %v1465_v1  ;;  %7909 = vpow2.f32 %v1615_v51  ;;  %v9267_v37 = vadd.f32 %v1585_v9, %v1574_v54  ;;  %v1076_v38 = vmul.f32 1.442695, %v1073_v60 }
 0x51d   :  { %v1532_v36 = vmul.f32 %v7886_v45, %v1505_v21  ;;  %v1507_v30 = vmul.f32 %v1505_v21, %v9059_v34  ;;  %v9255_v12 = vpop.eup %7893  ;;  %v1655_v21 = vmul.f32 %v9210_v46, %v9192_v63  ;;  %7911 = vpow2.f32 %v1656_v33 }
 0x51e   :  { %v1544_v8 = vpop.permute.xlu1 %1543  ;;  %v9245_v5 = vpop.permute.xlu0 %1627  ;;  %v1425_v45 = vrot.slane %v1424_v62, 4  ;;  %v907_v44 = vmul.f32 0.0, %v7892_v13  ;;  %v1117_v31 = vmul.f32 1.442695, %v1115_v32  ;;  %v1697_v28 = vmul.f32 %v9216_v40, %v9185_v50 }
 0x51f   :  { %v7896_v34 = vpop.eup %7895  ;;  %v1548_v24 = vadd.f32 %v1544_v8, %v1532_v36  ;;  %v1509_v22 = vsel %vm624_vm6, %v1507_v30, 0.0  ;;  %v1508_v41 = vsel %vm624_vm6, %v1506_v59, 0.0  ;;  %v1468_v42 = vrot.slane %v1467_v55, 4 }
 0x520   :  { %v9269_v39 = vpop.eup %7897  ;;  %v1119_v46 = vmul.f32 1.442695, %v1116_v26  ;;  %v1158_v9 = vmul.f32 %v9202_v52, %v9185_v50  ;;  %v1510_v36 = vadd.f32 %v1509_v22, %v1508_v41  ;;  %7913 = vpow2.f32 %v1074_v56 }
 0x521   :  { %v7900_v3 = vpop.eup %7899  ;;  %v1658_v54 = vmul.f32 1.442695, %v1655_v21  ;;  %v1550_v13 = vmul.f32 %v1548_v24, %v9068_v57  ;;  %7915 = vpow2.f32 %v1076_v38  ;;  %v1159_v33 = vmul.f32 %v9202_v52, %v9192_v63 }
 0x522   :  { %v1587_v48 = vpop.permute.xlu1 %1586  ;;  %v9262_v16 = vpop.permute.xlu0 %1670  ;;  %v1575_v8 = vmul.f32 %v7900_v3, %v1548_v24  ;;  %v1201_v1 = vmul.f32 %v9208_v27, %v9185_v50  ;;  %v1426_v32 = vadd.f32 %v1425_v45, %v1424_v62  ;;  %7917 = vpow2.f32 %v1117_v31 }
 0x523   :  { %v7902_v23 = vpop.eup %7901  ;;  %v1699_v59 = vmul.f32 1.442695, %v1697_v28  ;;  %v1469_v26 = vadd.f32 %v1468_v42, %v1467_v55  ;;  %v1549_v22 = vmul.f32 %v9236_v43, %v9070_v61  ;;  %7919 = vpow2.f32 %v1119_v46 }
 0x524   :  { %v7904_v30 = vpop.eup %7903  ;;  %v1617_v60 = vmul.f32 %v7902_v23, %v9267_v37  ;;  %v1160_v56 = vmul.f32 1.442695, %v1158_v9  ;;  %v1511_v21 = vrot.slane %v1510_v36, 4  ;;  %v1591_v57 = vadd.f32 %v1587_v48, %v1575_v8 }
 0x525   :  { %v9288_v3 = vpop.eup %7905  ;;  %7921 = vpow2.f32 %v1658_v54  ;;  %v1552_v52 = vsel %vm624_vm6, %v1550_v13, 0.0  ;;  %v1162_v45 = vmul.f32 1.442695, %v1159_v33  ;;  %v1202_v61 = vmul.f32 %v9208_v27, %v9192_v63 }
 0x526   :  { %v1630_v51 = vpop.permute.xlu1 %1629  ;;  %v9276_v29 = vpop.permute.xlu0 %1713  ;;  %v1633_v50 = vadd.f32 %v9245_v5, %v1617_v60  ;;  %v1203_v43 = vmul.f32 1.442695, %v1201_v1  ;;  %v1427_v31 = vrot.slane %v1426_v32, 2  ;;  %7923 = vpow2.f32 %v1699_v59 }
 0x527   :  { %v7908_v55 = vpop.eup %7907  ;;  %v1470_v28 = vrot.slane %v1469_v26, 2  ;;  %v1551_v41 = vsel %vm624_vm6, %v1549_v22, 0.0  ;;  %v1698_v5 = vmul.f32 %v9216_v40, %v9192_v63  ;;  %7925 = vpow2.f32 %v1160_v56 }
 0x528   :  { %v7910_v48 = vpop.eup %7909  ;;  %v1553_v46 = vadd.f32 %v1552_v52, %v1551_v41  ;;  %7927 = vpow2.f32 %v1162_v45  ;;  %v1205_v60 = vmul.f32 1.442695, %v1202_v61  ;;  %v1428_v33 = vadd.f32 %v1427_v31, %v1426_v32 }
 0x529   :  { %v7912_v23 = vpop.eup %7911  ;;  %v1618_v9 = vmul.f32 %v7910_v48, %v1591_v57  ;;  %v906_v1 = vmul.f32 0.0, %v9247_v7  ;;  %7929 = vpow2.f32 %v1203_v43  ;;  %v1593_v63 = vmul.f32 %v1591_v57, %v9076_v0 }
 0x52a   :  { %v9286_v24 = vpop.permute.xlu1 %1672  ;;  %v919_v38 = vpop.permute.xlu0 %918  ;;  %v1660_v27 = vmul.f32 %v7912_v23, %v1633_v50  ;;  %v1701_v22 = vmul.f32 1.442695, %v1698_v5  ;;  %v1592_v7 = vmul.f32 %v9267_v37, %v9078_v2  ;;  %7931 = vpow2.f32 %v1205_v60 }
 0x52b   :  { %v9292_v62 = vadd.f32 %v919_v38, %v907_v44  ;;  %v1512_v44 = vadd.f32 %v1511_v21, %v1510_v36  ;;  %v9303_v59 = vpop.eup %7913  ;;  %v1554_v38 = vrot.slane %v1553_v46, 4  ;;  %v1634_v56 = vadd.f32 %v1630_v51, %v1618_v9 }
 0x52c   :  { %v9306_v36 = vpop.eup %7915  ;;  %v1676_v32 = vadd.f32 %v9262_v16, %v1660_v27  ;;  %v1429_v0 = vrot.slane %v1428_v33, 1  ;;  %v1635_v31 = vmul.f32 %v1633_v50, %v9086_v15  ;;  %v1595_v51 = vsel %vm624_vm6, %v1593_v63, 0.0 }
 0x52d   :  { %v950_v42 = vmul.f32 %v7896_v34, %v9292_v62  ;;  %v1471_v34 = vadd.f32 %v1470_v28, %v1469_v26  ;;  %v1513_v21 = vrot.slane %v1512_v44, 2  ;;  %v9308_v45 = vpop.eup %7917  ;;  %7933 = vpow2.f32 %v1701_v22 }
 0x52e   :  { %v9300_v8 = vpop.permute.xlu1 %1715  ;;  %v962_v54 = vpop.permute.xlu0 %961  ;;  %v1594_v5 = vsel %vm624_vm6, %v1592_v7, 0.0  ;;  %v1678_v9 = vmul.f32 %v1676_v32, %v9094_v20  ;;  %v9320_v60 = vadd.f32 %v1429_v0, %v1428_v33  ;;  %v1636_v50 = vmul.f32 %v1634_v56, %v9084_v10 }
 0x52f   :  { %v966_v13 = vadd.f32 %v962_v54, %v950_v42  ;;  %v9313_v43 = vpop.eup %7919  ;;  %v1472_v57 = vrot.slane %v1471_v34, 1  ;;  %v1514_v41 = vadd.f32 %v1513_v21, %v1512_v44  ;;  %v1555_v42 = vadd.f32 %v1554_v38, %v1553_v46 }
 0x530   :  { %v1596_v15 = vadd.f32 %v1595_v51, %v1594_v5  ;;  %v1637_v46 = vsel %vm624_vm6, %v1635_v31, 0.0 }
 0x531   :  { %v993_v40 = vmul.f32 %v7904_v30, %v966_v13  ;;  %v7922_v30 = vpop.eup %7921  ;;  %v9325_v44 = vadd.f32 %v1472_v57, %v1471_v34  ;;  %v1515_v20 = vrot.slane %v1514_v41, 1  ;;  %v968_v21 = vmul.f32 %v966_v13, %v9145_v58 }
 0x532   :  { %v1005_v52 = vpop.permute.xlu0 %1004  ;;  %v917_v48 = vpop.permute.xlu1 %916  ;;  %v1661_v2 = vmul.f32 %v7922_v30, %v1634_v56  ;;  %v1680_v34 = vsel %vm624_vm6, %v1678_v9, 0.0  ;;  %v1597_v7 = vrot.slane %v1596_v15, 4 }
 0x533   :  { %v1009_v61 = vadd.f32 %v1005_v52, %v993_v40  ;;  %v922_v26 = vadd.f32 %v917_v48, %v906_v1  ;;  %v7924_v23 = vpop.eup %7923  ;;  %v970_v31 = vsel %vm624_vm6, %v968_v21, 0.0 }
 0x534   :  { %v1703_v1 = vmul.f32 %v7924_v23, %v1676_v32  ;;  %v1677_v33 = vadd.f32 %v9286_v24, %v1661_v2  ;;  %v925_v24 = vmul.f32 %v9292_v62, %v9139_v18 }
 0x535   :  { %v949_v28 = vmul.f32 %v9255_v12, %v922_v26  ;;  %v1036_v54 = vmul.f32 %v7908_v55, %v1009_v61  ;;  %v9323_v12 = vpop.eup %7925  ;;  %v1556_v55 = vrot.slane %v1555_v42, 2  ;;  %v924_v52 = vmul.f32 %v922_v26, %v9127_v6 }
 0x536   :  { %v1048_v37 = vpop.permute.xlu0 %1047  ;;  %v960_v16 = vpop.permute.xlu1 %959  ;;  %v9340_v32 = vadd.f32 %v9276_v29, %v1703_v1  ;;  %v1011_v58 = vmul.f32 %v1009_v61, %v9151_v47  ;;  %v9350_v26 = vadd.f32 %v1515_v20, %v1514_v41  ;;  %v1679_v29 = vmul.f32 %v1677_v33, %v9092_v19 }
 0x537   :  { %v965_v27 = vadd.f32 %v960_v16, %v949_v28  ;;  %v9330_v22 = vpop.eup %7927  ;;  %v1052_v48 = vadd.f32 %v1048_v37, %v1036_v54  ;;  %v9352_v57 = vadd.f32 %v1556_v55, %v1555_v42  ;;  %v926_v47 = vsel %vm624_vm6, %v924_v52, 0.0 }
 0x538   :  { %v9334_v56 = vpop.eup %7929  ;;  %v1598_v28 = vadd.f32 %v1597_v7, %v1596_v15  ;;  %v927_v41 = vsel %vm624_vm6, %v925_v24, 0.0  ;;  %v1013_v37 = vsel %vm624_vm6, %v1011_v58, 0.0  ;;  %v1681_v5 = vsel %vm624_vm6, %v1679_v29, 0.0 }
 0x539   :  { %v967_v63 = vmul.f32 %v965_v27, %v9132_v14  ;;  %v992_v40 = vmul.f32 %v9269_v39, %v965_v27  ;;  %v1638_v39 = vsel %vm624_vm6, %v1636_v50, 0.0  ;;  %v9348_v6 = vpop.eup %7931  ;;  %v1054_v62 = vmul.f32 %v1052_v48, %v9160_v17 }
 0x53a   :  { %v1089_v10 = vpop.permute.xlu0 %1088  ;;  %v1003_v38 = vpop.permute.xlu1 %1002  ;;  %v1639_v2 = vadd.f32 %v1638_v39, %v1637_v46  ;;  %v1079_v23 = vmul.f32 %v9306_v36, %v1052_v48  ;;  %v928_v9 = vadd.f32 %v927_v41, %v926_v47 }
 0x53b   :  { %v1008_v14 = vadd.f32 %v1003_v38, %v992_v40  ;;  %v969_v13 = vsel %vm624_vm6, %v967_v63, 0.0  ;;  %v1056_v15 = vsel %vm624_vm6, %v1054_v62, 0.0  ;;  %v1599_v40 = vrot.slane %v1598_v28, 2 }
 0x53c   :  { %v971_v42 = vadd.f32 %v970_v31, %v969_v13  ;;  %v1640_v20 = vrot.slane %v1639_v2, 4  ;;  %v1682_v38 = vadd.f32 %v1681_v5, %v1680_v34  ;;  %v929_v48 = vrot.slane %v928_v9, 4 }
 0x53d   :  { %v1010_v0 = vmul.f32 %v1008_v14, %v9137_v4  ;;  %v1035_v30 = vmul.f32 %v9288_v3, %v1008_v14  ;;  %v7934_v3 = vpop.eup %7933  ;;  %v9378_v62 = vadd.f32 %v1599_v40, %v1598_v28 }
 0x53e   :  { %v1132_v51 = vpop.permute.xlu0 %1131  ;;  %v1046_v18 = vpop.permute.xlu1 %1045  ;;  %v1704_v17 = vmul.f32 %v7934_v3, %v1677_v33  ;;  %v1683_v29 = vrot.slane %v1682_v38, 4  ;;  %v930_v31 = vadd.f32 %v929_v48, %v928_v9 }
 0x53f   :  { %v1012_v4 = vsel %vm624_vm6, %v1010_v0, 0.0  ;;  %v1051_v61 = vadd.f32 %v1046_v18, %v1035_v30 }
 0x540   :  { %v1014_v54 = vadd.f32 %v1013_v37, %v1012_v4  ;;  %v1720_v52 = vadd.f32 %v9300_v8, %v1704_v17  ;;  %v931_v5 = vrot.slane %v930_v31, 2 }
 0x541   :  { %v1053_v19 = vmul.f32 %v1051_v61, %v9143_v49  ;;  %v1078_v16 = vmul.f32 %v9303_v59, %v1051_v61  ;;  %v972_v49 = vrot.slane %v971_v42, 4 }
 0x542   :  { %v1175_v27 = vpop.permute.xlu0 %1174  ;;  %v1091_v50 = vpop.permute.xlu1 %1090  ;;  %v1015_v14 = vrot.slane %v1014_v54, 4 }
 0x543   :  { %v1055_v1 = vsel %vm624_vm6, %v1053_v19, 0.0  ;;  %v1094_v46 = vadd.f32 %v1089_v10, %v1078_v16  ;;  %v1095_v63 = vadd.f32 %v1091_v50, %v1079_v23  ;;  %v973_v0 = vadd.f32 %v972_v49, %v971_v42  ;;  %v11164_v42 = vld [vmem:[#allocation60_spill] sm:$0xff]  ;;  %v11165_v50 = vld [vmem:[#allocation62_spill] sm:$0xff]  ;;  %v11166_v49 = vld [vmem:[#allocation61_spill] sm:$0xff] }
 0x544   :  { %v1057_v55 = vadd.f32 %v1056_v15, %v1055_v1  ;;  %v1684_v23 = vadd.f32 %v1683_v29, %v1682_v38 }
 0x545   :  { %v1096_v59 = vmul.f32 %v1094_v46, %v9149_v11  ;;  %v1121_v36 = vmul.f32 %v9308_v45, %v1094_v46  ;;  %v1097_v33 = vmul.f32 %v1095_v63, %v9168_v53  ;;  %v1122_v21 = vmul.f32 %v9313_v43, %v1095_v63 }
 0x546   :  { %v1134_v7 = vpop.permute.xlu1 %1133  ;;  %v1218_v58 = vpop.permute.xlu0 %1217  ;;  %v1641_v11 = vadd.f32 %v1640_v20, %v1639_v2  ;;  %v1058_v45 = vrot.slane %v1057_v55, 4 }
 0x547   :  { %v1137_v10 = vadd.f32 %v1132_v51, %v1121_v36  ;;  %v1098_v39 = vsel %vm624_vm6, %v1096_v59, 0.0  ;;  %v1099_v24 = vsel %vm624_vm6, %v1097_v33, 0.0  ;;  %v1138_v13 = vadd.f32 %v1134_v7, %v1122_v21 }
 0x548   :  { %v1100_v30 = vadd.f32 %v1099_v24, %v1098_v39  ;;  %v1016_v51 = vadd.f32 %v1015_v14, %v1014_v54  ;;  %v1642_v2 = vrot.slane %v1641_v11, 2  ;;  %v1059_v41 = vadd.f32 %v1058_v45, %v1057_v55 }
 0x549   :  { %v1139_v53 = vmul.f32 %v1137_v10, %v9158_v35  ;;  %v1164_v43 = vmul.f32 %v9323_v12, %v1137_v10  ;;  %v1140_v8 = vmul.f32 %v1138_v13, %v9176_v25  ;;  %v1165_v34 = vmul.f32 %v9330_v22, %v1138_v13  ;;  %v11167_v10 = vld [vmem:[#allocation63_spill] sm:$0xff] }
 0x54a   :  { %v1101_v18 = vrot.slane %v1100_v30, 4  ;;  %v1177_v47 = vpop.permute.xlu1 %1176  ;;  %v974_v35 = vrot.slane %v973_v0, 2  ;;  %v1383_v19 = vpop.permute.xlu0 %1382  ;;  %v1017_v28 = vrot.slane %v1016_v51, 2  ;;  %v1060_v63 = vrot.slane %v1059_v41, 2 }
 0x54b   :  { %v1180_v4 = vadd.f32 %v1175_v27, %v1164_v43  ;;  %v1141_v61 = vsel %vm624_vm6, %v1139_v53, 0.0  ;;  %v1142_v3 = vsel %vm624_vm6, %v1140_v8, 0.0  ;;  %v1181_v16 = vadd.f32 %v1177_v47, %v1165_v34 }
 0x54c   :  { %v1143_v12 = vadd.f32 %v1142_v3, %v1141_v61  ;;  %v1102_v37 = vadd.f32 %v1101_v18, %v1100_v30  ;;  %v975_v46 = vadd.f32 %v974_v35, %v973_v0  ;;  %v1721_v20 = vmul.f32 %v9340_v32, %v1383_v19 }
 0x54d   :  { %v1182_v25 = vmul.f32 %v1180_v4, %v11164_v42  ;;  %v1207_v22 = vmul.f32 %v9334_v56, %v1180_v4  ;;  %v1183_v15 = vmul.f32 %v1181_v16, %v11165_v50  ;;  %v1208_v1 = vmul.f32 %v9348_v6, %v1181_v16 }
 0x54e   :  { %v1144_v17 = vrot.slane %v1143_v12, 4  ;;  %v1220_v9 = vpop.permute.xlu1 %1219  ;;  %v1103_v56 = vrot.slane %v1102_v37, 2  ;;  %v1685_v33 = vrot.slane %v1684_v23, 2  ;;  %v932_v21 = vadd.f32 %v931_v5, %v930_v31 }
 0x54f   :  { %v1184_v54 = vsel %vm624_vm6, %v1182_v25, 0.0  ;;  %v1223_v27 = vadd.f32 %v1218_v58, %v1207_v22  ;;  %v1185_v59 = vsel %vm624_vm6, %v1183_v15, 0.0  ;;  %v1224_v36 = vadd.f32 %v1220_v9, %v1208_v1 }
 0x550   :  { %v1145_v40 = vadd.f32 %v1144_v17, %v1143_v12  ;;  %v1186_v48 = vadd.f32 %v1185_v59, %v1184_v54  ;;  %v1018_v7 = vadd.f32 %v1017_v28, %v1016_v51  ;;  %v1643_v58 = vadd.f32 %v1642_v2, %v1641_v11 }
 0x551   :  { %v1225_v55 = vmul.f32 %v1223_v27, %v11166_v49  ;;  %v1226_v39 = vmul.f32 %v1224_v36, %v11167_v10  ;;  %v976_v32 = vrot.slane %v975_v46, 1  ;;  %v1061_v13 = vadd.f32 %v1060_v63, %v1059_v41  ;;  %v7111_v36 = vld [vmem:[%s11168_s9] ss:$0 sm:$0xff] }
 0x552   :  { %v1146_v38 = vrot.slane %v1145_v40, 2  ;;  %v1387_v14 = vpop.permute.xlu1 %1386  ;;  %v1187_v0 = vrot.slane %v1186_v48, 4  ;;  %v1104_v45 = vadd.f32 %v1103_v56, %v1102_v37  ;;  %v1723_v30 = vsel %vm624_vm6, %v1721_v20, 0.0 }
 0x553   :  { %v1227_v6 = vsel %vm624_vm6, %v1225_v55, 0.0  ;;  %v1722_v24 = vmul.f32 %v1720_v52, %v1387_v14  ;;  %v1228_v53 = vsel %vm624_vm6, %v1226_v39, 0.0  ;;  %v1558_v51 = vrot.slane %v9352_v57, 1  ;;  %v11170_v39 = vld [vmem:[#allocation54_spill] sm:$0xff] }
 0x554   :  { %v1147_v8 = vadd.f32 %v1146_v38, %v1145_v40  ;;  %v1188_v34 = vadd.f32 %v1187_v0, %v1186_v48  ;;  %v1229_v29 = vadd.f32 %v1228_v53, %v1227_v6  ;;  %v1686_v52 = vadd.f32 %v1685_v33, %v1684_v23 }
 0x555   :  { %v1724_v43 = vsel %vm624_vm6, %v1722_v24, 0.0  ;;  %v933_v11 = vrot.slane %v932_v21, 1  ;;  %v1019_v18 = vrot.slane %v1018_v7, 1  ;;  %v1062_v47 = vrot.slane %v1061_v13, 1 }
 0x556   :  { %v1725_v31 = vadd.f32 %v1724_v43, %v1723_v30  ;;  %v1189_v4 = vrot.slane %v1188_v34, 2  ;;  %v1230_v61 = vrot.slane %v1229_v29, 4  ;;  %v1601_v2 = vrot.slane %v9378_v62, 1  ;;  %v1761_v30 = vpop.permute.xlu0 %1760  ;;  %v1763_v53 = vpop.permute.xlu1 %1762 }
 0x557   :  { %v1644_v35 = vrot.slane %v1643_v58, 1  ;;  %v977_v41 = vadd.f32 %v976_v32, %v975_v46  ;;  %v1105_v12 = vrot.slane %v1104_v45, 1  ;;  %v1148_v42 = vrot.slane %v1147_v8, 1 }
 0x558   :  { %v1726_v3 = vrot.slane %v1725_v31, 4  ;;  %v1190_v25 = vadd.f32 %v1189_v4, %v1188_v34  ;;  %v1231_v37 = vadd.f32 %v1230_v61, %v1229_v29  ;;  %v1559_v19 = vadd.f32 %v1558_v51, %v9352_v57  ;;  %v7112_v34 = vld [vmem:[#allocation16] ss:$0 sm:$0xff] }
 0x559   :  { %v1687_v16 = vrot.slane %v1686_v52, 1  ;;  %v934_v5 = vadd.f32 %v933_v11, %v932_v21  ;;  %v1020_v23 = vadd.f32 %v1019_v18, %v1018_v7  ;;  %v1063_v28 = vadd.f32 %v1062_v47, %v1061_v13  ;;  %v11171_v11 = vld [vmem:[#allocation48_spill] sm:$0xff]  ;;  %v11172_v47 = vld [vmem:[#allocation47_spill] sm:$0xff] }
 0x55a   :  { %v1727_v22 = vadd.f32 %v1726_v3, %v1725_v31  ;;  %v1191_v17 = vrot.slane %v1190_v25, 1  ;;  %v1232_v9 = vrot.slane %v1231_v37, 2  ;;  %v1742_v27 = vsel %vm1732_vm7, %v9320_v60, %v9325_v44 }
 0x55b   :  { %v1602_v50 = vadd.f32 %v1601_v2, %v9378_v62  ;;  %v1645_v15 = vadd.f32 %v1644_v35, %v1643_v58  ;;  %v1106_v1 = vadd.f32 %v1105_v12, %v1104_v45  ;;  %v1733_v46 = vsel %vm1732_vm7, %v934_v5, %v977_v41  ;;  %v7117_v5 = vld [vmem:[%s11143_s19 + $0x20] sm:$0xff] }
 0x55c   :  { %v1728_v54 = vrot.slane %v1727_v22, 2  ;;  %v1149_v63 = vadd.f32 %v1148_v42, %v1147_v8  ;;  %v1233_v57 = vadd.f32 %v1232_v9, %v1231_v37  ;;  %v1735_v20 = vsel %vm1734_vm8, %v1733_v46, %v1020_v23  ;;  %v7118_v23 = vld [vmem:[%s11143_s19 + $0x28] sm:$0xff]  ;;  %v7120_v9 = vld [vmem:[%s11143_s19 + $0x38] sm:$0xff] }
 0x55d   :  { %v1192_v56 = vadd.f32 %v1191_v17, %v1190_v25  ;;  %v1688_v49 = vadd.f32 %v1687_v16, %v1686_v52  ;;  %v1743_v55 = vsel %vm1734_vm8, %v1742_v27, %v9350_v26  ;;  %v1736_v59 = vsel %vm508_vm2, %v1735_v20, %v1063_v28  ;;  %v11169_v26 = vld [vmem:[#allocation55_spill] sm:$0xff] }
 0x55e   :  { %v1729_v40 = vadd.f32 %v1728_v54, %v1727_v22  ;;  %v1234_v60 = vrot.slane %v1233_v57, 1  ;;  %v1744_v62 = vsel %vm508_vm2, %v1743_v55, %v1559_v19  ;;  %v1738_v21 = vsel %vm1737_vm9, %v1736_v59, %v1106_v1  ;;  %v7119_v28 = vld [vmem:[%s11143_s19 + $0x30] sm:$0xff] }
 0x55f   :  { %v1745_v33 = vsel %vm1737_vm9, %v1744_v62, %v1602_v50  ;;  %v1739_v7 = vsel %vm551_vm5, %v1738_v21, %v1149_v63  ;;  %v1756_v10 = vmul.f32 %v7111_v36, %v11169_v26  ;;  %v1757_v24 = vmul.f32 %v7111_v36, %v11170_v39  ;;  %v7125_v36 = vld [vmem:[%s11144_s8 + $0x40] sm:$0xff]  ;;  %v7127_v21 = vld [vmem:[%s11144_s8 + $0x50] sm:$0xff]  ;;  %v7132_v39 = vld [vmem:[%s11144_s8 + $0x78] sm:$0xff] }
 0x560   :  { %v1730_v44 = vrot.slane %v1729_v40, 1  ;;  %v1235_v38 = vadd.f32 %v1234_v60, %v1233_v57  ;;  %v1746_v14 = vsel %vm551_vm5, %v1745_v33, %v1645_v15  ;;  %v1740_v58 = vsel %vm537_vm4, %v1739_v7, %v1192_v56  ;;  %v7116_v56 = vld [vmem:[#allocation19] ss:$0 sm:$0xff]  ;;  %v7126_v33 = vld [vmem:[%s11144_s8 + $0x48] sm:$0xff] }
 0x561   :  { %v1747_v6 = vsel %vm537_vm4, %v1746_v14, %v1688_v49  ;;  %v7643_v17 = vpack.c.bf16 %v7118_v23, %v7117_v5  ;;  %v7647_v54 = vpack.c.bf16 %v7120_v9, %v7119_v28  ;;  %v7129_v7 = vld [vmem:[%s11144_s8 + $0x60] sm:$0xff] }
 0x562   :  { %v1731_v48 = vadd.f32 %v1730_v44, %v1729_v40  ;;  %v1741_v13 = vsel %vm523_vm3, %v1740_v58, %v1235_v38  ;;  %v7115_v40 = vld [vmem:[#allocation17] ss:$0 sm:$0xff]  ;;  %v7651_v38 = vpack.c.bf16 %v7126_v33, %v7125_v36  ;;  %v7121_v58 = vld [vmem:[#allocation10 + $0x1] ss:$0 sm:$0xff] }
 0x563   :  { %v1758_v45 = vadd.f32 %v1756_v10, %v1741_v13  ;;  %7644 = vmatprep.subr.bf16.mxu0 %v7643_v17  ;;  %v7131_v10 = vld [vmem:[%s11144_s8 + $0x70] sm:$0xff] }
 0x564   :  { %v1748_v32 = vsel %vm523_vm3, %v1747_v6, %v1731_v48  ;;  %7646 = vmatpush3.bf16.msra.mxu0 %v7643_v17  ;;  %v7128_v48 = vld [vmem:[%s11144_s8 + $0x58] sm:$0xff]  ;;  %v7130_v6 = vld [vmem:[%s11144_s8 + $0x68] sm:$0xff]  ;;  %7652 = vmatprep.subr.bf16.mxu1 %v7651_v38 }
 0x565   :  { %v1759_v0 = vadd.f32 %v1757_v24, %v1748_v32  ;;  %v1766_v8 = vmul.f32 %v1761_v30, %v1758_v45  ;;  %7648 = vmatprep.subr.bf16.mxu0 %v7647_v54  ;;  %v7655_v14 = vpack.c.bf16 %v7128_v48, %v7127_v21  ;;  %v7659_v26 = vpack.c.bf16 %v7130_v6, %v7129_v7 }
 0x566   :  { %v7663_v24 = vpack.c.bf16 %v7132_v39, %v7131_v10 }
 0x567   :  { %v1767_v43 = vmul.f32 %v1763_v53, %v1759_v0  ;;  %7415 = vmatprep.mubr.msk.f32.mxu1 %vm624_vm6, %v1766_v8 }
 0x568   :  { %7650 = vmatpush3.bf16.msra.mxu0 %v7647_v54 }
 0x569   :  { %7416 = vmatmul.mubr.msk.f32.vlgmr.msra.gmra.mrb[4].mxu1 %vm624_vm6, %v1767_v43 }
 0x56a   :  { %7654 = vmatpush3.bf16.msra.mxu1 %v7651_v38 }
 0x56b   :  { %7656 = vmatprep.subr.bf16.mxu1 %v7655_v14 }
 0x56e   :  { %7658 = vmatpush3.bf16.msra.mxu1 %v7655_v14 }
 0x56f   :  { %7660 = vmatprep.subr.bf16.mxu1 %v7659_v26 }
 0x572   :  { %7662 = vmatpush3.bf16.msra.mxu1 %v7659_v26 }
 0x573   :  { %7664 = vmatprep.subr.bf16.mxu1 %v7663_v24 }
 0x576   :  { %7666 = vmatpush3.bf16.msra.mxu1 %v7663_v24  ;;  %v7124_v24 = vld [vmem:[#allocation13 + $0x1] ss:$0 sm:$0xff] }
 0x63c   :  { %v7417_v29 = vpop.f32.mrb[4].mxu1 }
 0x63d   :  { %v1861_v31 = vadd.f32 %v7417_v29, %v7112_v34  ;;  %v1855_v51 = vpop.f32.mrb[5].mxu1 }
 0x63e   :  { %v1856_v52 = vadd.f32 %v7112_v34, %v1855_v51 }
 0x63f   :  { %v1865_v18 = vadd.f32 %v1861_v31, %v11171_v11 }
 0x640   :  { %v1864_v4 = vadd.f32 %v1856_v52, %v11172_v47  ;;  %v2018_v52 = vld [vmem:[#allocation11 + $0x4] sm:$0xf] }
 0x641   :  { %v1871_v61 = vsel %vm409_vm1, %v1865_v18, 0.0 }
 0x642   :  { %1872 = vadd.xlane.f32.xlu1 %v1871_v61  ;;  %v1868_v3 = vsel %vm409_vm1, %v1864_v4, 0.0 }
 0x643   :  { %1869 = vadd.xlane.f32.xlu0 %v1868_v3  ;;  %v11176_v3 = vld [vmem:[#allocation51_spill] sm:$0xff] }
 0x6cf   :  { %v1873_v2 = vpop.xlane.xlu1 %1872 }
 0x6d0   :  { %v1876_v35 = vmul.f32 0.03125, %v1873_v2  ;;  %v1870_v41 = vpop.xlane.xlu0 %1869  ;;  %v2046_v2 = vrot.slane %v2018_v52, %v11176_v3 }
 0x6d1   :  { %v1875_v12 = vmul.f32 0.03125, %v1870_v41 }
 0x6d2   :  { %v1878_v42 = vsub.f32 %v1865_v18, %v1876_v35  ;;  %v11177_v35 = vld [vmem:[#allocation52_spill] sm:$0xff] }
 0x6d3   :  { %v1877_v25 = vsub.f32 %v1864_v4, %v1875_v12  ;;  %v11175_v4 = vld [vmem:[#allocation50_spill] sm:$0xff]  ;;  %v2059_v41 = vrot.slane %v2018_v52, %v11177_v35 }
 0x6d4   :  { %v1880_v19 = vmul.f32 %v1878_v42, %v1878_v42  ;;  %v2033_v61 = vrot.slane %v2018_v52, %v11175_v4 }
 0x6d5   :  { %v1879_v37 = vmul.f32 %v1877_v25, %v1877_v25 }
 0x6d6   :  { %v1884_v16 = vsel %vm409_vm1, %v1880_v19, 0.0 }
 0x6d7   :  { %v1881_v22 = vsel %vm409_vm1, %v1879_v37, 0.0 }
 0x6d8   :  { %1882 = vadd.xlane.f32.xlu0 %v1881_v22 }
 0x6dc   :  { %1885 = vadd.xlane.f32.xlu0 %v1884_v16 }
 0x765   :  { %v1883_v27 = vpop.xlane.xlu0 %1882 }
 0x766   :  { %v1887_v50 = vmul.f32 0.03125, %v1883_v27 }
 0x768   :  { %v1889_v15 = vadd.f32 1e-05, %v1887_v50 }
 0x769   :  { %v1886_v1 = vpop.xlane.xlu0 %1885 }
 0x76a   :  { %7935 = vrsqrt.f32 %v1889_v15  ;;  %v1888_v46 = vmul.f32 0.03125, %v1886_v1 }
 0x76c   :  { %v1890_v63 = vadd.f32 1e-05, %v1888_v46 }
 0x76e   :  { %7937 = vrsqrt.f32 %v1890_v63 }
 0x774   :  { %v7936_v57 = vpop.eup %7935 }
 0x775   :  { %v1893_v20 = vmul.f32 %v7936_v57, %v1877_v25 }
 0x777   :  { %v1901_v49 = vmul.f32 %v7115_v40, %v1893_v20 }
 0x778   :  { %v7938_v55 = vpop.eup %7937 }
 0x779   :  { %v1894_v59 = vmul.f32 %v7938_v55, %v1878_v42  ;;  %v9431_v60 = vadd.f32 %v7116_v56, %v1901_v49  ;;  %v11178_v42 = vld [vmem:[#allocation53_spill] sm:$0xff] }
 0x77a   :  { %v2028_v25 = vrot.slane %v2018_v52, %v11178_v42 }
 0x77b   :  { %11173 = vst [vmem:[#allocation60_spill] sm:$0xff] %v9431_v60  ;;  %v1902_v44 = vmul.f32 %v7115_v40, %v1894_v59  ;;  %7426 = vmatprep.mubr.msk.f32.mxu0 %vm409_vm1, %v9431_v60 }
 0x77d   :  { %v9435_v62 = vadd.f32 %v7116_v56, %v1902_v44 }
 0x77f   :  { %11174 = vst [vmem:[#allocation62_spill] sm:$0xff] %v9435_v62  ;;  %7427 = vmatmul.mubr.msk.f32.vlgmr.msra.gmra.mrb[2].mxu0 %vm409_vm1, %v9435_v62 }
 0x852   :  { %v7428_v32 = vpop.f32.mrb[2].mxu0 }
 0x853   :  { %v2002_v13 = vadd.f32 %v7428_v32, %v7121_v58  ;;  %v1996_v0 = vpop.f32.mrb[3].mxu0 }
 0x854   :  { %v1997_v45 = vadd.f32 %v7121_v58, %v1996_v0 }
 0x855   :  { %v2006_v30 = vsub.f32 0.0, %v2002_v13 }
 0x856   :  { %v2005_v53 = vsub.f32 0.0, %v1997_v45 }
 0x857   :  { %v2009_v43 = vmul.f32 1.442695, %v2006_v30 }
 0x858   :  { %v2007_v8 = vmul.f32 1.442695, %v2005_v53 }
 0x859   :  { %7939 = vpow2.f32 %v2009_v43 }
 0x85a   :  { %7941 = vpow2.f32 %v2007_v8 }
 0x863   :  { %v7940_v34 = vpop.eup %7939 }
 0x864   :  { %v7942_v29 = vpop.eup %7941  ;;  %v2012_v31 = vadd.f32 1.0, %v7940_v34 }
 0x865   :  { %v2011_v51 = vadd.f32 1.0, %v7942_v29 }
 0x866   :  { %7943 = vrcp.f32 %v2012_v31 }
 0x867   :  { %7945 = vrcp.f32 %v2011_v51 }
 0x870   :  { %v7944_v11 = vpop.eup %7943 }
 0x871   :  { %v7946_v18 = vpop.eup %7945  ;;  %v9447_v47 = vmul.f32 %v7944_v11, %v2002_v13 }
 0x872   :  { %v9452_v12 = vmul.f32 %v7946_v18, %v1997_v45 }
 0x873   :  { %v2077_v37 = vrot.slane %v9447_v47, 5 }
 0x874   :  { %v2022_v22 = vrot.slane %v9452_v12, 5 }
 0x875   :  { %v2079_v19 = vsel %vm508_vm2, 0.0, %v2077_v37  ;;  %v2082_v16 = vmul.f32 %v2077_v37, %v2033_v61  ;;  %v2091_v5 = vmul.f32 %v2077_v37, %v2046_v2  ;;  %v2100_v17 = vmul.f32 %v2077_v37, %v2059_v41 }
 0x876   :  { %v2081_v23 = vmul.f32 %v2079_v19, %v2033_v61  ;;  %v2090_v28 = vmul.f32 %v2079_v19, %v2046_v2  ;;  %v2080_v9 = vmul.f32 %v2079_v19, %v2028_v25  ;;  %v2099_v27 = vmul.f32 %v2079_v19, %v2059_v41 }
 0x877   :  { %v2086_v54 = vrot.slane %v2082_v16, 1  ;;  %v2024_v50 = vsel %vm508_vm2, 0.0, %v2022_v22  ;;  %v2095_v46 = vrot.slane %v2091_v5, 2  ;;  %v2035_v57 = vmul.f32 %v2033_v61, %v2022_v22 }
 0x878   :  { %v2085_v15 = vrot.slane %v2081_v23, 1  ;;  %v2094_v1 = vrot.slane %v2090_v28, 2  ;;  %v2034_v63 = vmul.f32 %v2033_v61, %v2024_v50  ;;  %v2047_v40 = vmul.f32 %v2046_v2, %v2024_v50 }
 0x879   :  { %v2048_v20 = vmul.f32 %v2046_v2, %v2022_v22  ;;  %v2060_v56 = vmul.f32 %v2059_v41, %v2024_v50  ;;  %v2104_v49 = vrot.slane %v2100_v17, 3  ;;  %v2061_v59 = vmul.f32 %v2059_v41, %v2022_v22  ;;  %v7133_v22 = vld [vmem:[#allocation14 + $0x1] ss:$0 sm:$0xff] }
 0x87a   :  { %v2038_v55 = vrot.slane %v2034_v63, 1  ;;  %v2087_v44 = vsel %vm523_vm3, %v2085_v15, %v2086_v54  ;;  %v2039_v36 = vrot.slane %v2035_v57, 1  ;;  %v2051_v33 = vrot.slane %v2047_v40, 2  ;;  %v11181_v54 = vld [vmem:[#allocation56_spill] sm:$0xff]  ;;  %v11184_v63 = vld [vmem:[#allocation59_spill] sm:$0xff] }
 0x87b   :  { %v2052_v21 = vrot.slane %v2048_v20, 2  ;;  %v2089_v38 = vadd.f32 %v2087_v44, %v2080_v9  ;;  %v2029_v48 = vmul.f32 %v2028_v25, %v2024_v50  ;;  %v2096_v14 = vsel %vm537_vm4, %v2094_v1, %v2095_v46  ;;  %v11182_v50 = vld [vmem:[#allocation57_spill] sm:$0xff]  ;;  %v11183_v1 = vld [vmem:[#allocation58_spill] sm:$0xff] }
 0x87c   :  { %v2103_v7 = vrot.slane %v2099_v27, 3  ;;  %v2065_v6 = vrot.slane %v2061_v59, 3  ;;  %v2040_v10 = vsel %vm523_vm3, %v2038_v55, %v2039_v36  ;;  %v2064_v39 = vrot.slane %v2060_v56, 3 }
 0x87d   :  { %v2098_v26 = vadd.f32 %v2096_v14, %v2089_v38  ;;  %v2042_v32 = vadd.f32 %v2040_v10, %v2029_v48  ;;  %v2053_v0 = vsel %vm537_vm4, %v2051_v33, %v2052_v21 }
 0x87e   :  { %v2105_v58 = vsel %vm551_vm5, %v2103_v7, %v2104_v49  ;;  %v2066_v53 = vsel %vm551_vm5, %v2064_v39, %v2065_v6 }
 0x87f   :  { %v2107_v13 = vadd.f32 %v2105_v58, %v2098_v26  ;;  %v2055_v45 = vadd.f32 %v2053_v0, %v2042_v32 }
 0x881   :  { %v2108_v30 = vadd.f32 %v7124_v24, %v2107_v13  ;;  %v2068_v43 = vadd.f32 %v2066_v53, %v2055_v45 }
 0x883   :  { %v2110_v8 = vsub.f32 0.0, %v2108_v30  ;;  %v2075_v34 = vadd.f32 %v7124_v24, %v2068_v43 }
 0x885   :  { %v2113_v29 = vmul.f32 1.442695, %v2110_v8  ;;  %v2109_v31 = vsub.f32 0.0, %v2075_v34 }
 0x887   :  { %7947 = vpow2.f32 %v2113_v29  ;;  %v2111_v51 = vmul.f32 1.442695, %v2109_v31 }
 0x889   :  { %7949 = vpow2.f32 %v2111_v51 }
 0x891   :  { %v7948_v52 = vpop.eup %7947 }
 0x892   :  { %v2116_v11 = vadd.f32 1.0, %v7948_v52 }
 0x893   :  { %v7950_v18 = vpop.eup %7949 }
 0x894   :  { %7951 = vrcp.f32 %v2116_v11  ;;  %v2115_v61 = vadd.f32 1.0, %v7950_v18 }
 0x896   :  { %7953 = vrcp.f32 %v2115_v61 }
 0x89e   :  { %v7952_v2 = vpop.eup %7951 }
 0x89f   :  { %v9465_v41 = vmul.f32 %v7952_v2, %v2108_v30 }
 0x8a0   :  { %v7954_v25 = vpop.eup %7953 }
 0x8a1   :  { %11179 = vst [vmem:[#allocation61_spill] sm:$0xff] %v9465_v41  ;;  %2239 = vrot.lane.b32.xlu0 %v9465_v41, %s8628_s18  ;;  %v9469_v37 = vmul.f32 %v7954_v25, %v2075_v34 }
 0x8a3   :  { %11180 = vst [vmem:[#allocation63_spill] sm:$0xff] %v9469_v37  ;;  %2237 = vrot.lane.b32.xlu1 %v9469_v37, %s8628_s18  ;;  %7445 = vmatprep.mubr.msk.f32.mxu1 %vm624_vm6, %v9469_v37 }
 0x8a4   :  { %7446 = vmatmul.mubr.msk.f32.vlgmr.msra.gmra.mrb[6].mxu1 %vm624_vm6, %v9465_v41 }
 0x913   :  { %v2240_v32 = vpop.permute.xlu0 %2239 }
 0x915   :  { %v9508_v13 = vpop.permute.xlu1 %2237 }
 0x977   :  { %v7447_v19 = vpop.f32.mrb[6].mxu1 }
 0x978   :  { %v9477_v16 = vadd.f32 %v7447_v19, %v7133_v22  ;;  %v2210_v5 = vpop.f32.mrb[7].mxu1 }
 0x979   :  { %v2211_v40 = vadd.f32 %v7133_v22, %v2210_v5 }
 0x97a   :  { %v2753_v23 = vrot.slane %v9477_v16, %v11178_v42  ;;  %v2764_v28 = vrot.slane %v9477_v16, %v11175_v4  ;;  %v2775_v17 = vrot.slane %v9477_v16, %v11176_v3  ;;  %v2786_v9 = vrot.slane %v9477_v16, %v11177_v35 }
 0x97b   :  { %v2797_v27 = vrot.slane %v9477_v16, %v11181_v54  ;;  %v2808_v15 = vrot.slane %v9477_v16, %v11182_v50  ;;  %v2819_v46 = vrot.slane %v9477_v16, %v11183_v1  ;;  %v9495_v57 = vrot.slane %v9477_v16, %v11184_v63 }
 0x97c   :  { %2759 = vbcast.lane.b32.xlu1 %v2753_v23, 264  ;;  %2755 = vbcast.lane.b32.xlu0 %v2753_v23, 256  ;;  %v2268_v20 = vrot.slane %v2211_v40, %v11175_v4  ;;  %v2257_v56 = vrot.slane %v2211_v40, %v11178_v42  ;;  %v2279_v49 = vrot.slane %v2211_v40, %v11176_v3  ;;  %v2221_v59 = vand.u32 2147483647, %v2211_v40 }
 0x97d   :  { %v2290_v55 = vrot.slane %v2211_v40, %v11177_v35  ;;  %v2301_v44 = vrot.slane %v2211_v40, %v11181_v54  ;;  %v2312_v33 = vrot.slane %v2211_v40, %v11182_v50  ;;  %v2222_v21 = vand.u32 2147483647, %v9477_v16 }
 0x97e   :  { %v2223_v36 = vsub.f32 0.0, %v2221_v59  ;;  %v2323_v48 = vrot.slane %v2211_v40, %v11183_v1  ;;  %v2334_v7 = vrot.slane %v2211_v40, %v11184_v63  ;;  %v2219_v45 = vmax.f32 %v2211_v40, 0.0 }
 0x97f   :  { %v2224_v14 = vsub.f32 0.0, %v2222_v21  ;;  %v2220_v52 = vmax.f32 %v9477_v16, 0.0 }
 0x980   :  { %2770 = vbcast.lane.b32.xlu1 %v2764_v28, 264  ;;  %2766 = vbcast.lane.b32.xlu0 %v2764_v28, 256  ;;  %v2225_v38 = vmul.f32 1.442695, %v2223_v36 }
 0x981   :  { %v2227_v6 = vmul.f32 1.442695, %v2224_v14 }
 0x982   :  { %7955 = vpow2.f32 %v2225_v38 }
 0x983   :  { %7957 = vpow2.f32 %v2227_v6 }
 0x984   :  { %2781 = vbcast.lane.b32.xlu1 %v2775_v17, 264  ;;  %2777 = vbcast.lane.b32.xlu0 %v2775_v17, 256 }
 0x988   :  { %2792 = vbcast.lane.b32.xlu1 %v2786_v9, 264  ;;  %2788 = vbcast.lane.b32.xlu0 %v2786_v9, 256 }
 0x98c   :  { %2803 = vbcast.lane.b32.xlu1 %v2797_v27, 264  ;;  %2799 = vbcast.lane.b32.xlu0 %v2797_v27, 256  ;;  %v7956_v26 = vpop.eup %7955 }
 0x98d   :  { %v2229_v10 = vadd.f32 1.0, %v7956_v26  ;;  %v7958_v39 = vpop.eup %7957 }
 0x98e   :  { %v2230_v24 = vadd.f32 1.0, %v7958_v39 }
 0x98f   :  { %7959 = vlog2.f32 %v2229_v10 }
 0x990   :  { %2814 = vbcast.lane.b32.xlu1 %v2808_v15, 264  ;;  %2810 = vbcast.lane.b32.xlu0 %v2808_v15, 256  ;;  %7961 = vlog2.f32 %v2230_v24 }
 0x994   :  { %2825 = vbcast.lane.b32.xlu1 %v2819_v46, 264  ;;  %2821 = vbcast.lane.b32.xlu0 %v2819_v46, 256 }
 0x998   :  { %2836 = vbcast.lane.b32.xlu1 %v9495_v57, 264  ;;  %2832 = vbcast.lane.b32.xlu0 %v9495_v57, 256 }
 0x999   :  { %v7960_v58 = vpop.eup %7959 }
 0x99a   :  { %v2232_v0 = vmul.f32 0.6931472, %v7960_v58  ;;  %v7962_v8 = vpop.eup %7961 }
 0x99b   :  { %v2234_v34 = vmul.f32 0.6931472, %v7962_v8 }
 0x99c   :  { %2844 = vbcast.lane.b32.xlu1 %v2753_v23, 280  ;;  %2840 = vbcast.lane.b32.xlu0 %v2753_v23, 272  ;;  %v9512_v43 = vadd.f32 %v2232_v0, %v2219_v45 }
 0x99d   :  { %v2236_v11 = vadd.f32 %v2234_v34, %v2220_v52 }
 0x99e   :  { %v2409_v51 = vrot.slane %v9512_v43, %v11178_v42  ;;  %v2452_v2 = vrot.slane %v9512_v43, %v11175_v4  ;;  %v2495_v16 = vrot.slane %v9512_v43, %v11176_v3  ;;  %v2667_v36 = vrot.slane %v9512_v43, %v11183_v1 }
 0x99f   :  { %v2905_v19 = vrot.slane %v2236_v11, %v11178_v42  ;;  %v2710_v14 = vrot.slane %v9512_v43, %v11184_v63  ;;  %v3163_v39 = vrot.slane %v2236_v11, %v11183_v1  ;;  %v3206_v45 = vrot.slane %v2236_v11, %v11184_v63 }
 0x9a0   :  { %2852 = vbcast.lane.b32.xlu1 %v2764_v28, 280  ;;  %2848 = vbcast.lane.b32.xlu0 %v2764_v28, 272  ;;  %v2948_v28 = vrot.slane %v2236_v11, %v11175_v4 }
 0x9a4   :  { %2860 = vbcast.lane.b32.xlu1 %v2775_v17, 280  ;;  %2856 = vbcast.lane.b32.xlu0 %v2775_v17, 272  ;;  %v2538_v17 = vrot.slane %v9512_v43, %v11177_v35 }
 0x9a8   :  { %2868 = vbcast.lane.b32.xlu1 %v2786_v9, 280  ;;  %2864 = vbcast.lane.b32.xlu0 %v2786_v9, 272 }
 0x9ac   :  { %2876 = vbcast.lane.b32.xlu1 %v2797_v27, 280  ;;  %2872 = vbcast.lane.b32.xlu0 %v2797_v27, 272 }
 0x9b0   :  { %2884 = vbcast.lane.b32.xlu1 %v2808_v15, 280  ;;  %2880 = vbcast.lane.b32.xlu0 %v2808_v15, 272  ;;  %v2991_v15 = vrot.slane %v2236_v11, %v11176_v3 }
 0x9b4   :  { %2892 = vbcast.lane.b32.xlu1 %v2819_v46, 280  ;;  %2888 = vbcast.lane.b32.xlu0 %v2819_v46, 272  ;;  %v2581_v46 = vrot.slane %v9512_v43, %v11181_v54 }
 0x9b8   :  { %2270 = vbcast.lane.b32.xlu0 %v2268_v20, 256  ;;  %2259 = vbcast.lane.b32.xlu1 %v2257_v56, 256 }
 0x9bc   :  { %2281 = vbcast.lane.b32.xlu0 %v2279_v49, 256  ;;  %2263 = vbcast.lane.b32.xlu1 %v2257_v56, 264 }
 0x9c0   :  { %2292 = vbcast.lane.b32.xlu0 %v2290_v55, 256  ;;  %2274 = vbcast.lane.b32.xlu1 %v2268_v20, 264 }
 0x9c4   :  { %2303 = vbcast.lane.b32.xlu0 %v2301_v44, 256  ;;  %2285 = vbcast.lane.b32.xlu1 %v2279_v49, 264 }
 0x9c8   :  { %2314 = vbcast.lane.b32.xlu0 %v2312_v33, 256  ;;  %2296 = vbcast.lane.b32.xlu1 %v2290_v55, 264 }
 0x9cc   :  { %2325 = vbcast.lane.b32.xlu0 %v2323_v48, 256  ;;  %2307 = vbcast.lane.b32.xlu1 %v2301_v44, 264 }
 0x9d0   :  { %2336 = vbcast.lane.b32.xlu0 %v2334_v7, 256  ;;  %2318 = vbcast.lane.b32.xlu1 %v2312_v33, 264 }
 0x9d4   :  { %2344 = vbcast.lane.b32.xlu0 %v2257_v56, 272  ;;  %2329 = vbcast.lane.b32.xlu1 %v2323_v48, 264 }
 0x9d8   :  { %2352 = vbcast.lane.b32.xlu0 %v2268_v20, 272  ;;  %2340 = vbcast.lane.b32.xlu1 %v2334_v7, 264 }
 0x9dc   :  { %2360 = vbcast.lane.b32.xlu0 %v2279_v49, 272  ;;  %2348 = vbcast.lane.b32.xlu1 %v2257_v56, 280  ;;  %v3034_v56 = vrot.slane %v2236_v11, %v11177_v35 }
 0x9e0   :  { %2368 = vbcast.lane.b32.xlu0 %v2290_v55, 272  ;;  %2356 = vbcast.lane.b32.xlu1 %v2268_v20, 280 }
 0x9e4   :  { %2376 = vbcast.lane.b32.xlu0 %v2301_v44, 272  ;;  %2364 = vbcast.lane.b32.xlu1 %v2279_v49, 280  ;;  %v2624_v49 = vrot.slane %v9512_v43, %v11182_v50 }
 0x9e8   :  { %2384 = vbcast.lane.b32.xlu0 %v2312_v33, 272  ;;  %2372 = vbcast.lane.b32.xlu1 %v2290_v55, 280 }
 0x9ec   :  { %2392 = vbcast.lane.b32.xlu0 %v2323_v48, 272  ;;  %2380 = vbcast.lane.b32.xlu1 %v2301_v44, 280  ;;  %v3077_v44 = vrot.slane %v2236_v11, %v11181_v54 }
 0x9ee   :  { %v9510_v30 = vpop.permute.xlu1 %2759  ;;  %v2756_v53 = vpop.permute.xlu0 %2755 }
 0x9f0   :  { %2400 = vbcast.lane.b32.xlu0 %v2334_v7, 272  ;;  %2388 = vbcast.lane.b32.xlu1 %v2312_v33, 280  ;;  %v2244_v33 = vmul.f32 %v2240_v32, %v2236_v11 }
 0x9f2   :  { %v9514_v29 = vpop.permute.xlu1 %2770  ;;  %v2767_v31 = vpop.permute.xlu0 %2766  ;;  %v2964_v24 = vrot.slane %v2244_v33, %v11175_v4 }
 0x9f4   :  { %2396 = vbcast.lane.b32.xlu1 %v2323_v48, 280  ;;  %2411 = vrot.lane.b32.xlu0 %v2409_v51, %s8629_s22  ;;  %v3120_v48 = vrot.slane %v2236_v11, %v11182_v50  ;;  %v2965_v58 = vmul.f32 %v2964_v24, %v2767_v31  ;;  %v3050_v31 = vrot.slane %v2244_v33, %v11177_v35 }
 0x9f5   :  { %v2966_v11 = vmul.f32 %v2964_v24, %v9514_v29  ;;  %v3136_v29 = vrot.slane %v2244_v33, %v11182_v50 }
 0x9f6   :  { %v9520_v18 = vpop.permute.xlu1 %2781  ;;  %v2778_v61 = vpop.permute.xlu0 %2777 }
 0x9f8   :  { %2404 = vbcast.lane.b32.xlu1 %v2334_v7, 280  ;;  %2454 = vrot.lane.b32.xlu0 %v2452_v2, %s8629_s22  ;;  %v2921_v7 = vrot.slane %v2244_v33, %v11178_v42 }
 0x9fa   :  { %v9525_v25 = vpop.permute.xlu1 %2792  ;;  %v2789_v22 = vpop.permute.xlu0 %2788  ;;  %v2922_v6 = vmul.f32 %v2921_v7, %v2756_v53  ;;  %v3007_v53 = vrot.slane %v2244_v33, %v11176_v3  ;;  %v2923_v8 = vmul.f32 %v2921_v7, %v9510_v30  ;;  %v3093_v30 = vrot.slane %v2244_v33, %v11181_v54 }
 0x9fb   :  { %v3051_v2 = vmul.f32 %v3050_v31, %v2789_v22  ;;  %v3052_v22 = vmul.f32 %v3050_v31, %v9525_v25  ;;  %v2243_v25 = vmul.f32 %v9508_v13, %v9512_v43 }
 0x9fc   :  { %2907 = vrot.lane.b32.xlu1 %v2905_v19, %s8629_s22  ;;  %2497 = vrot.lane.b32.xlu0 %v2495_v16, %s8629_s22  ;;  %v3008_v34 = vmul.f32 %v3007_v53, %v2778_v61  ;;  %v3009_v61 = vmul.f32 %v3007_v53, %v9520_v18  ;;  %v3179_v18 = vrot.slane %v2244_v33, %v11183_v1 }
 0x9fd   :  { %v2468_v24 = vrot.slane %v2243_v25, %v11175_v4  ;;  %v2511_v53 = vrot.slane %v2243_v25, %v11176_v3 }
 0x9fe   :  { %v9532_v5 = vpop.permute.xlu1 %2803  ;;  %v2800_v23 = vpop.permute.xlu0 %2799 }
 0xa00   :  { %2950 = vrot.lane.b32.xlu1 %v2948_v28, %s8629_s22  ;;  %2540 = vrot.lane.b32.xlu0 %v2538_v17, %s8629_s22  ;;  %v3094_v28 = vmul.f32 %v3093_v30, %v2800_v23  ;;  %v3095_v23 = vmul.f32 %v3093_v30, %v9532_v5  ;;  %v2425_v5 = vrot.slane %v2243_v25, %v11178_v42 }
 0xa02   :  { %v9539_v9 = vpop.permute.xlu1 %2814  ;;  %v2811_v27 = vpop.permute.xlu0 %2810 }
 0xa04   :  { %2993 = vrot.lane.b32.xlu1 %v2991_v15, %s8629_s22  ;;  %2583 = vrot.lane.b32.xlu0 %v2581_v46, %s8629_s22  ;;  %v3137_v46 = vmul.f32 %v3136_v29, %v2811_v27  ;;  %v3138_v27 = vmul.f32 %v3136_v29, %v9539_v9 }
 0xa06   :  { %v9546_v40 = vpop.permute.xlu1 %2825  ;;  %v2822_v20 = vpop.permute.xlu0 %2821 }
 0xa08   :  { %3036 = vrot.lane.b32.xlu1 %v3034_v56, %s8629_s22  ;;  %2626 = vrot.lane.b32.xlu0 %v2624_v49, %s8629_s22 }
 0xa0a   :  { %v9553_v55 = vpop.permute.xlu1 %2836  ;;  %v9555_v59 = vpop.permute.xlu0 %2832 }
 0xa0c   :  { %3079 = vrot.lane.b32.xlu1 %v3077_v44, %s8629_s22  ;;  %2669 = vrot.lane.b32.xlu0 %v2667_v36, %s8629_s22  ;;  %v3180_v44 = vmul.f32 %v3179_v18, %v2822_v20  ;;  %v3181_v20 = vmul.f32 %v3179_v18, %v9546_v40 }
 0xa0e   :  { %v9562_v21 = vpop.permute.xlu1 %2844  ;;  %v9564_v38 = vpop.permute.xlu0 %2840 }
 0xa10   :  { %3122 = vrot.lane.b32.xlu1 %v3120_v48, %s8629_s22  ;;  %2712 = vrot.lane.b32.xlu0 %v2710_v14, %s8629_s22  ;;  %v3222_v14 = vrot.slane %v2244_v33, %v11184_v63 }
 0xa12   :  { %v9572_v26 = vpop.permute.xlu1 %2852  ;;  %v9574_v10 = vpop.permute.xlu0 %2848  ;;  %v3223_v7 = vmul.f32 %v3222_v14, %v9555_v59  ;;  %v3224_v9 = vmul.f32 %v3222_v14, %v9553_v55 }
 0xa14   :  { %3165 = vrot.lane.b32.xlu1 %v3163_v39, %s8629_s22  ;;  %2926 = vrot.lane.b32.xlu0 %v2922_v6, %s8629_s22 }
 0xa16   :  { %v9580_v32 = vpop.permute.xlu1 %2860  ;;  %v9582_v0 = vpop.permute.xlu0 %2856 }
 0xa18   :  { %3208 = vrot.lane.b32.xlu1 %v3206_v45, %s8629_s22  ;;  %2969 = vrot.lane.b32.xlu0 %v2965_v58, %s8629_s22 }
 0xa1a   :  { %v9589_v51 = vpop.permute.xlu1 %2868  ;;  %v9591_v52 = vpop.permute.xlu0 %2864 }
 0xa1c   :  { %2928 = vrot.lane.b32.xlu1 %v2923_v8, %s8629_s22  ;;  %3012 = vrot.lane.b32.xlu0 %v3008_v34, %s8629_s22 }
 0xa1e   :  { %v9597_v19 = vpop.permute.xlu1 %2876  ;;  %v9599_v16 = vpop.permute.xlu0 %2872 }
 0xa20   :  { %2971 = vrot.lane.b32.xlu1 %v2966_v11, %s8629_s22  ;;  %3055 = vrot.lane.b32.xlu0 %v3051_v2, %s8629_s22  ;;  %v2554_v11 = vrot.slane %v2243_v25, %v11177_v35 }
 0xa22   :  { %v9605_v17 = vpop.permute.xlu1 %2884  ;;  %v9607_v15 = vpop.permute.xlu0 %2880 }
 0xa24   :  { %3014 = vrot.lane.b32.xlu1 %v3009_v61, %s8629_s22  ;;  %3098 = vrot.lane.b32.xlu0 %v3094_v28, %s8629_s22  ;;  %v2597_v28 = vrot.slane %v2243_v25, %v11181_v54 }
 0xa26   :  { %v9613_v56 = vpop.permute.xlu1 %2892  ;;  %v9615_v49 = vpop.permute.xlu0 %2888 }
 0xa28   :  { %3057 = vrot.lane.b32.xlu1 %v3052_v22, %s8629_s22  ;;  %3141 = vrot.lane.b32.xlu0 %v3137_v46, %s8629_s22 }
 0xa2a   :  { %v2271_v36 = vpop.permute.xlu0 %2270  ;;  %v2260_v48 = vpop.permute.xlu1 %2259 }
 0xa2b   :  { %v2426_v40 = vmul.f32 %v2425_v5, %v2260_v48  ;;  %v2469_v55 = vmul.f32 %v2468_v24, %v2271_v36 }
 0xa2c   :  { %3100 = vrot.lane.b32.xlu1 %v3095_v23, %s8629_s22  ;;  %3184 = vrot.lane.b32.xlu0 %v3180_v44, %s8629_s22  ;;  %v2640_v23 = vrot.slane %v2243_v25, %v11182_v50 }
 0xa2e   :  { %v2282_v6 = vpop.permute.xlu0 %2281  ;;  %v2264_v39 = vpop.permute.xlu1 %2263 }
 0xa2f   :  { %v2427_v33 = vmul.f32 %v2425_v5, %v2264_v39  ;;  %v2512_v29 = vmul.f32 %v2511_v53, %v2282_v6 }
 0xa30   :  { %3143 = vrot.lane.b32.xlu1 %v3138_v27, %s8629_s22  ;;  %3227 = vrot.lane.b32.xlu0 %v3223_v7, %s8629_s22  ;;  %v2683_v27 = vrot.slane %v2243_v25, %v11183_v1 }
 0xa32   :  { %v2293_v13 = vpop.permute.xlu0 %2292  ;;  %v2275_v43 = vpop.permute.xlu1 %2274 }
 0xa33   :  { %v2470_v59 = vmul.f32 %v2468_v24, %v2275_v43  ;;  %v2555_v44 = vmul.f32 %v2554_v11, %v2293_v13 }
 0xa34   :  { %3186 = vrot.lane.b32.xlu1 %v3181_v20, %s8629_s22  ;;  %2432 = vrot.lane.b32.xlu0 %v2427_v33, %s8629_s22  ;;  %v2726_v20 = vrot.slane %v2243_v25, %v11184_v63 }
 0xa36   :  { %v2304_v58 = vpop.permute.xlu0 %2303  ;;  %v2286_v45 = vpop.permute.xlu1 %2285 }
 0xa37   :  { %v2513_v8 = vmul.f32 %v2511_v53, %v2286_v45  ;;  %v2598_v22 = vmul.f32 %v2597_v28, %v2304_v58 }
 0xa38   :  { %3229 = vrot.lane.b32.xlu1 %v3224_v9, %s8629_s22  ;;  %2475 = vrot.lane.b32.xlu0 %v2470_v59, %s8629_s22 }
 0xa3a   :  { %v2315_v34 = vpop.permute.xlu0 %2314  ;;  %v2297_v31 = vpop.permute.xlu1 %2296 }
 0xa3b   :  { %v2556_v2 = vmul.f32 %v2554_v11, %v2297_v31  ;;  %v2641_v36 = vmul.f32 %v2640_v23, %v2315_v34  ;;  %v7136_v11 = vld [vmem:[%s11159_s2 + $0x10] sm:$0xff] }
 0xa3c   :  { %2518 = vrot.lane.b32.xlu0 %v2513_v8, %s8629_s22  ;;  %2430 = vrot.lane.b32.xlu1 %v2426_v40, %s8629_s22  ;;  %v7140_v40 = vld [vmem:[%s11158_s13 + $0x40] sm:$0xff]  ;;  %v7141_v8 = vld [vmem:[%s11158_s13 + $0x48] sm:$0xff] }
 0xa3e   :  { %v2326_v30 = vpop.permute.xlu0 %2325  ;;  %v2308_v61 = vpop.permute.xlu1 %2307 }
 0xa3f   :  { %v2684_v7 = vmul.f32 %v2683_v27, %v2326_v30  ;;  %v2599_v6 = vmul.f32 %v2597_v28, %v2308_v61  ;;  %v7143_v30 = vld [vmem:[%s11158_s13 + $0x58] sm:$0xff] }
 0xa40   :  { %2561 = vrot.lane.b32.xlu0 %v2556_v2, %s8629_s22  ;;  %2473 = vrot.lane.b32.xlu1 %v2469_v55, %s8629_s22  ;;  %v7667_v55 = vpack.c.bf16 %v7141_v8, %v7140_v40  ;;  %v2248_v2 = vmul.f32 1.442695, %v7136_v11 }
 0xa42   :  { %v2337_v46 = vpop.permute.xlu0 %2336  ;;  %v2319_v18 = vpop.permute.xlu1 %2318  ;;  %7668 = vmatprep.subr.bf16.mxu0 %v7667_v55  ;;  %7963 = vpow2.f32 %v2248_v2 }
 0xa43   :  { %v2727_v33 = vmul.f32 %v2726_v20, %v2337_v46  ;;  %v2642_v13 = vmul.f32 %v2640_v23, %v2319_v18  ;;  %7670 = vmatpush3.bf16.msra.mxu0 %v7667_v55  ;;  %v7137_v23 = vld [vmem:[%s11159_s2 + $0x18] sm:$0xff] }
 0xa44   :  { %2602 = vrot.lane.b32.xlu0 %v2598_v22, %s8629_s22  ;;  %2516 = vrot.lane.b32.xlu1 %v2512_v29, %s8629_s22  ;;  %v7145_v22 = vld [vmem:[%s11158_s13 + $0x68] sm:$0xff] }
 0xa46   :  { %v9648_v48 = vpop.permute.xlu0 %2344  ;;  %v2330_v14 = vpop.permute.xlu1 %2329 }
 0xa47   :  { %v2685_v9 = vmul.f32 %v2683_v27, %v2330_v14  ;;  %v7147_v14 = vld [vmem:[%s11158_s13 + $0x78] sm:$0xff] }
 0xa48   :  { %2645 = vrot.lane.b32.xlu0 %v2641_v36, %s8629_s22  ;;  %2559 = vrot.lane.b32.xlu1 %v2555_v44, %s8629_s22  ;;  %v7146_v36 = vld [vmem:[%s11158_s13 + $0x70] sm:$0xff] }
 0xa49   :  { %v7679_v27 = vpack.c.bf16 %v7147_v14, %v7146_v36 }
 0xa4a   :  { %v9653_v39 = vpop.permute.xlu0 %2352  ;;  %v2341_v5 = vpop.permute.xlu1 %2340 }
 0xa4b   :  { %v2728_v58 = vmul.f32 %v2726_v20, %v2341_v5 }
 0xa4c   :  { %2688 = vrot.lane.b32.xlu0 %v2684_v7, %s8629_s22  ;;  %2604 = vrot.lane.b32.xlu1 %v2599_v6, %s8629_s22  ;;  %v2250_v7 = vmul.f32 1.442695, %v7137_v23 }
 0xa4e   :  { %v9658_v43 = vpop.permute.xlu0 %2360  ;;  %v9660_v24 = vpop.permute.xlu1 %2348  ;;  %7965 = vpow2.f32 %v2250_v7 }
 0xa50   :  { %2731 = vrot.lane.b32.xlu0 %v2727_v33, %s8629_s22  ;;  %2647 = vrot.lane.b32.xlu1 %v2642_v13, %s8629_s22  ;;  %v7964_v33 = vpop.eup %7963 }
 0xa51   :  { %v9706_v13 = vsub.f32 0.0, %v7964_v33 }
 0xa52   :  { %v9664_v59 = vpop.permute.xlu0 %2368  ;;  %v9666_v25 = vpop.permute.xlu1 %2356 }
 0xa54   :  { %2896 = vbcast.lane.b32.xlu0 %v9495_v57, 272  ;;  %2690 = vrot.lane.b32.xlu1 %v2685_v9, %s8629_s22 }
 0xa56   :  { %v9670_v45 = vpop.permute.xlu0 %2376  ;;  %v9672_v53 = vpop.permute.xlu1 %2364 }
 0xa58   :  { %3272 = vrot.lane.b32.xlu0 %v9452_v12, %s8613_s10  ;;  %2733 = vrot.lane.b32.xlu1 %v2728_v58, %s8629_s22  ;;  %v7142_v12 = vld [vmem:[%s11158_s13 + $0x50] sm:$0xff]  ;;  %v7966_v55 = vpop.eup %7965 }
 0xa59   :  { %v7671_v29 = vpack.c.bf16 %v7143_v30, %v7142_v12  ;;  %v9713_v12 = vsub.f32 0.0, %v7966_v55 }
 0xa5a   :  { %v9679_v34 = vpop.permute.xlu0 %2384  ;;  %v9681_v31 = vpop.permute.xlu1 %2372 }
 0xa5b   :  { %7672 = vmatprep.subr.bf16.mxu0 %v7671_v29 }
 0xa5c   :  { %2900 = vbcast.lane.b32.xlu1 %v9495_v57, 280  ;;  %7674 = vmatpush3.bf16.msra.mxu0 %v7671_v29  ;;  %v7144_v57 = vld [vmem:[%s11158_s13 + $0x60] sm:$0xff] }
 0xa5d   :  { %v7675_v44 = vpack.c.bf16 %v7145_v22, %v7144_v57 }
 0xa5e   :  { %v9687_v61 = vpop.permute.xlu0 %2392  ;;  %v9689_v28 = vpop.permute.xlu1 %2380 }
 0xa5f   :  { %11185 = vst [vmem:[#allocation55_spill] sm:$0xff] %v9687_v61  ;;  %7676 = vmatprep.subr.bf16.mxu0 %v7675_v44 }
 0xa60   :  { %3274 = vrot.lane.b32.xlu1 %v9447_v47, %s8613_s10  ;;  %7678 = vmatpush3.bf16.msra.mxu0 %v7675_v44 }
 0xa61   :  { %7680 = vmatprep.subr.bf16.mxu0 %v7679_v27 }
 0xa62   :  { %v9695_v46 = vpop.permute.xlu0 %2400  ;;  %v9697_v18 = vpop.permute.xlu1 %2388 }
 0xa63   :  { %11186 = vst [vmem:[#allocation54_spill] sm:$0xff] %v9695_v46 }
 0xa64   :  { %7682 = vmatpush3.bf16.msra.mxu0 %v7679_v27 }
 0xa66   :  { %v9702_v6 = vpop.permute.xlu1 %2396  ;;  %v2412_v47 = vpop.permute.xlu0 %2411 }
 0xa67   :  { %11187 = vst [vmem:[#allocation48_spill] sm:$0xff] %v9702_v6  ;;  %v2415_v4 = vmul.f32 %v2412_v47, %v9713_v12 }
 0xa69   :  { %v2418_v41 = vmul.f32 1.442695, %v2415_v4 }
 0xa6a   :  { %v9704_v5 = vpop.permute.xlu1 %2404  ;;  %v2455_v20 = vpop.permute.xlu0 %2454 }
 0xa6b   :  { %11188 = vst [vmem:[#allocation47_spill] sm:$0xff] %v9704_v5 }
 0xa6e   :  { %v2908_v9 = vpop.permute.xlu1 %2907  ;;  %v9708_v58 = vpop.permute.xlu0 %2497 }
 0xa6f   :  { %v2910_v40 = vmul.f32 %v2908_v9, %v9706_v13  ;;  %v2911_v22 = vmul.f32 %v2908_v9, %v9713_v12  ;;  %v2500_v37 = vmul.f32 %v9708_v58, %v9706_v13  ;;  %v2501_v4 = vmul.f32 %v9708_v58, %v9713_v12 }
 0xa71   :  { %v2912_v2 = vmul.f32 1.442695, %v2910_v40  ;;  %v2914_v27 = vmul.f32 1.442695, %v2911_v22 }
 0xa72   :  { %v2951_v8 = vpop.permute.xlu1 %2950  ;;  %v9711_v11 = vpop.permute.xlu0 %2540 }
 0xa73   :  { %v2953_v57 = vmul.f32 %v2951_v8, %v9706_v13  ;;  %7967 = vpow2.f32 %v2912_v2  ;;  %v2954_v7 = vmul.f32 %v2951_v8, %v9713_v12 }
 0xa75   :  { %v2955_v36 = vmul.f32 1.442695, %v2953_v57  ;;  %v2957_v9 = vmul.f32 1.442695, %v2954_v7 }
 0xa76   :  { %v2994_v30 = vpop.permute.xlu1 %2993  ;;  %v9715_v29 = vpop.permute.xlu0 %2583 }
 0xa77   :  { %v2996_v14 = vmul.f32 %v2994_v30, %v9706_v13  ;;  %7969 = vpow2.f32 %v2955_v36  ;;  %v2997_v2 = vmul.f32 %v2994_v30, %v9713_v12  ;;  %v2414_v30 = vmul.f32 %v2412_v47, %v9706_v13 }
 0xa78   :  { %7971 = vpow2.f32 %v2914_v27 }
 0xa79   :  { %v2998_v55 = vmul.f32 1.442695, %v2996_v14  ;;  %v3000_v8 = vmul.f32 1.442695, %v2997_v2  ;;  %v2416_v60 = vmul.f32 1.442695, %v2414_v30 }
 0xa7a   :  { %v3037_v23 = vpop.permute.xlu1 %3036  ;;  %v9719_v44 = vpop.permute.xlu0 %2626 }
 0xa7b   :  { %v3039_v63 = vmul.f32 %v3037_v23, %v9706_v13  ;;  %7973 = vpow2.f32 %v2998_v55  ;;  %v3040_v14 = vmul.f32 %v3037_v23, %v9713_v12  ;;  %v2458_v23 = vmul.f32 %v2455_v20, %v9713_v12 }
 0xa7c   :  { %7975 = vpow2.f32 %v2957_v9  ;;  %v2457_v9 = vmul.f32 %v2455_v20, %v9706_v13 }
 0xa7d   :  { %v7968_v1 = vpop.eup %7967  ;;  %v3041_v22 = vmul.f32 1.442695, %v3039_v63  ;;  %v3043_v2 = vmul.f32 1.442695, %v3040_v14  ;;  %v2461_v61 = vmul.f32 1.442695, %v2458_v23 }
 0xa7e   :  { %v3080_v33 = vpop.permute.xlu1 %3079  ;;  %v9723_v40 = vpop.permute.xlu0 %2669  ;;  %v2916_v54 = vmul.f32 0.0, %v7968_v1  ;;  %v2459_v46 = vmul.f32 1.442695, %v2457_v9 }
 0xa7f   :  { %7977 = vpow2.f32 %v3041_v22  ;;  %v3082_v7 = vmul.f32 %v3080_v33, %v9706_v13 }
 0xa80   :  { %7979 = vpow2.f32 %v3000_v8 }
 0xa81   :  { %v7970_v35 = vpop.eup %7969  ;;  %7981 = vpow2.f32 %v3043_v2 }
 0xa82   :  { %v9727_v50 = vpop.permute.xlu1 %3122  ;;  %v9729_v57 = vpop.permute.xlu0 %2712 }
 0xa83   :  { %v7972_v3 = vpop.eup %7971  ;;  %v3125_v20 = vmul.f32 %v9727_v50, %v9706_v13 }
 0xa84   :  { %v2917_v62 = vmul.f32 0.0, %v7972_v3 }
 0xa86   :  { %v9731_v42 = vpop.permute.xlu1 %3165  ;;  %v2927_v36 = vpop.permute.xlu0 %2926 }
 0xa87   :  { %v2932_v27 = vadd.f32 %v2927_v36, %v2916_v54  ;;  %v3084_v54 = vmul.f32 1.442695, %v3082_v7  ;;  %v7974_v36 = vpop.eup %7973 }
 0xa88   :  { %v7976_v14 = vpop.eup %7975 }
 0xa89   :  { %v2959_v1 = vmul.f32 %v7970_v35, %v2932_v27  ;;  %v3083_v35 = vmul.f32 %v3080_v33, %v9713_v12  ;;  %7983 = vpow2.f32 %v3084_v54  ;;  %v7978_v30 = vpop.eup %7977  ;;  %v3127_v54 = vmul.f32 1.442695, %v3125_v20 }
 0xa8a   :  { %v9737_v63 = vpop.permute.xlu1 %3208  ;;  %v2970_v55 = vpop.permute.xlu0 %2969  ;;  %7985 = vpow2.f32 %v2416_v60  ;;  %v2543_v60 = vmul.f32 %v9711_v11, %v9706_v13 }
 0xa8b   :  { %v2975_v22 = vadd.f32 %v2970_v55, %v2959_v1  ;;  %7987 = vpow2.f32 %v2418_v41  ;;  %v2502_v1 = vmul.f32 1.442695, %v2500_v37  ;;  %v3086_v33 = vmul.f32 1.442695, %v3083_v35  ;;  %v7980_v23 = vpop.eup %7979 }
 0xa8c   :  { %7989 = vpow2.f32 %v2459_v46  ;;  %v2544_v41 = vmul.f32 %v9711_v11, %v9713_v12  ;;  %v3126_v37 = vmul.f32 %v9727_v50, %v9713_v12  ;;  %v7982_v11 = vpop.eup %7981  ;;  %v2545_v20 = vmul.f32 1.442695, %v2543_v60 }
 0xa8d   :  { %v3002_v8 = vmul.f32 %v7974_v36, %v2975_v22  ;;  %7991 = vpow2.f32 %v2461_v61  ;;  %v2504_v36 = vmul.f32 1.442695, %v2501_v4  ;;  %v2934_v61 = vmul.f32 %v2932_v27, %v9564_v38 }
 0xa8e   :  { %v2929_v47 = vpop.permute.xlu1 %2928  ;;  %v3013_v5 = vpop.permute.xlu0 %3012  ;;  %7993 = vpow2.f32 %v2502_v1  ;;  %v2547_v4 = vmul.f32 1.442695, %v2544_v41 }
 0xa8f   :  { %v2933_v6 = vadd.f32 %v2929_v47, %v2917_v62  ;;  %v3018_v7 = vadd.f32 %v3013_v5, %v3002_v8  ;;  %7995 = vpow2.f32 %v3086_v33 }
 0xa90   :  { %7997 = vpow2.f32 %v3127_v54 }
 0xa91   :  { %v2960_v3 = vmul.f32 %v7976_v14, %v2933_v6  ;;  %v3045_v2 = vmul.f32 %v7978_v30, %v3018_v7  ;;  %v2935_v5 = vmul.f32 %v2933_v6, %v9562_v21  ;;  %v3168_v21 = vmul.f32 %v9731_v42, %v9706_v13 }
 0xa92   :  { %v2972_v55 = vpop.permute.xlu1 %2971  ;;  %v3056_v9 = vpop.permute.xlu0 %3055  ;;  %v2977_v6 = vmul.f32 %v2975_v22, %v9574_v10  ;;  %7999 = vpow2.f32 %v2504_v36  ;;  %v2936_v10 = vsel %vm624_vm6, %v2934_v61, 0.0 }
 0xa93   :  { %v2976_v62 = vadd.f32 %v2972_v55, %v2960_v3  ;;  %v9757_v35 = vadd.f32 %v3056_v9, %v3045_v2  ;;  %v2937_v50 = vsel %vm624_vm6, %v2935_v5, 0.0  ;;  %v2586_v3 = vmul.f32 %v9715_v29, %v9706_v13 }
 0xa94   :  { %v3129_v9 = vmul.f32 1.442695, %v3126_v37  ;;  %v2587_v2 = vmul.f32 %v9715_v29, %v9713_v12  ;;  %v2979_v54 = vsel %vm624_vm6, %v2977_v6, 0.0  ;;  %v2938_v36 = vadd.f32 %v2937_v50, %v2936_v10 }
 0xa95   :  { %v3003_v58 = vmul.f32 %v7980_v23, %v2976_v62  ;;  %v2978_v46 = vmul.f32 %v2976_v62, %v9572_v26  ;;  %v7984_v26 = vpop.eup %7983  ;;  %v3170_v23 = vmul.f32 1.442695, %v3168_v21  ;;  %8001 = vpow2.f32 %v2545_v20 }
 0xa96   :  { %v3015_v47 = vpop.permute.xlu1 %3014  ;;  %v3099_v8 = vpop.permute.xlu0 %3098  ;;  %v3088_v33 = vmul.f32 %v7984_v26, %v9757_v35  ;;  %v2629_v5 = vmul.f32 %v9719_v44, %v9706_v13  ;;  %8003 = vpow2.f32 %v2547_v4  ;;  %v2588_v37 = vmul.f32 1.442695, %v2586_v3 }
 0xa97   :  { %v3019_v14 = vadd.f32 %v3015_v47, %v3003_v58  ;;  %v2980_v38 = vsel %vm624_vm6, %v2978_v46, 0.0  ;;  %v9768_v55 = vpop.eup %7985  ;;  %v3020_v58 = vmul.f32 %v3018_v7, %v9582_v0  ;;  %v2630_v46 = vmul.f32 %v9719_v44, %v9713_v12 }
 0xa98   :  { %v7988_v62 = vpop.eup %7987  ;;  %v2981_v41 = vadd.f32 %v2980_v38, %v2979_v54  ;;  %8005 = vpow2.f32 %v3129_v9  ;;  %v9788_v6 = vadd.f32 %v3099_v8, %v3088_v33  ;;  %v2590_v7 = vmul.f32 1.442695, %v2587_v2 }
 0xa99   :  { %v3046_v27 = vmul.f32 %v7982_v11, %v3019_v14  ;;  %v3021_v22 = vmul.f32 %v3019_v14, %v9580_v32  ;;  %v9776_v60 = vpop.eup %7989  ;;  %v3169_v14 = vmul.f32 %v9731_v42, %v9713_v12  ;;  %8007 = vpow2.f32 %v3170_v23 }
 0xa9a   :  { %v3058_v30 = vpop.permute.xlu1 %3057  ;;  %v9766_v1 = vpop.permute.xlu0 %3141  ;;  %v2939_v11 = vrot.slane %v2938_v36, 4  ;;  %v2421_v20 = vmul.f32 0.0, %v7988_v62  ;;  %v2631_v44 = vmul.f32 1.442695, %v2629_v5  ;;  %v3211_v26 = vmul.f32 %v9737_v63, %v9706_v13 }
 0xa9b   :  { %v7992_v32 = vpop.eup %7991  ;;  %v3062_v29 = vadd.f32 %v3058_v30, %v3046_v27  ;;  %v3023_v21 = vsel %vm624_vm6, %v3021_v22, 0.0  ;;  %v3022_v4 = vsel %vm624_vm6, %v3020_v58, 0.0  ;;  %v2982_v3 = vrot.slane %v2981_v41, 4 }
 0xa9c   :  { %v9790_v0 = vpop.eup %7993  ;;  %v2633_v42 = vmul.f32 1.442695, %v2630_v46  ;;  %v2672_v8 = vmul.f32 %v9723_v40, %v9706_v13  ;;  %v3024_v27 = vadd.f32 %v3023_v21, %v3022_v4  ;;  %8009 = vpow2.f32 %v2588_v37 }
 0xa9d   :  { %v7996_v50 = vpop.eup %7995  ;;  %v3172_v33 = vmul.f32 1.442695, %v3169_v14  ;;  %v3064_v62 = vmul.f32 %v3062_v29, %v9589_v51  ;;  %8011 = vpow2.f32 %v2590_v7  ;;  %v2673_v23 = vmul.f32 %v9723_v40, %v9713_v12 }
 0xa9e   :  { %v3101_v47 = vpop.permute.xlu1 %3100  ;;  %v9783_v61 = vpop.permute.xlu0 %3184  ;;  %v3089_v30 = vmul.f32 %v7996_v50, %v3062_v29  ;;  %v2715_v54 = vmul.f32 %v9729_v57, %v9706_v13  ;;  %v2940_v5 = vadd.f32 %v2939_v11, %v2938_v36  ;;  %8013 = vpow2.f32 %v2631_v44 }
 0xa9f   :  { %v7998_v38 = vpop.eup %7997  ;;  %v3213_v58 = vmul.f32 1.442695, %v3211_v26  ;;  %v2983_v46 = vadd.f32 %v2982_v3, %v2981_v41  ;;  %v3063_v21 = vmul.f32 %v9757_v35, %v9591_v52  ;;  %8015 = vpow2.f32 %v2633_v42 }
 0xaa0   :  { %v8000_v22 = vpop.eup %7999  ;;  %v3131_v2 = vmul.f32 %v7998_v38, %v9788_v6  ;;  %v2674_v37 = vmul.f32 1.442695, %v2672_v8  ;;  %v3025_v14 = vrot.slane %v3024_v27, 4  ;;  %v3105_v51 = vadd.f32 %v3101_v47, %v3089_v30 }
 0xaa1   :  { %v9809_v50 = vpop.eup %8001  ;;  %8017 = vpow2.f32 %v3172_v33  ;;  %v3066_v40 = vsel %vm624_vm6, %v3064_v62, 0.0  ;;  %v2676_v11 = vmul.f32 1.442695, %v2673_v23  ;;  %v2716_v52 = vmul.f32 %v9729_v57, %v9713_v12 }
 0xaa2   :  { %v3144_v9 = vpop.permute.xlu1 %3143  ;;  %v9797_v10 = vpop.permute.xlu0 %3227  ;;  %v3147_v13 = vadd.f32 %v9766_v1, %v3131_v2  ;;  %v2717_v35 = vmul.f32 1.442695, %v2715_v54  ;;  %v2941_v44 = vrot.slane %v2940_v5, 2  ;;  %8019 = vpow2.f32 %v3213_v58 }
 0xaa3   :  { %v8004_v41 = vpop.eup %8003  ;;  %v2984_v26 = vrot.slane %v2983_v46, 2  ;;  %v3065_v4 = vsel %vm624_vm6, %v3063_v21, 0.0  ;;  %v3212_v1 = vmul.f32 %v9737_v63, %v9713_v12  ;;  %8021 = vpow2.f32 %v2674_v37 }
 0xaa4   :  { %v8006_v47 = vpop.eup %8005  ;;  %v3067_v42 = vadd.f32 %v3066_v40, %v3065_v4  ;;  %8023 = vpow2.f32 %v2676_v11  ;;  %v2719_v2 = vmul.f32 1.442695, %v2716_v52  ;;  %v2942_v23 = vadd.f32 %v2941_v44, %v2940_v5 }
 0xaa5   :  { %v8008_v38 = vpop.eup %8007  ;;  %v3132_v8 = vmul.f32 %v8006_v47, %v3105_v51  ;;  %v2420_v54 = vmul.f32 0.0, %v9768_v55  ;;  %8025 = vpow2.f32 %v2717_v35  ;;  %v3107_v12 = vmul.f32 %v3105_v51, %v9597_v19 }
 0xaa6   :  { %v9807_v29 = vpop.permute.xlu1 %3186  ;;  %v2433_v7 = vpop.permute.xlu0 %2432  ;;  %v3174_v57 = vmul.f32 %v8008_v38, %v3147_v13  ;;  %v3215_v21 = vmul.f32 1.442695, %v3212_v1  ;;  %v3106_v55 = vmul.f32 %v9788_v6, %v9599_v16  ;;  %8027 = vpow2.f32 %v2719_v2 }
 0xaa7   :  { %v9813_v36 = vadd.f32 %v2433_v7, %v2421_v20  ;;  %v3026_v20 = vadd.f32 %v3025_v14, %v3024_v27  ;;  %v9824_v58 = vpop.eup %8009  ;;  %v3068_v7 = vrot.slane %v3067_v42, 4  ;;  %v3148_v37 = vadd.f32 %v3144_v9, %v3132_v8 }
 0xaa8   :  { %v9827_v27 = vpop.eup %8011  ;;  %v3190_v5 = vadd.f32 %v9783_v61, %v3174_v57  ;;  %v2943_v19 = vrot.slane %v2942_v23, 1  ;;  %v3149_v44 = vmul.f32 %v3147_v13, %v9607_v15  ;;  %v3109_v9 = vsel %vm624_vm6, %v3107_v12, 0.0 }
 0xaa9   :  { %v2464_v3 = vmul.f32 %v7992_v32, %v9813_v36  ;;  %v2985_v32 = vadd.f32 %v2984_v26, %v2983_v46  ;;  %v3027_v14 = vrot.slane %v3026_v20, 2  ;;  %v9829_v11 = vpop.eup %8013  ;;  %8029 = vpow2.f32 %v3215_v21 }
 0xaaa   :  { %v9821_v30 = vpop.permute.xlu1 %3229  ;;  %v2476_v33 = vpop.permute.xlu0 %2475  ;;  %v3108_v1 = vsel %vm624_vm6, %v3106_v55, 0.0  ;;  %v3192_v8 = vmul.f32 %v3190_v5, %v9615_v49  ;;  %v9841_v2 = vadd.f32 %v2943_v19, %v2942_v23  ;;  %v3150_v13 = vmul.f32 %v3148_v37, %v9605_v17 }
 0xaab   :  { %v2480_v62 = vadd.f32 %v2476_v33, %v2464_v3  ;;  %v9834_v35 = vpop.eup %8015  ;;  %v2986_v51 = vrot.slane %v2985_v32, 1  ;;  %v3028_v4 = vadd.f32 %v3027_v14, %v3026_v20  ;;  %v3069_v3 = vadd.f32 %v3068_v7, %v3067_v42 }
 0xaac   :  { %v3110_v15 = vadd.f32 %v3109_v9, %v3108_v1  ;;  %v3151_v42 = vsel %vm624_vm6, %v3149_v44, 0.0 }
 0xaad   :  { %v2507_v63 = vmul.f32 %v8000_v22, %v2480_v62  ;;  %v8018_v22 = vpop.eup %8017  ;;  %v9846_v20 = vadd.f32 %v2986_v51, %v2985_v32  ;;  %v3029_v49 = vrot.slane %v3028_v4, 1  ;;  %v2482_v14 = vmul.f32 %v2480_v62, %v9666_v25 }
 0xaae   :  { %v2519_v40 = vpop.permute.xlu0 %2518  ;;  %v2431_v47 = vpop.permute.xlu1 %2430  ;;  %v3175_v16 = vmul.f32 %v8018_v22, %v3148_v37  ;;  %v3194_v32 = vsel %vm624_vm6, %v3192_v8, 0.0  ;;  %v3111_v55 = vrot.slane %v3110_v15, 4 }
 0xaaf   :  { %v2523_v52 = vadd.f32 %v2519_v40, %v2507_v63  ;;  %v2436_v46 = vadd.f32 %v2431_v47, %v2420_v54  ;;  %v8020_v38 = vpop.eup %8019  ;;  %v2484_v44 = vsel %vm624_vm6, %v2482_v14, 0.0 }
 0xab0   :  { %v3217_v54 = vmul.f32 %v8020_v38, %v3190_v5  ;;  %v3191_v23 = vadd.f32 %v9807_v29, %v3175_v16  ;;  %v2439_v29 = vmul.f32 %v9813_v36, %v9660_v24 }
 0xab1   :  { %v2463_v26 = vmul.f32 %v9776_v60, %v2436_v46  ;;  %v2550_v33 = vmul.f32 %v8004_v41, %v2523_v52  ;;  %v9844_v60 = vpop.eup %8021  ;;  %v3070_v41 = vrot.slane %v3069_v3, 2  ;;  %v2438_v40 = vmul.f32 %v2436_v46, %v9648_v48 }
 0xab2   :  { %v2562_v6 = vpop.permute.xlu0 %2561  ;;  %v2474_v61 = vpop.permute.xlu1 %2473  ;;  %v9861_v5 = vadd.f32 %v9797_v10, %v3217_v54  ;;  %v2525_v25 = vmul.f32 %v2523_v52, %v9672_v53  ;;  %v9871_v46 = vadd.f32 %v3029_v49, %v3028_v4  ;;  %v3193_v10 = vmul.f32 %v3191_v23, %v9613_v56 }
 0xab3   :  { %v2479_v57 = vadd.f32 %v2474_v61, %v2463_v26  ;;  %v9851_v21 = vpop.eup %8023  ;;  %v2566_v47 = vadd.f32 %v2562_v6, %v2550_v33  ;;  %v9873_v51 = vadd.f32 %v3070_v41, %v3069_v3  ;;  %v2440_v53 = vsel %vm624_vm6, %v2438_v40, 0.0 }
 0xab4   :  { %v9855_v37 = vpop.eup %8025  ;;  %v3112_v26 = vadd.f32 %v3111_v55, %v3110_v15  ;;  %v2441_v4 = vsel %vm624_vm6, %v2439_v29, 0.0  ;;  %v2527_v6 = vsel %vm624_vm6, %v2525_v25, 0.0  ;;  %v3195_v1 = vsel %vm624_vm6, %v3193_v10, 0.0 }
 0xab5   :  { %v2481_v12 = vmul.f32 %v2479_v57, %v9653_v39  ;;  %v2506_v63 = vmul.f32 %v9790_v0, %v2479_v57  ;;  %v3152_v0 = vsel %vm624_vm6, %v3150_v13, 0.0  ;;  %v9869_v48 = vpop.eup %8027  ;;  %v2568_v36 = vmul.f32 %v2566_v47, %v9681_v31 }
 0xab6   :  { %v2603_v17 = vpop.permute.xlu0 %2602  ;;  %v2517_v7 = vpop.permute.xlu1 %2516  ;;  %v3153_v16 = vadd.f32 %v3152_v0, %v3151_v42  ;;  %v2593_v38 = vmul.f32 %v9827_v27, %v2566_v47  ;;  %v2442_v8 = vadd.f32 %v2441_v4, %v2440_v53 }
 0xab7   :  { %v2522_v39 = vadd.f32 %v2517_v7, %v2506_v63  ;;  %v2483_v62 = vsel %vm624_vm6, %v2481_v12, 0.0  ;;  %v2570_v15 = vsel %vm624_vm6, %v2568_v36, 0.0  ;;  %v3113_v63 = vrot.slane %v3112_v26, 2 }
 0xab8   :  { %v2485_v3 = vadd.f32 %v2484_v44, %v2483_v62  ;;  %v3154_v49 = vrot.slane %v3153_v16, 4  ;;  %v3196_v7 = vadd.f32 %v3195_v1, %v3194_v32  ;;  %v2443_v47 = vrot.slane %v2442_v8, 4 }
 0xab9   :  { %v2524_v19 = vmul.f32 %v2522_v39, %v9658_v43  ;;  %v2549_v22 = vmul.f32 %v9809_v50, %v2522_v39  ;;  %v8030_v50 = vpop.eup %8029  ;;  %v9899_v36 = vadd.f32 %v3113_v63, %v3112_v26 }
 0xaba   :  { %v2646_v9 = vpop.permute.xlu0 %2645  ;;  %v2560_v24 = vpop.permute.xlu1 %2559  ;;  %v3218_v31 = vmul.f32 %v8030_v50, %v3191_v23  ;;  %v3197_v10 = vrot.slane %v3196_v7, 4  ;;  %v2444_v44 = vadd.f32 %v2443_v47, %v2442_v8 }
 0xabb   :  { %v2526_v43 = vsel %vm624_vm6, %v2524_v19, 0.0  ;;  %v2565_v52 = vadd.f32 %v2560_v24, %v2549_v22 }
 0xabc   :  { %v2528_v33 = vadd.f32 %v2527_v6, %v2526_v43  ;;  %v3234_v40 = vadd.f32 %v9821_v30, %v3218_v31  ;;  %v2445_v1 = vrot.slane %v2444_v44, 2 }
 0xabd   :  { %v2567_v56 = vmul.f32 %v2565_v52, %v9664_v59  ;;  %v2592_v61 = vmul.f32 %v9824_v58, %v2565_v52  ;;  %v2486_v59 = vrot.slane %v2485_v3, 4 }
 0xabe   :  { %v2689_v57 = vpop.permute.xlu0 %2688  ;;  %v2605_v13 = vpop.permute.xlu1 %2604  ;;  %v2529_v39 = vrot.slane %v2528_v33, 4 }
 0xabf   :  { %v2569_v54 = vsel %vm624_vm6, %v2567_v56, 0.0  ;;  %v2608_v42 = vadd.f32 %v2603_v17, %v2592_v61  ;;  %v2609_v12 = vadd.f32 %v2605_v13, %v2593_v38  ;;  %v2487_v19 = vadd.f32 %v2486_v59, %v2485_v3  ;;  %v11189_v3 = vld [vmem:[#allocation55_spill] sm:$0xff]  ;;  %v11190_v13 = vld [vmem:[#allocation48_spill] sm:$0xff]  ;;  %v11191_v59 = vld [vmem:[#allocation54_spill] sm:$0xff] }
 0xac0   :  { %v2571_v41 = vadd.f32 %v2570_v15, %v2569_v54  ;;  %v3198_v38 = vadd.f32 %v3197_v10, %v3196_v7 }
 0xac1   :  { %v2610_v58 = vmul.f32 %v2608_v42, %v9670_v45  ;;  %v2635_v27 = vmul.f32 %v9829_v11, %v2608_v42  ;;  %v2611_v23 = vmul.f32 %v2609_v12, %v9689_v28  ;;  %v2636_v14 = vmul.f32 %v9834_v35, %v2609_v12 }
 0xac2   :  { %v2648_v55 = vpop.permute.xlu1 %2647  ;;  %v2732_v25 = vpop.permute.xlu0 %2731  ;;  %v3155_v45 = vadd.f32 %v3154_v49, %v3153_v16  ;;  %v2572_v11 = vrot.slane %v2571_v41, 4 }
 0xac3   :  { %v2651_v17 = vadd.f32 %v2646_v9, %v2635_v27  ;;  %v2612_v0 = vsel %vm624_vm6, %v2610_v58, 0.0  ;;  %v2613_v29 = vsel %vm624_vm6, %v2611_v23, 0.0  ;;  %v2652_v62 = vadd.f32 %v2648_v55, %v2636_v14 }
 0xac4   :  { %v2614_v22 = vadd.f32 %v2613_v29, %v2612_v0  ;;  %v2530_v9 = vadd.f32 %v2529_v39, %v2528_v33  ;;  %v3156_v16 = vrot.slane %v3155_v45, 2  ;;  %v2573_v4 = vadd.f32 %v2572_v11, %v2571_v41 }
 0xac5   :  { %v2653_v28 = vmul.f32 %v2651_v17, %v9679_v34  ;;  %v2678_v35 = vmul.f32 %v9844_v60, %v2651_v17  ;;  %v2654_v30 = vmul.f32 %v2652_v62, %v9697_v18  ;;  %v2679_v32 = vmul.f32 %v9851_v21, %v2652_v62 }
 0xac6   :  { %v2615_v24 = vrot.slane %v2614_v22, 4  ;;  %v2691_v53 = vpop.permute.xlu1 %2690  ;;  %v2488_v34 = vrot.slane %v2487_v19, 2  ;;  %v2897_v56 = vpop.permute.xlu0 %2896  ;;  %v2531_v26 = vrot.slane %v2530_v9, 2  ;;  %v2574_v12 = vrot.slane %v2573_v4, 2 }
 0xac7   :  { %v2694_v43 = vadd.f32 %v2689_v57, %v2678_v35  ;;  %v2655_v52 = vsel %vm624_vm6, %v2653_v28, 0.0  ;;  %v2656_v50 = vsel %vm624_vm6, %v2654_v30, 0.0  ;;  %v2695_v61 = vadd.f32 %v2691_v53, %v2679_v32 }
 0xac8   :  { %v2657_v60 = vadd.f32 %v2656_v50, %v2655_v52  ;;  %v2616_v6 = vadd.f32 %v2615_v24, %v2614_v22  ;;  %v2489_v42 = vadd.f32 %v2488_v34, %v2487_v19  ;;  %v3235_v49 = vmul.f32 %v9861_v5, %v2897_v56 }
 0xac9   :  { %v2696_v18 = vmul.f32 %v2694_v43, %v11189_v3  ;;  %v2721_v21 = vmul.f32 %v9855_v37, %v2694_v43  ;;  %v2697_v15 = vmul.f32 %v2695_v61, %v11190_v13  ;;  %v2722_v54 = vmul.f32 %v9869_v48, %v2695_v61  ;;  %v11192_v48 = vld [vmem:[#allocation47_spill] sm:$0xff] }
 0xaca   :  { %v2658_v31 = vrot.slane %v2657_v60, 4  ;;  %v2734_v8 = vpop.permute.xlu1 %2733  ;;  %v2617_v37 = vrot.slane %v2616_v6, 2  ;;  %v3199_v23 = vrot.slane %v3198_v38, 2  ;;  %v2446_v14 = vadd.f32 %v2445_v1, %v2444_v44 }
 0xacb   :  { %v2698_v33 = vsel %vm624_vm6, %v2696_v18, 0.0  ;;  %v2737_v57 = vadd.f32 %v2732_v25, %v2721_v21  ;;  %v2699_v58 = vsel %vm624_vm6, %v2697_v15, 0.0  ;;  %v2738_v27 = vadd.f32 %v2734_v8, %v2722_v54 }
 0xacc   :  { %v2659_v63 = vadd.f32 %v2658_v31, %v2657_v60  ;;  %v2700_v47 = vadd.f32 %v2699_v58, %v2698_v33  ;;  %v2532_v55 = vadd.f32 %v2531_v26, %v2530_v9  ;;  %v3157_v25 = vadd.f32 %v3156_v16, %v3155_v45 }
 0xacd   :  { %v2739_v41 = vmul.f32 %v2737_v57, %v11191_v59  ;;  %v2740_v0 = vmul.f32 %v2738_v27, %v11192_v48  ;;  %v2490_v62 = vrot.slane %v2489_v42, 1  ;;  %v2575_v5 = vadd.f32 %v2574_v12, %v2573_v4  ;;  %v7139_v27 = vld [vmem:[%s11168_s9 + $0x1] ss:$0 sm:$0xff] }
 0xace   :  { %v2660_v7 = vrot.slane %v2659_v63, 2  ;;  %v2901_v39 = vpop.permute.xlu1 %2900  ;;  %v2701_v19 = vrot.slane %v2700_v47, 4  ;;  %v2618_v11 = vadd.f32 %v2617_v37, %v2616_v6  ;;  %v3237_v22 = vsel %vm624_vm6, %v3235_v49, 0.0 }
 0xacf   :  { %v2741_v17 = vsel %vm624_vm6, %v2739_v41, 0.0  ;;  %v3236_v29 = vmul.f32 %v3234_v40, %v2901_v39  ;;  %v2742_v28 = vsel %vm624_vm6, %v2740_v0, 0.0  ;;  %v3072_v9 = vrot.slane %v9873_v51, 1  ;;  %v11194_v0 = vld [vmem:[#allocation61_spill] sm:$0xff] }
 0xad0   :  { %v2661_v30 = vadd.f32 %v2660_v7, %v2659_v63  ;;  %v2702_v32 = vadd.f32 %v2701_v19, %v2700_v47  ;;  %v2743_v10 = vadd.f32 %v2742_v28, %v2741_v17  ;;  %v3200_v24 = vadd.f32 %v3199_v23, %v3198_v38 }
 0xad1   :  { %v3238_v35 = vsel %vm624_vm6, %v3236_v29, 0.0  ;;  %v2447_v53 = vrot.slane %v2446_v14, 1  ;;  %v2533_v40 = vrot.slane %v2532_v55, 1  ;;  %v2576_v45 = vrot.slane %v2575_v5, 1 }
 0xad2   :  { %v3239_v44 = vadd.f32 %v3238_v35, %v3237_v22  ;;  %v2703_v43 = vrot.slane %v2702_v32, 2  ;;  %v2744_v52 = vrot.slane %v2743_v10, 4  ;;  %v3115_v16 = vrot.slane %v9899_v36, 1  ;;  %v3273_v22 = vpop.permute.xlu0 %3272  ;;  %v3275_v28 = vpop.permute.xlu1 %3274 }
 0xad3   :  { %v3158_v34 = vrot.slane %v3157_v25, 1  ;;  %v2491_v4 = vadd.f32 %v2490_v62, %v2489_v42  ;;  %v2619_v60 = vrot.slane %v2618_v11, 1  ;;  %v2662_v3 = vrot.slane %v2661_v30, 1 }
 0xad4   :  { %v3240_v50 = vrot.slane %v3239_v44, 4  ;;  %v2704_v18 = vadd.f32 %v2703_v43, %v2702_v32  ;;  %v2745_v6 = vadd.f32 %v2744_v52, %v2743_v10  ;;  %v3073_v56 = vadd.f32 %v3072_v9, %v9873_v51  ;;  %v7148_v32 = vld [vmem:[#allocation16 + $0x1] ss:$0 sm:$0xff] }
 0xad5   :  { %v3201_v61 = vrot.slane %v3200_v24, 1  ;;  %v2448_v1 = vadd.f32 %v2447_v53, %v2446_v14  ;;  %v2534_v38 = vadd.f32 %v2533_v40, %v2532_v55  ;;  %v2577_v26 = vadd.f32 %v2576_v45, %v2575_v5  ;;  %v11195_v53 = vld [vmem:[#allocation62_spill] sm:$0xff]  ;;  %v11196_v45 = vld [vmem:[#allocation60_spill] sm:$0xff] }
 0xad6   :  { %v3241_v21 = vadd.f32 %v3240_v50, %v3239_v44  ;;  %v2705_v31 = vrot.slane %v2704_v18, 1  ;;  %v2746_v8 = vrot.slane %v2745_v6, 2  ;;  %v3253_v57 = vsel %vm1732_vm7, %v9841_v2, %v9846_v20 }
 0xad7   :  { %v3116_v13 = vadd.f32 %v3115_v16, %v9899_v36  ;;  %v3159_v15 = vadd.f32 %v3158_v34, %v3157_v25  ;;  %v2620_v54 = vadd.f32 %v2619_v60, %v2618_v11  ;;  %v3246_v42 = vsel %vm1732_vm7, %v2448_v1, %v2491_v4  ;;  %v7153_v1 = vld [vmem:[%s11143_s19 + $0x40] sm:$0xff] }
 0xad8   :  { %v3242_v33 = vrot.slane %v3241_v21, 2  ;;  %v2663_v12 = vadd.f32 %v2662_v3, %v2661_v30  ;;  %v2747_v51 = vadd.f32 %v2746_v8, %v2745_v6  ;;  %v3247_v49 = vsel %vm1734_vm8, %v3246_v42, %v2534_v38  ;;  %v7154_v38 = vld [vmem:[%s11143_s19 + $0x48] sm:$0xff]  ;;  %v7156_v8 = vld [vmem:[%s11143_s19 + $0x58] sm:$0xff] }
 0xad9   :  { %v2706_v37 = vadd.f32 %v2705_v31, %v2704_v18  ;;  %v3202_v59 = vadd.f32 %v3201_v61, %v3200_v24  ;;  %v3254_v41 = vsel %vm1734_vm8, %v3253_v57, %v9871_v46  ;;  %v3248_v58 = vsel %vm508_vm2, %v3247_v49, %v2577_v26  ;;  %v11193_v46 = vld [vmem:[#allocation63_spill] sm:$0xff] }
 0xada   :  { %v3243_v63 = vadd.f32 %v3242_v33, %v3241_v21  ;;  %v2748_v2 = vrot.slane %v2747_v51, 1  ;;  %v3255_v36 = vsel %vm508_vm2, %v3254_v41, %v3073_v56  ;;  %v3249_v14 = vsel %vm1737_vm9, %v3248_v58, %v2620_v54  ;;  %v7155_v26 = vld [vmem:[%s11143_s19 + $0x50] sm:$0xff] }
 0xadb   :  { %v3256_v23 = vsel %vm1737_vm9, %v3255_v36, %v3116_v13  ;;  %v3250_v55 = vsel %vm551_vm5, %v3249_v14, %v2663_v12  ;;  %v3268_v48 = vmul.f32 %v7139_v27, %v11193_v46  ;;  %v3269_v29 = vmul.f32 %v7139_v27, %v11194_v0  ;;  %v7161_v27 = vld [vmem:[%s11144_s8 + $0x80] sm:$0xff]  ;;  %v7163_v14 = vld [vmem:[%s11144_s8 + $0x90] sm:$0xff]  ;;  %v7168_v0 = vld [vmem:[%s11144_s8 + $0xb8] sm:$0xff] }
 0xadc   :  { %v3244_v20 = vrot.slane %v3243_v63, 1  ;;  %v2749_v7 = vadd.f32 %v2748_v2, %v2747_v51  ;;  %v3257_v39 = vsel %vm551_vm5, %v3256_v23, %v3159_v15  ;;  %v3251_v25 = vsel %vm537_vm4, %v3250_v55, %v2706_v37  ;;  %v7152_v37 = vld [vmem:[#allocation19 + $0x1] ss:$0 sm:$0xff]  ;;  %v7162_v23 = vld [vmem:[%s11144_s8 + $0x88] sm:$0xff] }
 0xadd   :  { %v3258_v17 = vsel %vm537_vm4, %v3257_v39, %v3202_v59  ;;  %v7683_v31 = vpack.c.bf16 %v7154_v38, %v7153_v1  ;;  %v7687_v33 = vpack.c.bf16 %v7156_v8, %v7155_v26  ;;  %v7165_v55 = vld [vmem:[%s11144_s8 + $0xa0] sm:$0xff] }
 0xade   :  { %v3245_v47 = vadd.f32 %v3244_v20, %v3243_v63  ;;  %v3252_v5 = vsel %vm523_vm3, %v3251_v25, %v2749_v7  ;;  %v7151_v63 = vld [vmem:[#allocation17 + $0x1] ss:$0 sm:$0xff]  ;;  %v7691_v7 = vpack.c.bf16 %v7162_v23, %v7161_v27  ;;  %v7157_v25 = vld [vmem:[#allocation10 + $0x2] ss:$0 sm:$0xff] }
 0xadf   :  { %v3270_v11 = vadd.f32 %v3268_v48, %v3252_v5  ;;  %7684 = vmatprep.subr.bf16.mxu1 %v7683_v31  ;;  %v7167_v48 = vld [vmem:[%s11144_s8 + $0xb0] sm:$0xff] }
 0xae0   :  { %v3259_v62 = vsel %vm523_vm3, %v3258_v17, %v3245_v47  ;;  %7686 = vmatpush3.bf16.msra.mxu1 %v7683_v31  ;;  %v7164_v47 = vld [vmem:[%s11144_s8 + $0x98] sm:$0xff]  ;;  %v7166_v17 = vld [vmem:[%s11144_s8 + $0xa8] sm:$0xff]  ;;  %7692 = vmatprep.subr.bf16.mxu0 %v7691_v7 }
 0xae1   :  { %v3271_v19 = vadd.f32 %v3269_v29, %v3259_v62  ;;  %v3278_v30 = vmul.f32 %v3273_v22, %v3270_v11  ;;  %7688 = vmatprep.subr.bf16.mxu1 %v7687_v33  ;;  %v7695_v39 = vpack.c.bf16 %v7164_v47, %v7163_v14  ;;  %v7699_v46 = vpack.c.bf16 %v7166_v17, %v7165_v55 }
 0xae2   :  { %v7703_v29 = vpack.c.bf16 %v7168_v0, %v7167_v48 }
 0xae3   :  { %v3279_v35 = vmul.f32 %v3275_v28, %v3271_v19  ;;  %7464 = vmatprep.mubr.msk.f32.mxu0 %vm624_vm6, %v3278_v30 }
 0xae4   :  { %7690 = vmatpush3.bf16.msra.mxu1 %v7687_v33 }
 0xae5   :  { %7465 = vmatmul.mubr.msk.f32.vlgmr.msra.gmra.mrb[4].mxu0 %vm624_vm6, %v3279_v35 }
 0xae6   :  { %7694 = vmatpush3.bf16.msra.mxu0 %v7691_v7 }
 0xae7   :  { %7696 = vmatprep.subr.bf16.mxu0 %v7695_v39 }
 0xaea   :  { %7698 = vmatpush3.bf16.msra.mxu0 %v7695_v39 }
 0xaeb   :  { %7700 = vmatprep.subr.bf16.mxu0 %v7699_v46 }
 0xaee   :  { %7702 = vmatpush3.bf16.msra.mxu0 %v7699_v46 }
 0xaef   :  { %7704 = vmatprep.subr.bf16.mxu0 %v7703_v29 }
 0xaf2   :  { %7706 = vmatpush3.bf16.msra.mxu0 %v7703_v29  ;;  %v7160_v29 = vld [vmem:[#allocation13 + $0x2] ss:$0 sm:$0xff] }
 0xbb8   :  { %v7466_v10 = vpop.f32.mrb[4].mxu0 }
 0xbb9   :  { %v3375_v44 = vadd.f32 %v7466_v10, %v7148_v32  ;;  %v3369_v9 = vpop.f32.mrb[5].mxu0 }
 0xbba   :  { %v3370_v24 = vadd.f32 %v7148_v32, %v3369_v9 }
 0xbbb   :  { %v3379_v40 = vadd.f32 %v3375_v44, %v11195_v53 }
 0xbbc   :  { %v3378_v43 = vadd.f32 %v3370_v24, %v11196_v45  ;;  %v3533_v24 = vld [vmem:[#allocation11 + $0x8] sm:$0xf] }
 0xbbd   :  { %v3387_v52 = vsel %vm409_vm1, %v3379_v40, 0.0 }
 0xbbe   :  { %3388 = vadd.xlane.f32.xlu1 %v3387_v52  ;;  %v3384_v50 = vsel %vm409_vm1, %v3378_v43, 0.0 }
 0xbbf   :  { %3385 = vadd.xlane.f32.xlu0 %v3384_v50  ;;  %v11200_v50 = vld [vmem:[#allocation51_spill] sm:$0xff] }
 0xc4b   :  { %v3389_v16 = vpop.xlane.xlu1 %3388 }
 0xc4c   :  { %v3391_v34 = vmul.f32 0.03125, %v3389_v16  ;;  %v3386_v4 = vpop.xlane.xlu0 %3385  ;;  %v3561_v16 = vrot.slane %v3533_v24, %v11200_v50 }
 0xc4d   :  { %v3390_v60 = vmul.f32 0.03125, %v3386_v4 }
 0xc4e   :  { %v3393_v3 = vsub.f32 %v3379_v40, %v3391_v34  ;;  %v11201_v34 = vld [vmem:[#allocation52_spill] sm:$0xff] }
 0xc4f   :  { %v3392_v18 = vsub.f32 %v3378_v43, %v3390_v60  ;;  %v11199_v43 = vld [vmem:[#allocation50_spill] sm:$0xff]  ;;  %v3574_v4 = vrot.slane %v3533_v24, %v11201_v34 }
 0xc50   :  { %v3395_v56 = vmul.f32 %v3393_v3, %v3393_v3  ;;  %v3548_v52 = vrot.slane %v3533_v24, %v11199_v43 }
 0xc51   :  { %v3394_v6 = vmul.f32 %v3392_v18, %v3392_v18 }
 0xc52   :  { %v3399_v61 = vsel %vm409_vm1, %v3395_v56, 0.0 }
 0xc53   :  { %v3396_v21 = vsel %vm409_vm1, %v3394_v6, 0.0 }
 0xc54   :  { %3397 = vadd.xlane.f32.xlu0 %v3396_v21 }
 0xc58   :  { %3400 = vadd.xlane.f32.xlu0 %v3399_v61 }
 0xce1   :  { %v3398_v57 = vpop.xlane.xlu0 %3397 }
 0xce2   :  { %v3402_v13 = vmul.f32 0.03125, %v3398_v57 }
 0xce4   :  { %v3404_v15 = vadd.f32 1e-05, %v3402_v13 }
 0xce5   :  { %v3401_v54 = vpop.xlane.xlu0 %3400 }
 0xce6   :  { %8031 = vrsqrt.f32 %v3404_v15  ;;  %v3403_v42 = vmul.f32 0.03125, %v3401_v54 }
 0xce8   :  { %v3405_v12 = vadd.f32 1e-05, %v3403_v42 }
 0xcea   :  { %8033 = vrsqrt.f32 %v3405_v12 }
 0xcf0   :  { %v8032_v51 = vpop.eup %8031 }
 0xcf1   :  { %v3408_v49 = vmul.f32 %v8032_v51, %v3392_v18 }
 0xcf3   :  { %v3416_v59 = vmul.f32 %v7151_v63, %v3408_v49 }
 0xcf4   :  { %v8034_v41 = vpop.eup %8033 }
 0xcf5   :  { %v3409_v58 = vmul.f32 %v8034_v41, %v3393_v3  ;;  %v9952_v2 = vadd.f32 %v7152_v37, %v3416_v59  ;;  %v11202_v3 = vld [vmem:[#allocation53_spill] sm:$0xff] }
 0xcf6   :  { %v3543_v18 = vrot.slane %v3533_v24, %v11202_v3 }
 0xcf7   :  { %11197 = vst [vmem:[#allocation55_spill] sm:$0xff] %v9952_v2  ;;  %v3417_v20 = vmul.f32 %v7151_v63, %v3409_v58  ;;  %7475 = vmatprep.mubr.msk.f32.mxu1 %vm409_vm1, %v9952_v2 }
 0xcf9   :  { %v9956_v36 = vadd.f32 %v7152_v37, %v3417_v20 }
 0xcfb   :  { %11198 = vst [vmem:[#allocation48_spill] sm:$0xff] %v9956_v36  ;;  %7476 = vmatmul.mubr.msk.f32.vlgmr.msra.gmra.mrb[8].mxu1 %vm409_vm1, %v9956_v36 }
 0xdce   :  { %v7477_v62 = vpop.f32.mrb[8].mxu1 }
 0xdcf   :  { %v3517_v5 = vadd.f32 %v7477_v62, %v7157_v25  ;;  %v3511_v19 = vpop.f32.mrb[9].mxu1 }
 0xdd0   :  { %v3512_v11 = vadd.f32 %v7157_v25, %v3511_v19 }
 0xdd1   :  { %v3521_v22 = vsub.f32 0.0, %v3517_v5 }
 0xdd2   :  { %v3520_v28 = vsub.f32 0.0, %v3512_v11 }
 0xdd3   :  { %v3524_v35 = vmul.f32 1.442695, %v3521_v22 }
 0xdd4   :  { %v3522_v30 = vmul.f32 1.442695, %v3520_v28 }
 0xdd5   :  { %8035 = vpow2.f32 %v3524_v35 }
 0xdd6   :  { %8037 = vpow2.f32 %v3522_v30 }
 0xddf   :  { %v8036_v32 = vpop.eup %8035 }
 0xde0   :  { %v8038_v10 = vpop.eup %8037  ;;  %v3527_v44 = vadd.f32 1.0, %v8036_v32 }
 0xde1   :  { %v3526_v9 = vadd.f32 1.0, %v8038_v10 }
 0xde2   :  { %8039 = vrcp.f32 %v3527_v44 }
 0xde3   :  { %8041 = vrcp.f32 %v3526_v9 }
 0xdec   :  { %v8040_v53 = vpop.eup %8039 }
 0xded   :  { %v8042_v40 = vpop.eup %8041  ;;  %v9968_v45 = vmul.f32 %v8040_v53, %v3517_v5 }
 0xdee   :  { %v9973_v60 = vmul.f32 %v8042_v40, %v3512_v11 }
 0xdef   :  { %v3592_v6 = vrot.slane %v9968_v45, 5 }
 0xdf0   :  { %v3537_v21 = vrot.slane %v9973_v60, 5 }
 0xdf1   :  { %v3594_v56 = vsel %vm508_vm2, 0.0, %v3592_v6  ;;  %v3597_v61 = vmul.f32 %v3592_v6, %v3548_v52  ;;  %v3606_v1 = vmul.f32 %v3592_v6, %v3561_v16  ;;  %v3615_v31 = vmul.f32 %v3592_v6, %v3574_v4 }
 0xdf2   :  { %v3596_v38 = vmul.f32 %v3594_v56, %v3548_v52  ;;  %v3605_v26 = vmul.f32 %v3594_v56, %v3561_v16  ;;  %v3595_v8 = vmul.f32 %v3594_v56, %v3543_v18  ;;  %v3614_v57 = vmul.f32 %v3594_v56, %v3574_v4 }
 0xdf3   :  { %v3601_v33 = vrot.slane %v3597_v61, 1  ;;  %v3539_v13 = vsel %vm508_vm2, 0.0, %v3537_v21  ;;  %v3610_v42 = vrot.slane %v3606_v1, 2  ;;  %v3550_v51 = vmul.f32 %v3548_v52, %v3537_v21 }
 0xdf4   :  { %v3600_v15 = vrot.slane %v3596_v38, 1  ;;  %v3609_v54 = vrot.slane %v3605_v26, 2  ;;  %v3549_v12 = vmul.f32 %v3548_v52, %v3539_v13  ;;  %v3562_v63 = vmul.f32 %v3561_v16, %v3539_v13 }
 0xdf5   :  { %v3563_v49 = vmul.f32 %v3561_v16, %v3537_v21  ;;  %v3575_v37 = vmul.f32 %v3574_v4, %v3539_v13  ;;  %v3619_v59 = vrot.slane %v3615_v31, 3  ;;  %v3576_v58 = vmul.f32 %v3574_v4, %v3537_v21  ;;  %v7169_v21 = vld [vmem:[#allocation14 + $0x2] ss:$0 sm:$0xff] }
 0xdf6   :  { %v3553_v41 = vrot.slane %v3549_v12, 1  ;;  %v3602_v20 = vsel %vm523_vm3, %v3600_v15, %v3601_v33  ;;  %v3554_v27 = vrot.slane %v3550_v51, 1  ;;  %v3566_v23 = vrot.slane %v3562_v63, 2  ;;  %v11205_v33 = vld [vmem:[#allocation56_spill] sm:$0xff]  ;;  %v11208_v12 = vld [vmem:[#allocation59_spill] sm:$0xff] }
 0xdf7   :  { %v3567_v14 = vrot.slane %v3563_v49, 2  ;;  %v3604_v7 = vadd.f32 %v3602_v20, %v3595_v8  ;;  %v3544_v47 = vmul.f32 %v3543_v18, %v3539_v13  ;;  %v3611_v39 = vsel %vm537_vm4, %v3609_v54, %v3610_v42  ;;  %v11206_v13 = vld [vmem:[#allocation57_spill] sm:$0xff]  ;;  %v11207_v54 = vld [vmem:[#allocation58_spill] sm:$0xff] }
 0xdf8   :  { %v3618_v55 = vrot.slane %v3614_v57, 3  ;;  %v3580_v17 = vrot.slane %v3576_v58, 3  ;;  %v3555_v48 = vsel %vm523_vm3, %v3553_v41, %v3554_v27  ;;  %v3579_v0 = vrot.slane %v3575_v37, 3 }
 0xdf9   :  { %v3613_v46 = vadd.f32 %v3611_v39, %v3604_v7  ;;  %v3557_v62 = vadd.f32 %v3555_v48, %v3544_v47  ;;  %v3568_v19 = vsel %vm537_vm4, %v3566_v23, %v3567_v14 }
 0xdfa   :  { %v3620_v25 = vsel %vm551_vm5, %v3618_v55, %v3619_v59  ;;  %v3581_v28 = vsel %vm551_vm5, %v3579_v0, %v3580_v17 }
 0xdfb   :  { %v3622_v5 = vadd.f32 %v3620_v25, %v3613_v46  ;;  %v3570_v11 = vadd.f32 %v3568_v19, %v3557_v62 }
 0xdfd   :  { %v3623_v22 = vadd.f32 %v7160_v29, %v3622_v5  ;;  %v3583_v35 = vadd.f32 %v3581_v28, %v3570_v11 }
 0xdff   :  { %v3625_v30 = vsub.f32 0.0, %v3623_v22  ;;  %v3590_v32 = vadd.f32 %v7160_v29, %v3583_v35 }
 0xe01   :  { %v3628_v10 = vmul.f32 1.442695, %v3625_v30  ;;  %v3624_v44 = vsub.f32 0.0, %v3590_v32 }
 0xe03   :  { %8043 = vpow2.f32 %v3628_v10  ;;  %v3626_v9 = vmul.f32 1.442695, %v3624_v44 }
 0xe05   :  { %8045 = vpow2.f32 %v3626_v9 }
 0xe0d   :  { %v8044_v24 = vpop.eup %8043 }
 0xe0e   :  { %v3631_v53 = vadd.f32 1.0, %v8044_v24 }
 0xe0f   :  { %v8046_v40 = vpop.eup %8045 }
 0xe10   :  { %8047 = vrcp.f32 %v3631_v53  ;;  %v3630_v52 = vadd.f32 1.0, %v8046_v40 }
 0xe12   :  { %8049 = vrcp.f32 %v3630_v52 }
 0xe1a   :  { %v8048_v16 = vpop.eup %8047 }
 0xe1b   :  { %v9986_v4 = vmul.f32 %v8048_v16, %v3623_v22 }
 0xe1c   :  { %v8050_v18 = vpop.eup %8049 }
 0xe1d   :  { %11203 = vst [vmem:[#allocation54_spill] sm:$0xff] %v9986_v4  ;;  %3754 = vrot.lane.b32.xlu0 %v9986_v4, %s8628_s18  ;;  %v9990_v6 = vmul.f32 %v8050_v18, %v3590_v32 }
 0xe1f   :  { %11204 = vst [vmem:[#allocation47_spill] sm:$0xff] %v9990_v6  ;;  %3752 = vrot.lane.b32.xlu1 %v9990_v6, %s8628_s18  ;;  %7494 = vmatprep.mubr.msk.f32.mxu0 %vm624_vm6, %v9990_v6 }
 0xe20   :  { %7495 = vmatmul.mubr.msk.f32.vlgmr.msra.gmra.mrb[6].mxu0 %vm624_vm6, %v9986_v4 }
 0xe8f   :  { %v3755_v62 = vpop.permute.xlu0 %3754 }
 0xe91   :  { %v10029_v5 = vpop.permute.xlu1 %3752 }
 0xef3   :  { %v7496_v56 = vpop.f32.mrb[6].mxu0 }
 0xef4   :  { %v9998_v61 = vadd.f32 %v7496_v56, %v7169_v21  ;;  %v3725_v1 = vpop.f32.mrb[7].mxu0 }
 0xef5   :  { %v3726_v63 = vadd.f32 %v7169_v21, %v3725_v1 }
 0xef6   :  { %v4268_v38 = vrot.slane %v9998_v61, %v11202_v3  ;;  %v4279_v26 = vrot.slane %v9998_v61, %v11199_v43  ;;  %v4290_v31 = vrot.slane %v9998_v61, %v11200_v50  ;;  %v4301_v8 = vrot.slane %v9998_v61, %v11201_v34 }
 0xef7   :  { %v4312_v57 = vrot.slane %v9998_v61, %v11205_v33  ;;  %v4323_v15 = vrot.slane %v9998_v61, %v11206_v13  ;;  %v4334_v42 = vrot.slane %v9998_v61, %v11207_v54  ;;  %v10016_v51 = vrot.slane %v9998_v61, %v11208_v12 }
 0xef8   :  { %4274 = vbcast.lane.b32.xlu1 %v4268_v38, 264  ;;  %4270 = vbcast.lane.b32.xlu0 %v4268_v38, 256  ;;  %v3783_v49 = vrot.slane %v3726_v63, %v11199_v43  ;;  %v3772_v37 = vrot.slane %v3726_v63, %v11202_v3  ;;  %v3794_v59 = vrot.slane %v3726_v63, %v11200_v50  ;;  %v3736_v58 = vand.u32 2147483647, %v3726_v63 }
 0xef9   :  { %v3805_v41 = vrot.slane %v3726_v63, %v11201_v34  ;;  %v3816_v20 = vrot.slane %v3726_v63, %v11205_v33  ;;  %v3827_v23 = vrot.slane %v3726_v63, %v11206_v13  ;;  %v3737_v14 = vand.u32 2147483647, %v9998_v61 }
 0xefa   :  { %v3738_v27 = vsub.f32 0.0, %v3736_v58  ;;  %v3838_v47 = vrot.slane %v3726_v63, %v11207_v54  ;;  %v3849_v55 = vrot.slane %v3726_v63, %v11208_v12  ;;  %v3734_v11 = vmax.f32 %v3726_v63, 0.0 }
 0xefb   :  { %v3739_v39 = vsub.f32 0.0, %v3737_v14  ;;  %v3735_v24 = vmax.f32 %v9998_v61, 0.0 }
 0xefc   :  { %4285 = vbcast.lane.b32.xlu1 %v4279_v26, 264  ;;  %4281 = vbcast.lane.b32.xlu0 %v4279_v26, 256  ;;  %v3740_v7 = vmul.f32 1.442695, %v3738_v27 }
 0xefd   :  { %v3742_v17 = vmul.f32 1.442695, %v3739_v39 }
 0xefe   :  { %8051 = vpow2.f32 %v3740_v7 }
 0xeff   :  { %8053 = vpow2.f32 %v3742_v17 }
 0xf00   :  { %4296 = vbcast.lane.b32.xlu1 %v4290_v31, 264  ;;  %4292 = vbcast.lane.b32.xlu0 %v4290_v31, 256 }
 0xf04   :  { %4307 = vbcast.lane.b32.xlu1 %v4301_v8, 264  ;;  %4303 = vbcast.lane.b32.xlu0 %v4301_v8, 256 }
 0xf08   :  { %4318 = vbcast.lane.b32.xlu1 %v4312_v57, 264  ;;  %4314 = vbcast.lane.b32.xlu0 %v4312_v57, 256  ;;  %v8052_v46 = vpop.eup %8051 }
 0xf09   :  { %v3744_v48 = vadd.f32 1.0, %v8052_v46  ;;  %v8054_v0 = vpop.eup %8053 }
 0xf0a   :  { %v3745_v29 = vadd.f32 1.0, %v8054_v0 }
 0xf0b   :  { %8055 = vlog2.f32 %v3744_v48 }
 0xf0c   :  { %4329 = vbcast.lane.b32.xlu1 %v4323_v15, 264  ;;  %4325 = vbcast.lane.b32.xlu0 %v4323_v15, 256  ;;  %8057 = vlog2.f32 %v3745_v29 }
 0xf10   :  { %4340 = vbcast.lane.b32.xlu1 %v4334_v42, 264  ;;  %4336 = vbcast.lane.b32.xlu0 %v4334_v42, 256 }
 0xf14   :  { %4351 = vbcast.lane.b32.xlu1 %v10016_v51, 264  ;;  %4347 = vbcast.lane.b32.xlu0 %v10016_v51, 256 }
 0xf15   :  { %v8056_v25 = vpop.eup %8055 }
 0xf16   :  { %v3747_v19 = vmul.f32 0.6931472, %v8056_v25  ;;  %v8058_v30 = vpop.eup %8057 }
 0xf17   :  { %v3749_v32 = vmul.f32 0.6931472, %v8058_v30 }
 0xf18   :  { %4359 = vbcast.lane.b32.xlu1 %v4268_v38, 280  ;;  %4355 = vbcast.lane.b32.xlu0 %v4268_v38, 272  ;;  %v10033_v35 = vadd.f32 %v3747_v19, %v3734_v11 }
 0xf19   :  { %v3751_v53 = vadd.f32 %v3749_v32, %v3735_v24 }
 0xf1a   :  { %v3924_v9 = vrot.slane %v10033_v35, %v11202_v3  ;;  %v3967_v16 = vrot.slane %v10033_v35, %v11199_v43  ;;  %v4010_v61 = vrot.slane %v10033_v35, %v11200_v50  ;;  %v4182_v27 = vrot.slane %v10033_v35, %v11207_v54 }
 0xf1b   :  { %v4420_v56 = vrot.slane %v3751_v53, %v11202_v3  ;;  %v4225_v39 = vrot.slane %v10033_v35, %v11208_v12  ;;  %v4678_v0 = vrot.slane %v3751_v53, %v11207_v54  ;;  %v4721_v11 = vrot.slane %v3751_v53, %v11208_v12 }
 0xf1c   :  { %4367 = vbcast.lane.b32.xlu1 %v4279_v26, 280  ;;  %4363 = vbcast.lane.b32.xlu0 %v4279_v26, 272  ;;  %v4463_v26 = vrot.slane %v3751_v53, %v11199_v43 }
 0xf20   :  { %4375 = vbcast.lane.b32.xlu1 %v4290_v31, 280  ;;  %4371 = vbcast.lane.b32.xlu0 %v4290_v31, 272  ;;  %v4053_v31 = vrot.slane %v10033_v35, %v11201_v34 }
 0xf24   :  { %4383 = vbcast.lane.b32.xlu1 %v4301_v8, 280  ;;  %4379 = vbcast.lane.b32.xlu0 %v4301_v8, 272 }
 0xf28   :  { %4391 = vbcast.lane.b32.xlu1 %v4312_v57, 280  ;;  %4387 = vbcast.lane.b32.xlu0 %v4312_v57, 272 }
 0xf2c   :  { %4399 = vbcast.lane.b32.xlu1 %v4323_v15, 280  ;;  %4395 = vbcast.lane.b32.xlu0 %v4323_v15, 272  ;;  %v4506_v15 = vrot.slane %v3751_v53, %v11200_v50 }
 0xf30   :  { %4407 = vbcast.lane.b32.xlu1 %v4334_v42, 280  ;;  %4403 = vbcast.lane.b32.xlu0 %v4334_v42, 272  ;;  %v4096_v42 = vrot.slane %v10033_v35, %v11205_v33 }
 0xf34   :  { %3785 = vbcast.lane.b32.xlu0 %v3783_v49, 256  ;;  %3774 = vbcast.lane.b32.xlu1 %v3772_v37, 256 }
 0xf38   :  { %3796 = vbcast.lane.b32.xlu0 %v3794_v59, 256  ;;  %3778 = vbcast.lane.b32.xlu1 %v3772_v37, 264 }
 0xf3c   :  { %3807 = vbcast.lane.b32.xlu0 %v3805_v41, 256  ;;  %3789 = vbcast.lane.b32.xlu1 %v3783_v49, 264 }
 0xf40   :  { %3818 = vbcast.lane.b32.xlu0 %v3816_v20, 256  ;;  %3800 = vbcast.lane.b32.xlu1 %v3794_v59, 264 }
 0xf44   :  { %3829 = vbcast.lane.b32.xlu0 %v3827_v23, 256  ;;  %3811 = vbcast.lane.b32.xlu1 %v3805_v41, 264 }
 0xf48   :  { %3840 = vbcast.lane.b32.xlu0 %v3838_v47, 256  ;;  %3822 = vbcast.lane.b32.xlu1 %v3816_v20, 264 }
 0xf4c   :  { %3851 = vbcast.lane.b32.xlu0 %v3849_v55, 256  ;;  %3833 = vbcast.lane.b32.xlu1 %v3827_v23, 264 }
 0xf50   :  { %3859 = vbcast.lane.b32.xlu0 %v3772_v37, 272  ;;  %3844 = vbcast.lane.b32.xlu1 %v3838_v47, 264 }
 0xf54   :  { %3867 = vbcast.lane.b32.xlu0 %v3783_v49, 272  ;;  %3855 = vbcast.lane.b32.xlu1 %v3849_v55, 264 }
 0xf58   :  { %3875 = vbcast.lane.b32.xlu0 %v3794_v59, 272  ;;  %3863 = vbcast.lane.b32.xlu1 %v3772_v37, 280  ;;  %v4549_v37 = vrot.slane %v3751_v53, %v11201_v34 }
 0xf5c   :  { %3883 = vbcast.lane.b32.xlu0 %v3805_v41, 272  ;;  %3871 = vbcast.lane.b32.xlu1 %v3783_v49, 280 }
 0xf60   :  { %3891 = vbcast.lane.b32.xlu0 %v3816_v20, 272  ;;  %3879 = vbcast.lane.b32.xlu1 %v3794_v59, 280  ;;  %v4139_v59 = vrot.slane %v10033_v35, %v11206_v13 }
 0xf64   :  { %3899 = vbcast.lane.b32.xlu0 %v3827_v23, 272  ;;  %3887 = vbcast.lane.b32.xlu1 %v3805_v41, 280 }
 0xf68   :  { %3907 = vbcast.lane.b32.xlu0 %v3838_v47, 272  ;;  %3895 = vbcast.lane.b32.xlu1 %v3816_v20, 280  ;;  %v4592_v20 = vrot.slane %v3751_v53, %v11205_v33 }
 0xf6a   :  { %v10031_v22 = vpop.permute.xlu1 %4274  ;;  %v4271_v28 = vpop.permute.xlu0 %4270 }
 0xf6c   :  { %3915 = vbcast.lane.b32.xlu0 %v3849_v55, 272  ;;  %3903 = vbcast.lane.b32.xlu1 %v3827_v23, 280  ;;  %v3759_v23 = vmul.f32 %v3755_v62, %v3751_v53 }
 0xf6e   :  { %v10035_v10 = vpop.permute.xlu1 %4285  ;;  %v4282_v44 = vpop.permute.xlu0 %4281  ;;  %v4479_v29 = vrot.slane %v3759_v23, %v11199_v43 }
 0xf70   :  { %3911 = vbcast.lane.b32.xlu1 %v3838_v47, 280  ;;  %3926 = vrot.lane.b32.xlu0 %v3924_v9, %s8629_s22  ;;  %v4635_v47 = vrot.slane %v3751_v53, %v11206_v13  ;;  %v4480_v25 = vmul.f32 %v4479_v29, %v4282_v44  ;;  %v4565_v44 = vrot.slane %v3759_v23, %v11201_v34 }
 0xf71   :  { %v4481_v53 = vmul.f32 %v4479_v29, %v10035_v10  ;;  %v4651_v10 = vrot.slane %v3759_v23, %v11206_v13 }
 0xf72   :  { %v10041_v40 = vpop.permute.xlu1 %4296  ;;  %v4293_v52 = vpop.permute.xlu0 %4292 }
 0xf74   :  { %3919 = vbcast.lane.b32.xlu1 %v3849_v55, 280  ;;  %3969 = vrot.lane.b32.xlu0 %v3967_v16, %s8629_s22  ;;  %v4436_v55 = vrot.slane %v3759_v23, %v11202_v3 }
 0xf76   :  { %v10046_v18 = vpop.permute.xlu1 %4307  ;;  %v4304_v21 = vpop.permute.xlu0 %4303  ;;  %v4437_v17 = vmul.f32 %v4436_v55, %v4271_v28  ;;  %v4522_v28 = vrot.slane %v3759_v23, %v11200_v50  ;;  %v4438_v30 = vmul.f32 %v4436_v55, %v10031_v22  ;;  %v4608_v22 = vrot.slane %v3759_v23, %v11205_v33 }
 0xf77   :  { %v4566_v16 = vmul.f32 %v4565_v44, %v4304_v21  ;;  %v4567_v21 = vmul.f32 %v4565_v44, %v10046_v18  ;;  %v3758_v18 = vmul.f32 %v10029_v5, %v10033_v35 }
 0xf78   :  { %4422 = vrot.lane.b32.xlu1 %v4420_v56, %s8629_s22  ;;  %4012 = vrot.lane.b32.xlu0 %v4010_v61, %s8629_s22  ;;  %v4523_v32 = vmul.f32 %v4522_v28, %v4293_v52  ;;  %v4524_v52 = vmul.f32 %v4522_v28, %v10041_v40  ;;  %v4694_v40 = vrot.slane %v3759_v23, %v11207_v54 }
 0xf79   :  { %v3983_v29 = vrot.slane %v3758_v18, %v11199_v43  ;;  %v4026_v28 = vrot.slane %v3758_v18, %v11200_v50 }
 0xf7a   :  { %v10053_v1 = vpop.permute.xlu1 %4318  ;;  %v4315_v38 = vpop.permute.xlu0 %4314 }
 0xf7c   :  { %4465 = vrot.lane.b32.xlu1 %v4463_v26, %s8629_s22  ;;  %4055 = vrot.lane.b32.xlu0 %v4053_v31, %s8629_s22  ;;  %v4609_v26 = vmul.f32 %v4608_v22, %v4315_v38  ;;  %v4610_v38 = vmul.f32 %v4608_v22, %v10053_v1  ;;  %v3940_v1 = vrot.slane %v3758_v18, %v11202_v3 }
 0xf7e   :  { %v10060_v8 = vpop.permute.xlu1 %4329  ;;  %v4326_v57 = vpop.permute.xlu0 %4325 }
 0xf80   :  { %4508 = vrot.lane.b32.xlu1 %v4506_v15, %s8629_s22  ;;  %4098 = vrot.lane.b32.xlu0 %v4096_v42, %s8629_s22  ;;  %v4652_v42 = vmul.f32 %v4651_v10, %v4326_v57  ;;  %v4653_v57 = vmul.f32 %v4651_v10, %v10060_v8 }
 0xf82   :  { %v10067_v63 = vpop.permute.xlu1 %4340  ;;  %v4337_v49 = vpop.permute.xlu0 %4336 }
 0xf84   :  { %4551 = vrot.lane.b32.xlu1 %v4549_v37, %s8629_s22  ;;  %4141 = vrot.lane.b32.xlu0 %v4139_v59, %s8629_s22 }
 0xf86   :  { %v10074_v41 = vpop.permute.xlu1 %4351  ;;  %v10076_v58 = vpop.permute.xlu0 %4347 }
 0xf88   :  { %4594 = vrot.lane.b32.xlu1 %v4592_v20, %s8629_s22  ;;  %4184 = vrot.lane.b32.xlu0 %v4182_v27, %s8629_s22  ;;  %v4695_v20 = vmul.f32 %v4694_v40, %v4337_v49  ;;  %v4696_v49 = vmul.f32 %v4694_v40, %v10067_v63 }
 0xf8a   :  { %v10083_v14 = vpop.permute.xlu1 %4359  ;;  %v10085_v7 = vpop.permute.xlu0 %4355 }
 0xf8c   :  { %4637 = vrot.lane.b32.xlu1 %v4635_v47, %s8629_s22  ;;  %4227 = vrot.lane.b32.xlu0 %v4225_v39, %s8629_s22  ;;  %v4737_v39 = vrot.slane %v3759_v23, %v11208_v12 }
 0xf8e   :  { %v10093_v46 = vpop.permute.xlu1 %4367  ;;  %v10095_v48 = vpop.permute.xlu0 %4363  ;;  %v4738_v55 = vmul.f32 %v4737_v39, %v10076_v58  ;;  %v4739_v8 = vmul.f32 %v4737_v39, %v10074_v41 }
 0xf90   :  { %4680 = vrot.lane.b32.xlu1 %v4678_v0, %s8629_s22  ;;  %4441 = vrot.lane.b32.xlu0 %v4437_v17, %s8629_s22 }
 0xf92   :  { %v10101_v62 = vpop.permute.xlu1 %4375  ;;  %v10103_v19 = vpop.permute.xlu0 %4371 }
 0xf94   :  { %4723 = vrot.lane.b32.xlu1 %v4721_v11, %s8629_s22  ;;  %4484 = vrot.lane.b32.xlu0 %v4480_v25, %s8629_s22 }
 0xf96   :  { %v10110_v9 = vpop.permute.xlu1 %4383  ;;  %v10112_v24 = vpop.permute.xlu0 %4379 }
 0xf98   :  { %4443 = vrot.lane.b32.xlu1 %v4438_v30, %s8629_s22  ;;  %4527 = vrot.lane.b32.xlu0 %v4523_v32, %s8629_s22 }
 0xf9a   :  { %v10118_v56 = vpop.permute.xlu1 %4391  ;;  %v10120_v61 = vpop.permute.xlu0 %4387 }
 0xf9c   :  { %4486 = vrot.lane.b32.xlu1 %v4481_v53, %s8629_s22  ;;  %4570 = vrot.lane.b32.xlu0 %v4566_v16, %s8629_s22  ;;  %v4069_v53 = vrot.slane %v3758_v18, %v11201_v34 }
 0xf9e   :  { %v10126_v31 = vpop.permute.xlu1 %4399  ;;  %v10128_v15 = vpop.permute.xlu0 %4395 }
 0xfa0   :  { %4529 = vrot.lane.b32.xlu1 %v4524_v52, %s8629_s22  ;;  %4613 = vrot.lane.b32.xlu0 %v4609_v26, %s8629_s22  ;;  %v4112_v26 = vrot.slane %v3758_v18, %v11205_v33 }
 0xfa2   :  { %v10134_v37 = vpop.permute.xlu1 %4407  ;;  %v10136_v59 = vpop.permute.xlu0 %4403 }
 0xfa4   :  { %4572 = vrot.lane.b32.xlu1 %v4567_v21, %s8629_s22  ;;  %4656 = vrot.lane.b32.xlu0 %v4652_v42, %s8629_s22 }
 0xfa6   :  { %v3786_v27 = vpop.permute.xlu0 %3785  ;;  %v3775_v47 = vpop.permute.xlu1 %3774 }
 0xfa7   :  { %v3941_v63 = vmul.f32 %v3940_v1, %v3775_v47  ;;  %v3984_v41 = vmul.f32 %v3983_v29, %v3786_v27 }
 0xfa8   :  { %4615 = vrot.lane.b32.xlu1 %v4610_v38, %s8629_s22  ;;  %4699 = vrot.lane.b32.xlu0 %v4695_v20, %s8629_s22  ;;  %v4155_v38 = vrot.slane %v3758_v18, %v11206_v13 }
 0xfaa   :  { %v3797_v17 = vpop.permute.xlu0 %3796  ;;  %v3779_v0 = vpop.permute.xlu1 %3778 }
 0xfab   :  { %v3942_v23 = vmul.f32 %v3940_v1, %v3779_v0  ;;  %v4027_v10 = vmul.f32 %v4026_v28, %v3797_v17 }
 0xfac   :  { %4658 = vrot.lane.b32.xlu1 %v4653_v57, %s8629_s22  ;;  %4742 = vrot.lane.b32.xlu0 %v4738_v55, %s8629_s22  ;;  %v4198_v57 = vrot.slane %v3758_v18, %v11207_v54 }
 0xfae   :  { %v3808_v5 = vpop.permute.xlu0 %3807  ;;  %v3790_v35 = vpop.permute.xlu1 %3789 }
 0xfaf   :  { %v3985_v58 = vmul.f32 %v3983_v29, %v3790_v35  ;;  %v4070_v20 = vmul.f32 %v4069_v53, %v3808_v5 }
 0xfb0   :  { %4701 = vrot.lane.b32.xlu1 %v4696_v49, %s8629_s22  ;;  %3947 = vrot.lane.b32.xlu0 %v3942_v23, %s8629_s22  ;;  %v4241_v49 = vrot.slane %v3758_v18, %v11208_v12 }
 0xfb2   :  { %v3819_v25 = vpop.permute.xlu0 %3818  ;;  %v3801_v11 = vpop.permute.xlu1 %3800 }
 0xfb3   :  { %v4028_v30 = vmul.f32 %v4026_v28, %v3801_v11  ;;  %v4113_v21 = vmul.f32 %v4112_v26, %v3819_v25 }
 0xfb4   :  { %4744 = vrot.lane.b32.xlu1 %v4739_v8, %s8629_s22  ;;  %3990 = vrot.lane.b32.xlu0 %v3985_v58, %s8629_s22 }
 0xfb6   :  { %v3830_v32 = vpop.permute.xlu0 %3829  ;;  %v3812_v44 = vpop.permute.xlu1 %3811 }
 0xfb7   :  { %v4071_v16 = vmul.f32 %v4069_v53, %v3812_v44  ;;  %v4156_v27 = vmul.f32 %v4155_v38, %v3830_v32  ;;  %v7172_v53 = vld [vmem:[%s11159_s2 + $0x20] sm:$0xff] }
 0xfb8   :  { %4033 = vrot.lane.b32.xlu0 %v4028_v30, %s8629_s22  ;;  %3945 = vrot.lane.b32.xlu1 %v3941_v63, %s8629_s22  ;;  %v7176_v63 = vld [vmem:[%s11158_s13 + $0x80] sm:$0xff]  ;;  %v7177_v30 = vld [vmem:[%s11158_s13 + $0x88] sm:$0xff] }
 0xfba   :  { %v3841_v22 = vpop.permute.xlu0 %3840  ;;  %v3823_v52 = vpop.permute.xlu1 %3822 }
 0xfbb   :  { %v4199_v55 = vmul.f32 %v4198_v57, %v3841_v22  ;;  %v4114_v17 = vmul.f32 %v4112_v26, %v3823_v52  ;;  %v7179_v22 = vld [vmem:[%s11158_s13 + $0x98] sm:$0xff] }
 0xfbc   :  { %4076 = vrot.lane.b32.xlu0 %v4071_v16, %s8629_s22  ;;  %3988 = vrot.lane.b32.xlu1 %v3984_v41, %s8629_s22  ;;  %v7707_v41 = vpack.c.bf16 %v7177_v30, %v7176_v63  ;;  %v3763_v16 = vmul.f32 1.442695, %v7172_v53 }
 0xfbe   :  { %v3852_v42 = vpop.permute.xlu0 %3851  ;;  %v3834_v40 = vpop.permute.xlu1 %3833  ;;  %7708 = vmatprep.subr.bf16.mxu1 %v7707_v41  ;;  %8059 = vpow2.f32 %v3763_v16 }
 0xfbf   :  { %v4242_v23 = vmul.f32 %v4241_v49, %v3852_v42  ;;  %v4157_v5 = vmul.f32 %v4155_v38, %v3834_v40  ;;  %7710 = vmatpush3.bf16.msra.mxu1 %v7707_v41  ;;  %v7173_v38 = vld [vmem:[%s11159_s2 + $0x28] sm:$0xff] }
 0xfc0   :  { %4117 = vrot.lane.b32.xlu0 %v4113_v21, %s8629_s22  ;;  %4031 = vrot.lane.b32.xlu1 %v4027_v10, %s8629_s22  ;;  %v7181_v21 = vld [vmem:[%s11158_s13 + $0xa8] sm:$0xff] }
 0xfc2   :  { %v10169_v47 = vpop.permute.xlu0 %3859  ;;  %v3845_v39 = vpop.permute.xlu1 %3844 }
 0xfc3   :  { %v4200_v8 = vmul.f32 %v4198_v57, %v3845_v39  ;;  %v7183_v39 = vld [vmem:[%s11158_s13 + $0xb8] sm:$0xff] }
 0xfc4   :  { %4160 = vrot.lane.b32.xlu0 %v4156_v27, %s8629_s22  ;;  %4074 = vrot.lane.b32.xlu1 %v4070_v20, %s8629_s22  ;;  %v7182_v27 = vld [vmem:[%s11158_s13 + $0xb0] sm:$0xff] }
 0xfc5   :  { %v7719_v57 = vpack.c.bf16 %v7183_v39, %v7182_v27 }
 0xfc6   :  { %v10174_v0 = vpop.permute.xlu0 %3867  ;;  %v3856_v1 = vpop.permute.xlu1 %3855 }
 0xfc7   :  { %v4243_v25 = vmul.f32 %v4241_v49, %v3856_v1 }
 0xfc8   :  { %4203 = vrot.lane.b32.xlu0 %v4199_v55, %s8629_s22  ;;  %4119 = vrot.lane.b32.xlu1 %v4114_v17, %s8629_s22  ;;  %v3765_v55 = vmul.f32 1.442695, %v7173_v38 }
 0xfca   :  { %v10179_v35 = vpop.permute.xlu0 %3875  ;;  %v10181_v29 = vpop.permute.xlu1 %3863  ;;  %8061 = vpow2.f32 %v3765_v55 }
 0xfcc   :  { %4246 = vrot.lane.b32.xlu0 %v4242_v23, %s8629_s22  ;;  %4162 = vrot.lane.b32.xlu1 %v4157_v5, %s8629_s22  ;;  %v8060_v23 = vpop.eup %8059 }
 0xfcd   :  { %v10227_v5 = vsub.f32 0.0, %v8060_v23 }
 0xfce   :  { %v10185_v58 = vpop.permute.xlu0 %3883  ;;  %v10187_v18 = vpop.permute.xlu1 %3871 }
 0xfd0   :  { %4411 = vbcast.lane.b32.xlu0 %v10016_v51, 272  ;;  %4205 = vrot.lane.b32.xlu1 %v4200_v8, %s8629_s22 }
 0xfd2   :  { %v10191_v11 = vpop.permute.xlu0 %3891  ;;  %v10193_v28 = vpop.permute.xlu1 %3879 }
 0xfd4   :  { %4787 = vrot.lane.b32.xlu0 %v9973_v60, %s8613_s10  ;;  %4248 = vrot.lane.b32.xlu1 %v4243_v25, %s8629_s22  ;;  %v7178_v60 = vld [vmem:[%s11158_s13 + $0x90] sm:$0xff]  ;;  %v8062_v41 = vpop.eup %8061 }
 0xfd5   :  { %v7711_v10 = vpack.c.bf16 %v7179_v22, %v7178_v60  ;;  %v10234_v60 = vsub.f32 0.0, %v8062_v41 }
 0xfd6   :  { %v10200_v32 = vpop.permute.xlu0 %3899  ;;  %v10202_v44 = vpop.permute.xlu1 %3887 }
 0xfd7   :  { %7712 = vmatprep.subr.bf16.mxu1 %v7711_v10 }
 0xfd8   :  { %4415 = vbcast.lane.b32.xlu1 %v10016_v51, 280  ;;  %7714 = vmatpush3.bf16.msra.mxu1 %v7711_v10  ;;  %v7180_v51 = vld [vmem:[%s11158_s13 + $0xa0] sm:$0xff] }
 0xfd9   :  { %v7715_v20 = vpack.c.bf16 %v7181_v21, %v7180_v51 }
 0xfda   :  { %v10208_v52 = vpop.permute.xlu0 %3907  ;;  %v10210_v26 = vpop.permute.xlu1 %3895 }
 0xfdb   :  { %11209 = vst [vmem:[#allocation63_spill] sm:$0xff] %v10208_v52  ;;  %7716 = vmatprep.subr.bf16.mxu1 %v7715_v20 }
 0xfdc   :  { %4789 = vrot.lane.b32.xlu1 %v9968_v45, %s8613_s10  ;;  %7718 = vmatpush3.bf16.msra.mxu1 %v7715_v20 }
 0xfdd   :  { %7720 = vmatprep.subr.bf16.mxu1 %v7719_v57 }
 0xfde   :  { %v10216_v42 = vpop.permute.xlu0 %3915  ;;  %v10218_v40 = vpop.permute.xlu1 %3903 }
 0xfdf   :  { %11210 = vst [vmem:[#allocation61_spill] sm:$0xff] %v10216_v42 }
 0xfe0   :  { %7722 = vmatpush3.bf16.msra.mxu1 %v7719_v57 }
 0xfe2   :  { %v10223_v17 = vpop.permute.xlu1 %3911  ;;  %v3927_v45 = vpop.permute.xlu0 %3926 }
 0xfe3   :  { %11211 = vst [vmem:[#allocation62_spill] sm:$0xff] %v10223_v17  ;;  %v3930_v43 = vmul.f32 %v3927_v45, %v10234_v60 }
 0xfe5   :  { %v3933_v4 = vmul.f32 1.442695, %v3930_v43 }
 0xfe6   :  { %v10225_v1 = vpop.permute.xlu1 %3919  ;;  %v3970_v49 = vpop.permute.xlu0 %3969 }
 0xfe7   :  { %11212 = vst [vmem:[#allocation60_spill] sm:$0xff] %v10225_v1 }
 0xfea   :  { %v4423_v8 = vpop.permute.xlu1 %4422  ;;  %v10229_v25 = vpop.permute.xlu0 %4012 }
 0xfeb   :  { %v4425_v63 = vmul.f32 %v4423_v8, %v10227_v5  ;;  %v4426_v21 = vmul.f32 %v4423_v8, %v10234_v60  ;;  %v4015_v6 = vmul.f32 %v10229_v25, %v10227_v5  ;;  %v4016_v43 = vmul.f32 %v10229_v25, %v10234_v60 }
 0xfed   :  { %v4427_v16 = vmul.f32 1.442695, %v4425_v63  ;;  %v4429_v57 = vmul.f32 1.442695, %v4426_v21 }
 0xfee   :  { %v4466_v30 = vpop.permute.xlu1 %4465  ;;  %v10232_v53 = vpop.permute.xlu0 %4055 }
 0xfef   :  { %v4468_v51 = vmul.f32 %v4466_v30, %v10227_v5  ;;  %8063 = vpow2.f32 %v4427_v16  ;;  %v4469_v55 = vmul.f32 %v4466_v30, %v10234_v60 }
 0xff1   :  { %v4470_v27 = vmul.f32 1.442695, %v4468_v51  ;;  %v4472_v8 = vmul.f32 1.442695, %v4469_v55 }
 0xff2   :  { %v4509_v22 = vpop.permute.xlu1 %4508  ;;  %v10236_v10 = vpop.permute.xlu0 %4098 }
 0xff3   :  { %v4511_v39 = vmul.f32 %v4509_v22, %v10227_v5  ;;  %8065 = vpow2.f32 %v4470_v27  ;;  %v4512_v16 = vmul.f32 %v4509_v22, %v10234_v60  ;;  %v3929_v22 = vmul.f32 %v3927_v45, %v10227_v5 }
 0xff4   :  { %8067 = vpow2.f32 %v4429_v57 }
 0xff5   :  { %v4513_v41 = vmul.f32 1.442695, %v4511_v39  ;;  %v4515_v30 = vmul.f32 1.442695, %v4512_v16  ;;  %v3931_v2 = vmul.f32 1.442695, %v3929_v22 }
 0xff6   :  { %v4552_v38 = vpop.permute.xlu1 %4551  ;;  %v10240_v20 = vpop.permute.xlu0 %4141 }
 0xff7   :  { %v4554_v12 = vmul.f32 %v4552_v38, %v10227_v5  ;;  %8069 = vpow2.f32 %v4513_v41  ;;  %v4555_v39 = vmul.f32 %v4552_v38, %v10234_v60  ;;  %v3973_v38 = vmul.f32 %v3970_v49, %v10234_v60 }
 0xff8   :  { %8071 = vpow2.f32 %v4472_v8  ;;  %v3972_v8 = vmul.f32 %v3970_v49, %v10227_v5 }
 0xff9   :  { %v8064_v54 = vpop.eup %8063  ;;  %v4556_v21 = vmul.f32 1.442695, %v4554_v12  ;;  %v4558_v16 = vmul.f32 1.442695, %v4555_v39  ;;  %v3976_v52 = vmul.f32 1.442695, %v3973_v38 }
 0xffa   :  { %v4595_v23 = vpop.permute.xlu1 %4594  ;;  %v10244_v63 = vpop.permute.xlu0 %4184  ;;  %v4431_v33 = vmul.f32 0.0, %v8064_v54  ;;  %v3974_v42 = vmul.f32 1.442695, %v3972_v8 }
 0xffb   :  { %8073 = vpow2.f32 %v4556_v21  ;;  %v4597_v55 = vmul.f32 %v4595_v23, %v10227_v5 }
 0xffc   :  { %8075 = vpow2.f32 %v4515_v30 }
 0xffd   :  { %v8066_v34 = vpop.eup %8065  ;;  %8077 = vpow2.f32 %v4558_v16 }
 0xffe   :  { %v10248_v13 = vpop.permute.xlu1 %4637  ;;  %v10250_v51 = vpop.permute.xlu0 %4227 }
 0xfff   :  { %v8068_v50 = vpop.eup %8067  ;;  %v4640_v49 = vmul.f32 %v10248_v13, %v10227_v5 }
0x1000   :  { %v4432_v36 = vmul.f32 0.0, %v8068_v50 }
0x1002   :  { %v10252_v3 = vpop.permute.xlu1 %4680  ;;  %v4442_v27 = vpop.permute.xlu0 %4441 }
0x1003   :  { %v4447_v57 = vadd.f32 %v4442_v27, %v4431_v33  ;;  %v4599_v33 = vmul.f32 1.442695, %v4597_v55  ;;  %v8070_v27 = vpop.eup %8069 }
0x1004   :  { %v8072_v39 = vpop.eup %8071 }
0x1005   :  { %v4474_v54 = vmul.f32 %v8066_v34, %v4447_v57  ;;  %v4598_v34 = vmul.f32 %v4595_v23, %v10234_v60  ;;  %8079 = vpow2.f32 %v4599_v33  ;;  %v8074_v22 = vpop.eup %8073  ;;  %v4642_v33 = vmul.f32 1.442695, %v4640_v49 }
0x1006   :  { %v10258_v12 = vpop.permute.xlu1 %4723  ;;  %v4485_v41 = vpop.permute.xlu0 %4484  ;;  %8081 = vpow2.f32 %v3931_v2  ;;  %v4058_v2 = vmul.f32 %v10232_v53, %v10227_v5 }
0x1007   :  { %v4490_v21 = vadd.f32 %v4485_v41, %v4474_v54  ;;  %8083 = vpow2.f32 %v3933_v4  ;;  %v4017_v54 = vmul.f32 1.442695, %v4015_v6  ;;  %v4601_v23 = vmul.f32 1.442695, %v4598_v34  ;;  %v8076_v38 = vpop.eup %8075 }
0x1008   :  { %8085 = vpow2.f32 %v3974_v42  ;;  %v4059_v4 = vmul.f32 %v10232_v53, %v10234_v60  ;;  %v4641_v6 = vmul.f32 %v10248_v13, %v10234_v60  ;;  %v8078_v53 = vpop.eup %8077  ;;  %v4060_v49 = vmul.f32 1.442695, %v4058_v2 }
0x1009   :  { %v4517_v30 = vmul.f32 %v8070_v27, %v4490_v21  ;;  %8087 = vpow2.f32 %v3976_v52  ;;  %v4019_v27 = vmul.f32 1.442695, %v4016_v43  ;;  %v4449_v52 = vmul.f32 %v4447_v57, %v10085_v7 }
0x100a   :  { %v4444_v45 = vpop.permute.xlu1 %4443  ;;  %v4528_v1 = vpop.permute.xlu0 %4527  ;;  %8089 = vpow2.f32 %v4017_v54  ;;  %v4062_v43 = vmul.f32 1.442695, %v4059_v4 }
0x100b   :  { %v4448_v17 = vadd.f32 %v4444_v45, %v4432_v36  ;;  %v4533_v55 = vadd.f32 %v4528_v1, %v4517_v30  ;;  %8091 = vpow2.f32 %v4601_v23 }
0x100c   :  { %8093 = vpow2.f32 %v4642_v33 }
0x100d   :  { %v4475_v50 = vmul.f32 %v8072_v39, %v4448_v17  ;;  %v4560_v16 = vmul.f32 %v8074_v22, %v4533_v55  ;;  %v4450_v1 = vmul.f32 %v4448_v17, %v10083_v14  ;;  %v4683_v14 = vmul.f32 %v10252_v3, %v10227_v5 }
0x100e   :  { %v4487_v41 = vpop.permute.xlu1 %4486  ;;  %v4571_v8 = vpop.permute.xlu0 %4570  ;;  %v4492_v17 = vmul.f32 %v4490_v21, %v10095_v48  ;;  %8095 = vpow2.f32 %v4019_v27  ;;  %v4451_v48 = vsel %vm624_vm6, %v4449_v52, 0.0 }
0x100f   :  { %v4491_v36 = vadd.f32 %v4487_v41, %v4475_v50  ;;  %v10278_v34 = vadd.f32 %v4571_v8, %v4560_v16  ;;  %v4452_v13 = vsel %vm624_vm6, %v4450_v1, 0.0  ;;  %v4101_v50 = vmul.f32 %v10236_v10, %v10227_v5 }
0x1010   :  { %v4644_v8 = vmul.f32 1.442695, %v4641_v6  ;;  %v4102_v16 = vmul.f32 %v10236_v10, %v10234_v60  ;;  %v4494_v33 = vsel %vm624_vm6, %v4492_v17, 0.0  ;;  %v4453_v27 = vadd.f32 %v4452_v13, %v4451_v48 }
0x1011   :  { %v4518_v25 = vmul.f32 %v8076_v38, %v4491_v36  ;;  %v4493_v42 = vmul.f32 %v4491_v36, %v10093_v46  ;;  %v8080_v46 = vpop.eup %8079  ;;  %v4685_v38 = vmul.f32 1.442695, %v4683_v14  ;;  %8097 = vpow2.f32 %v4060_v49 }
0x1012   :  { %v4530_v45 = vpop.permute.xlu1 %4529  ;;  %v4614_v30 = vpop.permute.xlu0 %4613  ;;  %v4603_v23 = vmul.f32 %v8080_v46, %v10278_v34  ;;  %v4144_v1 = vmul.f32 %v10240_v20, %v10227_v5  ;;  %8099 = vpow2.f32 %v4062_v43  ;;  %v4103_v6 = vmul.f32 1.442695, %v4101_v50 }
0x1013   :  { %v4534_v39 = vadd.f32 %v4530_v45, %v4518_v25  ;;  %v4495_v7 = vsel %vm624_vm6, %v4493_v42, 0.0  ;;  %v10289_v41 = vpop.eup %8081  ;;  %v4535_v25 = vmul.f32 %v4533_v55, %v10103_v19  ;;  %v4145_v42 = vmul.f32 %v10240_v20, %v10234_v60 }
0x1014   :  { %v8084_v36 = vpop.eup %8083  ;;  %v4496_v4 = vadd.f32 %v4495_v7, %v4494_v33  ;;  %8101 = vpow2.f32 %v4644_v8  ;;  %v10309_v17 = vadd.f32 %v4614_v30, %v4603_v23  ;;  %v4105_v55 = vmul.f32 1.442695, %v4102_v16 }
0x1015   :  { %v4561_v57 = vmul.f32 %v8078_v53, %v4534_v39  ;;  %v4536_v21 = vmul.f32 %v4534_v39, %v10101_v62  ;;  %v10297_v2 = vpop.eup %8085  ;;  %v4684_v39 = vmul.f32 %v10252_v3, %v10234_v60  ;;  %8103 = vpow2.f32 %v4685_v38 }
0x1016   :  { %v4573_v22 = vpop.permute.xlu1 %4572  ;;  %v10287_v54 = vpop.permute.xlu0 %4656  ;;  %v4454_v53 = vrot.slane %v4453_v27, 4  ;;  %v3936_v49 = vmul.f32 0.0, %v8084_v36  ;;  %v4146_v20 = vmul.f32 1.442695, %v4144_v1  ;;  %v4726_v46 = vmul.f32 %v10258_v12, %v10227_v5 }
0x1017   :  { %v8088_v62 = vpop.eup %8087  ;;  %v4577_v10 = vadd.f32 %v4573_v22, %v4561_v57  ;;  %v4538_v14 = vsel %vm624_vm6, %v4536_v21, 0.0  ;;  %v4537_v43 = vsel %vm624_vm6, %v4535_v25, 0.0  ;;  %v4497_v50 = vrot.slane %v4496_v4, 4 }
0x1018   :  { %v10311_v19 = vpop.eup %8089  ;;  %v4148_v3 = vmul.f32 1.442695, %v4145_v42  ;;  %v4187_v30 = vmul.f32 %v10244_v63, %v10227_v5  ;;  %v4539_v57 = vadd.f32 %v4538_v14, %v4537_v43  ;;  %8105 = vpow2.f32 %v4103_v6 }
0x1019   :  { %v8092_v13 = vpop.eup %8091  ;;  %v4687_v23 = vmul.f32 1.442695, %v4684_v39  ;;  %v4579_v36 = vmul.f32 %v4577_v10, %v10110_v9  ;;  %8107 = vpow2.f32 %v4105_v55  ;;  %v4188_v38 = vmul.f32 %v10244_v63, %v10234_v60 }
0x101a   :  { %v4616_v45 = vpop.permute.xlu1 %4615  ;;  %v10304_v52 = vpop.permute.xlu0 %4699  ;;  %v4604_v22 = vmul.f32 %v8092_v13, %v4577_v10  ;;  %v4230_v33 = vmul.f32 %v10250_v51, %v10227_v5  ;;  %v4455_v1 = vadd.f32 %v4454_v53, %v4453_v27  ;;  %8109 = vpow2.f32 %v4146_v20 }
0x101b   :  { %v8094_v7 = vpop.eup %8093  ;;  %v4728_v25 = vmul.f32 1.442695, %v4726_v46  ;;  %v4498_v42 = vadd.f32 %v4497_v50, %v4496_v4  ;;  %v4578_v14 = vmul.f32 %v10278_v34, %v10112_v24  ;;  %8111 = vpow2.f32 %v4148_v3 }
0x101c   :  { %v8096_v21 = vpop.eup %8095  ;;  %v4646_v16 = vmul.f32 %v8094_v7, %v10309_v17  ;;  %v4189_v6 = vmul.f32 1.442695, %v4187_v30  ;;  %v4540_v39 = vrot.slane %v4539_v57, 4  ;;  %v4620_v9 = vadd.f32 %v4616_v45, %v4604_v22 }
0x101d   :  { %v10330_v13 = vpop.eup %8097  ;;  %8113 = vpow2.f32 %v4687_v23  ;;  %v4581_v63 = vsel %vm624_vm6, %v4579_v36, 0.0  ;;  %v4191_v53 = vmul.f32 1.442695, %v4188_v38  ;;  %v4231_v24 = vmul.f32 %v10250_v51, %v10234_v60 }
0x101e   :  { %v4659_v8 = vpop.permute.xlu1 %4658  ;;  %v10318_v48 = vpop.permute.xlu0 %4742  ;;  %v4662_v5 = vadd.f32 %v10287_v54, %v4646_v16  ;;  %v4232_v34 = vmul.f32 1.442695, %v4230_v33  ;;  %v4456_v20 = vrot.slane %v4455_v1, 2  ;;  %8115 = vpow2.f32 %v4728_v25 }
0x101f   :  { %v8100_v4 = vpop.eup %8099  ;;  %v4499_v46 = vrot.slane %v4498_v42, 2  ;;  %v4580_v43 = vsel %vm624_vm6, %v4578_v14, 0.0  ;;  %v4727_v54 = vmul.f32 %v10258_v12, %v10234_v60  ;;  %8117 = vpow2.f32 %v4189_v6 }
0x1020   :  { %v8102_v45 = vpop.eup %8101  ;;  %v4582_v3 = vadd.f32 %v4581_v63, %v4580_v43  ;;  %8119 = vpow2.f32 %v4191_v53  ;;  %v4234_v16 = vmul.f32 1.442695, %v4231_v24  ;;  %v4457_v38 = vadd.f32 %v4456_v20, %v4455_v1 }
0x1021   :  { %v8104_v7 = vpop.eup %8103  ;;  %v4647_v30 = vmul.f32 %v8102_v45, %v4620_v9  ;;  %v3935_v33 = vmul.f32 0.0, %v10289_v41  ;;  %8121 = vpow2.f32 %v4232_v34  ;;  %v4622_v60 = vmul.f32 %v4620_v9, %v10118_v56 }
0x1022   :  { %v10328_v10 = vpop.permute.xlu1 %4701  ;;  %v3948_v55 = vpop.permute.xlu0 %3947  ;;  %v4689_v51 = vmul.f32 %v8104_v7, %v4662_v5  ;;  %v4730_v14 = vmul.f32 1.442695, %v4727_v54  ;;  %v4621_v41 = vmul.f32 %v10309_v17, %v10120_v61  ;;  %8123 = vpow2.f32 %v4234_v16 }
0x1023   :  { %v10334_v27 = vadd.f32 %v3948_v55, %v3936_v49  ;;  %v4541_v49 = vadd.f32 %v4540_v39, %v4539_v57  ;;  %v10345_v25 = vpop.eup %8105  ;;  %v4583_v55 = vrot.slane %v4582_v3, 4  ;;  %v4663_v6 = vadd.f32 %v4659_v8, %v4647_v30 }
0x1024   :  { %v10348_v57 = vpop.eup %8107  ;;  %v4705_v1 = vadd.f32 %v10304_v52, %v4689_v51  ;;  %v4458_v56 = vrot.slane %v4457_v38, 1  ;;  %v4664_v20 = vmul.f32 %v4662_v5, %v10128_v15  ;;  %v4624_v8 = vsel %vm624_vm6, %v4622_v60, 0.0 }
0x1025   :  { %v3979_v50 = vmul.f32 %v8088_v62, %v10334_v27  ;;  %v4500_v62 = vadd.f32 %v4499_v46, %v4498_v42  ;;  %v4542_v39 = vrot.slane %v4541_v49, 2  ;;  %v10350_v53 = vpop.eup %8109  ;;  %8125 = vpow2.f32 %v4730_v14 }
0x1026   :  { %v10342_v22 = vpop.permute.xlu1 %4744  ;;  %v3991_v23 = vpop.permute.xlu0 %3990  ;;  %v4623_v54 = vsel %vm624_vm6, %v4621_v41, 0.0  ;;  %v4707_v30 = vmul.f32 %v4705_v1, %v10136_v59  ;;  %v10362_v16 = vadd.f32 %v4458_v56, %v4457_v38  ;;  %v4665_v5 = vmul.f32 %v4663_v6, %v10126_v31 }
0x1027   :  { %v3995_v36 = vadd.f32 %v3991_v23, %v3979_v50  ;;  %v10355_v34 = vpop.eup %8111  ;;  %v4501_v9 = vrot.slane %v4500_v62, 1  ;;  %v4543_v43 = vadd.f32 %v4542_v39, %v4541_v49  ;;  %v4584_v50 = vadd.f32 %v4583_v55, %v4582_v3 }
0x1028   :  { %v4625_v15 = vadd.f32 %v4624_v8, %v4623_v54  ;;  %v4666_v3 = vsel %vm624_vm6, %v4664_v20, 0.0 }
0x1029   :  { %v4022_v12 = vmul.f32 %v8096_v21, %v3995_v36  ;;  %v8114_v21 = vpop.eup %8113  ;;  %v10367_v49 = vadd.f32 %v4501_v9, %v4500_v62  ;;  %v4544_v59 = vrot.slane %v4543_v43, 1  ;;  %v3997_v39 = vmul.f32 %v3995_v36, %v10187_v18 }
0x102a   :  { %v4034_v63 = vpop.permute.xlu0 %4033  ;;  %v3946_v45 = vpop.permute.xlu1 %3945  ;;  %v4690_v61 = vmul.f32 %v8114_v21, %v4663_v6  ;;  %v4709_v62 = vsel %vm624_vm6, %v4707_v30, 0.0  ;;  %v4626_v41 = vrot.slane %v4625_v15, 4 }
0x102b   :  { %v4038_v24 = vadd.f32 %v4034_v63, %v4022_v12  ;;  %v3951_v42 = vadd.f32 %v3946_v45, %v3935_v33  ;;  %v8116_v7 = vpop.eup %8115  ;;  %v3999_v20 = vsel %vm624_vm6, %v3997_v39, 0.0 }
0x102c   :  { %v4732_v33 = vmul.f32 %v8116_v7, %v4705_v1  ;;  %v4706_v38 = vadd.f32 %v10328_v10, %v4690_v61  ;;  %v3954_v10 = vmul.f32 %v10334_v27, %v10181_v29 }
0x102d   :  { %v3978_v46 = vmul.f32 %v10297_v2, %v3951_v42  ;;  %v4065_v23 = vmul.f32 %v8100_v4, %v4038_v24  ;;  %v10365_v2 = vpop.eup %8117  ;;  %v4585_v4 = vrot.slane %v4584_v50, 2  ;;  %v3953_v63 = vmul.f32 %v3951_v42, %v10169_v47 }
0x102e   :  { %v4077_v17 = vpop.permute.xlu0 %4076  ;;  %v3989_v52 = vpop.permute.xlu1 %3988  ;;  %v10382_v1 = vadd.f32 %v10318_v48, %v4732_v33  ;;  %v4040_v18 = vmul.f32 %v4038_v24, %v10193_v28  ;;  %v10392_v42 = vadd.f32 %v4544_v59, %v4543_v43  ;;  %v4708_v48 = vmul.f32 %v4706_v38, %v10134_v37 }
0x102f   :  { %v3994_v51 = vadd.f32 %v3989_v52, %v3978_v46  ;;  %v10372_v14 = vpop.eup %8119  ;;  %v4081_v45 = vadd.f32 %v4077_v17, %v4065_v23  ;;  %v10394_v9 = vadd.f32 %v4585_v4, %v4584_v50  ;;  %v3955_v28 = vsel %vm624_vm6, %v3953_v63, 0.0 }
0x1030   :  { %v10376_v6 = vpop.eup %8121  ;;  %v4627_v46 = vadd.f32 %v4626_v41, %v4625_v15  ;;  %v3956_v43 = vsel %vm624_vm6, %v3954_v10, 0.0  ;;  %v4042_v17 = vsel %vm624_vm6, %v4040_v18, 0.0  ;;  %v4710_v54 = vsel %vm624_vm6, %v4708_v48, 0.0 }
0x1031   :  { %v3996_v60 = vmul.f32 %v3994_v51, %v10174_v0  ;;  %v4021_v12 = vmul.f32 %v10311_v19, %v3994_v51  ;;  %v4667_v19 = vsel %vm624_vm6, %v4665_v5, 0.0  ;;  %v10390_v47 = vpop.eup %8123  ;;  %v4083_v27 = vmul.f32 %v4081_v45, %v10202_v44 }
0x1032   :  { %v4118_v31 = vpop.permute.xlu0 %4117  ;;  %v4032_v55 = vpop.permute.xlu1 %4031  ;;  %v4668_v61 = vadd.f32 %v4667_v19, %v4666_v3  ;;  %v4108_v7 = vmul.f32 %v10348_v57, %v4081_v45  ;;  %v3957_v30 = vadd.f32 %v3956_v43, %v3955_v28 }
0x1033   :  { %v4037_v0 = vadd.f32 %v4032_v55, %v4021_v12  ;;  %v3998_v36 = vsel %vm624_vm6, %v3996_v60, 0.0  ;;  %v4085_v15 = vsel %vm624_vm6, %v4083_v27, 0.0  ;;  %v4628_v12 = vrot.slane %v4627_v46, 2 }
0x1034   :  { %v4000_v50 = vadd.f32 %v3999_v20, %v3998_v36  ;;  %v4669_v59 = vrot.slane %v4668_v61, 4  ;;  %v4711_v55 = vadd.f32 %v4710_v54, %v4709_v62  ;;  %v3958_v45 = vrot.slane %v3957_v30, 4 }
0x1035   :  { %v4039_v56 = vmul.f32 %v4037_v0, %v10179_v35  ;;  %v4064_v21 = vmul.f32 %v10330_v13, %v4037_v0  ;;  %v8126_v13 = vpop.eup %8125  ;;  %v10420_v27 = vadd.f32 %v4628_v12, %v4627_v46 }
0x1036   :  { %v4161_v8 = vpop.permute.xlu0 %4160  ;;  %v4075_v29 = vpop.permute.xlu1 %4074  ;;  %v4733_v44 = vmul.f32 %v8126_v13, %v4706_v38  ;;  %v4712_v48 = vrot.slane %v4711_v55, 4  ;;  %v3959_v20 = vadd.f32 %v3958_v45, %v3957_v30 }
0x1037   :  { %v4041_v35 = vsel %vm624_vm6, %v4039_v56, 0.0  ;;  %v4080_v24 = vadd.f32 %v4075_v29, %v4064_v21 }
0x1038   :  { %v4043_v23 = vadd.f32 %v4042_v17, %v4041_v35  ;;  %v4749_v63 = vadd.f32 %v10342_v22, %v4733_v44  ;;  %v3960_v54 = vrot.slane %v3959_v20, 2 }
0x1039   :  { %v4082_v37 = vmul.f32 %v4080_v24, %v10185_v58  ;;  %v4107_v52 = vmul.f32 %v10345_v25, %v4080_v24  ;;  %v4001_v58 = vrot.slane %v4000_v50, 4 }
0x103a   :  { %v4204_v51 = vpop.permute.xlu0 %4203  ;;  %v4120_v5 = vpop.permute.xlu1 %4119  ;;  %v4044_v0 = vrot.slane %v4043_v23, 4 }
0x103b   :  { %v4084_v33 = vsel %vm624_vm6, %v4082_v37, 0.0  ;;  %v4123_v3 = vadd.f32 %v4118_v31, %v4107_v52  ;;  %v4124_v60 = vadd.f32 %v4120_v5, %v4108_v7  ;;  %v4002_v56 = vadd.f32 %v4001_v58, %v4000_v50  ;;  %v11213_v50 = vld [vmem:[#allocation63_spill] sm:$0xff]  ;;  %v11214_v5 = vld [vmem:[#allocation62_spill] sm:$0xff]  ;;  %v11215_v58 = vld [vmem:[#allocation61_spill] sm:$0xff] }
0x103c   :  { %v4086_v4 = vadd.f32 %v4085_v15, %v4084_v33  ;;  %v4713_v7 = vadd.f32 %v4712_v48, %v4711_v55 }
0x103d   :  { %v4125_v25 = vmul.f32 %v4123_v3, %v10191_v11  ;;  %v4150_v57 = vmul.f32 %v10350_v53, %v4123_v3  ;;  %v4126_v38 = vmul.f32 %v4124_v60, %v10210_v26  ;;  %v4151_v39 = vmul.f32 %v10355_v34, %v4124_v60 }
0x103e   :  { %v4163_v41 = vpop.permute.xlu1 %4162  ;;  %v4247_v18 = vpop.permute.xlu0 %4246  ;;  %v4670_v11 = vadd.f32 %v4669_v59, %v4668_v61  ;;  %v4087_v53 = vrot.slane %v4086_v4, 4 }
0x103f   :  { %v4166_v31 = vadd.f32 %v4161_v8, %v4150_v57  ;;  %v4127_v19 = vsel %vm624_vm6, %v4125_v25, 0.0  ;;  %v4128_v10 = vsel %vm624_vm6, %v4126_v38, 0.0  ;;  %v4167_v36 = vadd.f32 %v4163_v41, %v4151_v39 }
0x1040   :  { %v4129_v21 = vadd.f32 %v4128_v10, %v4127_v19  ;;  %v4045_v8 = vadd.f32 %v4044_v0, %v4043_v23  ;;  %v4671_v61 = vrot.slane %v4670_v11, 2  ;;  %v4088_v43 = vadd.f32 %v4087_v53, %v4086_v4 }
0x1041   :  { %v4168_v26 = vmul.f32 %v4166_v31, %v10200_v32  ;;  %v4193_v34 = vmul.f32 %v10365_v2, %v4166_v31  ;;  %v4169_v22 = vmul.f32 %v4167_v36, %v10218_v40  ;;  %v4194_v62 = vmul.f32 %v10372_v14, %v4167_v36 }
0x1042   :  { %v4130_v29 = vrot.slane %v4129_v21, 4  ;;  %v4206_v28 = vpop.permute.xlu1 %4205  ;;  %v4003_v32 = vrot.slane %v4002_v56, 2  ;;  %v4412_v37 = vpop.permute.xlu0 %4411  ;;  %v4046_v46 = vrot.slane %v4045_v8, 2  ;;  %v4089_v60 = vrot.slane %v4088_v43, 2 }
0x1043   :  { %v4209_v35 = vadd.f32 %v4204_v51, %v4193_v34  ;;  %v4170_v24 = vsel %vm624_vm6, %v4168_v26, 0.0  ;;  %v4171_v13 = vsel %vm624_vm6, %v4169_v22, 0.0  ;;  %v4210_v52 = vadd.f32 %v4206_v28, %v4194_v62 }
0x1044   :  { %v4172_v2 = vadd.f32 %v4171_v13, %v4170_v24  ;;  %v4131_v17 = vadd.f32 %v4130_v29, %v4129_v21  ;;  %v4004_v3 = vadd.f32 %v4003_v32, %v4002_v56  ;;  %v4750_v59 = vmul.f32 %v10382_v1, %v4412_v37 }
0x1045   :  { %v4211_v40 = vmul.f32 %v4209_v35, %v11213_v50  ;;  %v4236_v14 = vmul.f32 %v10376_v6, %v4209_v35  ;;  %v4212_v15 = vmul.f32 %v4210_v52, %v11214_v5  ;;  %v4237_v33 = vmul.f32 %v10390_v47, %v4210_v52  ;;  %v11216_v47 = vld [vmem:[#allocation60_spill] sm:$0xff] }
0x1046   :  { %v4173_v44 = vrot.slane %v4172_v2, 4  ;;  %v4249_v30 = vpop.permute.xlu1 %4248  ;;  %v4132_v6 = vrot.slane %v4131_v17, 2  ;;  %v4714_v38 = vrot.slane %v4713_v7, 2  ;;  %v3961_v39 = vadd.f32 %v3960_v54, %v3959_v20 }
0x1047   :  { %v4213_v23 = vsel %vm624_vm6, %v4211_v40, 0.0  ;;  %v4252_v51 = vadd.f32 %v4247_v18, %v4236_v14  ;;  %v4214_v25 = vsel %vm624_vm6, %v4212_v15, 0.0  ;;  %v4253_v57 = vadd.f32 %v4249_v30, %v4237_v33 }
0x1048   :  { %v4174_v12 = vadd.f32 %v4173_v44, %v4172_v2  ;;  %v4215_v45 = vadd.f32 %v4214_v25, %v4213_v23  ;;  %v4047_v41 = vadd.f32 %v4046_v46, %v4045_v8  ;;  %v4672_v18 = vadd.f32 %v4671_v61, %v4670_v11 }
0x1049   :  { %v4254_v4 = vmul.f32 %v4252_v51, %v11215_v58  ;;  %v4255_v19 = vmul.f32 %v4253_v57, %v11216_v47  ;;  %v4005_v36 = vrot.slane %v4004_v3, 1  ;;  %v4090_v1 = vadd.f32 %v4089_v60, %v4088_v43  ;;  %v7175_v57 = vld [vmem:[%s11168_s9 + $0x2] ss:$0 sm:$0xff] }
0x104a   :  { %v4175_v55 = vrot.slane %v4174_v12, 2  ;;  %v4416_v0 = vpop.permute.xlu1 %4415  ;;  %v4216_v56 = vrot.slane %v4215_v45, 4  ;;  %v4133_v53 = vadd.f32 %v4132_v6, %v4131_v17  ;;  %v4752_v21 = vsel %vm624_vm6, %v4750_v59, 0.0 }
0x104b   :  { %v4256_v31 = vsel %vm624_vm6, %v4254_v4, 0.0  ;;  %v4751_v10 = vmul.f32 %v4749_v63, %v4416_v0  ;;  %v4257_v26 = vsel %vm624_vm6, %v4255_v19, 0.0  ;;  %v4587_v8 = vrot.slane %v10394_v9, 1  ;;  %v11218_v19 = vld [vmem:[#allocation54_spill] sm:$0xff] }
0x104c   :  { %v4176_v22 = vadd.f32 %v4175_v55, %v4174_v12  ;;  %v4217_v62 = vadd.f32 %v4216_v56, %v4215_v45  ;;  %v4258_v48 = vadd.f32 %v4257_v26, %v4256_v31  ;;  %v4715_v29 = vadd.f32 %v4714_v38, %v4713_v7 }
0x104d   :  { %v4753_v34 = vsel %vm624_vm6, %v4751_v10, 0.0  ;;  %v3962_v28 = vrot.slane %v3961_v39, 1  ;;  %v4048_v63 = vrot.slane %v4047_v41, 1  ;;  %v4091_v11 = vrot.slane %v4090_v1, 1 }
0x104e   :  { %v4754_v20 = vadd.f32 %v4753_v34, %v4752_v21  ;;  %v4218_v35 = vrot.slane %v4217_v62, 2  ;;  %v4259_v24 = vrot.slane %v4258_v48, 4  ;;  %v4630_v61 = vrot.slane %v10420_v27, 1  ;;  %v4788_v21 = vpop.permute.xlu0 %4787  ;;  %v4790_v26 = vpop.permute.xlu1 %4789 }
0x104f   :  { %v4673_v32 = vrot.slane %v4672_v18, 1  ;;  %v4006_v43 = vadd.f32 %v4005_v36, %v4004_v3  ;;  %v4134_v2 = vrot.slane %v4133_v53, 1  ;;  %v4177_v50 = vrot.slane %v4176_v22, 1 }
0x1050   :  { %v4755_v13 = vrot.slane %v4754_v20, 4  ;;  %v4219_v40 = vadd.f32 %v4218_v35, %v4217_v62  ;;  %v4260_v17 = vadd.f32 %v4259_v24, %v4258_v48  ;;  %v4588_v37 = vadd.f32 %v4587_v8, %v10394_v9  ;;  %v7184_v62 = vld [vmem:[#allocation16 + $0x2] ss:$0 sm:$0xff] }
0x1051   :  { %v4716_v52 = vrot.slane %v4715_v29, 1  ;;  %v3963_v54 = vadd.f32 %v3962_v28, %v3961_v39  ;;  %v4049_v7 = vadd.f32 %v4048_v63, %v4047_v41  ;;  %v4092_v46 = vadd.f32 %v4091_v11, %v4090_v1  ;;  %v11219_v28 = vld [vmem:[#allocation48_spill] sm:$0xff]  ;;  %v11220_v11 = vld [vmem:[#allocation55_spill] sm:$0xff] }
0x1052   :  { %v4756_v14 = vadd.f32 %v4755_v13, %v4754_v20  ;;  %v4220_v44 = vrot.slane %v4219_v40, 1  ;;  %v4261_v30 = vrot.slane %v4260_v17, 2  ;;  %v4768_v51 = vsel %vm1732_vm7, %v10362_v16, %v10367_v49 }
0x1053   :  { %v4631_v5 = vadd.f32 %v4630_v61, %v10420_v27  ;;  %v4674_v15 = vadd.f32 %v4673_v32, %v4672_v18  ;;  %v4135_v33 = vadd.f32 %v4134_v2, %v4133_v53  ;;  %v4761_v3 = vsel %vm1732_vm7, %v3963_v54, %v4006_v43  ;;  %v7189_v54 = vld [vmem:[%s11143_s19 + $0x60] sm:$0xff] }
0x1054   :  { %v4757_v23 = vrot.slane %v4756_v14, 2  ;;  %v4178_v60 = vadd.f32 %v4177_v50, %v4176_v22  ;;  %v4262_v9 = vadd.f32 %v4261_v30, %v4260_v17  ;;  %v4762_v59 = vsel %vm1734_vm8, %v4761_v3, %v4049_v7  ;;  %v7190_v7 = vld [vmem:[%s11143_s19 + $0x68] sm:$0xff]  ;;  %v7192_v30 = vld [vmem:[%s11143_s19 + $0x78] sm:$0xff] }
0x1055   :  { %v4221_v6 = vadd.f32 %v4220_v44, %v4219_v40  ;;  %v4717_v58 = vadd.f32 %v4716_v52, %v4715_v29  ;;  %v4769_v4 = vsel %vm1734_vm8, %v4768_v51, %v10392_v42  ;;  %v4763_v25 = vsel %vm508_vm2, %v4762_v59, %v4092_v46  ;;  %v11217_v42 = vld [vmem:[#allocation47_spill] sm:$0xff] }
0x1056   :  { %v4758_v12 = vadd.f32 %v4757_v23, %v4756_v14  ;;  %v4263_v16 = vrot.slane %v4262_v9, 1  ;;  %v4770_v27 = vsel %vm508_vm2, %v4769_v4, %v4588_v37  ;;  %v4764_v39 = vsel %vm1737_vm9, %v4763_v25, %v4135_v33  ;;  %v7191_v46 = vld [vmem:[%s11143_s19 + $0x70] sm:$0xff] }
0x1057   :  { %v4771_v38 = vsel %vm1737_vm9, %v4770_v27, %v4631_v5  ;;  %v4765_v41 = vsel %vm551_vm5, %v4764_v39, %v4178_v60  ;;  %v4783_v47 = vmul.f32 %v7175_v57, %v11217_v42  ;;  %v4784_v10 = vmul.f32 %v7175_v57, %v11218_v19  ;;  %v7197_v57 = vld [vmem:[%s11144_s8 + $0xc0] sm:$0xff]  ;;  %v7199_v39 = vld [vmem:[%s11144_s8 + $0xd0] sm:$0xff]  ;;  %v7204_v19 = vld [vmem:[%s11144_s8 + $0xf8] sm:$0xff] }
0x1058   :  { %v4759_v49 = vrot.slane %v4758_v12, 1  ;;  %v4264_v55 = vadd.f32 %v4263_v16, %v4262_v9  ;;  %v4772_v0 = vsel %vm551_vm5, %v4771_v38, %v4674_v15  ;;  %v4766_v18 = vsel %vm537_vm4, %v4765_v41, %v4221_v6  ;;  %v7188_v6 = vld [vmem:[#allocation19 + $0x2] ss:$0 sm:$0xff]  ;;  %v7198_v38 = vld [vmem:[%s11144_s8 + $0xc8] sm:$0xff] }
0x1059   :  { %v4773_v31 = vsel %vm537_vm4, %v4772_v0, %v4717_v58  ;;  %v7723_v44 = vpack.c.bf16 %v7190_v7, %v7189_v54  ;;  %v7727_v23 = vpack.c.bf16 %v7192_v30, %v7191_v46  ;;  %v7201_v41 = vld [vmem:[%s11144_s8 + $0xe0] sm:$0xff] }
0x105a   :  { %v4760_v45 = vadd.f32 %v4759_v49, %v4758_v12  ;;  %v4767_v1 = vsel %vm523_vm3, %v4766_v18, %v4264_v55  ;;  %v7187_v12 = vld [vmem:[#allocation17 + $0x2] ss:$0 sm:$0xff]  ;;  %v7731_v55 = vpack.c.bf16 %v7198_v38, %v7197_v57  ;;  %v7193_v18 = vld [vmem:[#allocation10 + $0x3] ss:$0 sm:$0xff] }
0x105b   :  { %v4785_v53 = vadd.f32 %v4783_v47, %v4767_v1  ;;  %7724 = vmatprep.subr.bf16.mxu0 %v7723_v44  ;;  %v7203_v47 = vld [vmem:[%s11144_s8 + $0xf0] sm:$0xff] }
0x105c   :  { %v4774_v36 = vsel %vm523_vm3, %v4773_v31, %v4760_v45  ;;  %7726 = vmatpush3.bf16.msra.mxu0 %v7723_v44  ;;  %v7200_v45 = vld [vmem:[%s11144_s8 + $0xd8] sm:$0xff]  ;;  %v7202_v31 = vld [vmem:[%s11144_s8 + $0xe8] sm:$0xff]  ;;  %7732 = vmatprep.subr.bf16.mxu1 %v7731_v55 }
0x105d   :  { %v4786_v56 = vadd.f32 %v4784_v10, %v4774_v36  ;;  %v4793_v22 = vmul.f32 %v4788_v21, %v4785_v53  ;;  %7728 = vmatprep.subr.bf16.mxu0 %v7727_v23  ;;  %v7735_v0 = vpack.c.bf16 %v7200_v45, %v7199_v39  ;;  %v7739_v42 = vpack.c.bf16 %v7202_v31, %v7201_v41 }
0x105e   :  { %v7743_v10 = vpack.c.bf16 %v7204_v19, %v7203_v47 }
0x105f   :  { %v4794_v34 = vmul.f32 %v4790_v26, %v4786_v56  ;;  %7513 = vmatprep.mubr.msk.f32.mxu1 %vm624_vm6, %v4793_v22 }
0x1060   :  { %7730 = vmatpush3.bf16.msra.mxu0 %v7727_v23 }
0x1061   :  { %7514 = vmatmul.mubr.msk.f32.vlgmr.msra.gmra.mrb[10].mxu1 %vm624_vm6, %v4794_v34 }
0x1062   :  { %7734 = vmatpush3.bf16.msra.mxu1 %v7731_v55 }
0x1063   :  { %7736 = vmatprep.subr.bf16.mxu1 %v7735_v0 }
0x1066   :  { %7738 = vmatpush3.bf16.msra.mxu1 %v7735_v0 }
0x1067   :  { %7740 = vmatprep.subr.bf16.mxu1 %v7739_v42 }
0x106a   :  { %7742 = vmatpush3.bf16.msra.mxu1 %v7739_v42 }
0x106b   :  { %7744 = vmatprep.subr.bf16.mxu1 %v7743_v10 }
0x106e   :  { %7746 = vmatpush3.bf16.msra.mxu1 %v7743_v10  ;;  %v7196_v10 = vld [vmem:[#allocation13 + $0x3] ss:$0 sm:$0xff] }
0x1134   :  { %v7515_v48 = vpop.f32.mrb[10].mxu1 }
0x1135   :  { %v4890_v20 = vadd.f32 %v7515_v48, %v7184_v62  ;;  %v4884_v8 = vpop.f32.mrb[11].mxu1 }
0x1136   :  { %v4885_v29 = vadd.f32 %v7184_v62, %v4884_v8 }
0x1137   :  { %v4894_v63 = vadd.f32 %v4890_v20, %v11219_v28 }
0x1138   :  { %v4893_v35 = vadd.f32 %v4885_v29, %v11220_v11  ;;  %v5048_v29 = vld [vmem:[#allocation11 + $0xc] sm:$0xf] }
0x1139   :  { %v4902_v24 = vsel %vm409_vm1, %v4894_v63, 0.0 }
0x113a   :  { %4903 = vadd.xlane.f32.xlu1 %v4902_v24  ;;  %v4899_v13 = vsel %vm409_vm1, %v4893_v35, 0.0 }
0x113b   :  { %4900 = vadd.xlane.f32.xlu0 %v4899_v13  ;;  %v11224_v13 = vld [vmem:[#allocation51_spill] sm:$0xff] }
0x11c7   :  { %v4904_v61 = vpop.xlane.xlu1 %4903 }
0x11c8   :  { %v4906_v32 = vmul.f32 0.03125, %v4904_v61  ;;  %v4901_v43 = vpop.xlane.xlu0 %4900  ;;  %v5076_v61 = vrot.slane %v5048_v29, %v11224_v13 }
0x11c9   :  { %v4905_v2 = vmul.f32 0.03125, %v4901_v43 }
0x11ca   :  { %v4908_v50 = vsub.f32 %v4894_v63, %v4906_v32  ;;  %v11225_v32 = vld [vmem:[#allocation52_spill] sm:$0xff] }
0x11cb   :  { %v4907_v40 = vsub.f32 %v4893_v35, %v4905_v2  ;;  %v11223_v35 = vld [vmem:[#allocation50_spill] sm:$0xff]  ;;  %v5089_v43 = vrot.slane %v5048_v29, %v11225_v32 }
0x11cc   :  { %v4910_v37 = vmul.f32 %v4908_v50, %v4908_v50  ;;  %v5063_v24 = vrot.slane %v5048_v29, %v11223_v35 }
0x11cd   :  { %v4909_v17 = vmul.f32 %v4907_v40, %v4907_v40 }
0x11ce   :  { %v4914_v52 = vsel %vm409_vm1, %v4910_v37, 0.0 }
0x11cf   :  { %v4911_v14 = vsel %vm409_vm1, %v4909_v17, 0.0 }
0x11d0   :  { %4912 = vadd.xlane.f32.xlu0 %v4911_v14 }
0x11d4   :  { %4915 = vadd.xlane.f32.xlu0 %v4914_v52 }
0x125d   :  { %v4913_v51 = vpop.xlane.xlu0 %4912 }
0x125e   :  { %v4917_v5 = vmul.f32 0.03125, %v4913_v51 }
0x1260   :  { %v4919_v15 = vadd.f32 1e-05, %v4917_v5 }
0x1261   :  { %v4916_v33 = vpop.xlane.xlu0 %4915 }
0x1262   :  { %8127 = vrsqrt.f32 %v4919_v15  ;;  %v4918_v3 = vmul.f32 0.03125, %v4916_v33 }
0x1264   :  { %v4920_v60 = vadd.f32 1e-05, %v4918_v3 }
0x1266   :  { %8129 = vrsqrt.f32 %v4920_v60 }
0x126c   :  { %v8128_v9 = vpop.eup %8127 }
0x126d   :  { %v4923_v59 = vmul.f32 %v8128_v9, %v4907_v40 }
0x126f   :  { %v4931_v58 = vmul.f32 %v7187_v12, %v4923_v59 }
0x1270   :  { %v8130_v4 = vpop.eup %8129 }
0x1271   :  { %v4924_v25 = vmul.f32 %v8130_v4, %v4908_v50  ;;  %v10473_v16 = vadd.f32 %v7188_v6, %v4931_v58  ;;  %v11226_v50 = vld [vmem:[#allocation53_spill] sm:$0xff] }
0x1272   :  { %v5058_v40 = vrot.slane %v5048_v29, %v11226_v50 }
0x1273   :  { %11221 = vst [vmem:[#allocation63_spill] sm:$0xff] %v10473_v16  ;;  %v4932_v49 = vmul.f32 %v7187_v12, %v4924_v25  ;;  %7524 = vmatprep.mubr.msk.f32.mxu0 %vm409_vm1, %v10473_v16 }
0x1275   :  { %v10477_v27 = vadd.f32 %v7188_v6, %v4932_v49 }
0x1277   :  { %11222 = vst [vmem:[#allocation62_spill] sm:$0xff] %v10477_v27  ;;  %7525 = vmatmul.mubr.msk.f32.vlgmr.msra.gmra.mrb[8].mxu0 %vm409_vm1, %v10477_v27 }
0x134a   :  { %v7526_v36 = vpop.f32.mrb[8].mxu0 }
0x134b   :  { %v5032_v1 = vadd.f32 %v7526_v36, %v7193_v18  ;;  %v5026_v56 = vpop.f32.mrb[9].mxu0 }
0x134c   :  { %v5027_v53 = vadd.f32 %v7193_v18, %v5026_v56 }
0x134d   :  { %v5036_v21 = vsub.f32 0.0, %v5032_v1 }
0x134e   :  { %v5035_v26 = vsub.f32 0.0, %v5027_v53 }
0x134f   :  { %v5039_v34 = vmul.f32 1.442695, %v5036_v21 }
0x1350   :  { %v5037_v22 = vmul.f32 1.442695, %v5035_v26 }
0x1351   :  { %8131 = vpow2.f32 %v5039_v34 }
0x1352   :  { %8133 = vpow2.f32 %v5037_v22 }
0x135b   :  { %v8132_v62 = vpop.eup %8131 }
0x135c   :  { %v8134_v48 = vpop.eup %8133  ;;  %v5042_v20 = vadd.f32 1.0, %v8132_v62 }
0x135d   :  { %v5041_v8 = vadd.f32 1.0, %v8134_v48 }
0x135e   :  { %8135 = vrcp.f32 %v5042_v20 }
0x135f   :  { %8137 = vrcp.f32 %v5041_v8 }
0x1368   :  { %v8136_v28 = vpop.eup %8135 }
0x1369   :  { %v8138_v63 = vpop.eup %8137  ;;  %v10489_v11 = vmul.f32 %v8136_v28, %v5032_v1 }
0x136a   :  { %v10494_v2 = vmul.f32 %v8138_v63, %v5027_v53 }
0x136b   :  { %v5107_v17 = vrot.slane %v10489_v11, 5 }
0x136c   :  { %v5052_v14 = vrot.slane %v10494_v2, 5 }
0x136d   :  { %v5109_v37 = vsel %vm508_vm2, 0.0, %v5107_v17  ;;  %v5112_v52 = vmul.f32 %v5107_v17, %v5063_v24  ;;  %v5121_v54 = vmul.f32 %v5107_v17, %v5076_v61  ;;  %v5130_v44 = vmul.f32 %v5107_v17, %v5089_v43 }
0x136e   :  { %v5111_v7 = vmul.f32 %v5109_v37, %v5063_v24  ;;  %v5120_v46 = vmul.f32 %v5109_v37, %v5076_v61  ;;  %v5110_v30 = vmul.f32 %v5109_v37, %v5058_v40  ;;  %v5129_v51 = vmul.f32 %v5109_v37, %v5089_v43 }
0x136f   :  { %v5116_v23 = vrot.slane %v5112_v52, 1  ;;  %v5054_v5 = vsel %vm508_vm2, 0.0, %v5052_v14  ;;  %v5125_v3 = vrot.slane %v5121_v54, 2  ;;  %v5065_v9 = vmul.f32 %v5063_v24, %v5052_v14 }
0x1370   :  { %v5115_v15 = vrot.slane %v5111_v7, 1  ;;  %v5124_v33 = vrot.slane %v5120_v46, 2  ;;  %v5064_v60 = vmul.f32 %v5063_v24, %v5054_v5  ;;  %v5077_v12 = vmul.f32 %v5076_v61, %v5054_v5 }
0x1371   :  { %v5078_v59 = vmul.f32 %v5076_v61, %v5052_v14  ;;  %v5090_v6 = vmul.f32 %v5089_v43, %v5054_v5  ;;  %v5134_v58 = vrot.slane %v5130_v44, 3  ;;  %v5091_v25 = vmul.f32 %v5089_v43, %v5052_v14  ;;  %v7205_v14 = vld [vmem:[#allocation14 + $0x3] ss:$0 sm:$0xff] }
0x1372   :  { %v5068_v4 = vrot.slane %v5064_v60, 1  ;;  %v5117_v49 = vsel %vm523_vm3, %v5115_v15, %v5116_v23  ;;  %v5069_v57 = vrot.slane %v5065_v9, 1  ;;  %v5081_v38 = vrot.slane %v5077_v12, 2  ;;  %v11229_v23 = vld [vmem:[#allocation56_spill] sm:$0xff]  ;;  %v11232_v60 = vld [vmem:[#allocation59_spill] sm:$0xff] }
0x1373   :  { %v5082_v39 = vrot.slane %v5078_v59, 2  ;;  %v5119_v55 = vadd.f32 %v5117_v49, %v5110_v30  ;;  %v5059_v45 = vmul.f32 %v5058_v40, %v5054_v5  ;;  %v5126_v0 = vsel %vm537_vm4, %v5124_v33, %v5125_v3  ;;  %v11230_v5 = vld [vmem:[#allocation57_spill] sm:$0xff]  ;;  %v11231_v33 = vld [vmem:[#allocation58_spill] sm:$0xff] }
0x1374   :  { %v5133_v41 = vrot.slane %v5129_v51, 3  ;;  %v5095_v31 = vrot.slane %v5091_v25, 3  ;;  %v5070_v47 = vsel %vm523_vm3, %v5068_v4, %v5069_v57  ;;  %v5094_v19 = vrot.slane %v5090_v6, 3 }
0x1375   :  { %v5128_v42 = vadd.f32 %v5126_v0, %v5119_v55  ;;  %v5072_v36 = vadd.f32 %v5070_v47, %v5059_v45  ;;  %v5083_v56 = vsel %vm537_vm4, %v5081_v38, %v5082_v39 }
0x1376   :  { %v5135_v18 = vsel %vm551_vm5, %v5133_v41, %v5134_v58  ;;  %v5096_v26 = vsel %vm551_vm5, %v5094_v19, %v5095_v31 }
0x1377   :  { %v5137_v1 = vadd.f32 %v5135_v18, %v5128_v42  ;;  %v5085_v53 = vadd.f32 %v5083_v56, %v5072_v36 }
0x1379   :  { %v5138_v21 = vadd.f32 %v7196_v10, %v5137_v1  ;;  %v5098_v34 = vadd.f32 %v5096_v26, %v5085_v53 }
0x137b   :  { %v5140_v22 = vsub.f32 0.0, %v5138_v21  ;;  %v5105_v62 = vadd.f32 %v7196_v10, %v5098_v34 }
0x137d   :  { %v5143_v48 = vmul.f32 1.442695, %v5140_v22  ;;  %v5139_v20 = vsub.f32 0.0, %v5105_v62 }
0x137f   :  { %8139 = vpow2.f32 %v5143_v48  ;;  %v5141_v8 = vmul.f32 1.442695, %v5139_v20 }
0x1381   :  { %8141 = vpow2.f32 %v5141_v8 }
0x1389   :  { %v8140_v29 = vpop.eup %8139 }
0x138a   :  { %v5146_v28 = vadd.f32 1.0, %v8140_v29 }
0x138b   :  { %v8142_v63 = vpop.eup %8141 }
0x138c   :  { %8143 = vrcp.f32 %v5146_v28  ;;  %v5145_v24 = vadd.f32 1.0, %v8142_v63 }
0x138e   :  { %8145 = vrcp.f32 %v5145_v24 }
0x1396   :  { %v8144_v61 = vpop.eup %8143 }
0x1397   :  { %v10507_v43 = vmul.f32 %v8144_v61, %v5138_v21 }
0x1398   :  { %v8146_v40 = vpop.eup %8145 }
0x1399   :  { %11227 = vst [vmem:[#allocation61_spill] sm:$0xff] %v10507_v43  ;;  %5269 = vrot.lane.b32.xlu0 %v10507_v43, %s8628_s18  ;;  %v10511_v17 = vmul.f32 %v8146_v40, %v5105_v62 }
0x139b   :  { %11228 = vst [vmem:[#allocation60_spill] sm:$0xff] %v10511_v17  ;;  %5267 = vrot.lane.b32.xlu1 %v10511_v17, %s8628_s18  ;;  %7543 = vmatprep.mubr.msk.f32.mxu1 %vm624_vm6, %v10511_v17 }
0x139c   :  { %7544 = vmatmul.mubr.msk.f32.vlgmr.msra.gmra.mrb[12].mxu1 %vm624_vm6, %v10507_v43 }
0x140b   :  { %v5270_v36 = vpop.permute.xlu0 %5269 }
0x140d   :  { %v10550_v1 = vpop.permute.xlu1 %5267 }
0x146f   :  { %v7545_v37 = vpop.f32.mrb[12].mxu1 }
0x1470   :  { %v10519_v52 = vadd.f32 %v7545_v37, %v7205_v14  ;;  %v5240_v54 = vpop.f32.mrb[13].mxu1 }
0x1471   :  { %v5241_v12 = vadd.f32 %v7205_v14, %v5240_v54 }
0x1472   :  { %v5783_v7 = vrot.slane %v10519_v52, %v11226_v50  ;;  %v5794_v46 = vrot.slane %v10519_v52, %v11223_v35  ;;  %v5805_v44 = vrot.slane %v10519_v52, %v11224_v13  ;;  %v5816_v30 = vrot.slane %v10519_v52, %v11225_v32 }
0x1473   :  { %v5827_v51 = vrot.slane %v10519_v52, %v11229_v23  ;;  %v5838_v15 = vrot.slane %v10519_v52, %v11230_v5  ;;  %v5849_v3 = vrot.slane %v10519_v52, %v11231_v33  ;;  %v10537_v9 = vrot.slane %v10519_v52, %v11232_v60 }
0x1474   :  { %5789 = vbcast.lane.b32.xlu1 %v5783_v7, 264  ;;  %5785 = vbcast.lane.b32.xlu0 %v5783_v7, 256  ;;  %v5298_v59 = vrot.slane %v5241_v12, %v11223_v35  ;;  %v5287_v6 = vrot.slane %v5241_v12, %v11226_v50  ;;  %v5309_v58 = vrot.slane %v5241_v12, %v11224_v13  ;;  %v5251_v25 = vand.u32 2147483647, %v5241_v12 }
0x1475   :  { %v5320_v4 = vrot.slane %v5241_v12, %v11225_v32  ;;  %v5331_v49 = vrot.slane %v5241_v12, %v11229_v23  ;;  %v5342_v38 = vrot.slane %v5241_v12, %v11230_v5  ;;  %v5252_v39 = vand.u32 2147483647, %v10519_v52 }
0x1476   :  { %v5253_v57 = vsub.f32 0.0, %v5251_v25  ;;  %v5353_v45 = vrot.slane %v5241_v12, %v11231_v33  ;;  %v5364_v41 = vrot.slane %v5241_v12, %v11232_v60  ;;  %v5249_v53 = vmax.f32 %v5241_v12, 0.0 }
0x1477   :  { %v5254_v0 = vsub.f32 0.0, %v5252_v39  ;;  %v5250_v29 = vmax.f32 %v10519_v52, 0.0 }
0x1478   :  { %5800 = vbcast.lane.b32.xlu1 %v5794_v46, 264  ;;  %5796 = vbcast.lane.b32.xlu0 %v5794_v46, 256  ;;  %v5255_v55 = vmul.f32 1.442695, %v5253_v57 }
0x1479   :  { %v5257_v31 = vmul.f32 1.442695, %v5254_v0 }
0x147a   :  { %8147 = vpow2.f32 %v5255_v55 }
0x147b   :  { %8149 = vpow2.f32 %v5257_v31 }
0x147c   :  { %5811 = vbcast.lane.b32.xlu1 %v5805_v44, 264  ;;  %5807 = vbcast.lane.b32.xlu0 %v5805_v44, 256 }
0x1480   :  { %5822 = vbcast.lane.b32.xlu1 %v5816_v30, 264  ;;  %5818 = vbcast.lane.b32.xlu0 %v5816_v30, 256 }
0x1484   :  { %5833 = vbcast.lane.b32.xlu1 %v5827_v51, 264  ;;  %5829 = vbcast.lane.b32.xlu0 %v5827_v51, 256  ;;  %v8148_v42 = vpop.eup %8147 }
0x1485   :  { %v5259_v47 = vadd.f32 1.0, %v8148_v42  ;;  %v8150_v19 = vpop.eup %8149 }
0x1486   :  { %v5260_v10 = vadd.f32 1.0, %v8150_v19 }
0x1487   :  { %8151 = vlog2.f32 %v5259_v47 }
0x1488   :  { %5844 = vbcast.lane.b32.xlu1 %v5838_v15, 264  ;;  %5840 = vbcast.lane.b32.xlu0 %v5838_v15, 256  ;;  %8153 = vlog2.f32 %v5260_v10 }
0x148c   :  { %5855 = vbcast.lane.b32.xlu1 %v5849_v3, 264  ;;  %5851 = vbcast.lane.b32.xlu0 %v5849_v3, 256 }
0x1490   :  { %5866 = vbcast.lane.b32.xlu1 %v10537_v9, 264  ;;  %5862 = vbcast.lane.b32.xlu0 %v10537_v9, 256 }
0x1491   :  { %v8152_v18 = vpop.eup %8151 }
0x1492   :  { %v5262_v56 = vmul.f32 0.6931472, %v8152_v18  ;;  %v8154_v22 = vpop.eup %8153 }
0x1493   :  { %v5264_v62 = vmul.f32 0.6931472, %v8154_v22 }
0x1494   :  { %5874 = vbcast.lane.b32.xlu1 %v5783_v7, 280  ;;  %5870 = vbcast.lane.b32.xlu0 %v5783_v7, 272  ;;  %v10554_v34 = vadd.f32 %v5262_v56, %v5249_v53 }
0x1495   :  { %v5266_v28 = vadd.f32 %v5264_v62, %v5250_v29 }
0x1496   :  { %v5439_v8 = vrot.slane %v10554_v34, %v11226_v50  ;;  %v5482_v61 = vrot.slane %v10554_v34, %v11223_v35  ;;  %v5525_v52 = vrot.slane %v10554_v34, %v11224_v13  ;;  %v5697_v57 = vrot.slane %v10554_v34, %v11231_v33 }
0x1497   :  { %v5935_v37 = vrot.slane %v5266_v28, %v11226_v50  ;;  %v5740_v0 = vrot.slane %v10554_v34, %v11232_v60  ;;  %v6193_v19 = vrot.slane %v5266_v28, %v11231_v33  ;;  %v6236_v53 = vrot.slane %v5266_v28, %v11232_v60 }
0x1498   :  { %5882 = vbcast.lane.b32.xlu1 %v5794_v46, 280  ;;  %5878 = vbcast.lane.b32.xlu0 %v5794_v46, 272  ;;  %v5978_v46 = vrot.slane %v5266_v28, %v11223_v35 }
0x149c   :  { %5890 = vbcast.lane.b32.xlu1 %v5805_v44, 280  ;;  %5886 = vbcast.lane.b32.xlu0 %v5805_v44, 272  ;;  %v5568_v44 = vrot.slane %v10554_v34, %v11225_v32 }
0x14a0   :  { %5898 = vbcast.lane.b32.xlu1 %v5816_v30, 280  ;;  %5894 = vbcast.lane.b32.xlu0 %v5816_v30, 272 }
0x14a4   :  { %5906 = vbcast.lane.b32.xlu1 %v5827_v51, 280  ;;  %5902 = vbcast.lane.b32.xlu0 %v5827_v51, 272 }
0x14a8   :  { %5914 = vbcast.lane.b32.xlu1 %v5838_v15, 280  ;;  %5910 = vbcast.lane.b32.xlu0 %v5838_v15, 272  ;;  %v6021_v15 = vrot.slane %v5266_v28, %v11224_v13 }
0x14ac   :  { %5922 = vbcast.lane.b32.xlu1 %v5849_v3, 280  ;;  %5918 = vbcast.lane.b32.xlu0 %v5849_v3, 272  ;;  %v5611_v3 = vrot.slane %v10554_v34, %v11229_v23 }
0x14b0   :  { %5300 = vbcast.lane.b32.xlu0 %v5298_v59, 256  ;;  %5289 = vbcast.lane.b32.xlu1 %v5287_v6, 256 }
0x14b4   :  { %5311 = vbcast.lane.b32.xlu0 %v5309_v58, 256  ;;  %5293 = vbcast.lane.b32.xlu1 %v5287_v6, 264 }
0x14b8   :  { %5322 = vbcast.lane.b32.xlu0 %v5320_v4, 256  ;;  %5304 = vbcast.lane.b32.xlu1 %v5298_v59, 264 }
0x14bc   :  { %5333 = vbcast.lane.b32.xlu0 %v5331_v49, 256  ;;  %5315 = vbcast.lane.b32.xlu1 %v5309_v58, 264 }
0x14c0   :  { %5344 = vbcast.lane.b32.xlu0 %v5342_v38, 256  ;;  %5326 = vbcast.lane.b32.xlu1 %v5320_v4, 264 }
0x14c4   :  { %5355 = vbcast.lane.b32.xlu0 %v5353_v45, 256  ;;  %5337 = vbcast.lane.b32.xlu1 %v5331_v49, 264 }
0x14c8   :  { %5366 = vbcast.lane.b32.xlu0 %v5364_v41, 256  ;;  %5348 = vbcast.lane.b32.xlu1 %v5342_v38, 264 }
0x14cc   :  { %5374 = vbcast.lane.b32.xlu0 %v5287_v6, 272  ;;  %5359 = vbcast.lane.b32.xlu1 %v5353_v45, 264 }
0x14d0   :  { %5382 = vbcast.lane.b32.xlu0 %v5298_v59, 272  ;;  %5370 = vbcast.lane.b32.xlu1 %v5364_v41, 264 }
0x14d4   :  { %5390 = vbcast.lane.b32.xlu0 %v5309_v58, 272  ;;  %5378 = vbcast.lane.b32.xlu1 %v5287_v6, 280  ;;  %v6064_v6 = vrot.slane %v5266_v28, %v11225_v32 }
0x14d8   :  { %5398 = vbcast.lane.b32.xlu0 %v5320_v4, 272  ;;  %5386 = vbcast.lane.b32.xlu1 %v5298_v59, 280 }
0x14dc   :  { %5406 = vbcast.lane.b32.xlu0 %v5331_v49, 272  ;;  %5394 = vbcast.lane.b32.xlu1 %v5309_v58, 280  ;;  %v5654_v58 = vrot.slane %v10554_v34, %v11230_v5 }
0x14e0   :  { %5414 = vbcast.lane.b32.xlu0 %v5342_v38, 272  ;;  %5402 = vbcast.lane.b32.xlu1 %v5320_v4, 280 }
0x14e4   :  { %5422 = vbcast.lane.b32.xlu0 %v5353_v45, 272  ;;  %5410 = vbcast.lane.b32.xlu1 %v5331_v49, 280  ;;  %v6107_v49 = vrot.slane %v5266_v28, %v11229_v23 }
0x14e6   :  { %v10552_v21 = vpop.permute.xlu1 %5789  ;;  %v5786_v26 = vpop.permute.xlu0 %5785 }
0x14e8   :  { %5430 = vbcast.lane.b32.xlu0 %v5364_v41, 272  ;;  %5418 = vbcast.lane.b32.xlu1 %v5342_v38, 280  ;;  %v5274_v38 = vmul.f32 %v5270_v36, %v5266_v28 }
0x14ea   :  { %v10556_v48 = vpop.permute.xlu1 %5800  ;;  %v5797_v20 = vpop.permute.xlu0 %5796  ;;  %v5994_v10 = vrot.slane %v5274_v38, %v11223_v35 }
0x14ec   :  { %5426 = vbcast.lane.b32.xlu1 %v5353_v45, 280  ;;  %5441 = vrot.lane.b32.xlu0 %v5439_v8, %s8629_s22  ;;  %v6150_v45 = vrot.slane %v5266_v28, %v11230_v5  ;;  %v5995_v18 = vmul.f32 %v5994_v10, %v5797_v20  ;;  %v6080_v20 = vrot.slane %v5274_v38, %v11225_v32 }
0x14ed   :  { %v5996_v28 = vmul.f32 %v5994_v10, %v10556_v48  ;;  %v6166_v48 = vrot.slane %v5274_v38, %v11230_v5 }
0x14ee   :  { %v10562_v63 = vpop.permute.xlu1 %5811  ;;  %v5808_v24 = vpop.permute.xlu0 %5807 }
0x14f0   :  { %5434 = vbcast.lane.b32.xlu1 %v5364_v41, 280  ;;  %5484 = vrot.lane.b32.xlu0 %v5482_v61, %s8629_s22  ;;  %v5951_v41 = vrot.slane %v5274_v38, %v11226_v50 }
0x14f2   :  { %v10567_v40 = vpop.permute.xlu1 %5822  ;;  %v5819_v14 = vpop.permute.xlu0 %5818  ;;  %v5952_v31 = vmul.f32 %v5951_v41, %v5786_v26  ;;  %v6037_v26 = vrot.slane %v5274_v38, %v11224_v13  ;;  %v5953_v22 = vmul.f32 %v5951_v41, %v10552_v21  ;;  %v6123_v21 = vrot.slane %v5274_v38, %v11229_v23 }
0x14f3   :  { %v6081_v61 = vmul.f32 %v6080_v20, %v5819_v14  ;;  %v6082_v14 = vmul.f32 %v6080_v20, %v10567_v40  ;;  %v5273_v40 = vmul.f32 %v10550_v1, %v10554_v34 }
0x14f4   :  { %5937 = vrot.lane.b32.xlu1 %v5935_v37, %s8629_s22  ;;  %5527 = vrot.lane.b32.xlu0 %v5525_v52, %s8629_s22  ;;  %v6038_v62 = vmul.f32 %v6037_v26, %v5808_v24  ;;  %v6039_v24 = vmul.f32 %v6037_v26, %v10562_v63  ;;  %v6209_v63 = vrot.slane %v5274_v38, %v11231_v33 }
0x14f5   :  { %v5498_v10 = vrot.slane %v5273_v40, %v11223_v35  ;;  %v5541_v26 = vrot.slane %v5273_v40, %v11224_v13  ;;  %v5584_v35 = vrot.slane %v5273_v40, %v11225_v32  ;;  %v5627_v13 = vrot.slane %v5273_v40, %v11229_v23 }
0x14f6   :  { %v10574_v54 = vpop.permute.xlu1 %5833  ;;  %v5830_v7 = vpop.permute.xlu0 %5829  ;;  %v5670_v32 = vrot.slane %v5273_v40, %v11230_v5  ;;  %v5713_v23 = vrot.slane %v5273_v40, %v11231_v33 }
0x14f8   :  { %5980 = vrot.lane.b32.xlu1 %v5978_v46, %s8629_s22  ;;  %5570 = vrot.lane.b32.xlu0 %v5568_v44, %s8629_s22  ;;  %v6124_v46 = vmul.f32 %v6123_v21, %v5830_v7  ;;  %v6125_v7 = vmul.f32 %v6123_v21, %v10574_v54  ;;  %v5455_v54 = vrot.slane %v5273_v40, %v11226_v50 }
0x14fa   :  { %v10581_v30 = vpop.permute.xlu1 %5844  ;;  %v5841_v51 = vpop.permute.xlu0 %5840 }
0x14fc   :  { %6023 = vrot.lane.b32.xlu1 %v6021_v15, %s8629_s22  ;;  %5613 = vrot.lane.b32.xlu0 %v5611_v3, %s8629_s22  ;;  %v6167_v3 = vmul.f32 %v6166_v48, %v5841_v51  ;;  %v6168_v51 = vmul.f32 %v6166_v48, %v10581_v30 }
0x14fe   :  { %v10588_v12 = vpop.permute.xlu1 %5855  ;;  %v5852_v59 = vpop.permute.xlu0 %5851 }
0x1500   :  { %6066 = vrot.lane.b32.xlu1 %v6064_v6, %s8629_s22  ;;  %5656 = vrot.lane.b32.xlu0 %v5654_v58, %s8629_s22 }
0x1502   :  { %v10595_v4 = vpop.permute.xlu1 %5866  ;;  %v10597_v25 = vpop.permute.xlu0 %5862 }
0x1504   :  { %6109 = vrot.lane.b32.xlu1 %v6107_v49, %s8629_s22  ;;  %5699 = vrot.lane.b32.xlu0 %v5697_v57, %s8629_s22  ;;  %v6210_v49 = vmul.f32 %v6209_v63, %v5852_v59  ;;  %v6211_v59 = vmul.f32 %v6209_v63, %v10588_v12 }
0x1506   :  { %v10604_v39 = vpop.permute.xlu1 %5874  ;;  %v10606_v55 = vpop.permute.xlu0 %5870 }
0x1508   :  { %6152 = vrot.lane.b32.xlu1 %v6150_v45, %s8629_s22  ;;  %5742 = vrot.lane.b32.xlu0 %v5740_v0, %s8629_s22  ;;  %v6252_v0 = vrot.slane %v5274_v38, %v11232_v60 }
0x150a   :  { %v10614_v42 = vpop.permute.xlu1 %5882  ;;  %v10616_v47 = vpop.permute.xlu0 %5878  ;;  %v6253_v41 = vmul.f32 %v6252_v0, %v10597_v25  ;;  %v6254_v30 = vmul.f32 %v6252_v0, %v10595_v4 }
0x150c   :  { %6195 = vrot.lane.b32.xlu1 %v6193_v19, %s8629_s22  ;;  %5956 = vrot.lane.b32.xlu0 %v5952_v31, %s8629_s22 }
0x150e   :  { %v10622_v36 = vpop.permute.xlu1 %5890  ;;  %v10624_v56 = vpop.permute.xlu0 %5886 }
0x1510   :  { %6238 = vrot.lane.b32.xlu1 %v6236_v53, %s8629_s22  ;;  %5999 = vrot.lane.b32.xlu0 %v5995_v18, %s8629_s22 }
0x1512   :  { %v10631_v8 = vpop.permute.xlu1 %5898  ;;  %v10633_v29 = vpop.permute.xlu0 %5894 }
0x1514   :  { %5958 = vrot.lane.b32.xlu1 %v5953_v22, %s8629_s22  ;;  %6042 = vrot.lane.b32.xlu0 %v6038_v62, %s8629_s22 }
0x1516   :  { %v10639_v37 = vpop.permute.xlu1 %5906  ;;  %v10641_v52 = vpop.permute.xlu0 %5902 }
0x1518   :  { %6001 = vrot.lane.b32.xlu1 %v5996_v28, %s8629_s22  ;;  %6085 = vrot.lane.b32.xlu0 %v6081_v61, %s8629_s22 }
0x151a   :  { %v10647_v44 = vpop.permute.xlu1 %5914  ;;  %v10649_v15 = vpop.permute.xlu0 %5910 }
0x151c   :  { %6044 = vrot.lane.b32.xlu1 %v6039_v24, %s8629_s22  ;;  %6128 = vrot.lane.b32.xlu0 %v6124_v46, %s8629_s22 }
0x151e   :  { %v10655_v6 = vpop.permute.xlu1 %5922  ;;  %v10657_v58 = vpop.permute.xlu0 %5918 }
0x1520   :  { %6087 = vrot.lane.b32.xlu1 %v6082_v14, %s8629_s22  ;;  %6171 = vrot.lane.b32.xlu0 %v6167_v3, %s8629_s22 }
0x1522   :  { %v5301_v57 = vpop.permute.xlu0 %5300  ;;  %v5290_v45 = vpop.permute.xlu1 %5289 }
0x1523   :  { %v5456_v12 = vmul.f32 %v5455_v54, %v5290_v45  ;;  %v5499_v4 = vmul.f32 %v5498_v10, %v5301_v57 }
0x1524   :  { %6130 = vrot.lane.b32.xlu1 %v6125_v7, %s8629_s22  ;;  %6214 = vrot.lane.b32.xlu0 %v6210_v49, %s8629_s22 }
0x1526   :  { %v5312_v31 = vpop.permute.xlu0 %5311  ;;  %v5294_v19 = vpop.permute.xlu1 %5293 }
0x1527   :  { %v5457_v38 = vmul.f32 %v5455_v54, %v5294_v19  ;;  %v5542_v24 = vmul.f32 %v5541_v26, %v5312_v31 }
0x1528   :  { %6173 = vrot.lane.b32.xlu1 %v6168_v51, %s8629_s22  ;;  %6257 = vrot.lane.b32.xlu0 %v6253_v41, %s8629_s22  ;;  %v5756_v51 = vrot.slane %v5273_v40, %v11232_v60 }
0x152a   :  { %v5323_v1 = vpop.permute.xlu0 %5322  ;;  %v5305_v34 = vpop.permute.xlu1 %5304 }
0x152b   :  { %v5500_v25 = vmul.f32 %v5498_v10, %v5305_v34  ;;  %v5585_v3 = vmul.f32 %v5584_v35, %v5323_v1  ;;  %v7212_v34 = vld [vmem:[%s11158_s13 + $0xc0] sm:$0xff]  ;;  %v7213_v10 = vld [vmem:[%s11158_s13 + $0xc8] sm:$0xff] }
0x152c   :  { %6216 = vrot.lane.b32.xlu1 %v6211_v59, %s8629_s22  ;;  %5462 = vrot.lane.b32.xlu0 %v5457_v38, %s8629_s22 }
0x152e   :  { %v5334_v18 = vpop.permute.xlu0 %5333  ;;  %v5316_v53 = vpop.permute.xlu1 %5315 }
0x152f   :  { %v5543_v22 = vmul.f32 %v5541_v26, %v5316_v53  ;;  %v5628_v46 = vmul.f32 %v5627_v13, %v5334_v18  ;;  %v7208_v18 = vld [vmem:[%s11159_s2 + $0x30] sm:$0xff]  ;;  %v7747_v53 = vpack.c.bf16 %v7213_v10, %v7212_v34 }
0x1530   :  { %6259 = vrot.lane.b32.xlu1 %v6254_v30, %s8629_s22  ;;  %5505 = vrot.lane.b32.xlu0 %v5500_v25, %s8629_s22  ;;  %v5278_v26 = vmul.f32 1.442695, %v7208_v18 }
0x1531   :  { %7748 = vmatprep.subr.bf16.mxu0 %v7747_v53 }
0x1532   :  { %v5345_v62 = vpop.permute.xlu0 %5344  ;;  %v5327_v20 = vpop.permute.xlu1 %5326  ;;  %7750 = vmatpush3.bf16.msra.mxu0 %v7747_v53  ;;  %8155 = vpow2.f32 %v5278_v26 }
0x1533   :  { %v5586_v28 = vmul.f32 %v5584_v35, %v5327_v20  ;;  %v5671_v63 = vmul.f32 %v5670_v32, %v5345_v62  ;;  %v7217_v35 = vld [vmem:[%s11158_s13 + $0xe8] sm:$0xff] }
0x1534   :  { %5548 = vrot.lane.b32.xlu0 %v5543_v22, %s8629_s22  ;;  %5460 = vrot.lane.b32.xlu1 %v5456_v12, %s8629_s22  ;;  %v7214_v12 = vld [vmem:[%s11158_s13 + $0xd0] sm:$0xff] }
0x1536   :  { %v5356_v61 = vpop.permute.xlu0 %5355  ;;  %v5338_v21 = vpop.permute.xlu1 %5337 }
0x1537   :  { %v5714_v57 = vmul.f32 %v5713_v23, %v5356_v61  ;;  %v5629_v45 = vmul.f32 %v5627_v13, %v5338_v21  ;;  %v7209_v61 = vld [vmem:[%s11159_s2 + $0x38] sm:$0xff]  ;;  %v7218_v13 = vld [vmem:[%s11158_s13 + $0xf0] sm:$0xff] }
0x1538   :  { %5591 = vrot.lane.b32.xlu0 %v5586_v28, %s8629_s22  ;;  %5503 = vrot.lane.b32.xlu1 %v5499_v4, %s8629_s22 }
0x153a   :  { %v5367_v48 = vpop.permute.xlu0 %5366  ;;  %v5349_v14 = vpop.permute.xlu1 %5348 }
0x153b   :  { %v5757_v41 = vmul.f32 %v5756_v51, %v5367_v48  ;;  %v5672_v31 = vmul.f32 %v5670_v32, %v5349_v14 }
0x153c   :  { %5632 = vrot.lane.b32.xlu0 %v5628_v46, %s8629_s22  ;;  %5546 = vrot.lane.b32.xlu1 %v5542_v24, %s8629_s22  ;;  %v7219_v24 = vld [vmem:[%s11158_s13 + $0xf8] sm:$0xff]  ;;  %v5280_v46 = vmul.f32 1.442695, %v7209_v61 }
0x153d   :  { %v7759_v48 = vpack.c.bf16 %v7219_v24, %v7218_v13 }
0x153e   :  { %v10690_v7 = vpop.permute.xlu0 %5374  ;;  %v5360_v49 = vpop.permute.xlu1 %5359  ;;  %8157 = vpow2.f32 %v5280_v46 }
0x153f   :  { %v5715_v54 = vmul.f32 %v5713_v23, %v5360_v49 }
0x1540   :  { %5675 = vrot.lane.b32.xlu0 %v5671_v63, %s8629_s22  ;;  %5589 = vrot.lane.b32.xlu1 %v5585_v3, %s8629_s22  ;;  %v8156_v63 = vpop.eup %8155 }
0x1541   :  { %v10750_v49 = vsub.f32 0.0, %v8156_v63 }
0x1542   :  { %v10695_v0 = vpop.permute.xlu0 %5382  ;;  %v5371_v5 = vpop.permute.xlu1 %5370 }
0x1543   :  { %v5758_v40 = vmul.f32 %v5756_v51, %v5371_v5 }
0x1544   :  { %5718 = vrot.lane.b32.xlu0 %v5714_v57, %s8629_s22  ;;  %5634 = vrot.lane.b32.xlu1 %v5629_v45, %s8629_s22 }
0x1546   :  { %v10700_v33 = vpop.permute.xlu0 %5390  ;;  %v10702_v19 = vpop.permute.xlu1 %5378 }
0x1548   :  { %5761 = vrot.lane.b32.xlu0 %v5757_v41, %s8629_s22  ;;  %5677 = vrot.lane.b32.xlu1 %v5672_v31, %s8629_s22  ;;  %v8158_v41 = vpop.eup %8157 }
0x154a   :  { %v10706_v59 = vpop.permute.xlu0 %5398  ;;  %v10708_v60 = vpop.permute.xlu1 %5386 }
0x154c   :  { %5926 = vbcast.lane.b32.xlu0 %v10537_v9, 272  ;;  %5720 = vrot.lane.b32.xlu1 %v5715_v54, %s8629_s22  ;;  %v10757_v54 = vsub.f32 0.0, %v8158_v41 }
0x154e   :  { %v10712_v38 = vpop.permute.xlu0 %5406  ;;  %v10714_v1 = vpop.permute.xlu1 %5394 }
0x1550   :  { %6302 = vrot.lane.b32.xlu0 %v10494_v2, %s8613_s10  ;;  %5763 = vrot.lane.b32.xlu1 %v5758_v40, %s8629_s22  ;;  %v7215_v2 = vld [vmem:[%s11158_s13 + $0xd8] sm:$0xff] }
0x1551   :  { %v7751_v20 = vpack.c.bf16 %v7215_v2, %v7214_v12 }
0x1552   :  { %v10721_v30 = vpop.permute.xlu0 %5414  ;;  %v10723_v25 = vpop.permute.xlu1 %5402 }
0x1553   :  { %7752 = vmatprep.subr.bf16.mxu0 %v7751_v20 }
0x1554   :  { %5930 = vbcast.lane.b32.xlu1 %v10537_v9, 280  ;;  %7754 = vmatpush3.bf16.msra.mxu0 %v7751_v20  ;;  %v7216_v9 = vld [vmem:[%s11158_s13 + $0xe0] sm:$0xff] }
0x1555   :  { %v7755_v21 = vpack.c.bf16 %v7217_v35, %v7216_v9 }
0x1556   :  { %v10729_v22 = vpop.permute.xlu0 %5422  ;;  %v10731_v62 = vpop.permute.xlu1 %5410 }
0x1557   :  { %11233 = vst [vmem:[#allocation47_spill] sm:$0xff] %v10729_v22  ;;  %7756 = vmatprep.subr.bf16.mxu0 %v7755_v21 }
0x1558   :  { %6304 = vrot.lane.b32.xlu1 %v10489_v11, %s8613_s10  ;;  %7758 = vmatpush3.bf16.msra.mxu0 %v7755_v21  ;;  %s11245_s10 = sld [smem:[#allocation41_spill]] }
0x1559   :  { %7760 = vmatprep.subr.bf16.mxu0 %v7759_v48 }
0x155a   :  { %v10737_v4 = vpop.permute.xlu0 %5430  ;;  %v10739_v28 = vpop.permute.xlu1 %5418 }
0x155b   :  { %11234 = vst [vmem:[#allocation54_spill] sm:$0xff] %v10737_v4 }
0x155c   :  { %7762 = vmatpush3.bf16.msra.mxu0 %v7759_v48 }
0x155e   :  { %v10744_v14 = vpop.permute.xlu1 %5426  ;;  %v5442_v11 = vpop.permute.xlu0 %5441 }
0x155f   :  { %11235 = vst [vmem:[#allocation48_spill] sm:$0xff] %v10744_v14 }
0x1562   :  { %v10746_v32 = vpop.permute.xlu1 %5434  ;;  %v10748_v3 = vpop.permute.xlu0 %5484 }
0x1563   :  { %11236 = vst [vmem:[#allocation55_spill] sm:$0xff] %v10746_v32 }
0x1566   :  { %v5938_v23 = vpop.permute.xlu1 %5937  ;;  %v10752_v57 = vpop.permute.xlu0 %5527 }
0x1567   :  { %v5940_v45 = vmul.f32 %v5938_v23, %v10750_v49  ;;  %v5941_v18 = vmul.f32 %v5938_v23, %v10757_v54 }
0x1569   :  { %v5942_v31 = vmul.f32 1.442695, %v5940_v45  ;;  %v5944_v20 = vmul.f32 1.442695, %v5941_v18 }
0x156a   :  { %v5981_v5 = vpop.permute.xlu1 %5980  ;;  %v10755_v51 = vpop.permute.xlu0 %5570 }
0x156b   :  { %v5983_v10 = vmul.f32 %v5981_v5, %v10750_v49  ;;  %8159 = vpow2.f32 %v5942_v31  ;;  %v5984_v9 = vmul.f32 %v5981_v5, %v10757_v54 }
0x156d   :  { %v5985_v12 = vmul.f32 1.442695, %v5983_v10  ;;  %v5987_v46 = vmul.f32 1.442695, %v5984_v9 }
0x156e   :  { %v6024_v40 = vpop.permute.xlu1 %6023  ;;  %v10759_v34 = vpop.permute.xlu0 %5613 }
0x156f   :  { %v6026_v2 = vmul.f32 %v6024_v40, %v10750_v49  ;;  %8161 = vpow2.f32 %v5985_v12  ;;  %v6027_v48 = vmul.f32 %v6024_v40, %v10757_v54 }
0x1570   :  { %8163 = vpow2.f32 %v5944_v20 }
0x1571   :  { %v6028_v21 = vmul.f32 1.442695, %v6026_v2  ;;  %v6030_v5 = vmul.f32 1.442695, %v6027_v48 }
0x1572   :  { %v6067_v53 = vpop.permute.xlu1 %6066  ;;  %v10763_v26 = vpop.permute.xlu0 %5656 }
0x1573   :  { %v6069_v13 = vmul.f32 %v6067_v53, %v10750_v49  ;;  %8165 = vpow2.f32 %v6028_v21  ;;  %v6070_v18 = vmul.f32 %v6067_v53, %v10757_v54  ;;  %v5487_v53 = vmul.f32 %v10748_v3, %v10750_v49 }
0x1574   :  { %8167 = vpow2.f32 %v5987_v46  ;;  %v5445_v46 = vmul.f32 %v5442_v11, %v10757_v54 }
0x1575   :  { %v8160_v24 = vpop.eup %8159  ;;  %v6071_v45 = vmul.f32 1.442695, %v6069_v13  ;;  %v5444_v13 = vmul.f32 %v5442_v11, %v10750_v49 }
0x1576   :  { %v6110_v35 = vpop.permute.xlu1 %6109  ;;  %v10767_v61 = vpop.permute.xlu0 %5699  ;;  %v5946_v41 = vmul.f32 0.0, %v8160_v24  ;;  %v6073_v24 = vmul.f32 1.442695, %v6070_v18  ;;  %v5448_v4 = vmul.f32 1.442695, %v5445_v46 }
0x1577   :  { %8169 = vpow2.f32 %v6071_v45  ;;  %v6112_v2 = vmul.f32 %v6110_v35, %v10750_v49 }
0x1578   :  { %8171 = vpow2.f32 %v6030_v5  ;;  %v5446_v5 = vmul.f32 1.442695, %v5444_v13 }
0x1579   :  { %v8162_v20 = vpop.eup %8161  ;;  %v6114_v48 = vmul.f32 1.442695, %v6112_v2  ;;  %8173 = vpow2.f32 %v6073_v24  ;;  %v5489_v2 = vmul.f32 1.442695, %v5487_v53 }
0x157a   :  { %v6153_v63 = vpop.permute.xlu1 %6152  ;;  %v10771_v23 = vpop.permute.xlu0 %5742 }
0x157b   :  { %v8164_v9 = vpop.eup %8163  ;;  %8175 = vpow2.f32 %v6114_v48  ;;  %v6155_v11 = vmul.f32 %v6153_v63, %v10750_v49  ;;  %v6156_v14 = vmul.f32 %v6153_v63, %v10757_v54 }
0x157c   :  { %v5947_v45 = vmul.f32 0.0, %v8164_v9  ;;  %8177 = vpow2.f32 %v5446_v5 }
0x157d   :  { %v8166_v27 = vpop.eup %8165  ;;  %8179 = vpow2.f32 %v5448_v4  ;;  %v6157_v48 = vmul.f32 1.442695, %v6155_v11 }
0x157e   :  { %v10773_v31 = vpop.permute.xlu1 %6195  ;;  %v5957_v10 = vpop.permute.xlu0 %5956  ;;  %8181 = vpow2.f32 %v5489_v2 }
0x157f   :  { %v5962_v12 = vadd.f32 %v5957_v10, %v5946_v41  ;;  %v8168_v32 = vpop.eup %8167 }
0x1581   :  { %v5989_v50 = vmul.f32 %v8162_v20, %v5962_v12  ;;  %v6113_v20 = vmul.f32 %v6110_v35, %v10757_v54  ;;  %v8170_v9 = vpop.eup %8169  ;;  %v5964_v2 = vmul.f32 %v5962_v12, %v10606_v55 }
0x1582   :  { %v10777_v40 = vpop.permute.xlu1 %6238  ;;  %v6000_v21 = vpop.permute.xlu0 %5999 }
0x1583   :  { %v6005_v16 = vadd.f32 %v6000_v21, %v5989_v50  ;;  %v5488_v50 = vmul.f32 %v10748_v3, %v10757_v54  ;;  %v6116_v35 = vmul.f32 1.442695, %v6113_v20  ;;  %v8172_v46 = vpop.eup %8171 }
0x1585   :  { %v6032_v10 = vmul.f32 %v8166_v27, %v6005_v16  ;;  %v5530_v27 = vmul.f32 %v10752_v57, %v10750_v49  ;;  %v5491_v3 = vmul.f32 1.442695, %v5488_v50  ;;  %8183 = vpow2.f32 %v6116_v35 }
0x1586   :  { %v5959_v41 = vpop.permute.xlu1 %5958  ;;  %v6043_v43 = vpop.permute.xlu0 %6042  ;;  %8185 = vpow2.f32 %v6157_v48  ;;  %v6198_v50 = vmul.f32 %v10773_v31, %v10750_v49  ;;  %v5617_v48 = vmul.f32 %v10759_v34, %v10757_v54 }
0x1587   :  { %v5963_v17 = vadd.f32 %v5959_v41, %v5947_v45  ;;  %v6048_v18 = vadd.f32 %v6043_v43, %v6032_v10  ;;  %v5531_v43 = vmul.f32 %v10752_v57, %v10757_v54  ;;  %v5573_v10 = vmul.f32 %v10755_v51, %v10750_v49 }
0x1588   :  { %8187 = vpow2.f32 %v5491_v3 }
0x1589   :  { %v5990_v21 = vmul.f32 %v8168_v32, %v5963_v17  ;;  %v6075_v41 = vmul.f32 %v8170_v9, %v6048_v18  ;;  %v5532_v32 = vmul.f32 1.442695, %v5530_v27  ;;  %v5965_v5 = vmul.f32 %v5963_v17, %v10604_v39  ;;  %v8174_v27 = vpop.eup %8173 }
0x158a   :  { %v6002_v13 = vpop.permute.xlu1 %6001  ;;  %v6086_v24 = vpop.permute.xlu0 %6085  ;;  %v5534_v11 = vmul.f32 1.442695, %v5531_v43  ;;  %v5574_v17 = vmul.f32 %v10755_v51, %v10757_v54  ;;  %v6007_v39 = vmul.f32 %v6005_v16, %v10616_v47  ;;  %v5616_v16 = vmul.f32 %v10759_v34, %v10750_v49 }
0x158b   :  { %v6006_v45 = vadd.f32 %v6002_v13, %v5990_v21  ;;  %v10796_v9 = vadd.f32 %v6086_v24, %v6075_v41  ;;  %v8176_v63 = vpop.eup %8175  ;;  %8189 = vpow2.f32 %v5532_v32  ;;  %v5967_v13 = vsel %vm624_vm6, %v5965_v5, 0.0 }
0x158c   :  { %v6159_v41 = vmul.f32 1.442695, %v6156_v14  ;;  %8191 = vpow2.f32 %v5534_v11  ;;  %v6200_v47 = vmul.f32 1.442695, %v6198_v50  ;;  %v5966_v51 = vsel %vm624_vm6, %v5964_v2, 0.0  ;;  %v8178_v43 = vpop.eup %8177 }
0x158d   :  { %v6033_v53 = vmul.f32 %v8172_v46, %v6006_v45  ;;  %v6008_v4 = vmul.f32 %v6006_v45, %v10614_v42  ;;  %v5575_v42 = vmul.f32 1.442695, %v5573_v10  ;;  %v6118_v12 = vmul.f32 %v8176_v63, %v10796_v9  ;;  %v8180_v32 = vpop.eup %8179 }
0x158e   :  { %v6045_v20 = vpop.permute.xlu1 %6044  ;;  %v6129_v21 = vpop.permute.xlu0 %6128  ;;  %v6009_v3 = vsel %vm624_vm6, %v6007_v39, 0.0  ;;  %v5968_v14 = vadd.f32 %v5967_v13, %v5966_v51  ;;  %v6199_v11 = vmul.f32 %v10773_v31, %v10757_v54  ;;  %v5618_v2 = vmul.f32 1.442695, %v5616_v16 }
0x158f   :  { %v6049_v57 = vadd.f32 %v6045_v20, %v6033_v53  ;;  %v6010_v46 = vsel %vm624_vm6, %v6008_v4, 0.0  ;;  %v6050_v53 = vmul.f32 %v6048_v18, %v10624_v56  ;;  %8193 = vpow2.f32 %v5575_v42 }
0x1590   :  { %v6011_v10 = vadd.f32 %v6010_v46, %v6009_v3  ;;  %8195 = vpow2.f32 %v6159_v41  ;;  %v10824_v50 = vadd.f32 %v6129_v21, %v6118_v12  ;;  %v5659_v56 = vmul.f32 %v10763_v26, %v10750_v49 }
0x1591   :  { %v6076_v24 = vmul.f32 %v8174_v27, %v6049_v57  ;;  %v6051_v55 = vmul.f32 %v6049_v57, %v10622_v36  ;;  %v5577_v36 = vmul.f32 1.442695, %v5574_v17  ;;  %v10819_v57 = vpop.eup %8181  ;;  %8197 = vpow2.f32 %v6200_v47 }
0x1592   :  { %v6088_v35 = vpop.permute.xlu1 %6087  ;;  %v10805_v45 = vpop.permute.xlu0 %6171  ;;  %v10828_v18 = vmul.f32 0.0, %v8178_v43  ;;  %v5620_v17 = vmul.f32 1.442695, %v5617_v48  ;;  %v6241_v39 = vmul.f32 %v10777_v40, %v10750_v49  ;;  %v5969_v63 = vrot.slane %v5968_v14, 4 }
0x1593   :  { %v6092_v5 = vadd.f32 %v6088_v35, %v6076_v24  ;;  %v6053_v34 = vsel %vm624_vm6, %v6051_v55, 0.0  ;;  %v8184_v27 = vpop.eup %8183  ;;  %v6052_v42 = vsel %vm624_vm6, %v6050_v53, 0.0  ;;  %v5660_v21 = vmul.f32 %v10763_v26, %v10757_v54 }
0x1594   :  { %v8186_v31 = vpop.eup %8185  ;;  %v6012_v13 = vrot.slane %v6011_v10, 4  ;;  %v6054_v24 = vadd.f32 %v6053_v34, %v6052_v42  ;;  %8199 = vpow2.f32 %v5577_v36  ;;  %v6202_v12 = vmul.f32 1.442695, %v6199_v11 }
0x1595   :  { %v6119_v35 = vmul.f32 %v8184_v27, %v6092_v5  ;;  %v8188_v55 = vpop.eup %8187  ;;  %v6161_v16 = vmul.f32 %v8186_v31, %v10824_v50  ;;  %v5451_v47 = vmul.f32 0.0, %v8180_v32  ;;  %8201 = vpow2.f32 %v5618_v2 }
0x1596   :  { %v6131_v20 = vpop.permute.xlu1 %6130  ;;  %v10817_v4 = vpop.permute.xlu0 %6214  ;;  %v5661_v43 = vmul.f32 1.442695, %v5659_v56  ;;  %v5702_v48 = vmul.f32 %v10767_v61, %v10750_v49  ;;  %v5703_v26 = vmul.f32 %v10767_v61, %v10757_v54  ;;  %8203 = vpow2.f32 %v5620_v17 }
0x1597   :  { %v10838_v51 = vpop.eup %8189  ;;  %v6243_v3 = vmul.f32 1.442695, %v6241_v39  ;;  %v5970_v53 = vadd.f32 %v5969_v63, %v5968_v14  ;;  %v6094_v34 = vmul.f32 %v6092_v5, %v10631_v8  ;;  %v5663_v11 = vmul.f32 1.442695, %v5660_v21 }
0x1598   :  { %v8192_v36 = vpop.eup %8191  ;;  %v6013_v27 = vadd.f32 %v6012_v13, %v6011_v10  ;;  %v6055_v42 = vrot.slane %v6054_v24, 4  ;;  %v6135_v32 = vadd.f32 %v6131_v20, %v6119_v35  ;;  %8205 = vpow2.f32 %v6202_v12 }
0x1599   :  { %v6093_v56 = vmul.f32 %v10796_v9, %v10633_v29  ;;  %v6177_v22 = vadd.f32 %v10805_v45, %v6161_v16  ;;  %v10852_v17 = vpop.eup %8193  ;;  %8207 = vpow2.f32 %v5661_v43  ;;  %v5704_v8 = vmul.f32 1.442695, %v5702_v48 }
0x159a   :  { %v6174_v41 = vpop.permute.xlu1 %6173  ;;  %v10835_v46 = vpop.permute.xlu0 %6257  ;;  %v5706_v14 = vmul.f32 1.442695, %v5703_v26  ;;  %v5745_v10 = vmul.f32 %v10771_v23, %v10750_v49  ;;  %8209 = vpow2.f32 %v6243_v3  ;;  %v5971_v20 = vrot.slane %v5970_v53, 2 }
0x159b   :  { %v8196_v5 = vpop.eup %8195  ;;  %v6096_v39 = vsel %vm624_vm6, %v6094_v34, 0.0  ;;  %v5746_v9 = vmul.f32 %v10771_v23, %v10757_v54  ;;  %v6014_v45 = vrot.slane %v6013_v27, 2  ;;  %v6056_v21 = vadd.f32 %v6055_v42, %v6054_v24 }
0x159c   :  { %v8198_v29 = vpop.eup %8197  ;;  %v6162_v13 = vmul.f32 %v8196_v5, %v6135_v32  ;;  %8211 = vpow2.f32 %v5663_v11  ;;  %v6095_v49 = vsel %vm624_vm6, %v6093_v56, 0.0  ;;  %v5747_v43 = vmul.f32 1.442695, %v5745_v10 }
0x159d   :  { %v6204_v16 = vmul.f32 %v8198_v29, %v6177_v22  ;;  %8213 = vpow2.f32 %v5704_v8  ;;  %v6097_v48 = vadd.f32 %v6096_v39, %v6095_v49  ;;  %v5972_v23 = vadd.f32 %v5971_v20, %v5970_v53 }
0x159e   :  { %v10845_v31 = vpop.permute.xlu1 %6216  ;;  %v5463_v2 = vpop.permute.xlu0 %5462  ;;  %8215 = vpow2.f32 %v5706_v14  ;;  %v6137_v24 = vmul.f32 %v6135_v32, %v10639_v37  ;;  %v5749_v42 = vmul.f32 1.442695, %v5746_v9  ;;  %v6015_v11 = vadd.f32 %v6014_v45, %v6013_v27 }
0x159f   :  { %v10850_v61 = vadd.f32 %v5463_v2, %v5451_v47  ;;  %v8200_v26 = vpop.eup %8199  ;;  %v6057_v2 = vrot.slane %v6056_v21, 2  ;;  %v6178_v56 = vadd.f32 %v6174_v41, %v6162_v13  ;;  %8217 = vpow2.f32 %v5747_v43 }
0x15a0   :  { %v10866_v34 = vpop.eup %8201  ;;  %v5973_v10 = vrot.slane %v5972_v23, 1  ;;  %v6179_v27 = vmul.f32 %v6177_v22, %v10649_v15  ;;  %v6139_v41 = vsel %vm624_vm6, %v6137_v24, 0.0  ;;  %8219 = vpow2.f32 %v5749_v42 }
0x15a1   :  { %v5494_v63 = vmul.f32 %v8188_v55, %v10850_v61  ;;  %v6242_v55 = vmul.f32 %v10777_v40, %v10757_v54  ;;  %v10868_v8 = vpop.eup %8203  ;;  %v6136_v54 = vmul.f32 %v10824_v50, %v10641_v52  ;;  %v6220_v40 = vadd.f32 %v10817_v4, %v6204_v16 }
0x15a2   :  { %v10860_v35 = vpop.permute.xlu1 %6259  ;;  %v5506_v12 = vpop.permute.xlu0 %5505  ;;  %v6016_v52 = vrot.slane %v6015_v11, 1  ;;  %v6058_v50 = vadd.f32 %v6057_v2, %v6056_v21  ;;  %v10883_v43 = vadd.f32 %v5973_v10, %v5972_v23  ;;  %v6181_v21 = vsel %vm624_vm6, %v6179_v27, 0.0 }
0x15a3   :  { %v5510_v47 = vadd.f32 %v5506_v12, %v5494_v63  ;;  %v6245_v37 = vmul.f32 1.442695, %v6242_v55  ;;  %v8206_v32 = vpop.eup %8205  ;;  %v6138_v45 = vsel %vm624_vm6, %v6136_v54, 0.0  ;;  %v6222_v13 = vmul.f32 %v6220_v40, %v10657_v58 }
0x15a4   :  { %v10877_v39 = vpop.eup %8207  ;;  %v6205_v4 = vmul.f32 %v8206_v32, %v6178_v56  ;;  %v6140_v22 = vadd.f32 %v6139_v41, %v6138_v45  ;;  %v10890_v42 = vadd.f32 %v6016_v52, %v6015_v11  ;;  %v6059_v58 = vrot.slane %v6058_v50, 1 }
0x15a5   :  { %v5537_v3 = vmul.f32 %v8192_v36, %v5510_v47  ;;  %v6098_v36 = vrot.slane %v6097_v48, 4  ;;  %8221 = vpow2.f32 %v6245_v37  ;;  %v6224_v23 = vsel %vm624_vm6, %v6222_v13, 0.0 }
0x15a6   :  { %v5549_v5 = vpop.permute.xlu0 %5548  ;;  %v5461_v63 = vpop.permute.xlu1 %5460  ;;  %v5512_v54 = vmul.f32 %v5510_v47, %v10708_v60  ;;  %v6141_v37 = vrot.slane %v6140_v22, 4  ;;  %v10908_v60 = vadd.f32 %v6059_v58, %v6058_v50 }
0x15a7   :  { %v5553_v14 = vadd.f32 %v5549_v5, %v5537_v3  ;;  %v5466_v53 = vadd.f32 %v5461_v63, %v10828_v18  ;;  %v8210_v18 = vpop.eup %8209  ;;  %v6099_v15 = vadd.f32 %v6098_v36, %v6097_v48  ;;  %v6221_v48 = vadd.f32 %v10845_v31, %v6205_v4 }
0x15a8   :  { %v6247_v16 = vmul.f32 %v8210_v18, %v6220_v40  ;;  %v10921_v52 = vadd.f32 %v6141_v37, %v6140_v22 }
0x15a9   :  { %v5493_v20 = vmul.f32 %v10819_v57, %v5466_v53  ;;  %v5580_v12 = vmul.f32 %v8200_v26, %v5553_v14  ;;  %v10881_v57 = vpop.eup %8211  ;;  %v6180_v26 = vmul.f32 %v6178_v56, %v10647_v44  ;;  %v5555_v36 = vmul.f32 %v5553_v14, %v10714_v1 }
0x15aa   :  { %v5592_v29 = vpop.permute.xlu0 %5591  ;;  %v5504_v9 = vpop.permute.xlu1 %5503  ;;  %v10899_v11 = vadd.f32 %v10835_v46, %v6247_v16  ;;  %v5468_v44 = vmul.f32 %v5466_v53, %v10690_v7  ;;  %v6223_v27 = vmul.f32 %v6221_v48, %v10655_v6  ;;  %v5469_v46 = vmul.f32 %v10850_v61, %v10702_v19 }
0x15ab   :  { %v5509_v49 = vadd.f32 %v5504_v9, %v5493_v20  ;;  %v10888_v3 = vpop.eup %8213  ;;  %v6182_v47 = vsel %vm624_vm6, %v6180_v26, 0.0  ;;  %v5514_v7 = vsel %vm624_vm6, %v5512_v54, 0.0  ;;  %v5557_v6 = vsel %vm624_vm6, %v5555_v36, 0.0 }
0x15ac   :  { %v10894_v63 = vpop.eup %8215  ;;  %v5470_v19 = vsel %vm624_vm6, %v5468_v44, 0.0  ;;  %v6183_v9 = vadd.f32 %v6182_v47, %v6181_v21  ;;  %v6225_v18 = vsel %vm624_vm6, %v6223_v27, 0.0  ;;  %v5471_v45 = vsel %vm624_vm6, %v5469_v46, 0.0 }
0x15ad   :  { %v5511_v55 = vmul.f32 %v5509_v49, %v10695_v0  ;;  %v5536_v24 = vmul.f32 %v10838_v51, %v5509_v49  ;;  %v5596_v0 = vadd.f32 %v5592_v29, %v5580_v12  ;;  %v6100_v51 = vrot.slane %v6099_v15, 2  ;;  %v10906_v10 = vpop.eup %8217 }
0x15ae   :  { %v5633_v2 = vpop.permute.xlu0 %5632  ;;  %v5547_v5 = vpop.permute.xlu1 %5546  ;;  %v6143_v54 = vrot.slane %v10921_v52, 2 }
0x15af   :  { %v5552_v40 = vadd.f32 %v5547_v5, %v5536_v24  ;;  %v5513_v31 = vsel %vm624_vm6, %v5511_v55, 0.0  ;;  %v5598_v53 = vmul.f32 %v5596_v0, %v10723_v25  ;;  %v10917_v41 = vpop.eup %8219  ;;  %v10919_v20 = vadd.f32 %v6100_v51, %v6099_v15 }
0x15b0   :  { %v5515_v50 = vadd.f32 %v5514_v7, %v5513_v31  ;;  %v5623_v25 = vmul.f32 %v10868_v8, %v5596_v0  ;;  %v8222_v29 = vpop.eup %8221  ;;  %v5472_v24 = vadd.f32 %v5471_v45, %v5470_v19  ;;  %v6184_v0 = vrot.slane %v6183_v9, 4 }
0x15b1   :  { %v5554_v56 = vmul.f32 %v5552_v40, %v10700_v33  ;;  %v5579_v32 = vmul.f32 %v10852_v17, %v5552_v40  ;;  %v5600_v49 = vsel %vm624_vm6, %v5598_v53, 0.0  ;;  %v6226_v40 = vadd.f32 %v6225_v18, %v6224_v23 }
0x15b2   :  { %v5676_v1 = vpop.permute.xlu0 %5675  ;;  %v5590_v14 = vpop.permute.xlu1 %5589  ;;  %v5473_v31 = vrot.slane %v5472_v24, 4  ;;  %v6185_v27 = vadd.f32 %v6184_v0, %v6183_v9 }
0x15b3   :  { %v5556_v33 = vsel %vm624_vm6, %v5554_v56, 0.0  ;;  %v5595_v17 = vadd.f32 %v5590_v14, %v5579_v32  ;;  %v6227_v46 = vrot.slane %v6226_v40, 4 }
0x15b4   :  { %v5558_v13 = vadd.f32 %v5557_v6, %v5556_v33 }
0x15b5   :  { %v5597_v61 = vmul.f32 %v5595_v17, %v10706_v59  ;;  %v5622_v4 = vmul.f32 %v10866_v34, %v5595_v17  ;;  %v6248_v59 = vmul.f32 %v8222_v29, %v6221_v48  ;;  %v5516_v34 = vrot.slane %v5515_v50, 4 }
0x15b6   :  { %v5635_v12 = vpop.permute.xlu1 %5634  ;;  %v5719_v16 = vpop.permute.xlu0 %5718  ;;  %v5559_v51 = vrot.slane %v5558_v13, 4  ;;  %v6186_v29 = vrot.slane %v6185_v27, 2  ;;  %v6228_v9 = vadd.f32 %v6227_v46, %v6226_v40 }
0x15b7   :  { %v5599_v15 = vsel %vm624_vm6, %v5597_v61, 0.0  ;;  %v5638_v22 = vadd.f32 %v5633_v2, %v5622_v4  ;;  %v5639_v55 = vadd.f32 %v5635_v12, %v5623_v25  ;;  %v6264_v53 = vadd.f32 %v10860_v35, %v6248_v59  ;;  %v11237_v61 = vld [vmem:[#allocation47_spill] sm:$0xff] }
0x15b8   :  { %v5601_v58 = vadd.f32 %v5600_v49, %v5599_v15  ;;  %v11238_v15 = vld [vmem:[#allocation48_spill] sm:$0xff] }
0x15b9   :  { %v5640_v8 = vmul.f32 %v5638_v22, %v10712_v38  ;;  %v5665_v21 = vmul.f32 %v10877_v39, %v5638_v22  ;;  %v5641_v26 = vmul.f32 %v5639_v55, %v10731_v62  ;;  %v5666_v5 = vmul.f32 %v10881_v57, %v5639_v55 }
0x15ba   :  { %v5678_v2 = vpop.permute.xlu1 %5677  ;;  %v5517_v38 = vadd.f32 %v5516_v34, %v5515_v50  ;;  %v5602_v56 = vrot.slane %v5601_v58, 4  ;;  %v5762_v32 = vpop.permute.xlu0 %5761 }
0x15bb   :  { %v5681_v37 = vadd.f32 %v5676_v1, %v5665_v21  ;;  %v5642_v48 = vsel %vm624_vm6, %v5640_v8, 0.0  ;;  %v5643_v36 = vsel %vm624_vm6, %v5641_v26, 0.0  ;;  %v5682_v44 = vadd.f32 %v5678_v2, %v5666_v5 }
0x15bc   :  { %v5644_v39 = vadd.f32 %v5643_v36, %v5642_v48  ;;  %v5560_v1 = vadd.f32 %v5559_v51, %v5558_v13  ;;  %v5518_v50 = vrot.slane %v5517_v38, 2  ;;  %v6229_v5 = vrot.slane %v6228_v9, 2 }
0x15bd   :  { %v5683_v62 = vmul.f32 %v5681_v37, %v10721_v30  ;;  %v5708_v57 = vmul.f32 %v10888_v3, %v5681_v37  ;;  %v5684_v47 = vmul.f32 %v5682_v44, %v10739_v28  ;;  %v5709_v23 = vmul.f32 %v10894_v63, %v5682_v44 }
0x15be   :  { %v5645_v14 = vrot.slane %v5644_v39, 4  ;;  %v5721_v7 = vpop.permute.xlu1 %5720  ;;  %v5474_v30 = vadd.f32 %v5473_v31, %v5472_v24  ;;  %v5603_v3 = vadd.f32 %v5602_v56, %v5601_v58  ;;  %v5561_v18 = vrot.slane %v5560_v1, 2  ;;  %v5927_v49 = vpop.permute.xlu0 %5926 }
0x15bf   :  { %v5724_v33 = vadd.f32 %v5719_v16, %v5708_v57  ;;  %v5685_v17 = vsel %vm624_vm6, %v5683_v62, 0.0  ;;  %v5686_v6 = vsel %vm624_vm6, %v5684_v47, 0.0  ;;  %v5725_v25 = vadd.f32 %v5721_v7, %v5709_v23 }
0x15c0   :  { %v5687_v19 = vadd.f32 %v5686_v6, %v5685_v17  ;;  %v5646_v4 = vadd.f32 %v5645_v14, %v5644_v39  ;;  %v5475_v55 = vrot.slane %v5474_v30, 2  ;;  %v5519_v59 = vadd.f32 %v5518_v50, %v5517_v38 }
0x15c1   :  { %v5726_v28 = vmul.f32 %v5724_v33, %v11237_v61  ;;  %v5751_v63 = vmul.f32 %v10906_v10, %v5724_v33  ;;  %v5727_v22 = vmul.f32 %v5725_v25, %v11238_v15  ;;  %v5752_v16 = vmul.f32 %v10917_v41, %v5725_v25  ;;  %v11239_v10 = vld [vmem:[#allocation54_spill] sm:$0xff]  ;;  %v11240_v41 = vld [vmem:[#allocation55_spill] sm:$0xff] }
0x15c2   :  { %v5688_v45 = vrot.slane %v5687_v19, 4  ;;  %v5764_v35 = vpop.permute.xlu1 %5763  ;;  %v5604_v24 = vrot.slane %v5603_v3, 2  ;;  %v5647_v58 = vrot.slane %v5646_v4, 2  ;;  %v6265_v40 = vmul.f32 %v10899_v11, %v5927_v49 }
0x15c3   :  { %v5728_v13 = vsel %vm624_vm6, %v5726_v28, 0.0  ;;  %v5767_v12 = vadd.f32 %v5762_v32, %v5751_v63  ;;  %v5729_v21 = vsel %vm624_vm6, %v5727_v22, 0.0  ;;  %v5768_v26 = vadd.f32 %v5764_v35, %v5752_v16 }
0x15c4   :  { %v5689_v34 = vadd.f32 %v5688_v45, %v5687_v19  ;;  %v5730_v51 = vadd.f32 %v5729_v21, %v5728_v13  ;;  %v5562_v37 = vadd.f32 %v5561_v18, %v5560_v1  ;;  %v6144_v31 = vadd.f32 %v6143_v54, %v10921_v52 }
0x15c5   :  { %v5769_v8 = vmul.f32 %v5767_v12, %v11239_v10  ;;  %v5770_v36 = vmul.f32 %v5768_v26, %v11240_v41  ;;  %v5476_v38 = vadd.f32 %v5475_v55, %v5474_v30  ;;  %v5605_v56 = vadd.f32 %v5604_v24, %v5603_v3 }
0x15c6   :  { %v5690_v0 = vrot.slane %v5689_v34, 2  ;;  %v5931_v2 = vpop.permute.xlu1 %5930  ;;  %v5731_v39 = vrot.slane %v5730_v51, 4  ;;  %v5520_v62 = vrot.slane %v5519_v59, 1  ;;  %v5648_v57 = vadd.f32 %v5647_v58, %v5646_v4 }
0x15c7   :  { %v5771_v48 = vsel %vm624_vm6, %v5769_v8, 0.0  ;;  %v6266_v44 = vmul.f32 %v6264_v53, %v5931_v2  ;;  %v5772_v32 = vsel %vm624_vm6, %v5770_v36, 0.0  ;;  %v6267_v23 = vsel %vm624_vm6, %v6265_v40, 0.0 }
0x15c8   :  { %v5691_v11 = vadd.f32 %v5690_v0, %v5689_v34  ;;  %v5732_v46 = vadd.f32 %v5731_v39, %v5730_v51  ;;  %v5773_v1 = vadd.f32 %v5772_v32, %v5771_v48  ;;  %v6187_v14 = vadd.f32 %v6186_v29, %v6185_v27  ;;  %v6303_v32 = vpop.permute.xlu0 %6302 }
0x15c9   :  { %v6268_v47 = vsel %vm624_vm6, %v6266_v44, 0.0  ;;  %v6230_v7 = vadd.f32 %v6229_v5, %v6228_v9  ;;  %v5563_v33 = vrot.slane %v5562_v37, 1  ;;  %v5477_v17 = vrot.slane %v5476_v38, 1  ;;  %v11241_v44 = vld [vmem:[#allocation60_spill] sm:$0xff] }
0x15ca   :  { %v6269_v53 = vadd.f32 %v6268_v47, %v6267_v23  ;;  %v5606_v52 = vrot.slane %v5605_v56, 1  ;;  %v5733_v54 = vrot.slane %v5732_v46, 2  ;;  %v5774_v6 = vrot.slane %v5773_v1, 4 }
0x15cb   :  { %v6102_v30 = vrot.slane %v10919_v20, 1  ;;  %v6145_v50 = vrot.slane %v6144_v31, 1  ;;  %v5649_v3 = vrot.slane %v5648_v57, 1  ;;  %v5521_v61 = vadd.f32 %v5520_v62, %v5519_v59 }
0x15cc   :  { %v6270_v19 = vrot.slane %v6269_v53, 4  ;;  %v5692_v28 = vrot.slane %v5691_v11, 1  ;;  %v5734_v4 = vadd.f32 %v5733_v54, %v5732_v46  ;;  %v5775_v63 = vadd.f32 %v5774_v6, %v5773_v1  ;;  %v7220_v1 = vld [vmem:[#allocation16 + $0x3] ss:$0 sm:$0xff]  ;;  %v11244_v54 = vld [vmem:[#allocation63_spill] sm:$0xff] }
0x15cd   :  { %v6188_v25 = vrot.slane %v6187_v14, 1  ;;  %v6231_v18 = vrot.slane %v6230_v7, 1  ;;  %v5564_v45 = vadd.f32 %v5563_v33, %v5562_v37  ;;  %v5478_v29 = vadd.f32 %v5477_v17, %v5476_v38  ;;  %v11243_v17 = vld [vmem:[#allocation62_spill] sm:$0xff] }
0x15ce   :  { %v6271_v27 = vadd.f32 %v6270_v19, %v6269_v53  ;;  %v5607_v9 = vadd.f32 %v5606_v52, %v5605_v56  ;;  %v5735_v35 = vrot.slane %v5734_v4, 1  ;;  %v5776_v13 = vrot.slane %v5775_v63, 2  ;;  %v11242_v56 = vld [vmem:[#allocation61_spill] sm:$0xff] }
0x15cf   :  { %v6283_v12 = vsel %vm1732_vm7, %v10883_v43, %v10890_v42  ;;  %v6103_v49 = vadd.f32 %v6102_v30, %v10919_v20  ;;  %v5650_v15 = vadd.f32 %v5649_v3, %v5648_v57  ;;  %v6146_v16 = vadd.f32 %v6145_v50, %v6144_v31  ;;  %v7211_v42 = vld [vmem:[%s11168_s9 + $0x3] ss:$0 sm:$0xff]  ;;  %v6474_v3 = vld [vmem:[#allocation5] sm:$0x1] }
0x15d0   :  { %v6272_v22 = vrot.slane %v6271_v27, 2  ;;  %v6276_v55 = vsel %vm1732_vm7, %v5478_v29, %v5521_v61  ;;  %v5693_v59 = vadd.f32 %v5692_v28, %v5691_v11  ;;  %v5777_v24 = vadd.f32 %v5776_v13, %v5775_v63  ;;  %v6305_v11 = vpop.permute.xlu1 %6304  ;;  %v6475_v28 = vld [vmem:[#allocation5 + $0x1] sm:$0x1] }
0x15d1   :  { %v6189_v34 = vadd.f32 %v6188_v25, %v6187_v14  ;;  %v6277_v58 = vsel %vm1734_vm8, %v6276_v55, %v5564_v45  ;;  %v5736_v10 = vadd.f32 %v5735_v35, %v5734_v4  ;;  %v6232_v5 = vadd.f32 %v6231_v18, %v6230_v7 }
0x15d2   :  { %v6273_v8 = vadd.f32 %v6272_v22, %v6271_v27  ;;  %v6278_v21 = vsel %vm508_vm2, %v6277_v58, %v5607_v9  ;;  %v5778_v26 = vrot.slane %v5777_v24, 1  ;;  %v6284_v43 = vsel %vm1734_vm8, %v6283_v12, %v10908_v60  ;;  %v6614_v12 = vld [vmem:[#allocation22] sm:$0xff] }
0x15d3   :  { %v6279_v20 = vsel %vm1737_vm9, %v6278_v21, %v5650_v15  ;;  %v6285_v40 = vsel %vm508_vm2, %v6284_v43, %v6103_v49  ;;  %v6298_v31 = vmul.f32 %v7211_v42, %v11241_v44  ;;  %v6299_v39 = vmul.f32 %v7211_v42, %v11242_v56  ;;  %v6610_v15 = vld [vmem:[%s11245_s10] sm:$0xff]  ;;  %v6611_v22 = vld [vmem:[%s11245_s10 + $0x8] sm:$0xff] }
0x15d4   :  { %v6274_v0 = vrot.slane %v6273_v8, 1  ;;  %v5779_v51 = vadd.f32 %v5778_v26, %v5777_v24  ;;  %v6280_v2 = vsel %vm551_vm5, %v6279_v20, %v5693_v59  ;;  %v6286_v37 = vsel %vm1737_vm9, %v6285_v40, %v6146_v16  ;;  %v6612_v16 = vld [vmem:[%s11245_s10 + $0x10] sm:$0xff]  ;;  %v6613_v24 = vld [vmem:[%s11245_s10 + $0x18] sm:$0xff]  ;;  %v11247_v26 = vld [vmem:[#allocation49_spill] sm:$0xff] }
0x15d5   :  { %v6281_v41 = vsel %vm537_vm4, %v6280_v2, %v5736_v10  ;;  %v6287_v36 = vsel %vm551_vm5, %v6286_v37, %v6189_v34  ;;  %v8630_v19 = vmov 0   ;;  %v8631_v61 = vmov 1   ;;  %v7225_v43 = vld [vmem:[%s11246_s7] ss:$0 sm:$0xff]  ;;  %v7226_v42 = vld [vmem:[%s11246_s7 + $0x1] ss:$0 sm:$0xff] }
0x15d6   :  { %v6275_v48 = vadd.f32 %v6274_v0, %v6273_v8  ;;  %v6282_v60 = vsel %vm523_vm3, %v6281_v41, %v5779_v51  ;;  %v6288_v38 = vsel %vm537_vm4, %v6287_v36, %v6232_v5  ;;  %7839 = vset.pattern.permute.xlu1 %v8630_v19  ;;  %7840 = vset.pattern.permute.xlu0 %v8630_v19  ;;  %v8632_v49 = vmov 0.0   ;;  %v11248_v41 = vld [vmem:[#allocation53_spill] sm:$0xff] }
0x15d7   :  { %v6300_v57 = vadd.f32 %v6298_v31, %v6282_v60  ;;  %7565 = vmatprep.subr.mxu1 %v8632_v49  ;;  %7567 = vmatprep.mubr.msk.f32.mxu1 %vm8633_vm10, %v8632_v49  ;;  %v8634_v55 = vmov 0.0|0.0   ;;  %v7764_v59 = vpack.c.bf16 %v6611_v22, %v6610_v15  ;;  %v7767_v34 = vpack.c.bf16 %v6613_v24, %v6612_v16 }
0x15d8   :  { %v6289_v62 = vsel %vm523_vm3, %v6288_v38, %v6275_v48  ;;  %7566 = vmatpush3.msra.mxu1 %v6614_v12  ;;  %7763 = vmatprep.subr.bf16.mxu0 %v8634_v55  ;;  %v8635_v58 = vmov 1966171168   ;;  %v7227_v38 = vld [vmem:[#allocation20] ss:$0 sm:$0xff] }
0x15d9   :  { %v6301_v47 = vadd.f32 %v6299_v39, %v6289_v62  ;;  %v6308_v23 = vmul.f32 %v6303_v32, %v6300_v57  ;;  %7769 = vmatprep.subr.bf16.mxu1 %v8634_v55  ;;  %v6501_v10 = vunpack.c.l.s4 %v8635_v58 }
0x15db   :  { %v6309_v46 = vmul.f32 %v6305_v11, %v6301_v47  ;;  %7562 = vmatprep.mubr.msk.f32.mxu0 %vm624_vm6, %v6308_v23  ;;  %v6502_v8 = vunpack.c.0.s8 %v6501_v10 }
0x15dd   :  { %7563 = vmatmul.mubr.msk.f32.vlgmr.msra.gmra.mrb[10].mxu0 %vm624_vm6, %v6309_v46  ;;  %v11012_v5 = vsub.s32 %v6502_v8, %v11247_v26 }
0x15de   :  { %7578 = vmatprep.mubr.msk.f32.mxu0 %vm8633_vm10, %v8632_v49  ;;  %7765 = vmatpush3.bf16.msra.mxu0 %v7764_v59 }
0x15df   :  { %7766 = vmatprep.subr.bf16.mxu0 %v8634_v55  ;;  %v6506_v0 = vrot.slane %v7225_v43, %v11012_v5  ;;  %v6554_v2 = vrot.slane %v7226_v42, %v11012_v5  ;;  %v6588_v11 = vrot.slane %v7227_v38, %v11012_v5 }
0x15e1   :  { %v6514_v37 = vrot.slane %v6506_v0, %v11012_v5  ;;  %v6562_v44 = vrot.slane %v6554_v2, %v11012_v5  ;;  %v6555_v39 = vcombine.high %v6554_v2, %v6554_v2  ;;  %v6507_v57 = vcombine.high %v6506_v0, %v6506_v0 }
0x15e2   :  { %7768 = vmatpush3.bf16.msra.mxu0 %v7767_v34 }
0x15e3   :  { %7775 = vmatprep.subr.bf16.mxu0 %v8634_v55  ;;  %v6569_v46 = vrot.slane %v6555_v39, %v11012_v5 }
0x16b0   :  { %v7564_v14 = vpop.f32.mrb[10].mxu0 }
0x16b1   :  { %v6405_v7 = vadd.f32 %v7564_v14, %v7220_v1  ;;  %v6399_v33 = vpop.f32.mrb[11].mxu0  ;;  %v6596_v14 = vrot.slane %v6588_v11, %v11012_v5 }
0x16b2   :  { %v6400_v53 = vadd.f32 %v7220_v1, %v6399_v33  ;;  %v6521_v33 = vrot.slane %v6507_v57, %v11012_v5 }
0x16b3   :  { %v6409_v52 = vadd.f32 %v6405_v7, %v11243_v17 }
0x16b4   :  { %v6408_v6 = vadd.f32 %v6400_v53, %v11244_v54  ;;  %v6589_v53 = vcombine.high %v6588_v11, %v6588_v11  ;;  %v6817_v11 = vld [vmem:[#allocation23 + $0x8] sm:$0xff] }
0x16b5   :  { %v6417_v30 = vsel %vm409_vm1, %v6409_v52, 0.0 }
0x16b6   :  { %6418 = vadd.xlane.f32.xlu1 %v6417_v30  ;;  %v6414_v50 = vsel %vm409_vm1, %v6408_v6, 0.0  ;;  %v7223_v30 = vld [vmem:[#allocation17 + $0x3] ss:$0 sm:$0xff] }
0x16b7   :  { %6415 = vadd.xlane.f32.xlu0 %v6414_v50 }
0x16c7   :  { %6479 = vperm.xlu1 %7839, %v6474_v3  }
0x16cb   :  { %7841 = vset.pattern.permute.xlu1 %v8631_v61 }
0x16cc   :  { %6528 = vperm.xlu1 %7841, %v6474_v3   ;;  %v6603_v3 = vrot.slane %v6589_v53, %v11012_v5 }
0x16d0   :  { %6536 = vperm.xlu1 %7841, %v6475_v28  }
0x1743   :  { %v6419_v4 = vpop.xlane.xlu1 %6418 }
0x1744   :  { %v6421_v63 = vmul.f32 0.03125, %v6419_v4  ;;  %v6416_v25 = vpop.xlane.xlu0 %6415 }
0x1745   :  { %v6420_v18 = vmul.f32 0.03125, %v6416_v25 }
0x1746   :  { %v10988_v45 = vsub.f32 %v6409_v52, %v6421_v63 }
0x1747   :  { %v10990_v27 = vsub.f32 %v6408_v6, %v6420_v18  ;;  %v6480_v21 = vpop.permute.xlu1 %6479 }
0x1748   :  { %v6425_v29 = vmul.f32 %v10988_v45, %v10988_v45  ;;  %v6485_v36 = vrot.slane %v6480_v21, %v11248_v41 }
0x1749   :  { %v6424_v35 = vmul.f32 %v10990_v27, %v10990_v27 }
0x174a   :  { %v6429_v9 = vsel %vm409_vm1, %v6425_v29, 0.0  ;;  %v6524_v47 = vmul.f32 %v6514_v37, %v6485_v36 }
0x174b   :  { %6430 = vadd.xlane.f32.xlu0 %v6429_v9  ;;  %v6426_v13 = vsel %vm409_vm1, %v6424_v35, 0.0  ;;  %v6529_v40 = vpop.permute.xlu1 %6528 }
0x174c   :  { %v6534_v31 = vrot.slane %v6529_v40, %v11248_v41 }
0x174e   :  { %v6572_v23 = vmul.f32 %v6562_v44, %v6534_v31  ;;  %v7230_v44 = vld [vmem:[%s11249_s11] ss:$0 sm:$0xff] }
0x174f   :  { %6427 = vadd.xlane.f32.xlu0 %v6426_v13  ;;  %v6537_v62 = vpop.permute.xlu1 %6536 }
0x1750   :  { %v6542_v1 = vrot.slane %v6537_v62, %v11248_v41  ;;  %v6574_v7 = vadd.f32 %v6572_v23, %v6524_v47  ;;  %v6818_v23 = vld [vmem:[#allocation23 + $0x10] sm:$0xff] }
0x1752   :  { %v6573_v52 = vmul.f32 %v6569_v46, %v6542_v1  ;;  %v6606_v50 = vadd.f32 %v6596_v14, %v6574_v7  ;;  %v6819_v1 = vld [vmem:[#allocation23 + $0x18] sm:$0xff] }
0x1753   :  { %v7773_v14 = vpack.c.bf16 %v6819_v1, %v6818_v23 }
0x1754   :  { %v6608_v18 = vmax.f32 %v6606_v50, 0.0 }
0x1765   :  { %6488 = vperm.xlu0 %7840, %v6475_v28   ;;  %v7224_v28 = vld [vmem:[#allocation19 + $0x3] ss:$0 sm:$0xff] }
0x1769   :  { %7842 = vset.pattern.permute.xlu0 %v8631_v61 }
0x17d8   :  { %v6431_v20 = vpop.xlane.xlu0 %6430 }
0x17d9   :  { %v6433_v51 = vmul.f32 0.03125, %v6431_v20 }
0x17db   :  { %v6435_v48 = vadd.f32 1e-05, %v6433_v51 }
0x17dc   :  { %v6428_v60 = vpop.xlane.xlu0 %6427 }
0x17dd   :  { %8223 = vrsqrt.f32 %v6435_v48  ;;  %v6432_v56 = vmul.f32 0.03125, %v6428_v60 }
0x17df   :  { %v6434_v32 = vadd.f32 1e-05, %v6432_v56 }
0x17e1   :  { %8225 = vrsqrt.f32 %v6434_v32 }
0x17e4   :  { %v6489_v17 = vpop.permute.xlu0 %6488 }
0x17e5   :  { %v6494_v54 = vrot.slane %v6489_v17, %v11248_v41 }
0x17e7   :  { %v8224_v6 = vpop.eup %8223  ;;  %v6525_v19 = vmul.f32 %v6521_v33, %v6494_v54 }
0x17e8   :  { %v6439_v61 = vmul.f32 %v8224_v6, %v10988_v45  ;;  %v7232_v6 = vld [vmem:[%s11251_s25] ss:$0 sm:$0xff] }
0x17e9   :  { %v6575_v4 = vadd.f32 %v6573_v52, %v6525_v19  ;;  %v7231_v52 = vld [vmem:[%s11250_s17] ss:$0 sm:$0xff] }
0x17ea   :  { %v6447_v63 = vmul.f32 %v7223_v30, %v6439_v61  ;;  %v7233_v19 = vld [vmem:[%s11252_s12] ss:$0 sm:$0xff] }
0x17eb   :  { %v8226_v25 = vpop.eup %8225  ;;  %v6607_v29 = vadd.f32 %v6603_v3, %v6575_v4 }
0x17ec   :  { %v6455_v9 = vadd.f32 %v7224_v28, %v6447_v63  ;;  %v6438_v35 = vmul.f32 %v8226_v25, %v10990_v27 }
0x17ed   :  { %v6609_v13 = vmax.f32 %v6607_v29, 0.0 }
0x17ee   :  { %v6446_v12 = vmul.f32 %v7223_v30, %v6438_v35  ;;  %v6465_v15 = vsel %vm409_vm1, %v6455_v9, 0.0 }
0x17ef   :  { %v6617_v22 = vcombine.low %v6608_v18, %v6609_v13  ;;  %v6466_v16 = vrot.slane %v6465_v15, 4  ;;  %v6930_v13 = vld [vmem:[%s8780_s21] sm:$0xff] }
0x17f0   :  { %v6454_v59 = vadd.f32 %v7224_v28, %v6446_v12  ;;  %v6931_v12 = vld [vmem:[%s8780_s21 + $0x8] sm:$0xff] }
0x17f1   :  { %v6624_v24 = vrot.slane %v6617_v22, %v11012_v5  ;;  %v6467_v34 = vadd.f32 %v6466_v16, %v6465_v15  ;;  %v6932_v15 = vld [vmem:[%s8780_s21 + $0x10] sm:$0xff]  ;;  %v7776_v22 = vpack.c.bf16 %v6931_v12, %v6930_v13  ;;  %v6933_v16 = vld [vmem:[%s8780_s21 + $0x18] sm:$0xff]  ;;  %s8636_s21 = smov [#allocation25]  }
0x17f2   :  { %v6456_v45 = vsel %vm409_vm1, %v6454_v59, 0.0  ;;  %v7779_v59 = vpack.c.bf16 %v6933_v16, %v6932_v15  ;;  %s7053_s0 = sshll.u32 %s8636_s21, 4  ;;  %s7054_s0 = int_to_ptr.vmem [resolvable:$true] %s7053_s0 }
0x17f3   :  { %v6631_v58 = vrot.slane %v6624_v24, %v11012_v5  ;;  %v6457_v10 = vrot.slane %v6456_v45, 4  ;;  %v6468_v8 = vrot.slane %v6467_v34, 2  ;;  %p8544_p1 = scmp.lt.s32.totalorder %s7054_s0, %s7054_s0 }
0x17f5   :  { %7568 = vmatmul.mubr.msk.f32.vlgmr.msra.gmra.mrb[14].mxu1 %vm316_vm0, %v6631_v58  ;;  %v6458_v21 = vadd.f32 %v6457_v10, %v6456_v45  ;;  %v6469_v27 = vadd.f32 %v6468_v8, %v6467_v34  ;;  %v7235_v10 = vld [vmem:[%s11253_s3] ss:$0 sm:$0xff] }
0x17f6   :  { %7589 = vmatprep.mubr.msk.f32.mxu1 %vm8633_vm10, %v8632_v49 }
0x17f7   :  { %v6459_v26 = vrot.slane %v6458_v21, 2  ;;  %v6470_v43 = vrot.slane %v6469_v27, 1 }
0x17f9   :  { %v6460_v42 = vadd.f32 %v6459_v26, %v6458_v21  ;;  %v6471_v0 = vadd.f32 %v6470_v43, %v6469_v27  ;;  %v7236_v21 = vld [vmem:[%s8775_s24] ss:$0 sm:$0xff]  ;;  %s8539_s24 = scalar_lea.vmem %s7054_s0, 32 }
0x17fa   :  { %p8540_p0 = scmp.ne.s32.totalorder %s7054_s0, %s8539_s24  ;;  %p8545_p2 = scmp.lt.s32.totalorder %s8539_s24, %s8539_s24 }
0x17fb   :  { %v6461_v20 = vrot.slane %v6460_v42, 1  ;;  %v6472_v2 = vmul.f32 0.125, %v6471_v0 }
0x17fc   :  { %p8546_p3 = por %p8545_p2, %p8544_p1 }
0x17fd   :  { %v6462_v40 = vadd.f32 %v6461_v20, %v6460_v42  ;;  %v7237_v42 = vld [vmem:[%s8785_s27] ss:$0 sm:$0xff]  ;;  %v11254_v20 = vlaneseq }
0x17fe   :  { %p8547_p4 = pnand %p8546_p3, %p8540_p0 }
0x17ff   :  { %v6464_v51 = vmul.f32 0.125, %v6462_v40  ;;  %v7015_v0 = vand.u32 127, %v11254_v20 }
0x1801   :  { %v6473_v37 = vsel %vm1732_vm7, %v6464_v51, %v6472_v2  ;;  %vm7016_vm12 = vcmp.lt.s32.totalorder %v7015_v0, 1 }
0x1802   :  { %7579 = vmatmul.mubr.msk.f32.vlgmr.msra.gmra.mrb[12].mxu0 %vm409_vm1, %v6473_v37 }
0x1803   :  { %7600 = vmatprep.mubr.msk.f32.mxu0 %vm8633_vm10, %v8632_v49  ;;  %v6816_v49 = vld [vmem:[#allocation23] sm:$0xff]  ;;  %7777 = vmatpush3.bf16.msra.mxu0 %v7776_v22 }
0x1804   :  { %v7770_v46 = vpack.c.bf16 %v6817_v11, %v6816_v49  ;;  %7778 = vmatprep.subr.bf16.mxu0 %v8634_v55 }
0x1806   :  { %7771 = vmatpush3.bf16.msra.mxu1 %v7770_v46 }
0x1807   :  { %7772 = vmatprep.subr.bf16.mxu1 %v8634_v55  ;;  %7780 = vmatpush3.bf16.msra.mxu0 %v7779_v59 }
0x180a   :  { %7774 = vmatpush3.bf16.msra.mxu1 %v7773_v14 }
0x18c8   :  { %v6700_v48 = vpop.f32.mrb[14].mxu1 }
0x18c9   :  { %v7569_v41 = vpop.f32.mrb[15].mxu1 }
0x18d5   :  { %v6773_v36 = vpop.f32.mrb[12].mxu0 }
0x18d6   :  { %v6774_v31 = vadd.f32 %v6773_v36, %v6700_v48  ;;  %v7580_v60 = vpop.f32.mrb[13].mxu0 }
0x18d8   :  { %v6784_v38 = vadd.f32 %v7230_v44, %v6774_v31 }
0x18da   :  { %v6788_v56 = vsel %vm6787_vm11, %v6784_v38, 0.0 }
0x18db   :  { %6789 = vadd.xlane.f32.xlu1 %v6788_v56 }
0x1968   :  { %v6790_v39 = vpop.xlane.xlu1 %6789 }
0x1969   :  { %v6791_v62 = vmul.f32 0.03125, %v6790_v39 }
0x196b   :  { %v6792_v57 = vsub.f32 %v6784_v38, %v6791_v62 }
0x196d   :  { %v6793_v32 = vmul.f32 %v6792_v57, %v6792_v57 }
0x196f   :  { %v6794_v47 = vsel %vm6787_vm11, %v6793_v32, 0.0 }
0x1970   :  { %6795 = vadd.xlane.f32.xlu0 %v6794_v47 }
0x19fd   :  { %v6796_v7 = vpop.xlane.xlu0 %6795 }
0x19fe   :  { %v6797_v33 = vmul.f32 0.03125, %v6796_v7 }
0x1a00   :  { %v6798_v53 = vadd.f32 1e-05, %v6797_v33 }
0x1a02   :  { %8227 = vrsqrt.f32 %v6798_v53 }
0x1a0c   :  { %v8228_v17 = vpop.eup %8227 }
0x1a0d   :  { %v6800_v54 = vmul.f32 %v8228_v17, %v6792_v57 }
0x1a0f   :  { %v6807_v30 = vmul.f32 %v7231_v52, %v6800_v54 }
0x1a11   :  { %v6814_v50 = vadd.f32 %v7232_v6, %v6807_v30 }
0x1a13   :  { %v6815_v3 = vmax.f32 %v6814_v50, 0.0 }
0x1a15   :  { %7590 = vmatmul.mubr.msk.f32.vlgmr.msra.gmra.mrb[16].mxu1 %vm409_vm1, %v6815_v3 }
0x1ae8   :  { %v6896_v61 = vpop.f32.mrb[16].mxu1 }
0x1ae9   :  { %v6897_v28 = vadd.f32 %v7233_v19, %v6896_v61  ;;  %v7591_v4 = vpop.f32.mrb[17].mxu1 }
0x1aeb   :  { %v6902_v63 = vsel %vm6787_vm11, %v6897_v28, 0.0 }
0x1aec   :  { %6903 = vadd.xlane.f32.xlu1 %v6902_v63 }
0x1b79   :  { %v6904_v25 = vpop.xlane.xlu1 %6903 }
0x1b7a   :  { %v6905_v18 = vmul.f32 0.03125, %v6904_v25 }
0x1b7c   :  { %v6906_v29 = vsub.f32 %v6897_v28, %v6905_v18 }
0x1b7e   :  { %v6907_v9 = vmul.f32 %v6906_v29, %v6906_v29 }
0x1b80   :  { %v6908_v35 = vsel %vm6787_vm11, %v6907_v9, 0.0 }
0x1b81   :  { %6909 = vadd.xlane.f32.xlu1 %v6908_v35 }
0x1c0e   :  { %v6910_v24 = vpop.xlane.xlu1 %6909 }
0x1c0f   :  { %v6911_v34 = vmul.f32 0.03125, %v6910_v24 }
0x1c11   :  { %v6912_v45 = vadd.f32 1e-05, %v6911_v34 }
0x1c13   :  { %8229 = vrsqrt.f32 %v6912_v45 }
0x1c1d   :  { %v8230_v58 = vpop.eup %8229 }
0x1c1e   :  { %v6914_v8 = vmul.f32 %v8230_v58, %v6906_v29 }
0x1c20   :  { %v6921_v27 = vmul.f32 %v7235_v10, %v6914_v8 }
0x1c22   :  { %v6928_v26 = vadd.f32 %v7236_v21, %v6921_v27 }
0x1c24   :  { %v6929_v43 = vmax.f32 %v6928_v26, 0.0 }
0x1c26   :  { %7601 = vmatmul.mubr.msk.f32.vlgmr.msra.gmra.mrb[14].mxu0 %vm409_vm1, %v6929_v43 }
0x1cf9   :  { %v7010_v40 = vpop.f32.mrb[14].mxu0 }
0x1cfa   :  { %v7011_v51 = vadd.f32 %v7237_v42, %v7010_v40  ;;  %v7602_v55 = vpop.f32.mrb[15].mxu0 }
0x1cfc   :  { %v7239_v2 = vclamps-f32 %v7011_v51, 2.0 }
0x1cfe   :  { %v7019_v37 = vsel %vm7016_vm12, %v7011_v51, %v7239_v2 }
0x1cff   :  { %v7027_v48 = vrot.slane %v7019_v37, %v11012_v5 }
0x1d01   :  { %v7028_v41 = vcombine.high %v7027_v48, %v7027_v48  ;;  %v7035_v36 = vrot.slane %v7027_v48, %v11012_v5 }
0x1d03   :  { %v7042_v44 = vrot.slane %v7028_v41, %v11012_v5  ;;  %7046 = vst.msk [vmem:[#allocation25] sm:$0x1] %vm7045_vm13, %v7035_v36 }
0x1d05   :  { %7047 = vst.msk [vmem:[#allocation25 + $0x1] sm:$0x1] %vm7045_vm13, %v7042_v44 }
0x1d06   :  { %8550 = shalt.err (!%p8547_p4)
}
0x1d07   :  { %s8551_s27 = scalar_lea.hbm %s8790_s30, 32 }
0x1d08   :  { %p8552_p5 = scmp.ne.s32.totalorder %s8790_s30, %s8551_s27  ;;  %p8555_p6 = scmp.lt.u32.totalorder %s8551_s27, %s8790_s30 }
0x1d0a   :  { %p8557_p7 = pnand %p8555_p6, %p8552_p5 }
0x1d0c   :  { %8560 = shalt.err (!%p8557_p7)
}
0x1d0d   :  { %7059 = dma.vmem_to_hbm [thread:$0]  %s7054_s0, 32, %s8790_s30, [#allocation4], %s8609_s15, %s8609_s15, %s8610_s16  }
0x1d0e   :  { %8577 = dma.done.wait [#allocation4], 32  }
0x1d0f   :  { %8578 = vsyncadd [#allocation4], 4294967264 }
0x1d10   :  { %7063 = vsyncpa [#allocation3], 1 }
0x1d11   :  { %7064 = vsyncpa [#allocation6], 1 }
0x1d12   :  { %7065 = vsyncpa [#allocation9], 1 }
0x1d13   :  { %7066 = vsyncpa [#allocation12], 1 }
0x1d14   :  { %7067 = vsyncpa [#allocation15], 1 }
0x1d15   :  { %7068 = vsyncpa [#allocation18], 1 }
0x1d16   :  { %7069 = vsyncpa [#allocation21], 1 }
0x1d17   :  { %7070 = vsyncpa [#allocation24], 1 }
0x1d18   :  { %7071 = vsyncpa [#allocation4], 1 }

</bundles_post_ra>
